<compile_context>
chip_gen: v5e
topology: v5e:2x2
jax: 0.10.0
libtpu: 0.0.40
codegen_flags: <defaults>
</compile_context>

<pallas_src>
import functools

import jax
import jax.numpy as jnp
from jax.experimental import pallas as pl
from jax.experimental.pallas import tpu as pltpu

LANE = 128
_TAPS = tuple((dy, dx) for dy in range(3) for dx in range(3))


def _round_up(x, m):
    return (x + m - 1) // m * m


# ---------------------------------------------------------------------------
# Fused kernel: conv1+bn1+relu -> conv2+bn2+relu -> + identity, one image per grid step.
# ---------------------------------------------------------------------------
def _resblock_kernel(x_ref, w1_ref, b1_ref, w2_ref, b2_ref, o_ref,
                     xpad_ref, y1pad_ref, col_ref, *, H, W, Cp):
    HW = H * W
    bf16 = jnp.bfloat16

    # ---- zero only the 1-pixel halo border of the two padded scratches (interior is fully
    #      rewritten each step; corners are touched twice, which is harmless) ----
    zrow = jnp.zeros((1, W + 2, Cp), bf16)
    zcol = jnp.zeros((H + 2, 1, Cp), bf16)
    for ref in (xpad_ref, y1pad_ref):
        ref[0:1, :, :] = zrow
        ref[H + 1:H + 2, :, :] = zrow
        ref[:, 0:1, :] = zcol
        ref[:, W + 1:W + 2, :] = zcol

    # ---- stage the input once: single f32 -> bf16 cast into the haloed scratch ----
    xpad_ref[1:H + 1, 1:W + 1, :] = x_ref[0].astype(bf16)

    # ---- conv1 (3x3, pad=1, stride=1): im2col slab then ONE big-K matmul; BN1 folded in w1 ----
    for t, (dy, dx) in enumerate(_TAPS):
        col_ref[:, t * Cp:(t + 1) * Cp] = xpad_ref[dy:dy + H, dx:dx + W, :].reshape(HW, Cp)
    y1 = jnp.maximum(
        jnp.dot(col_ref[...], w1_ref[...], preferred_element_type=jnp.float32) + b1_ref[...],
        0.0)

    # Stage y1 (bf16, MXU-ready) inside its own zero halo; y1 never touches HBM.
    y1pad_ref[1:H + 1, 1:W + 1, :] = y1.reshape(H, W, Cp).astype(bf16)

    # ---- conv2 (3x3, pad=1) + BN2 + ReLU, then identity shortcut ----
    for t, (dy, dx) in enumerate(_TAPS):
        col_ref[:, t * Cp:(t + 1) * Cp] = y1pad_ref[dy:dy + H, dx:dx + W, :].reshape(HW, Cp)
    y2 = jnp.maximum(
        jnp.dot(col_ref[...], w2_ref[...], preferred_element_type=jnp.float32) + b2_ref[...],
        0.0)

    # Residual is the original (unpadded) f32 input: out = relu(bn2(conv2(y1))) + x
    res = x_ref[0].reshape(HW, Cp)
    o_ref[...] = (y2 + res).reshape(1, H, W, Cp).astype(o_ref.dtype)


# ---------------------------------------------------------------------------
# Host-side glue: layout conversion + BN folding (no hot-path compute).
# ---------------------------------------------------------------------------
def _fold_bn(gamma, beta, mean, var, eps=1e-5):
    scale = gamma / jnp.sqrt(var + eps)
    bias = beta - mean * scale
    return scale, bias


def _prep_conv_bn(w_oihw, gamma, beta, mean, var, cp, eps=1e-5):
    """PyTorch (O,I,3,3) weight + BN params -> (9*Cp, Cp) bf16 folded weight, (1, Cp) f32 bias."""
    o, i, _, _ = w_oihw.shape
    scale, bias = _fold_bn(gamma, beta, mean, var, eps)
    w = w_oihw.astype(jnp.float32) * scale[:, None, None, None]   # fold BN scale into out-channels
    w = jnp.transpose(w, (2, 3, 1, 0))                             # (3,3,I,O)
    w = jnp.pad(w, ((0, 0), (0, 0), (0, cp - i), (0, cp - o)))     # (3,3,Cp,Cp)
    w = w.reshape(9 * cp, cp).astype(jnp.bfloat16)                 # K = 9*Cp stacked in tap order
    b = jnp.pad(bias, (0, cp - o)).reshape(1, cp).astype(jnp.float32)
    return w, b


def resblock_forward(x_nchw, params, eps=1e-5):
    """Forward pass of ResBlock (stride=1, identity shortcut). Input/output are NCHW f32."""
    N, C, H, W = x_nchw.shape
    Cout = params["w1"].shape[0]
    assert Cout == C, "identity shortcut requires in_planes == out_planes (stride=1)"
    Cp = _round_up(C, LANE)
    HW = H * W

    # NCHW -> NHWC + channel padding only; the spatial 1-pixel halo is built in VMEM in-kernel.
    x = jnp.transpose(x_nchw, (0, 2, 3, 1)).astype(jnp.float32)
    x = jnp.pad(x, ((0, 0), (0, 0), (0, 0), (0, Cp - C)))

    w1, b1 = _prep_conv_bn(params["w1"], params["g1"], params["b1"], params["m1"], params["v1"], Cp, eps)
    w2, b2 = _prep_conv_bn(params["w2"], params["g2"], params["b2"], params["m2"], params["v2"], Cp, eps)

    kernel = functools.partial(_resblock_kernel, H=H, W=W, Cp=Cp)

    flops = int(2 * 2 * N * HW * (9 * Cp) * Cp)                       # two 3x3 convs
    bytes_accessed = int(2 * N * HW * Cp * 4 + (w1.size + w2.size) * 2 + (b1.size + b2.size) * 4)

    out = pl.pallas_call(
        kernel,
        out_shape=jax.ShapeDtypeStruct((N, H, W, Cp), jnp.float32),
        grid_spec=pltpu.PrefetchScalarGridSpec(
            num_scalar_prefetch=0,
            grid=(N,),
            in_specs=[
                pl.BlockSpec((1, H, W, Cp), lambda n: (n, 0, 0, 0)),   # unpadded activation tile
                pl.BlockSpec((9 * Cp, Cp), lambda n: (0, 0)),          # folded conv1 weight (bf16)
                pl.BlockSpec((1, Cp), lambda n: (0, 0)),               # folded bn1 bias
                pl.BlockSpec((9 * Cp, Cp), lambda n: (0, 0)),          # folded conv2 weight (bf16)
                pl.BlockSpec((1, Cp), lambda n: (0, 0)),               # folded bn2 bias
            ],
            out_specs=pl.BlockSpec((1, H, W, Cp), lambda n: (n, 0, 0, 0)),
            scratch_shapes=[
                pltpu.VMEM((H + 2, W + 2, Cp), jnp.bfloat16),          # x + zero halo (cast once)
                pltpu.VMEM((H + 2, W + 2, Cp), jnp.bfloat16),          # y1 + zero halo
                pltpu.VMEM((HW, 9 * Cp), jnp.bfloat16),                # im2col slab (reused by both convs)
            ]),
        compiler_params=pltpu.CompilerParams(
            dimension_semantics=("parallel",)),                        # batch across TCs (v7x)
        cost_estimate=pl.CostEstimate(flops=flops, transcendentals=0,
                                      bytes_accessed=bytes_accessed),
    )(x, w1, b1, w2, b2)

    return jnp.transpose(out[..., :C], (0, 3, 1, 2))  # drop channel padding, NHWC -> NCHW


# ---------------------------------------------------------------------------
# Pure-JAX reference (for correctness check)
# ---------------------------------------------------------------------------
def _reference(x, p, eps=1e-5):
    def conv(x, w):
        return jax.lax.conv_general_dilated(
            x, w, window_strides=(1, 1), padding=((1, 1), (1, 1)),
            dimension_numbers=("NCHW", "OIHW", "NCHW"))

    def bn(x, g, b, m, v):
        inv = (g / jnp.sqrt(v + eps))[None, :, None, None]
        return (x - m[None, :, None, None]) * inv + b[None, :, None, None]

    out = jax.nn.relu(bn(conv(x, p["w1"]), p["g1"], p["b1"], p["m1"], p["v1"]))
    out = jax.nn.relu(bn(conv(out, p["w2"]), p["g2"], p["b2"], p["m2"], p["v2"]))
    return out + x


# ---------------------------------------------------------------------------
if __name__ == "__main__":
    key = jax.random.PRNGKey(0)
    N, C, H, W = 2, 4, 16, 16
    ks = jax.random.split(key, 10)

    x = jax.random.normal(ks[0], (N, C, H, W), jnp.float32)
    params = {
        "w1": 0.1 * jax.random.normal(ks[1], (C, C, 3, 3), jnp.float32),
        "w2": 0.1 * jax.random.normal(ks[2], (C, C, 3, 3), jnp.float32),
        "g1": 1.0 + 0.1 * jax.random.normal(ks[3], (C,), jnp.float32),
        "b1": 0.1 * jax.random.normal(ks[4], (C,), jnp.float32),
        "m1": 0.1 * jax.random.normal(ks[5], (C,), jnp.float32),
        "v1": 1.0 + 0.1 * jnp.abs(jax.random.normal(ks[6], (C,), jnp.float32)),
        "g2": 1.0 + 0.1 * jax.random.normal(ks[7], (C,), jnp.float32),
        "b2": 0.1 * jax.random.normal(ks[8], (C,), jnp.float32),
        "m2": 0.1 * jax.random.normal(ks[9], (C,), jnp.float32),
        "v2": 1.0 + 0.1 * jnp.abs(jax.random.normal(ks[6], (C,), jnp.float32)),
    }

    fwd = jax.jit(resblock_forward)
    out = jax.block_until_ready(fwd(x, params))
    ref = jax.block_until_ready(_reference(x, params))

    assert out.shape == (N, C, H, W), out.shape
    # bf16 MXU operands vs f32 reference -> tolerance sized for two chained bf16 matmuls.
    if not jnp.allclose(out, ref, atol=4e-2, rtol=4e-2):
        err = float(jnp.max(jnp.abs(out - ref)))
        raise AssertionError(f"Pallas ResBlock output mismatch vs JAX reference (max |diff|={err:.4f})")
    print("KERNEL_OK")
</pallas_src>

<mosaic_0001>
module attributes {stable_mosaic.version = 11 : i64} {
  func.func @_resblock_kernel(%arg0: i32, %arg1: memref<1x16x16x128xf32, #tpu.memory_space<vmem>>, %arg2: memref<1152x128xbf16, #tpu.memory_space<vmem>>, %arg3: memref<1x128xf32, #tpu.memory_space<vmem>>, %arg4: memref<1152x128xbf16, #tpu.memory_space<vmem>>, %arg5: memref<1x128xf32, #tpu.memory_space<vmem>>, %arg6: memref<1x16x16x128xf32, #tpu.memory_space<vmem>>, %arg7: memref<18x18x128xbf16, #tpu.memory_space<vmem>>, %arg8: memref<18x18x128xbf16, #tpu.memory_space<vmem>>, %arg9: memref<256x1152xbf16, #tpu.memory_space<vmem>>) attributes {dimension_semantics = [#tpu.dimension_semantics<parallel>], iteration_bounds = array<i64: 2>, scalar_prefetch = 0 : i64, scratch_operands = 3 : i64, tpu.core_type = #tpu.core_type<tc>, window_params = [{transform_indices = @transform_0, window_bounds = array<i64: 1, 16, 16, 128>}, {pipeline_mode = #tpu.pipeline_mode<synchronous>, transform_indices = @transform_1, window_bounds = array<i64: 1152, 128>}, {pipeline_mode = #tpu.pipeline_mode<synchronous>, transform_indices = @transform_2, window_bounds = array<i64: 1, 128>}, {pipeline_mode = #tpu.pipeline_mode<synchronous>, transform_indices = @transform_3, window_bounds = array<i64: 1152, 128>}, {pipeline_mode = #tpu.pipeline_mode<synchronous>, transform_indices = @transform_4, window_bounds = array<i64: 1, 128>}, {transform_indices = @transform_5, window_bounds = array<i64: 1, 16, 16, 128>}]} {
    %cst = arith.constant 0.000000e+00 : bf16
    %0 = vector.broadcast %cst : bf16 to vector<1x18x128xbf16>
    %cst_0 = arith.constant 0.000000e+00 : bf16
    %1 = vector.broadcast %cst_0 : bf16 to vector<18x1x128xbf16>
    %c0 = arith.constant 0 : index
    %c0_1 = arith.constant 0 : index
    %c0_2 = arith.constant 0 : index
    %2 = vector.load %arg7[%c0, %c0_1, %c0_2] : memref<18x18x128xbf16, #tpu.memory_space<vmem>>, vector<1x18x128xbf16>
    tpu.vector_store %arg7[%c0, %c0_1, %c0_2], %0 {strides = array<i32>} : memref<18x18x128xbf16, #tpu.memory_space<vmem>>, vector<1x18x128xbf16>,
    %c17 = arith.constant 17 : index
    %c0_3 = arith.constant 0 : index
    %c0_4 = arith.constant 0 : index
    %3 = vector.load %arg7[%c17, %c0_3, %c0_4] : memref<18x18x128xbf16, #tpu.memory_space<vmem>>, vector<1x18x128xbf16>
    tpu.vector_store %arg7[%c17, %c0_3, %c0_4], %0 {strides = array<i32>} : memref<18x18x128xbf16, #tpu.memory_space<vmem>>, vector<1x18x128xbf16>,
    %c0_5 = arith.constant 0 : index
    %c0_6 = arith.constant 0 : index
    %c0_7 = arith.constant 0 : index
    %4 = vector.load %arg7[%c0_5, %c0_6, %c0_7] : memref<18x18x128xbf16, #tpu.memory_space<vmem>>, vector<18x1x128xbf16>
    tpu.vector_store %arg7[%c0_5, %c0_6, %c0_7], %1 {strides = array<i32>} : memref<18x18x128xbf16, #tpu.memory_space<vmem>>, vector<18x1x128xbf16>,
    %c0_8 = arith.constant 0 : index
    %c17_9 = arith.constant 17 : index
    %c0_10 = arith.constant 0 : index
    %5 = vector.load %arg7[%c0_8, %c17_9, %c0_10] : memref<18x18x128xbf16, #tpu.memory_space<vmem>>, vector<18x1x128xbf16>
    tpu.vector_store %arg7[%c0_8, %c17_9, %c0_10], %1 {strides = array<i32>} : memref<18x18x128xbf16, #tpu.memory_space<vmem>>, vector<18x1x128xbf16>,
    %c0_11 = arith.constant 0 : index
    %c0_12 = arith.constant 0 : index
    %c0_13 = arith.constant 0 : index
    %6 = vector.load %arg8[%c0_11, %c0_12, %c0_13] : memref<18x18x128xbf16, #tpu.memory_space<vmem>>, vector<1x18x128xbf16>
    tpu.vector_store %arg8[%c0_11, %c0_12, %c0_13], %0 {strides = array<i32>} : memref<18x18x128xbf16, #tpu.memory_space<vmem>>, vector<1x18x128xbf16>,
    %c17_14 = arith.constant 17 : index
    %c0_15 = arith.constant 0 : index
    %c0_16 = arith.constant 0 : index
    %7 = vector.load %arg8[%c17_14, %c0_15, %c0_16] : memref<18x18x128xbf16, #tpu.memory_space<vmem>>, vector<1x18x128xbf16>
    tpu.vector_store %arg8[%c17_14, %c0_15, %c0_16], %0 {strides = array<i32>} : memref<18x18x128xbf16, #tpu.memory_space<vmem>>, vector<1x18x128xbf16>,
    %c0_17 = arith.constant 0 : index
    %c0_18 = arith.constant 0 : index
    %c0_19 = arith.constant 0 : index
    %8 = vector.load %arg8[%c0_17, %c0_18, %c0_19] : memref<18x18x128xbf16, #tpu.memory_space<vmem>>, vector<18x1x128xbf16>
    tpu.vector_store %arg8[%c0_17, %c0_18, %c0_19], %1 {strides = array<i32>} : memref<18x18x128xbf16, #tpu.memory_space<vmem>>, vector<18x1x128xbf16>,
    %c0_20 = arith.constant 0 : index
    %c17_21 = arith.constant 17 : index
    %c0_22 = arith.constant 0 : index
    %9 = vector.load %arg8[%c0_20, %c17_21, %c0_22] : memref<18x18x128xbf16, #tpu.memory_space<vmem>>, vector<18x1x128xbf16>
    tpu.vector_store %arg8[%c0_20, %c17_21, %c0_22], %1 {strides = array<i32>} : memref<18x18x128xbf16, #tpu.memory_space<vmem>>, vector<18x1x128xbf16>,
    %c0_23 = arith.constant 0 : index
    %c0_24 = arith.constant 0 : index
    %c0_25 = arith.constant 0 : index
    %c0_26 = arith.constant 0 : index
    %10 = vector.load %arg1[%c0_23, %c0_24, %c0_25, %c0_26] : memref<1x16x16x128xf32, #tpu.memory_space<vmem>>, vector<1x16x16x128xf32>
    %11 = vector.shape_cast %10 : vector<1x16x16x128xf32> to vector<16x16x128xf32>
    %12 = arith.truncf %11 : vector<16x16x128xf32> to vector<16x16x128xbf16>
    %c1 = arith.constant 1 : index
    %c1_27 = arith.constant 1 : index
    %c0_28 = arith.constant 0 : index
    %13 = vector.load %arg7[%c1, %c1_27, %c0_28] : memref<18x18x128xbf16, #tpu.memory_space<vmem>>, vector<16x16x128xbf16>
    tpu.vector_store %arg7[%c1, %c1_27, %c0_28], %12 {strides = array<i32>} : memref<18x18x128xbf16, #tpu.memory_space<vmem>>, vector<16x16x128xbf16>,
    %c0_29 = arith.constant 0 : index
    %c0_30 = arith.constant 0 : index
    %c0_31 = arith.constant 0 : index
    %14 = vector.load %arg7[%c0_29, %c0_30, %c0_31] : memref<18x18x128xbf16, #tpu.memory_space<vmem>>, vector<16x16x128xbf16>
    %15 = vector.shape_cast %14 : vector<16x16x128xbf16> to vector<256x128xbf16>
    %c0_32 = arith.constant 0 : index
    %c0_33 = arith.constant 0 : index
    %16 = vector.load %arg9[%c0_32, %c0_33] : memref<256x1152xbf16, #tpu.memory_space<vmem>>, vector<256x128xbf16>
    tpu.vector_store %arg9[%c0_32, %c0_33], %15 {strides = array<i32>} : memref<256x1152xbf16, #tpu.memory_space<vmem>>, vector<256x128xbf16>,
    %c0_34 = arith.constant 0 : index
    %c1_35 = arith.constant 1 : index
    %c0_36 = arith.constant 0 : index
    %17 = vector.load %arg7[%c0_34, %c1_35, %c0_36] : memref<18x18x128xbf16, #tpu.memory_space<vmem>>, vector<16x16x128xbf16>
    %18 = vector.shape_cast %17 : vector<16x16x128xbf16> to vector<256x128xbf16>
    %c0_37 = arith.constant 0 : index
    %c128 = arith.constant 128 : index
    %19 = vector.load %arg9[%c0_37, %c128] : memref<256x1152xbf16, #tpu.memory_space<vmem>>, vector<256x128xbf16>
    tpu.vector_store %arg9[%c0_37, %c128], %18 {strides = array<i32>} : memref<256x1152xbf16, #tpu.memory_space<vmem>>, vector<256x128xbf16>,
    %c0_38 = arith.constant 0 : index
    %c2 = arith.constant 2 : index
    %c0_39 = arith.constant 0 : index
    %20 = vector.load %arg7[%c0_38, %c2, %c0_39] : memref<18x18x128xbf16, #tpu.memory_space<vmem>>, vector<16x16x128xbf16>
    %21 = vector.shape_cast %20 : vector<16x16x128xbf16> to vector<256x128xbf16>
    %c0_40 = arith.constant 0 : index
    %c256 = arith.constant 256 : index
    %22 = vector.load %arg9[%c0_40, %c256] : memref<256x1152xbf16, #tpu.memory_space<vmem>>, vector<256x128xbf16>
    tpu.vector_store %arg9[%c0_40, %c256], %21 {strides = array<i32>} : memref<256x1152xbf16, #tpu.memory_space<vmem>>, vector<256x128xbf16>,
    %c1_41 = arith.constant 1 : index
    %c0_42 = arith.constant 0 : index
    %c0_43 = arith.constant 0 : index
    %23 = vector.load %arg7[%c1_41, %c0_42, %c0_43] : memref<18x18x128xbf16, #tpu.memory_space<vmem>>, vector<16x16x128xbf16>
    %24 = vector.shape_cast %23 : vector<16x16x128xbf16> to vector<256x128xbf16>
    %c0_44 = arith.constant 0 : index
    %c384 = arith.constant 384 : index
    %25 = vector.load %arg9[%c0_44, %c384] : memref<256x1152xbf16, #tpu.memory_space<vmem>>, vector<256x128xbf16>
    tpu.vector_store %arg9[%c0_44, %c384], %24 {strides = array<i32>} : memref<256x1152xbf16, #tpu.memory_space<vmem>>, vector<256x128xbf16>,
    %c1_45 = arith.constant 1 : index
    %c1_46 = arith.constant 1 : index
    %c0_47 = arith.constant 0 : index
    %26 = vector.load %arg7[%c1_45, %c1_46, %c0_47] : memref<18x18x128xbf16, #tpu.memory_space<vmem>>, vector<16x16x128xbf16>
    %27 = vector.shape_cast %26 : vector<16x16x128xbf16> to vector<256x128xbf16>
    %c0_48 = arith.constant 0 : index
    %c512 = arith.constant 512 : index
    %28 = vector.load %arg9[%c0_48, %c512] : memref<256x1152xbf16, #tpu.memory_space<vmem>>, vector<256x128xbf16>
    tpu.vector_store %arg9[%c0_48, %c512], %27 {strides = array<i32>} : memref<256x1152xbf16, #tpu.memory_space<vmem>>, vector<256x128xbf16>,
    %c1_49 = arith.constant 1 : index
    %c2_50 = arith.constant 2 : index
    %c0_51 = arith.constant 0 : index
    %29 = vector.load %arg7[%c1_49, %c2_50, %c0_51] : memref<18x18x128xbf16, #tpu.memory_space<vmem>>, vector<16x16x128xbf16>
    %30 = vector.shape_cast %29 : vector<16x16x128xbf16> to vector<256x128xbf16>
    %c0_52 = arith.constant 0 : index
    %c640 = arith.constant 640 : index
    %31 = vector.load %arg9[%c0_52, %c640] : memref<256x1152xbf16, #tpu.memory_space<vmem>>, vector<256x128xbf16>
    tpu.vector_store %arg9[%c0_52, %c640], %30 {strides = array<i32>} : memref<256x1152xbf16, #tpu.memory_space<vmem>>, vector<256x128xbf16>,
    %c2_53 = arith.constant 2 : index
    %c0_54 = arith.constant 0 : index
    %c0_55 = arith.constant 0 : index
    %32 = vector.load %arg7[%c2_53, %c0_54, %c0_55] : memref<18x18x128xbf16, #tpu.memory_space<vmem>>, vector<16x16x128xbf16>
    %33 = vector.shape_cast %32 : vector<16x16x128xbf16> to vector<256x128xbf16>
    %c0_56 = arith.constant 0 : index
    %c768 = arith.constant 768 : index
    %34 = vector.load %arg9[%c0_56, %c768] : memref<256x1152xbf16, #tpu.memory_space<vmem>>, vector<256x128xbf16>
    tpu.vector_store %arg9[%c0_56, %c768], %33 {strides = array<i32>} : memref<256x1152xbf16, #tpu.memory_space<vmem>>, vector<256x128xbf16>,
    %c2_57 = arith.constant 2 : index
    %c1_58 = arith.constant 1 : index
    %c0_59 = arith.constant 0 : index
    %35 = vector.load %arg7[%c2_57, %c1_58, %c0_59] : memref<18x18x128xbf16, #tpu.memory_space<vmem>>, vector<16x16x128xbf16>
    %36 = vector.shape_cast %35 : vector<16x16x128xbf16> to vector<256x128xbf16>
    %c0_60 = arith.constant 0 : index
    %c896 = arith.constant 896 : index
    %37 = vector.load %arg9[%c0_60, %c896] : memref<256x1152xbf16, #tpu.memory_space<vmem>>, vector<256x128xbf16>
    tpu.vector_store %arg9[%c0_60, %c896], %36 {strides = array<i32>} : memref<256x1152xbf16, #tpu.memory_space<vmem>>, vector<256x128xbf16>,
    %c2_61 = arith.constant 2 : index
    %c2_62 = arith.constant 2 : index
    %c0_63 = arith.constant 0 : index
    %38 = vector.load %arg7[%c2_61, %c2_62, %c0_63] : memref<18x18x128xbf16, #tpu.memory_space<vmem>>, vector<16x16x128xbf16>
    %39 = vector.shape_cast %38 : vector<16x16x128xbf16> to vector<256x128xbf16>
    %c0_64 = arith.constant 0 : index
    %c1024 = arith.constant 1024 : index
    %40 = vector.load %arg9[%c0_64, %c1024] : memref<256x1152xbf16, #tpu.memory_space<vmem>>, vector<256x128xbf16>
    tpu.vector_store %arg9[%c0_64, %c1024], %39 {strides = array<i32>} : memref<256x1152xbf16, #tpu.memory_space<vmem>>, vector<256x128xbf16>,
    %c0_65 = arith.constant 0 : index
    %c0_66 = arith.constant 0 : index
    %41 = vector.load %arg9[%c0_65, %c0_66] : memref<256x1152xbf16, #tpu.memory_space<vmem>>, vector<256x1152xbf16>
    %c0_67 = arith.constant 0 : index
    %c0_68 = arith.constant 0 : index
    %42 = vector.load %arg2[%c0_67, %c0_68] : memref<1152x128xbf16, #tpu.memory_space<vmem>>, vector<1152x128xbf16>
    %cst_69 = arith.constant dense<0.000000e+00> : vector<256x128xf32>
    %43 = tpu.matmul %41, %42, %cst_69 {dimension_numbers = #tpu.dot_dimension_numbers<[1], [0], [0], [1], [0, 0, 1, 1], [], []>} : vector<256x1152xbf16>, vector<1152x128xbf16>, vector<256x128xf32> -> vector<256x128xf32>
    %c0_70 = arith.constant 0 : index
    %c0_71 = arith.constant 0 : index
    %44 = vector.load %arg3[%c0_70, %c0_71] : memref<1x128xf32, #tpu.memory_space<vmem>>, vector<1x128xf32>
    %45 = vector.broadcast %44 : vector<1x128xf32> to vector<256x128xf32>
    %46 = arith.addf %43, %45 : vector<256x128xf32>
    %cst_72 = arith.constant 0.000000e+00 : f32
    %47 = vector.broadcast %cst_72 : f32 to vector<256x128xf32>
    %48 = arith.maximumf %46, %47 : vector<256x128xf32>
    %49 = vector.shape_cast %48 : vector<256x128xf32> to vector<16x16x128xf32>
    %50 = arith.truncf %49 : vector<16x16x128xf32> to vector<16x16x128xbf16>
    %c1_73 = arith.constant 1 : index
    %c1_74 = arith.constant 1 : index
    %c0_75 = arith.constant 0 : index
    %51 = vector.load %arg8[%c1_73, %c1_74, %c0_75] : memref<18x18x128xbf16, #tpu.memory_space<vmem>>, vector<16x16x128xbf16>
    tpu.vector_store %arg8[%c1_73, %c1_74, %c0_75], %50 {strides = array<i32>} : memref<18x18x128xbf16, #tpu.memory_space<vmem>>, vector<16x16x128xbf16>,
    %c0_76 = arith.constant 0 : index
    %c0_77 = arith.constant 0 : index
    %c0_78 = arith.constant 0 : index
    %52 = vector.load %arg8[%c0_76, %c0_77, %c0_78] : memref<18x18x128xbf16, #tpu.memory_space<vmem>>, vector<16x16x128xbf16>
    %53 = vector.shape_cast %52 : vector<16x16x128xbf16> to vector<256x128xbf16>
    %c0_79 = arith.constant 0 : index
    %c0_80 = arith.constant 0 : index
    %54 = vector.load %arg9[%c0_79, %c0_80] : memref<256x1152xbf16, #tpu.memory_space<vmem>>, vector<256x128xbf16>
    tpu.vector_store %arg9[%c0_79, %c0_80], %53 {strides = array<i32>} : memref<256x1152xbf16, #tpu.memory_space<vmem>>, vector<256x128xbf16>,
    %c0_81 = arith.constant 0 : index
    %c1_82 = arith.constant 1 : index
    %c0_83 = arith.constant 0 : index
    %55 = vector.load %arg8[%c0_81, %c1_82, %c0_83] : memref<18x18x128xbf16, #tpu.memory_space<vmem>>, vector<16x16x128xbf16>
    %56 = vector.shape_cast %55 : vector<16x16x128xbf16> to vector<256x128xbf16>
    %c0_84 = arith.constant 0 : index
    %c128_85 = arith.constant 128 : index
    %57 = vector.load %arg9[%c0_84, %c128_85] : memref<256x1152xbf16, #tpu.memory_space<vmem>>, vector<256x128xbf16>
    tpu.vector_store %arg9[%c0_84, %c128_85], %56 {strides = array<i32>} : memref<256x1152xbf16, #tpu.memory_space<vmem>>, vector<256x128xbf16>,
    %c0_86 = arith.constant 0 : index
    %c2_87 = arith.constant 2 : index
    %c0_88 = arith.constant 0 : index
    %58 = vector.load %arg8[%c0_86, %c2_87, %c0_88] : memref<18x18x128xbf16, #tpu.memory_space<vmem>>, vector<16x16x128xbf16>
    %59 = vector.shape_cast %58 : vector<16x16x128xbf16> to vector<256x128xbf16>
    %c0_89 = arith.constant 0 : index
    %c256_90 = arith.constant 256 : index
    %60 = vector.load %arg9[%c0_89, %c256_90] : memref<256x1152xbf16, #tpu.memory_space<vmem>>, vector<256x128xbf16>
    tpu.vector_store %arg9[%c0_89, %c256_90], %59 {strides = array<i32>} : memref<256x1152xbf16, #tpu.memory_space<vmem>>, vector<256x128xbf16>,
    %c1_91 = arith.constant 1 : index
    %c0_92 = arith.constant 0 : index
    %c0_93 = arith.constant 0 : index
    %61 = vector.load %arg8[%c1_91, %c0_92, %c0_93] : memref<18x18x128xbf16, #tpu.memory_space<vmem>>, vector<16x16x128xbf16>
    %62 = vector.shape_cast %61 : vector<16x16x128xbf16> to vector<256x128xbf16>
    %c0_94 = arith.constant 0 : index
    %c384_95 = arith.constant 384 : index
    %63 = vector.load %arg9[%c0_94, %c384_95] : memref<256x1152xbf16, #tpu.memory_space<vmem>>, vector<256x128xbf16>
    tpu.vector_store %arg9[%c0_94, %c384_95], %62 {strides = array<i32>} : memref<256x1152xbf16, #tpu.memory_space<vmem>>, vector<256x128xbf16>,
    %c1_96 = arith.constant 1 : index
    %c1_97 = arith.constant 1 : index
    %c0_98 = arith.constant 0 : index
    %64 = vector.load %arg8[%c1_96, %c1_97, %c0_98] : memref<18x18x128xbf16, #tpu.memory_space<vmem>>, vector<16x16x128xbf16>
    %65 = vector.shape_cast %64 : vector<16x16x128xbf16> to vector<256x128xbf16>
    %c0_99 = arith.constant 0 : index
    %c512_100 = arith.constant 512 : index
    %66 = vector.load %arg9[%c0_99, %c512_100] : memref<256x1152xbf16, #tpu.memory_space<vmem>>, vector<256x128xbf16>
    tpu.vector_store %arg9[%c0_99, %c512_100], %65 {strides = array<i32>} : memref<256x1152xbf16, #tpu.memory_space<vmem>>, vector<256x128xbf16>,
    %c1_101 = arith.constant 1 : index
    %c2_102 = arith.constant 2 : index
    %c0_103 = arith.constant 0 : index
    %67 = vector.load %arg8[%c1_101, %c2_102, %c0_103] : memref<18x18x128xbf16, #tpu.memory_space<vmem>>, vector<16x16x128xbf16>
    %68 = vector.shape_cast %67 : vector<16x16x128xbf16> to vector<256x128xbf16>
    %c0_104 = arith.constant 0 : index
    %c640_105 = arith.constant 640 : index
    %69 = vector.load %arg9[%c0_104, %c640_105] : memref<256x1152xbf16, #tpu.memory_space<vmem>>, vector<256x128xbf16>
    tpu.vector_store %arg9[%c0_104, %c640_105], %68 {strides = array<i32>} : memref<256x1152xbf16, #tpu.memory_space<vmem>>, vector<256x128xbf16>,
    %c2_106 = arith.constant 2 : index
    %c0_107 = arith.constant 0 : index
    %c0_108 = arith.constant 0 : index
    %70 = vector.load %arg8[%c2_106, %c0_107, %c0_108] : memref<18x18x128xbf16, #tpu.memory_space<vmem>>, vector<16x16x128xbf16>
    %71 = vector.shape_cast %70 : vector<16x16x128xbf16> to vector<256x128xbf16>
    %c0_109 = arith.constant 0 : index
    %c768_110 = arith.constant 768 : index
    %72 = vector.load %arg9[%c0_109, %c768_110] : memref<256x1152xbf16, #tpu.memory_space<vmem>>, vector<256x128xbf16>
    tpu.vector_store %arg9[%c0_109, %c768_110], %71 {strides = array<i32>} : memref<256x1152xbf16, #tpu.memory_space<vmem>>, vector<256x128xbf16>,
    %c2_111 = arith.constant 2 : index
    %c1_112 = arith.constant 1 : index
    %c0_113 = arith.constant 0 : index
    %73 = vector.load %arg8[%c2_111, %c1_112, %c0_113] : memref<18x18x128xbf16, #tpu.memory_space<vmem>>, vector<16x16x128xbf16>
    %74 = vector.shape_cast %73 : vector<16x16x128xbf16> to vector<256x128xbf16>
    %c0_114 = arith.constant 0 : index
    %c896_115 = arith.constant 896 : index
    %75 = vector.load %arg9[%c0_114, %c896_115] : memref<256x1152xbf16, #tpu.memory_space<vmem>>, vector<256x128xbf16>
    tpu.vector_store %arg9[%c0_114, %c896_115], %74 {strides = array<i32>} : memref<256x1152xbf16, #tpu.memory_space<vmem>>, vector<256x128xbf16>,
    %c2_116 = arith.constant 2 : index
    %c2_117 = arith.constant 2 : index
    %c0_118 = arith.constant 0 : index
    %76 = vector.load %arg8[%c2_116, %c2_117, %c0_118] : memref<18x18x128xbf16, #tpu.memory_space<vmem>>, vector<16x16x128xbf16>
    %77 = vector.shape_cast %76 : vector<16x16x128xbf16> to vector<256x128xbf16>
    %c0_119 = arith.constant 0 : index
    %c1024_120 = arith.constant 1024 : index
    %78 = vector.load %arg9[%c0_119, %c1024_120] : memref<256x1152xbf16, #tpu.memory_space<vmem>>, vector<256x128xbf16>
    tpu.vector_store %arg9[%c0_119, %c1024_120], %77 {strides = array<i32>} : memref<256x1152xbf16, #tpu.memory_space<vmem>>, vector<256x128xbf16>,
    %c0_121 = arith.constant 0 : index
    %c0_122 = arith.constant 0 : index
    %79 = vector.load %arg9[%c0_121, %c0_122] : memref<256x1152xbf16, #tpu.memory_space<vmem>>, vector<256x1152xbf16>
    %c0_123 = arith.constant 0 : index
    %c0_124 = arith.constant 0 : index
    %80 = vector.load %arg4[%c0_123, %c0_124] : memref<1152x128xbf16, #tpu.memory_space<vmem>>, vector<1152x128xbf16>
    %cst_125 = arith.constant dense<0.000000e+00> : vector<256x128xf32>
    %81 = tpu.matmul %79, %80, %cst_125 {dimension_numbers = #tpu.dot_dimension_numbers<[1], [0], [0], [1], [0, 0, 1, 1], [], []>} : vector<256x1152xbf16>, vector<1152x128xbf16>, vector<256x128xf32> -> vector<256x128xf32>
    %c0_126 = arith.constant 0 : index
    %c0_127 = arith.constant 0 : index
    %82 = vector.load %arg5[%c0_126, %c0_127] : memref<1x128xf32, #tpu.memory_space<vmem>>, vector<1x128xf32>
    %83 = vector.broadcast %82 : vector<1x128xf32> to vector<256x128xf32>
    %84 = arith.addf %81, %83 : vector<256x128xf32>
    %cst_128 = arith.constant 0.000000e+00 : f32
    %85 = vector.broadcast %cst_128 : f32 to vector<256x128xf32>
    %86 = arith.maximumf %84, %85 : vector<256x128xf32>
    %c0_129 = arith.constant 0 : index
    %c0_130 = arith.constant 0 : index
    %c0_131 = arith.constant 0 : index
    %c0_132 = arith.constant 0 : index
    %87 = vector.load %arg1[%c0_129, %c0_130, %c0_131, %c0_132] : memref<1x16x16x128xf32, #tpu.memory_space<vmem>>, vector<1x16x16x128xf32>
    %88 = vector.shape_cast %87 : vector<1x16x16x128xf32> to vector<16x16x128xf32>
    %89 = vector.shape_cast %88 : vector<16x16x128xf32> to vector<256x128xf32>
    %90 = arith.addf %86, %89 : vector<256x128xf32>
    %91 = vector.shape_cast %90 : vector<256x128xf32> to vector<1x16x16x128xf32>
    %c0_133 = arith.constant 0 : index
    %c0_134 = arith.constant 0 : index
    %c0_135 = arith.constant 0 : index
    %c0_136 = arith.constant 0 : index
    %92 = vector.load %arg6[%c0_133, %c0_134, %c0_135, %c0_136] : memref<1x16x16x128xf32, #tpu.memory_space<vmem>>, vector<1x16x16x128xf32>
    tpu.vector_store %arg6[%c0_133, %c0_134, %c0_135, %c0_136], %91 {strides = array<i32>} : memref<1x16x16x128xf32, #tpu.memory_space<vmem>>, vector<1x16x16x128xf32>,
    return
  }
  func.func @transform_0(%arg0: i32) -> (i32, i32, i32, i32) {
    %c0_i32 = arith.constant 0 : i32
    %c0_i32_0 = arith.constant 0 : i32
    %c0_i32_1 = arith.constant 0 : i32
    %c0_i32_2 = arith.constant 0 : i32
    return %arg0, %c0_i32, %c0_i32_0, %c0_i32_1 : i32, i32, i32, i32
  }
  func.func @transform_1(%arg0: i32) -> (i32, i32) {
    %c0_i32 = arith.constant 0 : i32
    %c0_i32_0 = arith.constant 0 : i32
    %c0_i32_1 = arith.constant 0 : i32
    return %c0_i32, %c0_i32_0 : i32, i32
  }
  func.func @transform_2(%arg0: i32) -> (i32, i32) {
    %c0_i32 = arith.constant 0 : i32
    %c0_i32_0 = arith.constant 0 : i32
    %c0_i32_1 = arith.constant 0 : i32
    return %c0_i32, %c0_i32_0 : i32, i32
  }
  func.func @transform_3(%arg0: i32) -> (i32, i32) {
    %c0_i32 = arith.constant 0 : i32
    %c0_i32_0 = arith.constant 0 : i32
    %c0_i32_1 = arith.constant 0 : i32
    return %c0_i32, %c0_i32_0 : i32, i32
  }
  func.func @transform_4(%arg0: i32) -> (i32, i32) {
    %c0_i32 = arith.constant 0 : i32
    %c0_i32_0 = arith.constant 0 : i32
    %c0_i32_1 = arith.constant 0 : i32
    return %c0_i32, %c0_i32_0 : i32, i32
  }
  func.func @transform_5(%arg0: i32) -> (i32, i32, i32, i32) {
    %c0_i32 = arith.constant 0 : i32
    %c0_i32_0 = arith.constant 0 : i32
    %c0_i32_1 = arith.constant 0 : i32
    %c0_i32_2 = arith.constant 0 : i32
    return %arg0, %c0_i32, %c0_i32_0, %c0_i32_1 : i32, i32, i32, i32
  }
}

</mosaic_0001>

<bundles_post_ra>
// kernel: resblock_forward.1
= control target key start
LH: loop header
LB: loop body
LE: loop exit
PB: predicated region body
PF: predicated region fallthrough
CT: control target
= control target key end

     0   :  { %s13537_s18 = smov 0   ;;  %s16753_s0 = inlined_call_operand.vmem [shape: f32[2,16,16,128], index: 0, kind: input, shape index: {}]   ;;  %s16754_s1 = inlined_call_operand.vmem [shape: bf16[1152,128], index: 1, kind: input, shape index: {}]   ;;  %s16755_s2 = inlined_call_operand.vmem [shape: f32[1,128], index: 2, kind: input, shape index: {}]   ;;  %s16756_s3 = inlined_call_operand.vmem [shape: bf16[1152,128], index: 3, kind: input, shape index: {}]   ;;  %s16757_s4 = inlined_call_operand.vmem [shape: f32[1,128], index: 4, kind: input, shape index: {}]   ;;  %s16758_s5 = inlined_call_operand.vmem [shape: f32[2,16,16,128], index: 5, kind: output, shape index: {}]  }
   0x1 LB: > { %s11196_s19 = sadd.s32 4294967295, %s13504_s18   ;;  %p11200_p0 = scmp.ge.s32.totalorder %s13504_s18, 1  ;;  %s13504_s18 = sphi %s13537_s18, %s15_s18  }
   0x2   : > { %p187_p1 = scmp.lt.s32.totalorder %s13504_s18, 3 }
   0x4   : > { %p188_p2 = pnand %p11200_p0, %p187_p1 }
   0x6   : > { %191 = sbr.rel (%p188_p2) target bundleno = 1572 (0x624), region = 40 }
   0xb   : > { %v13184_v0 = vld [vmem:[%s16754_s1 + $0x38] sm:$0xff]  ;;  %p215_p3 = scmp.lt.s32.totalorder %s11196_s19, 1  ;;  %v13506_v2 = vmov 0   ;;  %v13183_v3 = vld [vmem:[%s16754_s1 + $0x30] sm:$0xff]  ;;  %v13182_v5 = vld [vmem:[%s16754_s1 + $0x28] sm:$0xff]  ;;  %vm233_vm0 = vcmask 1040384  }
   0xc   : > { %v13192_v1 = vld [vmem:[%s16754_s1 + $0x78] sm:$0xff]  ;;  %226 = vst [vmem:[#allocation2] sm:$0xf] %v13506_v2  ;;  %4941 = vmatpush.bf16.msra.mxu0 %v13184_v0  ;;  %13465 = vmatpush.bf16.msra.mxu2 %v13184_v0  ;;  %v13191_v4 = vld [vmem:[%s16754_s1 + $0x70] sm:$0xff]  ;;  %vm234_vm1 = vsmask.f32 256 }
   0xd   : > { %227 = vst [vmem:[#allocation2 + $0x4] sm:$0xf] %v13506_v2  ;;  %s16900_s19 = smov (!%p215_p3, %s11196_s19), 1  ;;  %13473 = vmatpush.bf16.msra.mxu3 %v13192_v1  ;;  %5030 = vmatpush.bf16.msra.mxu1 %v13192_v1  ;;  %v13190_v6 = vld [vmem:[%s16754_s1 + $0x68] sm:$0xff]  ;;  %vm290_vm2 = vsmask.f32 7938  ;;  %vm13588_vm4 = vmand %vm233_vm0, %vm234_vm1 }
   0xe   : > { %346 = vst [vmem:[#allocation3] sm:$0xf] %v13506_v2  ;;  %s13031_s28 = sshll.u32 %s16900_s19, 8  ;;  %vm525_vm3 = vsmask.f32 4368  ;;  %v13181_v11 = vld [vmem:[%s16754_s1 + $0x20] sm:$0xff]  ;;  %vm13602_vm5 = vmand %vm233_vm0, %vm290_vm2 }
   0xf   : > { %347 = vst [vmem:[#allocation3 + $0x4] sm:$0xf] %v13506_v2  ;;  %s13572_s8 = scalar_lea.vmem %s16753_s0, %s13031_s28  ;;  %v260_v14 = vld [vmem:[#allocation2 + $0x60] sm:$0x1]  ;;  %v13606_v23 = vld [vmem:[#allocation2 + $0x68] sm:$0x1]  ;;  %vm13632_vm7 = vmor %vm234_vm1, %vm525_vm3  ;;  %s16592_s11 = scalar_lea.vmem %s16758_s5, %s13031_s28 }
  0x10   : > { %4942 = vmatpush.bf16.msra.mxu0 %v13183_v3  ;;  %13466 = vmatpush.bf16.msra.mxu2 %v13183_v3  ;;  %228 = vst [vmem:[#allocation2 + $0x8] sm:$0x1] %v13506_v2  ;;  %v475_v7 = vld [vmem:[%s13572_s8 + $0x70] sm:$0xff]  ;;  %v476_v8 = vld [vmem:[%s13572_s8 + $0x78] sm:$0xff]  ;;  %v461_v15 = vld [vmem:[%s13572_s8] sm:$0xff]  ;;  %vm848_vm6 = vcmask 1043456  }
  0x11   : > { %13474 = vmatpush.bf16.msra.mxu3 %v13191_v4  ;;  %5031 = vmatpush.bf16.msra.mxu1 %v13191_v4  ;;  %230 = vst [vmem:[#allocation2 + $0xcc] sm:$0xf] %v13506_v2  ;;  %v13581_v9 = vpack.c.bf16 %v475_v7, %v475_v7  ;;  %v508_v10 = vpack.c.bf16 %v476_v8, %v476_v8  ;;  %v13189_v24 = vld [vmem:[%s16754_s1 + $0x60] sm:$0xff]  ;;  %v13180_v27 = vld [vmem:[%s16754_s1 + $0x18] sm:$0xff]  ;;  %v261_v32 = vsel %vm13588_vm4, 0, %v260_v14  ;;  %v317_v35 = vsel %vm13602_vm5, 0, %v13606_v23  ;;  %vm13671_vm10 = vmand %vm848_vm6, %vm290_vm2 }
  0x12   : > { %231 = vst [vmem:[#allocation2 + $0xd0] sm:$0xf] %v13506_v2  ;;  %v13598_v19 = vpack.c.bf16 %v461_v15, %v461_v15  ;;  %v13188_v31 = vld [vmem:[%s16754_s1 + $0x58] sm:$0xff]  ;;  %v462_v40 = vld [vmem:[%s13572_s8 + $0x8] sm:$0xff]  ;;  %vm1074_vm8 = vsmask.f32 3328 }
  0x13   : > { %v236_v13 = vld [vmem:[#allocation2] sm:$0x1]  ;;  %232 = vst [vmem:[#allocation2 + $0xd4] sm:$0x1] %v13506_v2  ;;  %v647_v18 = vshrl.u32 %v13581_v9, 16  ;;  %v655_v21 = vshrl.u32 %v508_v10, 16  ;;  %v13655_v53 = vpack.c.bf16 %v462_v40, %v462_v40 }
  0x14   : > { %v237_v16 = vsel %vm13588_vm4, 0, %v236_v13  ;;  %v963_v17 = vld [vmem:[#allocation2 + $0x4] sm:$0xf]  ;;  %4943 = vmatpush.bf16.msra.mxu0 %v13182_v5  ;;  %13467 = vmatpush.bf16.msra.mxu2 %v13182_v5  ;;  %v658_v22 = vshll.u32 %v508_v10, 16  ;;  %348 = vst [vmem:[#allocation3 + $0x8] sm:$0x1] %v13506_v2 }
  0x15   : > { %238 = vst [vmem:[#allocation2] sm:$0x1] %v237_v16  ;;  %13475 = vmatpush.bf16.msra.mxu3 %v13190_v6  ;;  %5032 = vmatpush.bf16.msra.mxu1 %v13190_v6  ;;  %v353_v25 = vld [vmem:[#allocation3] sm:$0x1]  ;;  %v649_v26 = vrot.slane %v647_v18, 7  ;;  %v13617_v29 = vrot.slane %v655_v21, 7 }
  0x16   : > { %995 = vst [vmem:[#allocation4 + $0x24] sm:$0xf] %v963_v17  ;;  %v354_v28 = vsel %vm13588_vm4, 0, %v353_v25  ;;  %v528_v30 = vshrl.u32 %v13598_v19, 16  ;;  %v650_v33 = vshll.u32 %v13581_v9, 16  ;;  %v13179_v42 = vld [vmem:[%s16754_s1 + $0x10] sm:$0xff] }
  0x17   : > { %355 = vst [vmem:[#allocation3] sm:$0x1] %v354_v28  ;;  %v653_v34 = vrot.slane %v649_v26, 4  ;;  %v6240_v36 = vld [vmem:[#allocation3 + $0x4] sm:$0xf]  ;;  %v660_v38 = vor.u32 %v658_v22, %v13617_v29  ;;  %v662_v39 = vrot.slane %v13617_v29, 4 }
  0x18   : > { %4944 = vmatpush.bf16.msra.mxu0 %v13181_v11  ;;  %13468 = vmatpush.bf16.msra.mxu2 %v13181_v11  ;;  %350 = vst [vmem:[#allocation3 + $0xcc] sm:$0xf] %v13506_v2  ;;  %v292_v41 = vld [vmem:[#allocation2 + $0x8] sm:$0x1]  ;;  %v1027_v44 = vld [vmem:[#allocation2 + $0x4] sm:$0xf]  ;;  %v652_v58 = vor.u32 %v650_v33, %v649_v26 }
  0x19   : > { %13476 = vmatpush.bf16.msra.mxu3 %v13189_v24  ;;  %5033 = vmatpush.bf16.msra.mxu1 %v13189_v24  ;;  %351 = vst [vmem:[#allocation3 + $0xd0] sm:$0xf] %v13506_v2  ;;  %v293_v43 = vsel %vm13602_vm5, 0, %v292_v41  ;;  %v13646_v45 = vrot.slane %v528_v30, 7  ;;  %v13187_v46 = vld [vmem:[%s16754_s1 + $0x50] sm:$0xff]  ;;  %v661_v48 = vsel %vm13632_vm7, %v653_v34, %v660_v38  ;;  %v1087_v54 = vshll.u32 %v1027_v44, 16 }
  0x1a   : > { %352 = vst [vmem:[#allocation3 + $0xd4] sm:$0x1] %v13506_v2  ;;  %v1091_v55 = vshrl.u32 %v1027_v44, 16  ;;  %v13657_v56 = vld [vmem:[#allocation2 + $0xc] sm:$0x1]  ;;  %v531_v2 = vshll.u32 %v13598_v19, 16 }
  0x1b   : > { %262 = vst [vmem:[#allocation2 + $0x60] sm:$0x1] %v261_v32  ;;  %v13178_v57 = vld [vmem:[%s16754_s1 + $0x8] sm:$0xff]  ;;  %vm1075_vm9 = vsmask.f32 7440  ;;  %v1089_v63 = vrot.slane %v1087_v54, 5 }
  0x1c   : > { %v962_v47 = vld [vmem:[#allocation2] sm:$0xf]  ;;  %4945 = vmatpush.bf16.msra.mxu0 %v13180_v27  ;;  %13469 = vmatpush.bf16.msra.mxu2 %v13180_v27  ;;  %902 = vst [vmem:[#allocation2 + $0x64] sm:$0xf] %v661_v48  ;;  %v13186_v62 = vld [vmem:[%s16754_s1 + $0x48] sm:$0xff]  ;;  %v1093_v0 = vrot.slane %v1091_v55, 4  ;;  %vm13693_vm11 = vmor %vm1074_vm8, %vm1075_vm9 }
  0x1d   : > { %v1026_v49 = vld [vmem:[#allocation2] sm:$0xf]  ;;  %994 = vst [vmem:[#allocation4] sm:$0xf] %v962_v47  ;;  %v13653_v50 = vld [vmem:[#allocation4 + $0x20] sm:$0xf0]  ;;  %13477 = vmatpush.bf16.msra.mxu3 %v13188_v31  ;;  %5034 = vmatpush.bf16.msra.mxu1 %v13188_v31 }
  0x1e   : > { %v1078_v51 = vshrl.u32 %v1026_v49, 16  ;;  %v1081_v52 = vshll.u32 %v1026_v49, 16  ;;  %6272 = vst [vmem:[#allocation4 + $0x24] sm:$0xf] %v6240_v36  ;;  %v6239_v61 = vld [vmem:[#allocation3] sm:$0xf]  ;;  %v1094_v9 = vor.u32 %v1093_v0, %v1089_v63 }
  0x1f   : > { %318 = vst [vmem:[#allocation2 + $0x68] sm:$0x1] %v317_v35  ;;  %v240_v1 = vsel %vm13588_vm4, 0, %v13657_v56  ;;  %v407_v4 = vld [vmem:[#allocation3 + $0x8] sm:$0x1]  ;;  %v534_v6 = vrot.slane %v13646_v45, 4  ;;  %v533_v56 = vor.u32 %v531_v2, %v13646_v45 }
  0x20   : > { %v1080_v59 = vrot.slane %v1078_v51, 4  ;;  %v1083_v60 = vrot.slane %v1081_v52, 5  ;;  %4946 = vmatpush.bf16.msra.mxu0 %v13179_v42  ;;  %13470 = vmatpush.bf16.msra.mxu2 %v13179_v42  ;;  %294 = vst [vmem:[#allocation2 + $0x8] sm:$0x1] %v293_v43  ;;  %v536_v7 = vshrl.u32 %v13655_v53, 16  ;;  %v408_v8 = vsel %vm13602_vm5, 0, %v407_v4 }
  0x21   : > { %13478 = vmatpush.bf16.msra.mxu3 %v13187_v46  ;;  %5035 = vmatpush.bf16.msra.mxu1 %v13187_v46  ;;  %v6303_v10 = vld [vmem:[#allocation3] sm:$0xf]  ;;  %v6304_v11 = vld [vmem:[#allocation3 + $0x4] sm:$0xf]  ;;  %v539_v13 = vshll.u32 %v13655_v53, 16  ;;  %v13177_v14 = vld [vmem:[%s16754_s1] sm:$0xff] }
  0x22   : > { %v1084_v5 = vor.u32 %v1083_v60, %v1080_v59  ;;  %v899_v15 = vld [vmem:[#allocation2 + $0x60] sm:$0xf]  ;;  %409 = vst [vmem:[#allocation3 + $0x8] sm:$0x1] %v408_v8  ;;  %v6352_v17 = vshrl.u32 %v6303_v10, 16  ;;  %v13200_v23 = vld [vmem:[%s16754_s1 + $0xb8] sm:$0xff] }
  0x23   : > { %v900_v21 = vsel %vm13671_vm10, %v652_v58, %v899_v15  ;;  %v13185_v22 = vld [vmem:[%s16754_s1 + $0x40] sm:$0xff]  ;;  %v13697_v25 = vrot.slane %v1094_v9, 4  ;;  %v6355_v26 = vshll.u32 %v6303_v10, 16  ;;  %v6361_v27 = vshll.u32 %v6304_v11, 16  ;;  %v13208_v28 = vld [vmem:[%s16754_s1 + $0xf8] sm:$0xff] }
  0x24   : > { %v1085_v16 = vrot.slane %v1084_v5, 4  ;;  %v11255_v18 = vld [vmem:[#allocation4] sm:$0xf]  ;;  %4947 = vmatpush.bf16.msra.mxu0 %v13178_v57  ;;  %13471 = vmatpush.bf16.msra.mxu2 %v13178_v57  ;;  %v6354_v31 = vrot.slane %v6352_v17, 4  ;;  %v6365_v32 = vshrl.u32 %v6304_v11, 16  ;;  %v477_v34 = vld [vmem:[%s13572_s8 + $0x80] sm:$0xff] }
  0x25   : > { %6271 = vst [vmem:[#allocation4] sm:$0xf] %v6239_v61  ;;  %v263_v33 = vld [vmem:[#allocation2 + $0x6c] sm:$0x1]  ;;  %v979_v35 = vld [vmem:[#allocation2 + $0x64] sm:$0xf]  ;;  %13479 = vmatpush.bf16.msra.mxu3 %v13186_v62  ;;  %5036 = vmatpush.bf16.msra.mxu1 %v13186_v62  ;;  %v11256_v42 = vor.u32 %v13653_v50, %v11255_v18  ;;  %v509_v55 = vpack.c.bf16 %v477_v34, %v477_v34 }
  0x26   : > { %v1090_v30 = vsel %vm13693_vm11, %v1085_v16, %v1089_v63  ;;  %901 = vst [vmem:[#allocation2 + $0x60] sm:$0xf] %v900_v21  ;;  %v1051_v36 = vld [vmem:[#allocation2 + $0x64] sm:$0xf]  ;;  %v903_v38 = vld [vmem:[#allocation2 + $0x68] sm:$0x1] }
  0x27   : > { %1011 = vst [vmem:[#allocation4 + $0x264] sm:$0xf] %v979_v35  ;;  %v1279_v40 = vshll.u32 %v1051_v36, 16  ;;  %v1283_v41 = vshrl.u32 %v1051_v36, 16  ;;  %v904_v43 = vsel %vm13588_vm4, %v662_v39, %v903_v38  ;;  %v1028_v44 = vld [vmem:[#allocation2 + $0x8] sm:$0x1] }
  0x28   : > { %1493 = vst [vmem:[#allocation4 + $0x4] sm:$0xf] %v1090_v30  ;;  %v6357_v46 = vrot.slane %v6355_v26, 5  ;;  %v6363_v47 = vrot.slane %v6361_v27, 5  ;;  %4948 = vmatpush.bf16.msra.mxu0 %v13177_v14  ;;  %13472 = vmatpush.bf16.msra.mxu2 %v13177_v14  ;;  %v1097_v51 = vshll.u32 %v1028_v44, 16  ;;  %v6367_v52 = vrot.slane %v6365_v32, 4 }
  0x29   : > { %905 = vst [vmem:[#allocation2 + $0x68] sm:$0x1] %v904_v43  ;;  %v13710_v48 = vrot.slane %v1279_v40, 5  ;;  %v1285_v49 = vrot.slane %v1283_v41, 4  ;;  %13480 = vmatpush.bf16.msra.mxu3 %v13185_v22  ;;  %v6305_v50 = vld [vmem:[#allocation3 + $0x8] sm:$0x1]  ;;  %5037 = vmatpush.bf16.msra.mxu1 %v13185_v22 }
  0x2a   : > { %v6358_v29 = vor.u32 %v6357_v46, %v6354_v31  ;;  %241 = vst [vmem:[#allocation2 + $0xc] sm:$0x1] %v240_v1  ;;  %v13716_v39 = vrot.slane %v536_v7, 7  ;;  %v264_v54 = vsel %vm13588_vm4, 0, %v263_v33  ;;  %v1099_v58 = vrot.slane %v1097_v51, 5  ;;  %v478_v61 = vld [vmem:[%s13572_s8 + $0x88] sm:$0xff] }
  0x2b   : > { %v1286_v57 = vor.u32 %v1285_v49, %v13710_v48  ;;  %v6368_v59 = vor.u32 %v6367_v52, %v6363_v47  ;;  %v6371_v60 = vshll.u32 %v6305_v50, 16  ;;  %265 = vst [vmem:[#allocation2 + $0x6c] sm:$0x1] %v264_v54  ;;  %4949 = vmatmul.bf16.vlgmr.msra.gmra.mxu0 %v11256_v42  ;;  %v463_v1 = vld [vmem:[%s13572_s8 + $0x10] sm:$0xff]  ;;  %v510_v10 = vpack.c.bf16 %v478_v61, %v478_v61  ;;  %v13216_v33 = vld [vmem:[%s16754_s1 + $0x138] sm:$0xff] }
  0x2c   : > { %5119 = vmatpush.bf16.msrb.mxu2 %v13200_v23  ;;  %v6359_v62 = vrot.slane %v6358_v29, 4  ;;  %v541_v63 = vor.u32 %v539_v13, %v13716_v39  ;;  %v543_v0 = vrot.slane %v13716_v39, 4  ;;  %v1100_v8 = vsel %vm13693_vm11, %v13697_v25, %v1099_v58  ;;  %v319_v13 = vld [vmem:[#allocation2 + $0x74] sm:$0x1]  ;;  %5297 = vmatpush.bf16.msrb.mxu0 %v13216_v33  ;;  %v464_v46 = vld [vmem:[%s13572_s8 + $0x18] sm:$0xff] }
  0x2d   : > { %5208 = vmatpush.bf16.msrb.mxu3 %v13208_v28  ;;  %v978_v4 = vld [vmem:[#allocation2 + $0x60] sm:$0xf]  ;;  %v1287_v7 = vrot.slane %v1286_v57, 4  ;;  %v6369_v9 = vrot.slane %v6368_v59, 4  ;;  %1494 = vst [vmem:[#allocation4 + $0x28] sm:$0xf] %v1100_v8  ;;  %v13739_v28 = vpack.c.bf16 %v463_v1, %v463_v1  ;;  %v13758_v50 = vpack.c.bf16 %v464_v46, %v464_v46 }
  0x2e   : > { %v1050_v5 = vld [vmem:[#allocation2 + $0x60] sm:$0xf]  ;;  %1010 = vst [vmem:[#allocation4 + $0x240] sm:$0xf] %v978_v4  ;;  %v6364_v2 = vsel %vm13693_vm11, %v6359_v62, %v6363_v47  ;;  %v542_v53 = vsel %vm13632_vm7, %v534_v6, %v541_v63  ;;  %v6373_v15 = vrot.slane %v6371_v60, 5  ;;  %v664_v16 = vshrl.u32 %v509_v55, 16 }
  0x2f   : > { %v1270_v11 = vshrl.u32 %v1050_v5, 16  ;;  %v1273_v19 = vshll.u32 %v1050_v5, 16  ;;  %v13033_v14 = vld [vmem:[#allocation4 + $0x4] sm:$0xf]  ;;  %853 = vst [vmem:[#allocation2 + $0x10] sm:$0xf] %v542_v53 }
  0x30   : > { %v295_v17 = vld [vmem:[#allocation2 + $0x14] sm:$0x1]  ;;  %v1052_v18 = vld [vmem:[#allocation2 + $0x68] sm:$0x1]  ;;  %6767 = vst [vmem:[#allocation4 + $0x4] sm:$0xf] %v6364_v2  ;;  %v6374_v51 = vsel %vm13693_vm11, %v6369_v9, %v6373_v15 }
  0x31   : > { %v1272_v21 = vrot.slane %v1270_v11, 4  ;;  %v1275_v22 = vrot.slane %v1273_v19, 5  ;;  %v13109_v23 = vld [vmem:[#allocation4 + $0x260] sm:$0xf0]  ;;  %v1289_v25 = vshll.u32 %v1052_v18, 16  ;;  %v666_v27 = vrot.slane %v664_v16, 7 }
  0x32   : > { %v850_v26 = vld [vmem:[#allocation2 + $0xc] sm:$0xf]  ;;  %v667_v30 = vshll.u32 %v509_v55, 16  ;;  %v672_v31 = vshrl.u32 %v510_v10, 16  ;;  %v13199_v34 = vld [vmem:[%s16754_s1 + $0xb0] sm:$0xff]  ;;  %v675_v38 = vshll.u32 %v510_v10, 16 }
  0x33   : > { %v1276_v45 = vor.u32 %v1275_v22, %v1272_v21  ;;  %v851_v6 = vsel %vm13671_vm10, %v533_v56, %v850_v26  ;;  %v906_v32 = vld [vmem:[#allocation2 + $0x6c] sm:$0xf]  ;;  %v1291_v35 = vrot.slane %v1289_v25, 5  ;;  %v670_v36 = vrot.slane %v666_v27, 4  ;;  %5120 = vmatpush.bf16.msrb.mxu2 %v13199_v34  ;;  %v242_v52 = vld [vmem:[#allocation2 + $0x18] sm:$0x1] }
  0x34   : > { %852 = vst [vmem:[#allocation2 + $0xc] sm:$0xf] %v851_v6  ;;  %v320_v40 = vsel %vm13602_vm5, 0, %v319_v13  ;;  %v669_v42 = vor.u32 %v667_v30, %v666_v27  ;;  %v674_v43 = vrot.slane %v672_v31, 7  ;;  %v296_v44 = vsel %vm13602_vm5, 0, %v295_v17  ;;  %v479_v10 = vld [vmem:[%s13572_s8 + $0x90] sm:$0xff] }
  0x35   : > { %v1277_v41 = vrot.slane %v1276_v45, 4  ;;  %321 = vst [vmem:[#allocation2 + $0x74] sm:$0x1] %v320_v40  ;;  %v11543_v47 = vld [vmem:[#allocation4 + $0x240] sm:$0xf]  ;;  %v1292_v49 = vsel %vm13693_vm11, %v1287_v7, %v1291_v35  ;;  %v243_v61 = vsel %vm13588_vm4, 0, %v242_v52  ;;  %v13784_v45 = vpack.c.bf16 %v479_v10, %v479_v10 }
  0x36   : > { %297 = vst [vmem:[#allocation2 + $0x14] sm:$0x1] %v296_v44  ;;  %v11544_v29 = vor.u32 %v13109_v23, %v11543_v47  ;;  %v11257_v55 = vld [vmem:[#allocation4 + $0x24] sm:$0xf0]  ;;  %v677_v57 = vor.u32 %v675_v38, %v674_v43  ;;  %v679_v58 = vrot.slane %v674_v43, 4  ;;  %v907_v60 = vsel %vm13671_vm10, %v669_v42, %v906_v32  ;;  %v465_v52 = vld [vmem:[%s13572_s8 + $0x20] sm:$0xff] }
  0x37   : > { %v1282_v54 = vsel %vm13693_vm11, %v1277_v41, %v13710_v48  ;;  %1510 = vst [vmem:[#allocation4 + $0x268] sm:$0xf] %v1292_v49  ;;  %v11260_v59 = vor.u32 %v13033_v14, %v11257_v55  ;;  %v545_v62 = vshrl.u32 %v13739_v28, 16  ;;  %v965_v56 = vld [vmem:[#allocation2 + $0x10] sm:$0xf]  ;;  %v548_v63 = vshll.u32 %v13739_v28, 16 }
  0x38   : > { %1509 = vst [vmem:[#allocation4 + $0x244] sm:$0xf] %v1282_v54  ;;  %4989 = vmatmul.bf16.vlgmr.msra.gmra.mxu2 %v11544_v29  ;;  %v13207_v48 = vld [vmem:[%s16754_s1 + $0xf0] sm:$0xff]  ;;  %v678_v1 = vsel %vm13632_vm7, %v670_v36, %v677_v57  ;;  %v553_v7 = vshrl.u32 %v13758_v50, 16  ;;  %v556_v39 = vshll.u32 %v13758_v50, 16  ;;  %v480_v35 = vld [vmem:[%s13572_s8 + $0x98] sm:$0xff] }
  0x39   : > { %6768 = vst [vmem:[#allocation4 + $0x28] sm:$0xf] %v6374_v51  ;;  %5038 = vmatmul.bf16.vlgmr.msra.gmra.mxu1 %v11260_v59  ;;  %v1030_v4 = vld [vmem:[#allocation2 + $0x10] sm:$0xf]  ;;  %v547_v5 = vrot.slane %v545_v62, 7  ;;  %5209 = vmatpush.bf16.msrb.mxu3 %v13207_v48  ;;  %v681_v51 = vshrl.u32 %v13784_v45, 16  ;;  %v512_v57 = vpack.c.bf16 %v480_v35, %v480_v35 }
  0x3a   : > { %997 = vst [vmem:[#allocation4 + $0x6c] sm:$0xf] %v965_v56  ;;  %v1111_v14 = vshll.u32 %v1030_v4, 16  ;;  %v1115_v15 = vshrl.u32 %v1030_v4, 16  ;;  %v13782_v28 = vrot.slane %v553_v7, 7  ;;  %v13215_v10 = vld [vmem:[%s16754_s1 + $0x130] sm:$0xff] }
  0x3b   : > { %v964_v8 = vld [vmem:[#allocation2 + $0xc] sm:$0xf]  ;;  %908 = vst [vmem:[#allocation2 + $0x6c] sm:$0xf] %v907_v60  ;;  %v551_v30 = vrot.slane %v547_v5, 4  ;;  %v550_v41 = vor.u32 %v548_v63, %v547_v5  ;;  %v683_v4 = vrot.slane %v681_v51, 7  ;;  %5298 = vmatpush.bf16.msrb.mxu0 %v13215_v10 }
  0x3c   : > { %v1029_v9 = vld [vmem:[#allocation2 + $0xc] sm:$0xf]  ;;  %996 = vst [vmem:[#allocation4 + $0x48] sm:$0xf] %v964_v8  ;;  %v910_v11 = vld [vmem:[#allocation2 + $0x74] sm:$0x1]  ;;  %v558_v42 = vor.u32 %v556_v39, %v13782_v28 }
  0x3d   : > { %v1102_v19 = vshrl.u32 %v1029_v9, 16  ;;  %v1105_v2 = vshll.u32 %v1029_v9, 16  ;;  %909 = vst [vmem:[#allocation2 + $0x70] sm:$0xf] %v678_v1  ;;  %v911_v53 = vsel %vm13588_vm4, %v679_v58, %v910_v11  ;;  %v854_v13 = vld [vmem:[#allocation2 + $0x14] sm:$0x1] }
  0x3e   : > { %v11545_v16 = vld [vmem:[#allocation4 + $0x264] sm:$0xf0]  ;;  %912 = vst [vmem:[#allocation2 + $0x74] sm:$0x1] %v911_v53  ;;  %v855_v17 = vsel %vm13588_vm4, %v543_v0, %v854_v13  ;;  %v1113_v23 = vrot.slane %v1111_v14, 5  ;;  %v1117_v25 = vrot.slane %v1115_v15, 4  ;;  %v559_v55 = vsel %vm13632_vm7, %v551_v30, %v558_v42 }
  0x3f   : > { %v1104_v18 = vrot.slane %v1102_v19, 4  ;;  %v1107_v21 = vrot.slane %v1105_v2, 5  ;;  %v13105_v22 = vld [vmem:[#allocation4 + $0x244] sm:$0xf]  ;;  %856 = vst [vmem:[#allocation2 + $0x14] sm:$0x1] %v855_v17  ;;  %v13806_v13 = vpack.c.bf16 %v465_v52, %v465_v52 }
  0x40   : > { %v11548_v26 = vor.u32 %v13105_v22, %v11545_v16  ;;  %244 = vst [vmem:[#allocation2 + $0x18] sm:$0x1] %v243_v61  ;;  %v266_v31 = vld [vmem:[#allocation2 + $0x78] sm:$0x1]  ;;  %v1118_v34 = vor.u32 %v1117_v25, %v1113_v23  ;;  %v322_v56 = vld [vmem:[#allocation2 + $0x80] sm:$0x1] }
  0x41   : > { %v1108_v27 = vor.u32 %v1107_v21, %v1104_v18  ;;  %v13046_v6 = vld [vmem:[#allocation4 + $0x68] sm:$0xf0]  ;;  %v267_v49 = vsel %vm13588_vm4, 0, %v266_v31  ;;  %860 = vst [vmem:[#allocation2 + $0x1c] sm:$0xf] %v559_v55  ;;  %v684_v9 = vshll.u32 %v13784_v45, 16 }
  0x42   : > { %5078 = vmatmul.bf16.vlgmr.msra.gmra.mxu3 %v11548_v26  ;;  %v980_v0 = vld [vmem:[#allocation2 + $0x6c] sm:$0xf]  ;;  %v1119_v62 = vrot.slane %v1118_v34, 4  ;;  %268 = vst [vmem:[#allocation2 + $0x78] sm:$0x1] %v267_v49  ;;  %v689_v16 = vshrl.u32 %v512_v57, 16 }
  0x43   : > { %v1053_v32 = vld [vmem:[#allocation2 + $0x6c] sm:$0xf]  ;;  %v1109_v33 = vrot.slane %v1108_v27, 4  ;;  %v11291_v36 = vld [vmem:[#allocation4 + $0x48] sm:$0xf]  ;;  %v692_v17 = vshll.u32 %v512_v57, 16  ;;  %v686_v39 = vor.u32 %v684_v9, %v683_v4 }
  0x44   : > { %1012 = vst [vmem:[#allocation4 + $0x288] sm:$0xf] %v980_v0  ;;  %v1294_v38 = vshrl.u32 %v1053_v32, 16  ;;  %v1297_v40 = vshll.u32 %v1053_v32, 16  ;;  %v11292_v43 = vor.u32 %v13046_v6, %v11291_v36  ;;  %v981_v44 = vld [vmem:[#allocation2 + $0x70] sm:$0xf] }
  0x45   : > { %v1054_v46 = vld [vmem:[#allocation2 + $0x70] sm:$0xf]  ;;  %v1114_v47 = vsel %vm13693_vm11, %v1109_v33, %v1113_v23  ;;  %1013 = vst [vmem:[#allocation4 + $0x2ac] sm:$0xf] %v981_v44  ;;  %v1055_v50 = vld [vmem:[#allocation2 + $0x74] sm:$0x1] }
  0x46   : > { %v1296_v29 = vrot.slane %v1294_v38, 4  ;;  %v1299_v54 = vrot.slane %v1297_v40, 5  ;;  %4954 = vmatmul.bf16.gmra.mxu0 %v11292_v43  ;;  %v1303_v58 = vshll.u32 %v1054_v46, 16  ;;  %v1307_v59 = vshrl.u32 %v1054_v46, 16  ;;  %v1031_v61 = vld [vmem:[#allocation2 + $0x14] sm:$0x1] }
  0x47   : > { %v1313_v60 = vshll.u32 %v1055_v50, 16  ;;  %v1121_v63 = vshll.u32 %v1031_v61, 16  ;;  %1495 = vst [vmem:[#allocation4 + $0x4c] sm:$0xf] %v1114_v47  ;;  %v857_v1 = vld [vmem:[#allocation2 + $0x18] sm:$0xf] }
  0x48   : > { %v1300_v48 = vor.u32 %v1299_v54, %v1296_v29  ;;  %v1305_v5 = vrot.slane %v1303_v58, 5  ;;  %v1309_v7 = vrot.slane %v1307_v59, 4  ;;  %v858_v8 = vsel %vm13671_vm10, %v550_v41, %v857_v1  ;;  %v13198_v53 = vld [vmem:[%s16754_s1 + $0xa8] sm:$0xff]  ;;  %v298_v25 = vld [vmem:[#allocation2 + $0x20] sm:$0x1] }
  0x49   : > { %v1315_v19 = vrot.slane %v1313_v60, 5  ;;  %v1123_v2 = vrot.slane %v1121_v63, 5  ;;  %859 = vst [vmem:[#allocation2 + $0x18] sm:$0xf] %v858_v8  ;;  %v687_v22 = vrot.slane %v683_v4, 4  ;;  %5121 = vmatpush.bf16.msrb.mxu2 %v13198_v53  ;;  %v323_v23 = vsel %vm13602_vm5, 0, %v322_v56 }
  0x4a   : > { %v1301_v11 = vrot.slane %v1300_v48, 4  ;;  %v1310_v15 = vor.u32 %v1309_v7, %v1305_v5  ;;  %v245_v26 = vld [vmem:[#allocation2 + $0x24] sm:$0x1]  ;;  %v691_v6 = vrot.slane %v689_v16, 7  ;;  %v299_v31 = vsel %vm13602_vm5, 0, %v298_v25  ;;  %v466_v36 = vld [vmem:[%s13572_s8 + $0x28] sm:$0xff] }
  0x4b   : > { %v11579_v14 = vld [vmem:[#allocation4 + $0x288] sm:$0xf]  ;;  %v1124_v21 = vsel %vm13693_vm11, %v1119_v62, %v1123_v2  ;;  %v562_v0 = vshrl.u32 %v13806_v13, 16  ;;  %324 = vst [vmem:[#allocation2 + $0x80] sm:$0x1] %v323_v23  ;;  %v246_v35 = vsel %vm13588_vm4, 0, %v245_v26  ;;  %v498_v52 = vpack.c.bf16 %v466_v36, %v466_v36 }
  0x4c   : > { %v1306_v18 = vsel %vm13693_vm11, %v1301_v11, %v1305_v5  ;;  %v13118_v27 = vld [vmem:[#allocation4 + $0x2a8] sm:$0xf0]  ;;  %v1311_v45 = vrot.slane %v1310_v15, 4  ;;  %1496 = vst [vmem:[#allocation4 + $0x70] sm:$0xf] %v1124_v21  ;;  %v694_v33 = vor.u32 %v692_v17, %v691_v6  ;;  %v696_v34 = vrot.slane %v691_v6, 4 }
  0x4d   : > { %1511 = vst [vmem:[#allocation4 + $0x28c] sm:$0xf] %v1306_v18  ;;  %v11580_v30 = vor.u32 %v13118_v27, %v11579_v14  ;;  %v481_v38 = vld [vmem:[%s13572_s8 + $0xa0] sm:$0xff]  ;;  %v967_v40 = vld [vmem:[#allocation2 + $0x1c] sm:$0xf]  ;;  %v13206_v41 = vld [vmem:[%s16754_s1 + $0xe8] sm:$0xff] }
  0x4e   : > { %v1316_v32 = vsel %vm13693_vm11, %v1311_v45, %v1315_v19  ;;  %v13826_v42 = vrot.slane %v562_v0, 7  ;;  %v13042_v43 = vld [vmem:[#allocation4 + $0x4c] sm:$0xf]  ;;  %999 = vst [vmem:[#allocation4 + $0xb4] sm:$0xf] %v967_v40  ;;  %v695_v46 = vsel %vm13632_vm7, %v687_v22, %v694_v33  ;;  %5210 = vmatpush.bf16.msrb.mxu3 %v13206_v41  ;;  %v565_v59 = vshll.u32 %v13806_v13, 16 }
  0x4f   : > { %4994 = vmatmul.bf16.gmra.mxu2 %v11580_v30  ;;  %1512 = vst [vmem:[#allocation4 + $0x2b0] sm:$0xf] %v1316_v32  ;;  %v913_v49 = vld [vmem:[#allocation2 + $0x78] sm:$0xf]  ;;  %v1033_v51 = vld [vmem:[#allocation2 + $0x1c] sm:$0xf]  ;;  %v513_v60 = vpack.c.bf16 %v481_v38, %v481_v38 }
  0x50   : > { %v966_v44 = vld [vmem:[#allocation2 + $0x18] sm:$0xf]  ;;  %v914_v50 = vsel %vm13671_vm10, %v686_v39, %v913_v49  ;;  %916 = vst [vmem:[#allocation2 + $0x7c] sm:$0xf] %v695_v46  ;;  %v1135_v55 = vshll.u32 %v1033_v51, 16  ;;  %v1139_v58 = vshrl.u32 %v1033_v51, 16  ;;  %v567_v6 = vor.u32 %v565_v59, %v13826_v42 }
  0x51   : > { %v1032_v47 = vld [vmem:[#allocation2 + $0x18] sm:$0xf]  ;;  %998 = vst [vmem:[#allocation4 + $0x90] sm:$0xf] %v966_v44  ;;  %v568_v4 = vrot.slane %v13826_v42, 4  ;;  %v482_v5 = vld [vmem:[%s13572_s8 + $0xa8] sm:$0xff] }
  0x52   : > { %v1126_v29 = vshrl.u32 %v1032_v47, 16  ;;  %v1129_v54 = vshll.u32 %v1032_v47, 16  ;;  %915 = vst [vmem:[#allocation2 + $0x78] sm:$0xf] %v914_v50  ;;  %v917_v63 = vld [vmem:[#allocation2 + $0x80] sm:$0x1]  ;;  %v514_v39 = vpack.c.bf16 %v482_v5, %v482_v5 }
  0x53   : > { %v11293_v61 = vld [vmem:[#allocation4 + $0x6c] sm:$0xf0]  ;;  %300 = vst [vmem:[#allocation2 + $0x20] sm:$0x1] %v299_v31  ;;  %v13833_v1 = vrot.slane %v1135_v55, 5  ;;  %v918_v8 = vsel %vm13588_vm4, %v696_v34, %v917_v63  ;;  %v570_v10 = vshrl.u32 %v498_v52, 16 }
  0x54   : > { %v13114_v57 = vld [vmem:[#allocation4 + $0x28c] sm:$0xf]  ;;  %v1128_v62 = vrot.slane %v1126_v29, 4  ;;  %v1131_v56 = vrot.slane %v1129_v54, 5  ;;  %v11296_v48 = vor.u32 %v13042_v43, %v11293_v61  ;;  %247 = vst [vmem:[#allocation2 + $0x24] sm:$0x1] %v246_v35 }
  0x55   : > { %v573_v11 = vshll.u32 %v498_v52, 16  ;;  %v269_v19 = vld [vmem:[#allocation2 + $0x84] sm:$0x1]  ;;  %919 = vst [vmem:[#allocation2 + $0x80] sm:$0x1] %v918_v8  ;;  %v698_v14 = vshrl.u32 %v513_v60, 16 }
  0x56   : > { %v11581_v7 = vld [vmem:[#allocation4 + $0x2ac] sm:$0xf0]  ;;  %v1132_v9 = vor.u32 %v1131_v56, %v1128_v62  ;;  %5043 = vmatmul.bf16.gmra.mxu1 %v11296_v48  ;;  %v13055_v53 = vld [vmem:[#allocation4 + $0xb0] sm:$0xf0]  ;;  %v270_v13 = vsel %vm13588_vm4, 0, %v269_v19  ;;  %v13841_v17 = vrot.slane %v570_v10, 7 }
  0x57   : > { %v11584_v2 = vor.u32 %v13114_v57, %v11581_v7  ;;  %271 = vst [vmem:[#allocation2 + $0x84] sm:$0x1] %v270_v13  ;;  %v560_v18 = vrot.slane %v13782_v28, 4  ;;  %v983_v22 = vld [vmem:[#allocation2 + $0x7c] sm:$0xf]  ;;  %v13844_v25 = vrot.slane %v698_v14, 7 }
  0x58   : > { %v11327_v15 = vld [vmem:[#allocation4 + $0x90] sm:$0xf]  ;;  %v1133_v16 = vrot.slane %v1132_v9, 4  ;;  %v1057_v23 = vld [vmem:[#allocation2 + $0x7c] sm:$0xf]  ;;  %v575_v30 = vor.u32 %v573_v11, %v13841_v17  ;;  %v1141_v34 = vrot.slane %v1139_v58, 4 }
  0x59   : > { %5083 = vmatmul.bf16.gmra.mxu3 %v11584_v2  ;;  %v11328_v21 = vor.u32 %v13055_v53, %v11327_v15  ;;  %v982_v26 = vld [vmem:[#allocation2 + $0x78] sm:$0xf]  ;;  %1015 = vst [vmem:[#allocation4 + $0x2f4] sm:$0xf] %v983_v22  ;;  %v1327_v0 = vshll.u32 %v1057_v23, 16  ;;  %v1331_v32 = vshrl.u32 %v1057_v23, 16 }
  0x5a   : > { %v1056_v27 = vld [vmem:[#allocation2 + $0x78] sm:$0xf]  ;;  %v1138_v45 = vsel %vm13693_vm11, %v1133_v16, %v13833_v1  ;;  %1014 = vst [vmem:[#allocation4 + $0x2d0] sm:$0xf] %v982_v26  ;;  %v861_v33 = vld [vmem:[#allocation2 + $0x20] sm:$0x1]  ;;  %v576_v35 = vsel %vm13632_vm7, %v568_v4, %v575_v30  ;;  %v1142_v58 = vor.u32 %v1141_v34, %v13833_v1 }
  0x5b   : > { %4959 = vmatmul.bf16.gmra.mxu0 %v11328_v21  ;;  %v1318_v28 = vshrl.u32 %v1056_v27, 16  ;;  %v1321_v31 = vshll.u32 %v1056_v27, 16  ;;  %1497 = vst [vmem:[#allocation4 + $0x94] sm:$0xf] %v1138_v45  ;;  %v701_v36 = vshll.u32 %v513_v60, 16  ;;  %v1329_v41 = vrot.slane %v1327_v0, 5 }
  0x5c   : > { %v1333_v42 = vrot.slane %v1331_v32, 4  ;;  %v864_v43 = vld [vmem:[#allocation2 + $0x24] sm:$0xf]  ;;  %v1058_v44 = vld [vmem:[#allocation2 + $0x80] sm:$0x1]  ;;  %v862_v46 = vsel %vm13588_vm4, %v560_v18, %v861_v33  ;;  %v704_v51 = vrot.slane %v13844_v25, 4 }
  0x5d   : > { %v1320_v38 = vrot.slane %v1318_v28, 4  ;;  %v1323_v40 = vrot.slane %v1321_v31, 5  ;;  %v865_v47 = vsel %vm13671_vm10, %v567_v6, %v864_v43  ;;  %867 = vst [vmem:[#allocation2 + $0x28] sm:$0xf] %v576_v35  ;;  %v703_v49 = vor.u32 %v701_v36, %v13844_v25  ;;  %v13214_v52 = vld [vmem:[%s16754_s1 + $0x128] sm:$0xff]  ;;  %v13197_v61 = vld [vmem:[%s16754_s1 + $0xa0] sm:$0xff] }
  0x5e   : > { %v1334_v29 = vor.u32 %v1333_v42, %v1329_v41  ;;  %v1337_v54 = vshll.u32 %v1058_v44, 16  ;;  %863 = vst [vmem:[#allocation2 + $0x20] sm:$0x1] %v862_v46  ;;  %v706_v55 = vshrl.u32 %v514_v39, 16  ;;  %v920_v57 = vld [vmem:[#allocation2 + $0x84] sm:$0xf]  ;;  %5299 = vmatpush.bf16.msrb.mxu0 %v13214_v52  ;;  %5122 = vmatpush.bf16.msrb.mxu2 %v13197_v61 }
  0x5f   : > { %v1324_v50 = vor.u32 %v1323_v40, %v1320_v38  ;;  %866 = vst [vmem:[#allocation2 + $0x24] sm:$0xf] %v865_v47  ;;  %v709_v59 = vshll.u32 %v514_v39, 16  ;;  %v921_v60 = vsel %vm13671_vm10, %v703_v49, %v920_v57  ;;  %v325_v62 = vld [vmem:[#allocation2 + $0x8c] sm:$0x1]  ;;  %v467_v8 = vld [vmem:[%s13572_s8 + $0x30] sm:$0xff] }
  0x60   : > { %v13127_v56 = vld [vmem:[#allocation4 + $0x2f0] sm:$0xf0]  ;;  %v1335_v63 = vrot.slane %v1334_v29, 4  ;;  %v1339_v4 = vrot.slane %v1337_v54, 5  ;;  %v708_v5 = vrot.slane %v706_v55, 7  ;;  %v326_v1 = vsel %vm13602_vm5, 0, %v325_v62 }
  0x61   : > { %v1325_v48 = vrot.slane %v1324_v50, 4  ;;  %v11615_v7 = vld [vmem:[#allocation4 + $0x2d0] sm:$0xf]  ;;  %922 = vst [vmem:[#allocation2 + $0x84] sm:$0xf] %v921_v60  ;;  %v1143_v53 = vrot.slane %v1142_v58, 4  ;;  %v13879_v16 = vpack.c.bf16 %v467_v8, %v467_v8 }
  0x62   : > { %v11616_v9 = vor.u32 %v13127_v56, %v11615_v7  ;;  %v1340_v11 = vsel %vm13693_vm11, %v1335_v63, %v1339_v4  ;;  %v711_v19 = vor.u32 %v709_v59, %v708_v5  ;;  %327 = vst [vmem:[#allocation2 + $0x8c] sm:$0x1] %v326_v1  ;;  %v301_v2 = vld [vmem:[#allocation2 + $0x2c] sm:$0x1]  ;;  %v577_v13 = vrot.slane %v13841_v17, 4  ;;  %v13205_v15 = vld [vmem:[%s16754_s1 + $0xe0] sm:$0xff] }
  0x63   : > { %v1330_v10 = vsel %vm13693_vm11, %v1325_v48, %v1329_v41  ;;  %v713_v14 = vrot.slane %v708_v5, 4  ;;  %1514 = vst [vmem:[#allocation4 + $0x2f8] sm:$0xf] %v1340_v11  ;;  %5211 = vmatpush.bf16.msrb.mxu3 %v13205_v15  ;;  %v302_v25 = vsel %vm13602_vm5, 0, %v301_v2  ;;  %v579_v28 = vshrl.u32 %v13879_v16, 16  ;;  %v468_v34 = vld [vmem:[%s13572_s8 + $0x38] sm:$0xff] }
  0x64   : > { %1513 = vst [vmem:[#allocation4 + $0x2d4] sm:$0xf] %v1330_v10  ;;  %4999 = vmatmul.bf16.gmra.mxu2 %v11616_v9  ;;  %v969_v18 = vld [vmem:[#allocation2 + $0x28] sm:$0xf]  ;;  %v712_v21 = vsel %vm13632_vm7, %v704_v51, %v711_v19  ;;  %v248_v58 = vld [vmem:[#allocation2 + $0x30] sm:$0x1]  ;;  %v500_v59 = vpack.c.bf16 %v468_v34, %v468_v34 }
  0x65   : > { %v1036_v22 = vld [vmem:[#allocation2 + $0x28] sm:$0xf]  ;;  %v1034_v23 = vld [vmem:[#allocation2 + $0x20] sm:$0x1]  ;;  %1001 = vst [vmem:[#allocation4 + $0xfc] sm:$0xf] %v969_v18 }
  0x66   : > { %v1159_v26 = vshll.u32 %v1036_v22, 16  ;;  %v1145_v27 = vshll.u32 %v1034_v23, 16  ;;  %v968_v45 = vld [vmem:[#allocation2 + $0x24] sm:$0xf]  ;;  %923 = vst [vmem:[#allocation2 + $0x88] sm:$0xf] %v712_v21 }
  0x67   : > { %v1163_v6 = vshrl.u32 %v1036_v22, 16  ;;  %1000 = vst [vmem:[#allocation4 + $0xd8] sm:$0xf] %v968_v45  ;;  %v1035_v30 = vld [vmem:[#allocation2 + $0x24] sm:$0xf]  ;;  %v249_v5 = vsel %vm13588_vm4, 0, %v248_v58 }
  0x68   : > { %v13885_v39 = vrot.slane %v1159_v26, 5  ;;  %v1147_v31 = vrot.slane %v1145_v27, 5  ;;  %v984_v0 = vld [vmem:[#allocation2 + $0x84] sm:$0xf]  ;;  %v1150_v33 = vshrl.u32 %v1035_v30, 16  ;;  %v1153_v44 = vshll.u32 %v1035_v30, 16 }
  0x69   : > { %v1059_v32 = vld [vmem:[#allocation2 + $0x84] sm:$0xf]  ;;  %1016 = vst [vmem:[#allocation4 + $0x318] sm:$0xf] %v984_v0  ;;  %v924_v35 = vld [vmem:[#allocation2 + $0x8c] sm:$0x1] }
  0x6a   : > { %v1342_v36 = vshrl.u32 %v1059_v32, 16  ;;  %v1345_v38 = vshll.u32 %v1059_v32, 16  ;;  %v1148_v41 = vsel %vm13693_vm11, %v1143_v53, %v1147_v31  ;;  %v925_v42 = vsel %vm13588_vm4, %v713_v14, %v924_v35  ;;  %303 = vst [vmem:[#allocation2 + $0x2c] sm:$0x1] %v302_v25  ;;  %v11617_v46 = vld [vmem:[#allocation4 + $0x2f4] sm:$0xf0] }
  0x6b   : > { %v13123_v40 = vld [vmem:[#allocation4 + $0x2d4] sm:$0xf]  ;;  %v1152_v43 = vrot.slane %v1150_v33, 4  ;;  %1498 = vst [vmem:[#allocation4 + $0xb8] sm:$0xf] %v1148_v41  ;;  %v1155_v50 = vrot.slane %v1153_v44, 5 }
  0x6c   : > { %v1344_v47 = vrot.slane %v1342_v36, 4  ;;  %v1347_v49 = vrot.slane %v1345_v38, 5  ;;  %v11620_v51 = vor.u32 %v13123_v40, %v11617_v46  ;;  %v13064_v52 = vld [vmem:[#allocation4 + $0xf8] sm:$0xf0]  ;;  %926 = vst [vmem:[#allocation2 + $0x8c] sm:$0x1] %v925_v42 }
  0x6d   : > { %v13893_v29 = vrot.slane %v1163_v6, 4  ;;  %v985_v54 = vld [vmem:[#allocation2 + $0x88] sm:$0xf]  ;;  %v1156_v56 = vor.u32 %v1155_v50, %v1152_v43  ;;  %v13051_v48 = vld [vmem:[#allocation4 + $0x94] sm:$0xf]  ;;  %v581_v7 = vrot.slane %v579_v28, 7 }
  0x6e   : > { %v1060_v55 = vld [vmem:[#allocation2 + $0x88] sm:$0xf]  ;;  %v1348_v57 = vor.u32 %v1347_v49, %v1344_v47  ;;  %5088 = vmatmul.bf16.gmra.mxu3 %v11620_v51  ;;  %1017 = vst [vmem:[#allocation4 + $0x33c] sm:$0xf] %v985_v54  ;;  %v483_v1 = vld [vmem:[%s13572_s8 + $0xb0] sm:$0xff]  ;;  %v582_v11 = vshll.u32 %v13879_v16, 16 }
  0x6f   : > { %v11363_v60 = vld [vmem:[#allocation4 + $0xd8] sm:$0xf]  ;;  %v1351_v61 = vshll.u32 %v1060_v55, 16  ;;  %v1355_v62 = vshrl.u32 %v1060_v55, 16  ;;  %v1157_v10 = vrot.slane %v1156_v56, 4  ;;  %v585_v14 = vrot.slane %v581_v7, 4 }
  0x70   : > { %v11364_v63 = vor.u32 %v13064_v52, %v11363_v60  ;;  %v1349_v4 = vrot.slane %v1348_v57, 4  ;;  %v272_v19 = vld [vmem:[#allocation2 + $0x90] sm:$0x1]  ;;  %v11651_v2 = vld [vmem:[#allocation4 + $0x318] sm:$0xf]  ;;  %v587_v15 = vshrl.u32 %v500_v59, 16  ;;  %v515_v18 = vpack.c.bf16 %v483_v1, %v483_v1 }
  0x71   : > { %v1353_v8 = vrot.slane %v1351_v61, 5  ;;  %v1357_v9 = vrot.slane %v1355_v62, 4  ;;  %v868_v53 = vld [vmem:[#allocation2 + $0x2c] sm:$0x1]  ;;  %250 = vst [vmem:[#allocation2 + $0x30] sm:$0x1] %v249_v5  ;;  %v1162_v16 = vsel %vm13693_vm11, %v1157_v10, %v13885_v39  ;;  %v584_v34 = vor.u32 %v582_v11, %v581_v7 }
  0x72   : > { %4964 = vmatmul.bf16.gmra.mxu0 %v11364_v63  ;;  %v11329_v21 = vld [vmem:[#allocation4 + $0xb4] sm:$0xf0]  ;;  %v869_v25 = vsel %vm13588_vm4, %v577_v13, %v868_v53  ;;  %v484_v26 = vld [vmem:[%s13572_s8 + $0xb8] sm:$0xff]  ;;  %v13213_v27 = vld [vmem:[%s16754_s1 + $0x120] sm:$0xff]  ;;  %v13912_v30 = vrot.slane %v587_v15, 7  ;;  %v590_v28 = vshll.u32 %v500_v59, 16  ;;  %v1166_v44 = vor.u32 %v13893_v29, %v13885_v39 }
  0x73   : > { %v1354_v22 = vsel %vm13693_vm11, %v1349_v4, %v1353_v8  ;;  %v1358_v23 = vor.u32 %v1357_v9, %v1353_v8  ;;  %v11332_v45 = vor.u32 %v13051_v48, %v11329_v21  ;;  %v1061_v6 = vld [vmem:[#allocation2 + $0x8c] sm:$0x1]  ;;  %870 = vst [vmem:[#allocation2 + $0x2c] sm:$0x1] %v869_v25  ;;  %v273_v13 = vsel %vm13588_vm4, 0, %v272_v19  ;;  %5300 = vmatpush.bf16.msrb.mxu0 %v13213_v27  ;;  %v13196_v32 = vld [vmem:[%s16754_s1 + $0x98] sm:$0xff] }
  0x74   : > { %1515 = vst [vmem:[#allocation4 + $0x31c] sm:$0xf] %v1354_v22  ;;  %v1361_v17 = vshll.u32 %v1061_v6, 16  ;;  %v516_v0 = vpack.c.bf16 %v484_v26, %v484_v26  ;;  %v592_v35 = vor.u32 %v590_v28, %v13912_v30  ;;  %v715_v36 = vshrl.u32 %v515_v18, 16  ;;  %5123 = vmatpush.bf16.msrb.mxu2 %v13196_v32  ;;  %v469_v43 = vld [vmem:[%s13572_s8 + $0x40] sm:$0xff]  ;;  %v13204_v48 = vld [vmem:[%s16754_s1 + $0xd8] sm:$0xff] }
  0x75   : > { %v1359_v31 = vrot.slane %v1358_v23, 4  ;;  %5048 = vmatmul.bf16.gmra.mxu1 %v11332_v45  ;;  %v13136_v33 = vld [vmem:[#allocation4 + $0x338] sm:$0xf0]  ;;  %1499 = vst [vmem:[#allocation4 + $0xdc] sm:$0xf] %v1162_v16  ;;  %v718_v41 = vshll.u32 %v515_v18, 16  ;;  %v13929_v58 = vpack.c.bf16 %v469_v43, %v469_v43  ;;  %5212 = vmatpush.bf16.msrb.mxu3 %v13204_v48 }
  0x76   : > { %v11652_v38 = vor.u32 %v13136_v33, %v11651_v2  ;;  %v1363_v40 = vrot.slane %v1361_v17, 5  ;;  %274 = vst [vmem:[#allocation2 + $0x90] sm:$0x1] %v273_v13  ;;  %v723_v42 = vshrl.u32 %v516_v0, 16  ;;  %v593_v46 = vsel %vm13632_vm7, %v585_v14, %v592_v35  ;;  %v328_v51 = vld [vmem:[#allocation2 + $0x98] sm:$0x1] }
  0x77   : > { %v717_v47 = vrot.slane %v715_v36, 7  ;;  %v726_v49 = vshll.u32 %v516_v0, 16  ;;  %v304_v52 = vld [vmem:[#allocation2 + $0x38] sm:$0x1]  ;;  %874 = vst [vmem:[#allocation2 + $0x34] sm:$0xf] %v593_v46 }
  0x78   : > { %5004 = vmatmul.bf16.gmra.mxu2 %v11652_v38  ;;  %v1364_v50 = vsel %vm13693_vm11, %v1359_v31, %v1363_v40  ;;  %v871_v54 = vld [vmem:[#allocation2 + $0x30] sm:$0xf]  ;;  %v725_v55 = vrot.slane %v723_v42, 7  ;;  %v329_v57 = vsel %vm13602_vm5, 0, %v328_v51  ;;  %v305_v59 = vsel %vm13602_vm5, 0, %v304_v52  ;;  %v470_v8 = vld [vmem:[%s13572_s8 + $0x48] sm:$0xff] }
  0x79   : > { %1516 = vst [vmem:[#allocation4 + $0x340] sm:$0xf] %v1364_v50  ;;  %v872_v39 = vsel %vm13671_vm10, %v584_v34, %v871_v54  ;;  %v721_v29 = vrot.slane %v717_v47, 4  ;;  %v251_v60 = vld [vmem:[#allocation2 + $0x3c] sm:$0x1]  ;;  %v720_v61 = vor.u32 %v718_v41, %v717_v47  ;;  %v1167_v5 = vrot.slane %v1166_v44, 4 }
  0x7a   : > { %873 = vst [vmem:[#allocation2 + $0x30] sm:$0xf] %v872_v39  ;;  %v728_v62 = vor.u32 %v726_v49, %v725_v55  ;;  %v1037_v56 = vld [vmem:[#allocation2 + $0x2c] sm:$0x1]  ;;  %v252_v63 = vsel %vm13588_vm4, 0, %v251_v60  ;;  %v596_v9 = vshrl.u32 %v13929_v58, 16  ;;  %v13950_v22 = vpack.c.bf16 %v470_v8, %v470_v8 }
  0x7b   : > { %330 = vst [vmem:[#allocation2 + $0x98] sm:$0x1] %v329_v57  ;;  %v13132_v4 = vld [vmem:[#allocation4 + $0x31c] sm:$0xf]  ;;  %v1169_v7 = vshll.u32 %v1037_v56, 16  ;;  %v594_v10 = vrot.slane %v13912_v30, 4 }
  0x7c   : > { %v729_v1 = vsel %vm13632_vm7, %v721_v29, %v728_v62  ;;  %306 = vst [vmem:[#allocation2 + $0x38] sm:$0x1] %v305_v59  ;;  %v730_v11 = vrot.slane %v725_v55, 4  ;;  %v13947_v14 = vrot.slane %v596_v9, 7  ;;  %v599_v15 = vshll.u32 %v13929_v58, 16  ;;  %v485_v34 = vld [vmem:[%s13572_s8 + $0xc0] sm:$0xff] }
  0x7d   : > { %v927_v19 = vld [vmem:[#allocation2 + $0x90] sm:$0xf]  ;;  %930 = vst [vmem:[#allocation2 + $0x94] sm:$0xf] %v729_v1  ;;  %v1171_v2 = vrot.slane %v1169_v7, 5  ;;  %v604_v33 = vshrl.u32 %v13950_v22, 16  ;;  %v13960_v51 = vpack.c.bf16 %v485_v34, %v485_v34 }
  0x7e   : > { %v928_v53 = vsel %vm13671_vm10, %v720_v61, %v927_v19  ;;  %253 = vst [vmem:[#allocation2 + $0x3c] sm:$0x1] %v252_v63  ;;  %v971_v18 = vld [vmem:[#allocation2 + $0x34] sm:$0xf]  ;;  %v13060_v35 = vld [vmem:[#allocation4 + $0xdc] sm:$0xf]  ;;  %v601_v57 = vor.u32 %v599_v15, %v13947_v14 }
  0x7f   : > { %929 = vst [vmem:[#allocation2 + $0x90] sm:$0xf] %v928_v53  ;;  %v1039_v21 = vld [vmem:[#allocation2 + $0x34] sm:$0xf]  ;;  %v1172_v25 = vsel %vm13693_vm11, %v1167_v5, %v1171_v2  ;;  %v486_v58 = vld [vmem:[%s13572_s8 + $0xc8] sm:$0xff]  ;;  %v602_v60 = vrot.slane %v13947_v14, 4 }
  0x80   : > { %v11653_v23 = vld [vmem:[#allocation4 + $0x33c] sm:$0xf0]  ;;  %1003 = vst [vmem:[#allocation4 + $0x144] sm:$0xf] %v971_v18  ;;  %v1183_v16 = vshll.u32 %v1039_v21, 16  ;;  %v1187_v26 = vshrl.u32 %v1039_v21, 16 }
  0x81   : > { %v11656_v27 = vor.u32 %v13132_v4, %v11653_v23  ;;  %1500 = vst [vmem:[#allocation4 + $0x100] sm:$0xf] %v1172_v25  ;;  %v970_v45 = vld [vmem:[#allocation2 + $0x30] sm:$0xf]  ;;  %v13965_v61 = vrot.slane %v604_v33, 7  ;;  %v607_v9 = vshll.u32 %v13950_v22, 16 }
  0x82   : > { %v1038_v6 = vld [vmem:[#allocation2 + $0x30] sm:$0xf]  ;;  %1002 = vst [vmem:[#allocation4 + $0x120] sm:$0xf] %v970_v45  ;;  %v931_v30 = vld [vmem:[#allocation2 + $0x98] sm:$0x1] }
  0x83   : > { %v1174_v28 = vshrl.u32 %v1038_v6, 16  ;;  %v1177_v31 = vshll.u32 %v1038_v6, 16  ;;  %5093 = vmatmul.bf16.gmra.mxu3 %v11656_v27  ;;  %v932_v17 = vsel %vm13588_vm4, %v730_v11, %v931_v30  ;;  %v875_v13 = vld [vmem:[#allocation2 + $0x38] sm:$0x1]  ;;  %v1185_v0 = vrot.slane %v1183_v16, 5  ;;  %v471_v5 = vld [vmem:[%s13572_s8 + $0x50] sm:$0xff] }
  0x84   : > { %v1189_v32 = vrot.slane %v1187_v26, 4  ;;  %v987_v36 = vld [vmem:[#allocation2 + $0x94] sm:$0xf]  ;;  %933 = vst [vmem:[#allocation2 + $0x98] sm:$0x1] %v932_v17  ;;  %v876_v40 = vsel %vm13588_vm4, %v594_v10, %v875_v13  ;;  %v13212_v18 = vld [vmem:[%s16754_s1 + $0x118] sm:$0xff]  ;;  %v609_v16 = vor.u32 %v607_v9, %v13965_v61  ;;  %v518_v26 = vpack.c.bf16 %v486_v58, %v486_v58 }
  0x85   : > { %v1063_v38 = vld [vmem:[#allocation2 + $0x94] sm:$0xf]  ;;  %1019 = vst [vmem:[#allocation4 + $0x384] sm:$0xf] %v987_v36  ;;  %v1176_v43 = vrot.slane %v1174_v28, 4  ;;  %v1179_v44 = vrot.slane %v1177_v31, 5  ;;  %5301 = vmatpush.bf16.msrb.mxu0 %v13212_v18  ;;  %v13985_v13 = vpack.c.bf16 %v471_v5, %v471_v5 }
  0x86   : > { %v1375_v41 = vshll.u32 %v1063_v38, 16  ;;  %v1379_v42 = vshrl.u32 %v1063_v38, 16  ;;  %v986_v46 = vld [vmem:[#allocation2 + $0x90] sm:$0xf]  ;;  %877 = vst [vmem:[#allocation2 + $0x38] sm:$0x1] %v876_v40  ;;  %v1190_v49 = vor.u32 %v1189_v32, %v1185_v0  ;;  %v610_v17 = vsel %vm13632_vm7, %v602_v60, %v609_v16 }
  0x87   : > { %v1062_v47 = vld [vmem:[#allocation2 + $0x90] sm:$0xf]  ;;  %v13073_v52 = vld [vmem:[#allocation4 + $0x140] sm:$0xf0]  ;;  %1018 = vst [vmem:[#allocation4 + $0x360] sm:$0xf] %v986_v46  ;;  %v1180_v55 = vor.u32 %v1179_v44, %v1176_v43 }
  0x88   : > { %v1366_v50 = vshrl.u32 %v1062_v47, 16  ;;  %v1369_v54 = vshll.u32 %v1062_v47, 16  ;;  %v11365_v39 = vld [vmem:[#allocation4 + $0xfc] sm:$0xf0]  ;;  %v1377_v29 = vrot.slane %v1375_v41, 5  ;;  %v1381_v59 = vrot.slane %v1379_v42, 4 }
  0x89   : > { %v11368_v62 = vor.u32 %v13060_v35, %v11365_v39  ;;  %v11399_v56 = vld [vmem:[#allocation4 + $0x120] sm:$0xf]  ;;  %v1181_v4 = vrot.slane %v1180_v55, 4  ;;  %v1191_v8 = vrot.slane %v1190_v49, 4  ;;  %v878_v10 = vld [vmem:[#allocation2 + $0x3c] sm:$0xf] }
  0x8a   : > { %v1368_v48 = vrot.slane %v1366_v50, 4  ;;  %v1371_v63 = vrot.slane %v1369_v54, 5  ;;  %v11400_v7 = vor.u32 %v13073_v52, %v11399_v56  ;;  %v1382_v1 = vor.u32 %v1381_v59, %v1377_v29  ;;  %v275_v11 = vld [vmem:[#allocation2 + $0x9c] sm:$0x1]  ;;  %v13195_v21 = vld [vmem:[%s16754_s1 + $0x90] sm:$0xff] }
  0x8b   : > { %5053 = vmatmul.bf16.gmra.mxu1 %v11368_v62  ;;  %v1064_v19 = vld [vmem:[#allocation2 + $0x98] sm:$0x1]  ;;  %v1186_v53 = vsel %vm13693_vm11, %v1181_v4, %v1185_v0  ;;  %v879_v14 = vsel %vm13671_vm10, %v601_v57, %v878_v10  ;;  %v276_v15 = vsel %vm13588_vm4, 0, %v275_v11  ;;  %v732_v6 = vshrl.u32 %v13960_v51, 16  ;;  %5124 = vmatpush.bf16.msrb.mxu2 %v13195_v21  ;;  %881 = vst [vmem:[#allocation2 + $0x40] sm:$0xf] %v610_v17 }
  0x8c   : > { %v1372_v2 = vor.u32 %v1371_v63, %v1368_v48  ;;  %4969 = vmatmul.bf16.gmra.mxu0 %v11400_v7  ;;  %v13145_v22 = vld [vmem:[#allocation4 + $0x380] sm:$0xf0]  ;;  %v1383_v23 = vrot.slane %v1382_v1, 4  ;;  %v1385_v25 = vshll.u32 %v1064_v19, 16  ;;  %1501 = vst [vmem:[#allocation4 + $0x124] sm:$0xf] %v1186_v53 }
  0x8d   : > { %v1040_v45 = vld [vmem:[#allocation2 + $0x38] sm:$0x1]  ;;  %880 = vst [vmem:[#allocation2 + $0x3c] sm:$0xf] %v879_v14  ;;  %v734_v33 = vrot.slane %v732_v6, 7  ;;  %v735_v34 = vshll.u32 %v13960_v51, 16 }
  0x8e   : > { %v1373_v27 = vrot.slane %v1372_v2, 4  ;;  %v11687_v30 = vld [vmem:[#allocation4 + $0x360] sm:$0xf]  ;;  %v1387_v28 = vrot.slane %v1385_v25, 5  ;;  %v1193_v31 = vshll.u32 %v1040_v45, 16  ;;  %v740_v40 = vshrl.u32 %v518_v26, 16 }
  0x8f   : > { %277 = vst [vmem:[#allocation2 + $0x9c] sm:$0x1] %v276_v15  ;;  %v11688_v0 = vor.u32 %v13145_v22, %v11687_v30  ;;  %v331_v35 = vld [vmem:[#allocation2 + $0xa4] sm:$0x1]  ;;  %v743_v41 = vshll.u32 %v518_v26, 16  ;;  %v738_v42 = vrot.slane %v734_v33, 4  ;;  %v737_v47 = vor.u32 %v735_v34, %v734_v33 }
  0x90   : > { %v1378_v32 = vsel %vm13693_vm11, %v1373_v27, %v1377_v29  ;;  %v1388_v36 = vsel %vm13693_vm11, %v1383_v23, %v1387_v28  ;;  %v1195_v38 = vrot.slane %v1193_v31, 5  ;;  %v332_v43 = vsel %vm13602_vm5, 0, %v331_v35  ;;  %v307_v44 = vld [vmem:[#allocation2 + $0x44] sm:$0x1]  ;;  %v254_v52 = vld [vmem:[#allocation2 + $0x48] sm:$0x1] }
  0x91   : > { %1517 = vst [vmem:[#allocation4 + $0x364] sm:$0xf] %v1378_v32  ;;  %5009 = vmatmul.bf16.gmra.mxu2 %v11688_v0  ;;  %v742_v49 = vrot.slane %v740_v40, 7  ;;  %v308_v51 = vsel %vm13602_vm5, 0, %v307_v44  ;;  %v611_v50 = vrot.slane %v13965_v61, 4  ;;  %v472_v54 = vld [vmem:[%s13572_s8 + $0x58] sm:$0xff] }
  0x92   : > { %1518 = vst [vmem:[#allocation4 + $0x388] sm:$0xf] %v1388_v36  ;;  %v1196_v46 = vsel %vm13693_vm11, %v1191_v8, %v1195_v38  ;;  %v613_v55 = vshrl.u32 %v13985_v13, 16  ;;  %v255_v29 = vsel %vm13588_vm4, 0, %v254_v52  ;;  %v13203_v60 = vld [vmem:[%s16754_s1 + $0xd0] sm:$0xff]  ;;  %v504_v10 = vpack.c.bf16 %v472_v54, %v472_v54  ;;  %v488_v36 = vld [vmem:[%s13572_s8 + $0xd8] sm:$0xff] }
  0x93   : > { %333 = vst [vmem:[#allocation2 + $0xa4] sm:$0x1] %v332_v43  ;;  %v745_v58 = vor.u32 %v743_v41, %v742_v49  ;;  %v747_v39 = vrot.slane %v742_v49, 4  ;;  %v13069_v61 = vld [vmem:[#allocation4 + $0x124] sm:$0xf]  ;;  %5213 = vmatpush.bf16.msrb.mxu3 %v13203_v60  ;;  %v616_v17 = vshll.u32 %v13985_v13, 16  ;;  %v520_v54 = vpack.c.bf16 %v488_v36, %v488_v36 }
  0x94   : > { %1502 = vst [vmem:[#allocation4 + $0x148] sm:$0xf] %v1196_v46  ;;  %v972_v57 = vld [vmem:[#allocation2 + $0x3c] sm:$0xf]  ;;  %v14006_v62 = vrot.slane %v613_v55, 7  ;;  %v487_v7 = vld [vmem:[%s13572_s8 + $0xd0] sm:$0xff] }
  0x95   : > { %309 = vst [vmem:[#allocation2 + $0x44] sm:$0x1] %v308_v51  ;;  %v973_v56 = vld [vmem:[#allocation2 + $0x40] sm:$0xf]  ;;  %v746_v48 = vsel %vm13632_vm7, %v738_v42, %v745_v58  ;;  %v1041_v4 = vld [vmem:[#allocation2 + $0x3c] sm:$0xf]  ;;  %v519_v6 = vpack.c.bf16 %v487_v7, %v487_v7 }
  0x96   : > { %1004 = vst [vmem:[#allocation4 + $0x168] sm:$0xf] %v972_v57  ;;  %v934_v59 = vld [vmem:[#allocation2 + $0x9c] sm:$0xf]  ;;  %v1042_v5 = vld [vmem:[#allocation2 + $0x40] sm:$0xf] }
  0x97   : > { %v935_v63 = vsel %vm13671_vm10, %v737_v47, %v934_v59  ;;  %1005 = vst [vmem:[#allocation4 + $0x18c] sm:$0xf] %v973_v56  ;;  %v1198_v8 = vshrl.u32 %v1041_v4, 16  ;;  %v1201_v9 = vshll.u32 %v1041_v4, 16  ;;  %v1207_v19 = vshll.u32 %v1042_v5, 16  ;;  %v473_v49 = vld [vmem:[%s13572_s8 + $0x60] sm:$0xff] }
  0x98   : > { %v13141_v1 = vld [vmem:[#allocation4 + $0x364] sm:$0xf]  ;;  %936 = vst [vmem:[#allocation2 + $0x9c] sm:$0xf] %v935_v63  ;;  %v1211_v2 = vshrl.u32 %v1042_v5, 16  ;;  %v621_v45 = vshrl.u32 %v504_v10, 16 }
  0x99   : > { %v11689_v11 = vld [vmem:[#allocation4 + $0x384] sm:$0xf0]  ;;  %937 = vst [vmem:[#allocation2 + $0xa0] sm:$0xf] %v746_v48  ;;  %v1200_v15 = vrot.slane %v1198_v8, 4  ;;  %v1203_v18 = vrot.slane %v1201_v9, 5 }
  0x9a   : > { %v11692_v53 = vor.u32 %v13141_v1, %v11689_v11  ;;  %v938_v14 = vld [vmem:[#allocation2 + $0xa4] sm:$0x1]  ;;  %v1209_v23 = vrot.slane %v1207_v19, 5  ;;  %v1213_v25 = vrot.slane %v1211_v2, 4  ;;  %256 = vst [vmem:[#allocation2 + $0x48] sm:$0x1] %v255_v29 }
  0x9b   : > { %v11401_v21 = vld [vmem:[#allocation4 + $0x144] sm:$0xf0]  ;;  %v939_v22 = vsel %vm13588_vm4, %v747_v39, %v938_v14  ;;  %v1204_v27 = vor.u32 %v1203_v18, %v1200_v15  ;;  %v624_v0 = vshll.u32 %v504_v10, 16  ;;  %v278_v32 = vld [vmem:[#allocation2 + $0xa8] sm:$0x1]  ;;  %v14018_v34 = vrot.slane %v621_v45, 7 }
  0x9c   : > { %5098 = vmatmul.bf16.gmra.mxu3 %v11692_v53  ;;  %v11404_v16 = vor.u32 %v13069_v61, %v11401_v21  ;;  %940 = vst [vmem:[#allocation2 + $0xa4] sm:$0x1] %v939_v22  ;;  %v882_v26 = vld [vmem:[#allocation2 + $0x44] sm:$0x1]  ;;  %v1214_v31 = vor.u32 %v1213_v25, %v1209_v23  ;;  %v279_v35 = vsel %vm13588_vm4, 0, %v278_v32  ;;  %v619_v41 = vrot.slane %v14006_v62, 4 }
  0x9d   : > { %v11435_v30 = vld [vmem:[#allocation4 + $0x168] sm:$0xf]  ;;  %v883_v28 = vsel %vm13588_vm4, %v611_v50, %v882_v26  ;;  %v1205_v33 = vrot.slane %v1204_v27, 4  ;;  %280 = vst [vmem:[#allocation2 + $0xa8] sm:$0x1] %v279_v35  ;;  %v626_v46 = vor.u32 %v624_v0, %v14018_v34  ;;  %v749_v47 = vshrl.u32 %v519_v6, 16 }
  0x9e   : > { %5058 = vmatmul.bf16.gmra.mxu1 %v11404_v16  ;;  %884 = vst [vmem:[#allocation2 + $0x44] sm:$0x1] %v883_v28  ;;  %v13082_v38 = vld [vmem:[#allocation4 + $0x188] sm:$0xf0]  ;;  %v14023_v40 = vrot.slane %v1214_v31, 4  ;;  %v618_v50 = vor.u32 %v616_v17, %v14006_v62  ;;  %v14033_v61 = vpack.c.bf16 %v473_v49, %v473_v49  ;;  %v752_v8 = vshll.u32 %v519_v6, 16 }
  0x9f   : > { %v11436_v42 = vor.u32 %v13082_v38, %v11435_v30  ;;  %v988_v13 = vld [vmem:[#allocation2 + $0x9c] sm:$0xf]  ;;  %v1210_v44 = vsel %vm13693_vm11, %v1205_v33, %v1209_v23  ;;  %v627_v59 = vsel %vm13632_vm7, %v619_v41, %v626_v46  ;;  %v751_v1 = vrot.slane %v749_v47, 7  ;;  %v13211_v9 = vld [vmem:[%s16754_s1 + $0x110] sm:$0xff]  ;;  %v13194_v22 = vld [vmem:[%s16754_s1 + $0x88] sm:$0xff] }
  0xa0   : > { %v1065_v43 = vld [vmem:[#allocation2 + $0x9c] sm:$0xf]  ;;  %v989_v51 = vld [vmem:[#allocation2 + $0xa0] sm:$0xf]  ;;  %1020 = vst [vmem:[#allocation4 + $0x3a8] sm:$0xf] %v988_v13  ;;  %5302 = vmatpush.bf16.msrb.mxu0 %v13211_v9  ;;  %5125 = vmatpush.bf16.msrb.mxu2 %v13194_v22 }
  0xa1   : > { %v1066_v52 = vld [vmem:[#allocation2 + $0xa0] sm:$0xf]  ;;  %4974 = vmatmul.bf16.gmra.mxu0 %v11436_v42  ;;  %1021 = vst [vmem:[#allocation4 + $0x3cc] sm:$0xf] %v989_v51  ;;  %v1390_v55 = vshrl.u32 %v1065_v43, 16  ;;  %v1393_v57 = vshll.u32 %v1065_v43, 16  ;;  %v754_v18 = vor.u32 %v752_v8, %v751_v1 }
  0xa2   : > { %v1399_v58 = vshll.u32 %v1066_v52, 16  ;;  %v1403_v39 = vshrl.u32 %v1066_v52, 16  ;;  %1503 = vst [vmem:[#allocation4 + $0x16c] sm:$0xf] %v1210_v44  ;;  %v885_v60 = vld [vmem:[#allocation2 + $0x48] sm:$0xf] }
  0xa3   : > { %v1067_v29 = vld [vmem:[#allocation2 + $0xa4] sm:$0x1]  ;;  %v1392_v56 = vrot.slane %v1390_v55, 4  ;;  %v1395_v48 = vrot.slane %v1393_v57, 5  ;;  %888 = vst [vmem:[#allocation2 + $0x4c] sm:$0xf] %v627_v59  ;;  %v886_v7 = vsel %vm13671_vm10, %v618_v50, %v885_v60 }
  0xa4   : > { %v1401_v63 = vrot.slane %v1399_v58, 5  ;;  %v1405_v4 = vrot.slane %v1403_v39, 4  ;;  %v1409_v62 = vshll.u32 %v1067_v29, 16  ;;  %887 = vst [vmem:[#allocation2 + $0x48] sm:$0xf] %v886_v7  ;;  %v757_v2 = vshrl.u32 %v520_v54, 16 }
  0xa5   : > { %v1043_v5 = vld [vmem:[#allocation2 + $0x44] sm:$0x1]  ;;  %v1396_v10 = vor.u32 %v1395_v48, %v1392_v56  ;;  %v941_v53 = vld [vmem:[#allocation2 + $0xa8] sm:$0xf]  ;;  %v628_v15 = vrot.slane %v14018_v34, 4  ;;  %v760_v21 = vshll.u32 %v520_v54, 16 }
  0xa6   : > { %v1406_v11 = vor.u32 %v1405_v4, %v1401_v63  ;;  %v1217_v19 = vshll.u32 %v1043_v5, 16  ;;  %v1411_v14 = vrot.slane %v1409_v62, 5  ;;  %v474_v23 = vld [vmem:[%s13572_s8 + $0x68] sm:$0xff]  ;;  %v14045_v45 = vrot.slane %v757_v2, 7  ;;  %v334_v31 = vld [vmem:[#allocation2 + $0xb0] sm:$0x1] }
  0xa7   : > { %v11723_v25 = vld [vmem:[#allocation4 + $0x3a8] sm:$0xf]  ;;  %v1397_v16 = vrot.slane %v1396_v10, 4  ;;  %v755_v30 = vrot.slane %v751_v1, 4  ;;  %v942_v28 = vsel %vm13671_vm10, %v754_v18, %v941_v53  ;;  %v630_v17 = vshrl.u32 %v14033_v61, 16  ;;  %v13202_v9 = vld [vmem:[%s16754_s1 + $0xc8] sm:$0xff] }
  0xa8   : > { %v1407_v26 = vrot.slane %v1406_v11, 4  ;;  %v1219_v27 = vrot.slane %v1217_v19, 5  ;;  %v13154_v6 = vld [vmem:[#allocation4 + $0x3c8] sm:$0xf0]  ;;  %943 = vst [vmem:[#allocation2 + $0xa8] sm:$0xf] %v942_v28  ;;  %v762_v41 = vor.u32 %v760_v21, %v14045_v45  ;;  %v506_v13 = vpack.c.bf16 %v474_v23, %v474_v23  ;;  %5214 = vmatpush.bf16.msrb.mxu3 %v13202_v9 }
  0xa9   : > { %v11724_v0 = vor.u32 %v13154_v6, %v11723_v25  ;;  %v1402_v32 = vsel %vm13693_vm11, %v1397_v16, %v1401_v63  ;;  %v310_v36 = vld [vmem:[#allocation2 + $0x50] sm:$0x1]  ;;  %v257_v42 = vld [vmem:[#allocation2 + $0x54] sm:$0x1]  ;;  %v335_v43 = vsel %vm13602_vm5, 0, %v334_v31  ;;  %v14060_v46 = vrot.slane %v630_v17, 7 }
  0xaa   : > { %v1412_v33 = vsel %vm13693_vm11, %v1407_v26, %v1411_v14  ;;  %v1220_v35 = vsel %vm13693_vm11, %v14023_v40, %v1219_v27  ;;  %1519 = vst [vmem:[#allocation4 + $0x3ac] sm:$0xf] %v1402_v32  ;;  %v975_v38 = vld [vmem:[#allocation2 + $0x4c] sm:$0xf]  ;;  %v763_v40 = vsel %vm13632_vm7, %v755_v30, %v762_v41  ;;  %v311_v51 = vsel %vm13602_vm5, 0, %v310_v36  ;;  %v489_v18 = vld [vmem:[%s13572_s8 + $0xe0] sm:$0xff] }
  0xab   : > { %5014 = vmatmul.bf16.gmra.mxu2 %v11724_v0  ;;  %1520 = vst [vmem:[#allocation4 + $0x3d0] sm:$0xf] %v1412_v33  ;;  %v1045_v44 = vld [vmem:[#allocation2 + $0x4c] sm:$0xf]  ;;  %v974_v47 = vld [vmem:[#allocation2 + $0x48] sm:$0xf]  ;;  %v521_v17 = vpack.c.bf16 %v489_v18, %v489_v18 }
  0xac   : > { %1504 = vst [vmem:[#allocation4 + $0x190] sm:$0xf] %v1220_v35  ;;  %v1044_v49 = vld [vmem:[#allocation2 + $0x48] sm:$0xf]  ;;  %v1231_v54 = vshll.u32 %v1045_v44, 16  ;;  %v1235_v55 = vshrl.u32 %v1045_v44, 16 }
  0xad   : > { %1006 = vst [vmem:[#allocation4 + $0x1b0] sm:$0xf] %v974_v47  ;;  %v1222_v52 = vshrl.u32 %v1044_v49, 16  ;;  %v1225_v50 = vshll.u32 %v1044_v49, 16  ;;  %v258_v57 = vsel %vm13588_vm4, 0, %v257_v42  ;;  %v636_v58 = vrot.slane %v14060_v46, 4 }
  0xae   : > { %1007 = vst [vmem:[#allocation4 + $0x1d4] sm:$0xf] %v975_v38  ;;  %v638_v39 = vshrl.u32 %v506_v13, 16  ;;  %v13078_v29 = vld [vmem:[#allocation4 + $0x16c] sm:$0xf]  ;;  %v14069_v56 = vrot.slane %v1231_v54, 5 }
  0xaf   : > { %944 = vst [vmem:[#allocation2 + $0xac] sm:$0xf] %v763_v40  ;;  %v1224_v59 = vrot.slane %v1222_v52, 4  ;;  %v1227_v60 = vrot.slane %v1225_v50, 5  ;;  %v641_v48 = vshll.u32 %v506_v13, 16  ;;  %v764_v23 = vrot.slane %v14045_v45, 4 }
  0xb0   : > { %v990_v63 = vld [vmem:[#allocation2 + $0xa8] sm:$0xf]  ;;  %336 = vst [vmem:[#allocation2 + $0xb0] sm:$0x1] %v335_v43  ;;  %v14074_v10 = vrot.slane %v638_v39, 7  ;;  %v633_v25 = vshll.u32 %v14033_v61, 16 }
  0xb1   : > { %v1068_v4 = vld [vmem:[#allocation2 + $0xa8] sm:$0xf]  ;;  %v13150_v62 = vld [vmem:[#allocation4 + $0x3ac] sm:$0xf]  ;;  %1022 = vst [vmem:[#allocation4 + $0x3f0] sm:$0xf] %v990_v63  ;;  %v1228_v1 = vor.u32 %v1227_v60, %v1224_v59 }
  0xb2   : > { %v1414_v5 = vshrl.u32 %v1068_v4, 16  ;;  %v1417_v7 = vshll.u32 %v1068_v4, 16  ;;  %v11725_v8 = vld [vmem:[#allocation4 + $0x3cc] sm:$0xf0]  ;;  %312 = vst [vmem:[#allocation2 + $0x50] sm:$0x1] %v311_v51  ;;  %v643_v16 = vor.u32 %v641_v48, %v14074_v10  ;;  %v635_v13 = vor.u32 %v633_v25, %v14060_v46 }
  0xb3   : > { %v11728_v11 = vor.u32 %v13150_v62, %v11725_v8  ;;  %v11437_v19 = vld [vmem:[#allocation4 + $0x18c] sm:$0xf0]  ;;  %v1229_v14 = vrot.slane %v1228_v1, 4  ;;  %259 = vst [vmem:[#allocation2 + $0x54] sm:$0x1] %v258_v57  ;;  %v1237_v30 = vrot.slane %v1235_v55, 4 }
  0xb4   : > { %v1416_v2 = vrot.slane %v1414_v5, 4  ;;  %v1419_v53 = vrot.slane %v1417_v7, 5  ;;  %v11440_v21 = vor.u32 %v13078_v29, %v11437_v19  ;;  %v11471_v22 = vld [vmem:[#allocation4 + $0x1b0] sm:$0xf]  ;;  %v281_v28 = vld [vmem:[#allocation2 + $0xb4] sm:$0x1]  ;;  %v644_v61 = vsel %vm13632_vm7, %v636_v58, %v643_v16 }
  0xb5   : > { %5103 = vmatmul.bf16.gmra.mxu3 %v11728_v11  ;;  %v13091_v26 = vld [vmem:[#allocation4 + $0x1d0] sm:$0xf0]  ;;  %v1234_v6 = vsel %vm13693_vm11, %v1229_v14, %v14069_v56  ;;  %v490_v31 = vld [vmem:[%s13572_s8 + $0xe8] sm:$0xff]  ;;  %895 = vst [vmem:[#allocation2 + $0x58] sm:$0xf] %v644_v61  ;;  %v282_v43 = vsel %vm13588_vm4, 0, %v281_v28  ;;  %v1238_v34 = vor.u32 %v1237_v30, %v14069_v56 }
  0xb6   : > { %v1420_v27 = vor.u32 %v1419_v53, %v1416_v2  ;;  %5063 = vmatmul.bf16.gmra.mxu1 %v11440_v21  ;;  %v11472_v0 = vor.u32 %v13091_v26, %v11471_v22  ;;  %v991_v45 = vld [vmem:[#allocation2 + $0xac] sm:$0xf]  ;;  %1505 = vst [vmem:[#allocation4 + $0x1b4] sm:$0xf] %v1234_v6  ;;  %v522_v33 = vpack.c.bf16 %v490_v31, %v490_v31  ;;  %v766_v40 = vshrl.u32 %v521_v17, 16  ;;  %v13224_v60 = vld [vmem:[%s16754_s1 + $0x178] sm:$0xff] }
  0xb7   : > { %v1069_v32 = vld [vmem:[#allocation2 + $0xac] sm:$0xf]  ;;  %1023 = vst [vmem:[#allocation4 + $0x414] sm:$0xf] %v991_v45  ;;  %v945_v35 = vld [vmem:[#allocation2 + $0xb0] sm:$0x1]  ;;  %5386 = vmatpush.bf16.msrb.mxu1 %v13224_v60 }
  0xb8   : > { %v1421_v36 = vrot.slane %v1420_v27, 4  ;;  %v1423_v38 = vshll.u32 %v1069_v32, 16  ;;  %4979 = vmatmul.bf16.gmra.mxu0 %v11472_v0  ;;  %v946_v41 = vsel %vm13588_vm4, %v764_v23, %v945_v35  ;;  %v1427_v42 = vshrl.u32 %v1069_v32, 16  ;;  %v11759_v49 = vld [vmem:[#allocation4 + $0x3f0] sm:$0xf]  ;;  %v13210_v46 = vld [vmem:[%s16754_s1 + $0x108] sm:$0xff] }
  0xb9   : > { %947 = vst [vmem:[#allocation2 + $0xb0] sm:$0x1] %v946_v41  ;;  %v889_v47 = vld [vmem:[#allocation2 + $0x50] sm:$0x1]  ;;  %v769_v50 = vshll.u32 %v521_v17, 16  ;;  %v774_v54 = vshrl.u32 %v522_v33, 16  ;;  %5303 = vmatpush.bf16.msrb.mxu0 %v13210_v46 }
  0xba   : > { %v1425_v44 = vrot.slane %v1423_v38, 5  ;;  %v1429_v51 = vrot.slane %v1427_v42, 4  ;;  %v890_v52 = vsel %vm13588_vm4, %v628_v15, %v889_v47  ;;  %283 = vst [vmem:[#allocation2 + $0xb4] sm:$0x1] %v282_v43  ;;  %v892_v57 = vld [vmem:[#allocation2 + $0x54] sm:$0xf]  ;;  %v4950_v38 = vpop.f32.mrf.mxu0 }
  0xbb   : > { %891 = vst [vmem:[#allocation2 + $0x50] sm:$0x1] %v890_v52  ;;  %v768_v58 = vrot.slane %v766_v40, 7  ;;  %v777_v39 = vshll.u32 %v522_v33, 16  ;;  %v893_v15 = vsel %vm13671_vm10, %v635_v13, %v892_v57  ;;  %v14103_v59 = vrot.slane %v774_v54, 7  ;;  %v13193_v48 = vld [vmem:[%s16754_s1 + $0x80] sm:$0xff]  ;;  %v4990_v60 = vpop.f32.mrf.mxu2 }
  0xbc   : > { %v1426_v55 = vsel %vm13693_vm11, %v1421_v36, %v1425_v44  ;;  %v1430_v29 = vor.u32 %v1429_v51, %v1425_v44  ;;  %894 = vst [vmem:[#allocation2 + $0x54] sm:$0xf] %v893_v15  ;;  %5126 = vmatpush.bf16.msrb.mxu2 %v13193_v48  ;;  %v13223_v5 = vld [vmem:[%s16754_s1 + $0x170] sm:$0xff]  ;;  %v337_v7 = vld [vmem:[#allocation2 + $0xbc] sm:$0x1]  ;;  %v1239_v53 = vrot.slane %v1238_v34, 4  ;;  %v5039_v48 = vpop.f32.mrf.mxu1 }
  0xbd   : > { %1521 = vst [vmem:[#allocation4 + $0x3f4] sm:$0xf] %v1426_v55  ;;  %v772_v63 = vrot.slane %v768_v58, 4  ;;  %v771_v62 = vor.u32 %v769_v50, %v768_v58  ;;  %v779_v56 = vor.u32 %v777_v39, %v14103_v59  ;;  %v977_v8 = vld [vmem:[#allocation2 + $0x58] sm:$0xf]  ;;  %v338_v9 = vsel %vm13602_vm5, 0, %v337_v7  ;;  %5387 = vmatpush.bf16.msrb.mxu1 %v13223_v5 }
  0xbe   : > { %v13163_v4 = vld [vmem:[#allocation4 + $0x410] sm:$0xf0]  ;;  %v313_v11 = vld [vmem:[#allocation2 + $0x5c] sm:$0x1]  ;;  %v1431_v2 = vrot.slane %v1430_v29, 4  ;;  %v645_v6 = vrot.slane %v14074_v10, 4 }
  0xbf   : > { %v11760_v1 = vor.u32 %v13163_v4, %v11759_v49  ;;  %1009 = vst [vmem:[#allocation4 + $0x21c] sm:$0xf] %v977_v8  ;;  %v780_v14 = vsel %vm13632_vm7, %v772_v63, %v779_v56  ;;  %v314_v22 = vsel %vm13602_vm5, 0, %v313_v11  ;;  %v1048_v16 = vld [vmem:[#allocation2 + $0x58] sm:$0xf]  ;;  %v781_v30 = vrot.slane %v14103_v59, 4 }
  0xc0   : > { %v1070_v19 = vld [vmem:[#allocation2 + $0xb0] sm:$0x1]  ;;  %951 = vst [vmem:[#allocation2 + $0xb8] sm:$0xf] %v780_v14  ;;  %v13201_v31 = vld [vmem:[%s16754_s1 + $0xc0] sm:$0xff]  ;;  %v1255_v17 = vshll.u32 %v1048_v16, 16 }
  0xc1   : > { %5019 = vmatmul.bf16.gmra.mxu2 %v11760_v1  ;;  %v1433_v18 = vshll.u32 %v1070_v19, 16  ;;  %v948_v21 = vld [vmem:[#allocation2 + $0xb4] sm:$0xf]  ;;  %339 = vst [vmem:[#allocation2 + $0xbc] sm:$0x1] %v338_v9  ;;  %v1259_v61 = vshrl.u32 %v1048_v16, 16  ;;  %5215 = vmatpush.bf16.msrb.mxu3 %v13201_v31 }
  0xc2   : > { %v1046_v23 = vld [vmem:[#allocation2 + $0x50] sm:$0x1]  ;;  %v949_v25 = vsel %vm13671_vm10, %v771_v62, %v948_v21  ;;  %315 = vst [vmem:[#allocation2 + $0x5c] sm:$0x1] %v314_v22  ;;  %v14130_v35 = vrot.slane %v1255_v17, 5  ;;  %v13222_v36 = vld [vmem:[%s16754_s1 + $0x168] sm:$0xff] }
  0xc3   : > { %v1435_v26 = vrot.slane %v1433_v18, 5  ;;  %v1241_v27 = vshll.u32 %v1046_v23, 16  ;;  %950 = vst [vmem:[#allocation2 + $0xb4] sm:$0xf] %v949_v25  ;;  %v976_v28 = vld [vmem:[#allocation2 + $0x54] sm:$0xf]  ;;  %5388 = vmatpush.bf16.msrb.mxu1 %v13222_v36 }
  0xc4   : > { %1008 = vst [vmem:[#allocation4 + $0x1f8] sm:$0xf] %v976_v28  ;;  %v1047_v32 = vld [vmem:[#allocation2 + $0x54] sm:$0xf]  ;;  %v1261_v42 = vrot.slane %v1259_v61, 4  ;;  %v13209_v13 = vld [vmem:[%s16754_s1 + $0x100] sm:$0xff] }
  0xc5   : > { %v1436_v0 = vsel %vm13693_vm11, %v1431_v2, %v1435_v26  ;;  %v1243_v45 = vrot.slane %v1241_v27, 5  ;;  %v1246_v10 = vshrl.u32 %v1047_v32, 16  ;;  %v1249_v33 = vshll.u32 %v1047_v32, 16  ;;  %v13159_v40 = vld [vmem:[#allocation4 + $0x3f4] sm:$0xf]  ;;  %5304 = vmatpush.bf16.msrb.mxu0 %v13209_v13  ;;  %v14159_v27 = vpop.f32.mrf.mxu0  ;;  %v11047_v16 = vld [vmem:[%s13572_s8 + $0x10] sm:$0xff] }
  0xc6   : > { %1522 = vst [vmem:[#allocation4 + $0x418] sm:$0xf] %v1436_v0  ;;  %vm1621_vm12 = vcmask 1042432   ;;  %vm1622_vm13 = vcmask 1046532   ;;  %v13100_v43 = vld [vmem:[#allocation4 + $0x218] sm:$0xf0]  ;;  %v1262_v58 = vor.u32 %v1261_v42, %v14130_v35 }
  0xc7   : > { %v1244_v41 = vsel %vm13693_vm11, %v1239_v53, %v1243_v45  ;;  %v993_v44 = vld [vmem:[#allocation2 + $0xb8] sm:$0xf]  ;;  %v1248_v55 = vrot.slane %v1246_v10, 4  ;;  %v1251_v57 = vrot.slane %v1249_v33, 5  ;;  %v13087_v39 = vld [vmem:[#allocation4 + $0x1b4] sm:$0xf]  ;;  %vm14155_vm14 = vmor %vm1621_vm12, %vm1622_vm13 }
  0xc8   : > { %1506 = vst [vmem:[#allocation4 + $0x1d8] sm:$0xf] %v1244_v41  ;;  %v1072_v47 = vld [vmem:[#allocation2 + $0xb8] sm:$0xf]  ;;  %v952_v49 = vld [vmem:[#allocation2 + $0xbc] sm:$0x1] }
  0xc9   : > { %1025 = vst [vmem:[#allocation4 + $0x45c] sm:$0xf] %v993_v44  ;;  %v1447_v51 = vshll.u32 %v1072_v47, 16  ;;  %v1451_v52 = vshrl.u32 %v1072_v47, 16  ;;  %v953_v54 = vsel %vm13588_vm4, %v781_v30, %v952_v49  ;;  %v896_v4 = vld [vmem:[#allocation2 + $0x5c] sm:$0x1]  ;;  %v1252_v62 = vor.u32 %v1251_v57, %v1248_v55  ;;  %v5079_v49 = vpop.f32.mrf.mxu3  ;;  %v14181_v55 = vpop.f32.mrf.mxu1 }
  0xca   : > { %v992_v50 = vld [vmem:[#allocation2 + $0xb4] sm:$0xf]  ;;  %954 = vst [vmem:[#allocation2 + $0xbc] sm:$0x1] %v953_v54  ;;  %v14146_v9 = vld [vmem:[%s16755_s2] ss:$0 sm:$0xff]  ;;  %v897_v19 = vsel %vm13588_vm4, %v645_v6, %v896_v4 }
  0xcb   : > { %v1071_v46 = vld [vmem:[#allocation2 + $0xb4] sm:$0xf]  ;;  %1024 = vst [vmem:[#allocation4 + $0x438] sm:$0xf] %v992_v50  ;;  %v1449_v15 = vrot.slane %v1447_v51, 5  ;;  %v1453_v59 = vrot.slane %v1451_v52, 4  ;;  %v4951_v25 = vadd.f32 %v14146_v9, %v4950_v38  ;;  %v4991_v10 = vadd.f32 %v14146_v9, %v4990_v60 }
  0xcc   : > { %v1438_v29 = vshrl.u32 %v1071_v46, 16  ;;  %v1441_v34 = vshll.u32 %v1071_v46, 16  ;;  %v11507_v63 = vld [vmem:[#allocation4 + $0x1f8] sm:$0xf]  ;;  %v1253_v2 = vrot.slane %v1252_v62, 4  ;;  %v14150_v53 = vrot.slane %v1262_v58, 4 }
  0xcd   : > { %v11761_v56 = vld [vmem:[#allocation4 + $0x414] sm:$0xf0]  ;;  %v11508_v5 = vor.u32 %v13100_v43, %v11507_v63  ;;  %v1454_v8 = vor.u32 %v1453_v59, %v1449_v15  ;;  %v1525_v14 = vld [vmem:[#allocation2] sm:$0xe]  ;;  %v1526_v18 = vld [vmem:[#allocation2 + $0x4] sm:$0xf]  ;;  %v14168_v33 = vadd.f32 %v5039_v48, %v4951_v25 }
  0xce   : > { %v1440_v7 = vrot.slane %v1438_v29, 4  ;;  %v1443_v1 = vrot.slane %v1441_v34, 5  ;;  %v11764_v11 = vor.u32 %v13159_v40, %v11761_v56  ;;  %898 = vst [vmem:[#allocation2 + $0x5c] sm:$0x1] %v897_v19  ;;  %v11205_v26 = vrot.slane %v1525_v14, 9  ;;  %v13221_v0 = vld [vmem:[%s16754_s1 + $0x160] sm:$0xff]  ;;  %v14174_v40 = vpop.f32.mrf.mxu2 }
  0xcf   : > { %v11473_v21 = vld [vmem:[#allocation4 + $0x1d4] sm:$0xf0]  ;;  %4984 = vmatmul.bf16.gmra.mxu0 %v11508_v5  ;;  %v1455_v23 = vrot.slane %v1454_v8, 4  ;;  %v1258_v28 = vsel %vm13693_vm11, %v1253_v2, %v14130_v35  ;;  %v1626_v17 = vrot.slane %v1526_v18, 5  ;;  %v6799_v61 = vld [vmem:[#allocation3] sm:$0xe]  ;;  %5389 = vmatpush.bf16.msrb.mxu1 %v13221_v0  ;;  %v4955_v18 = vpop.f32.mrf.mxu0 }
  0xd0   : > { %v1444_v22 = vor.u32 %v1443_v1, %v1440_v7  ;;  %5108 = vmatmul.bf16.gmra.mxu3 %v11764_v11  ;;  %v11476_v6 = vor.u32 %v13087_v39, %v11473_v21  ;;  %v13172_v30 = vld [vmem:[#allocation4 + $0x458] sm:$0xf0]  ;;  %v1527_v31 = vld [vmem:[#allocation2 + $0x8] sm:$0x1]  ;;  %1507 = vst [vmem:[#allocation4 + $0x1fc] sm:$0xf] %v1258_v28  ;;  %v14183_v39 = vadd.f32 %v5079_v49, %v4991_v10 }
  0xd1   : > { %v1629_v32 = vrot.slane %v1527_v31, 5  ;;  %v1627_v38 = vsel %vm14155_vm14, %v11205_v26, %v1626_v17  ;;  %v1628_v35 = vrot.slane %v1626_v17, 4  ;;  %v6800_v41 = vld [vmem:[#allocation3 + $0x4] sm:$0xf]  ;;  %v12117_v42 = vrot.slane %v6799_v61, 9  ;;  %v13219_v56 = vld [vmem:[%s16754_s1 + $0x150] sm:$0xff] }
  0xd2   : > { %v1445_v45 = vrot.slane %v1444_v22, 4  ;;  %5068 = vmatmul.bf16.gmra.mxu1 %v11476_v6  ;;  %v11795_v36 = vld [vmem:[#allocation4 + $0x438] sm:$0xf]  ;;  %v1073_v43 = vld [vmem:[#allocation2 + $0xbc] sm:$0x1]  ;;  %v6897_v50 = vrot.slane %v6800_v41, 5  ;;  %v4956_v6 = vadd.f32 %v14146_v9, %v4955_v18 }
  0xd3   : > { %v11796_v13 = vor.u32 %v13172_v30, %v11795_v36  ;;  %1768 = vst [vmem:[#allocation4 + $0x8] sm:$0xf] %v1627_v38  ;;  %v6801_v47 = vld [vmem:[#allocation3 + $0x8] sm:$0x1]  ;;  %v1457_v51 = vshll.u32 %v1073_v43, 16  ;;  %v1630_v52 = vsel %vm14155_vm14, %v1628_v35, %v1629_v32  ;;  %v13220_v46 = vld [vmem:[%s16754_s1 + $0x158] sm:$0xff]  ;;  %v14209_v32 = vpop.f32.mrf.mxu3  ;;  %v5044_v38 = vpop.f32.mrf.mxu1 }
  0xd4   : > { %v1450_v44 = vsel %vm13693_vm11, %v1445_v45, %v1449_v15  ;;  %v6900_v54 = vrot.slane %v6801_v47, 5  ;;  %1769 = vst [vmem:[#allocation4 + $0x2c] sm:$0xf] %v1630_v52  ;;  %v1864_v57 = vld [vmem:[#allocation2 + $0xc] sm:$0xf]  ;;  %v6899_v15 = vrot.slane %v6897_v50, 4  ;;  %5390 = vmatpush.bf16.msrb.mxu1 %v13220_v46  ;;  %v6898_v7 = vsel %vm14155_vm14, %v12117_v42, %v6897_v50 }
  0xd5   : > { %1523 = vst [vmem:[#allocation4 + $0x43c] sm:$0xf] %v1450_v44  ;;  %5024 = vmatmul.bf16.gmra.mxu2 %v11796_v13  ;;  %v1865_v58 = vld [vmem:[#allocation2 + $0x10] sm:$0xf]  ;;  %v1459_v29 = vrot.slane %v1457_v51, 5  ;;  %v1913_v48 = vshrl.u32 %v1864_v57, 16  ;;  %v14211_v13 = vadd.f32 %v5044_v38, %v4956_v6 }
  0xd6   : > { %v1049_v34 = vld [vmem:[#allocation2 + $0x5c] sm:$0x1]  ;;  %v1866_v59 = vld [vmem:[#allocation2 + $0x14] sm:$0x1]  ;;  %v1916_v63 = vshll.u32 %v1864_v57, 16  ;;  %v1922_v4 = vshll.u32 %v1865_v58, 16  ;;  %v6901_v22 = vsel %vm14155_vm14, %v6899_v15, %v6900_v54  ;;  %v4995_v45 = vpop.f32.mrf.mxu2 }
  0xd7   : > { %v1265_v60 = vshll.u32 %v1049_v34, 16  ;;  %v13232_v62 = vld [vmem:[%s16754_s1 + $0x1b8] sm:$0xff]  ;;  %v1460_v5 = vsel %vm13693_vm11, %v1455_v23, %v1459_v29  ;;  %v1926_v1 = vshrl.u32 %v1865_v58, 16  ;;  %v1932_v8 = vshll.u32 %v1866_v59, 16  ;;  %v1800_v23 = vld [vmem:[#allocation2 + $0xc] sm:$0xf] }
  0xd8   : > { %1524 = vst [vmem:[#allocation4 + $0x460] sm:$0xf] %v1460_v5  ;;  %v1915_v19 = vrot.slane %v1913_v48, 4  ;;  %v1918_v2 = vrot.slane %v1916_v63, 5  ;;  %v1924_v14 = vrot.slane %v1922_v4, 5  ;;  %5475 = vmatpush.bf16.msra.mxu2 %v13232_v62  ;;  %5391 = vmatpush.bf16.msrb.mxu1 %v13219_v56  ;;  %v13240_v17 = vld [vmem:[%s16754_s1 + $0x1f8] sm:$0xff]  ;;  %v4996_v63 = vadd.f32 %v14146_v9, %v4995_v45 }
  0xd9   : > { %v1267_v11 = vrot.slane %v1265_v60, 5  ;;  %v1928_v25 = vrot.slane %v1926_v1, 4  ;;  %v1934_v26 = vrot.slane %v1932_v8, 5  ;;  %v1801_v31 = vld [vmem:[#allocation2 + $0x10] sm:$0xf]  ;;  %v13218_v0 = vld [vmem:[%s16754_s1 + $0x148] sm:$0xff]  ;;  %5564 = vmatpush.bf16.msra.mxu3 %v13240_v17 }
  0xda   : > { %v14195_v21 = vld [vmem:[#allocation4 + $0x8] sm:$0xf]  ;;  %v1919_v28 = vor.u32 %v1918_v2, %v1915_v19  ;;  %16772 = vst [vmem:[#allocation5_spill] sm:$0xff] %v14209_v32  ;;  %v1529_v41 = vld [vmem:[#allocation2 + $0x10] sm:$0xf]  ;;  %v13217_v54 = vld [vmem:[%s16754_s1 + $0x140] sm:$0xff]  ;;  %v14229_v19 = vpop.f32.mrf.mxu0 }
  0xdb   : > { %v1268_v30 = vsel %vm13693_vm11, %v14150_v53, %v1267_v11  ;;  %7039 = vst [vmem:[#allocation4 + $0x8] sm:$0xf] %v6898_v7  ;;  %v13038_v10 = vld [vmem:[#allocation4 + $0x28] sm:$0xf0]  ;;  %v1929_v36 = vor.u32 %v1928_v25, %v1924_v14  ;;  %v1528_v53 = vld [vmem:[#allocation2 + $0xc] sm:$0xe] }
  0xdc   : > { %v13168_v61 = vld [vmem:[#allocation4 + $0x43c] sm:$0xf]  ;;  %1508 = vst [vmem:[#allocation4 + $0x220] sm:$0xf] %v1268_v30  ;;  %v1920_v35 = vrot.slane %v1919_v28, 4  ;;  %v11206_v42 = vrot.slane %v1528_v53, 9  ;;  %5392 = vmatpush.bf16.msrb.mxu1 %v13218_v0  ;;  %v11264_v59 = vor.u32 %v13038_v10, %v14195_v21  ;;  %v5084_v2 = vpop.f32.mrf.mxu3 }
  0xdd   : > { %7040 = vst [vmem:[#allocation4 + $0x2c] sm:$0xf] %v6901_v22  ;;  %v1930_v43 = vrot.slane %v1929_v36, 4  ;;  %v1530_v44 = vld [vmem:[#allocation2 + $0x14] sm:$0x1]  ;;  %v1633_v47 = vrot.slane %v1529_v41, 5  ;;  %v14233_v28 = vadd.f32 %v5084_v2, %v4996_v63 }
  0xde   : > { %1832 = vst [vmem:[#allocation4 + $0xc] sm:$0xf] %v1800_v23  ;;  %v13096_v49 = vld [vmem:[#allocation4 + $0x1fc] sm:$0xf]  ;;  %v1925_v51 = vsel %vm13693_vm11, %v1920_v35, %v1924_v14  ;;  %v1636_v52 = vrot.slane %v1530_v44, 5  ;;  %v13248_v7 = vld [vmem:[%s16754_s1 + $0x238] sm:$0xff] }
  0xdf   : > { %1833 = vst [vmem:[#allocation4 + $0x30] sm:$0xf] %v1801_v31  ;;  %v1867_v50 = vld [vmem:[#allocation2 + $0x18] sm:$0xf]  ;;  %v11797_v46 = vld [vmem:[#allocation4 + $0x45c] sm:$0xf0]  ;;  %v1935_v57 = vsel %vm13693_vm11, %v1930_v43, %v1934_v26  ;;  %v1634_v58 = vsel %vm14155_vm14, %v11206_v42, %v1633_v47  ;;  %5653 = vmatpush.bf16.msra.mxu0 %v13248_v7  ;;  %v14231_v26 = vpop.f32.mrf.mxu2  ;;  %v14237_v43 = vpop.f32.mrf.mxu1 }
  0xe0   : > { %2328 = vst [vmem:[#allocation4 + $0x10] sm:$0xf] %v1925_v51  ;;  %v1635_v29 = vrot.slane %v1633_v47, 4  ;;  %v1937_v34 = vshrl.u32 %v1867_v50, 16  ;;  %v11800_v15 = vor.u32 %v13168_v61, %v11797_v46  ;;  %v1868_v60 = vld [vmem:[#allocation2 + $0x1c] sm:$0xf]  ;;  %5393 = vmatpush.bf16.msrb.mxu1 %v13217_v54 }
  0xe1   : > { %2329 = vst [vmem:[#allocation4 + $0x34] sm:$0xf] %v1935_v57  ;;  %v1869_v48 = vld [vmem:[#allocation2 + $0x20] sm:$0x1]  ;;  %v1940_v56 = vshll.u32 %v1867_v50, 16  ;;  %v1946_v5 = vshll.u32 %v1868_v60, 16 }
  0xe2   : > { %v1637_v4 = vsel %vm14155_vm14, %v1635_v29, %v1636_v52  ;;  %1770 = vst [vmem:[#allocation4 + $0x50] sm:$0xf] %v1634_v58  ;;  %v1939_v62 = vrot.slane %v1937_v34, 4  ;;  %5113 = vmatmul.bf16.gmra.mxu3 %v11800_v15  ;;  %v1950_v8 = vshrl.u32 %v1868_v60, 16  ;;  %v1956_v11 = vshll.u32 %v1869_v48, 16  ;;  %v13231_v63 = vld [vmem:[%s16754_s1 + $0x1b0] sm:$0xff] }
  0xe3   : > { %v11509_v1 = vld [vmem:[#allocation4 + $0x21c] sm:$0xf0]  ;;  %1771 = vst [vmem:[#allocation4 + $0x74] sm:$0xf] %v1637_v4  ;;  %v1942_v18 = vrot.slane %v1940_v56, 5  ;;  %v1948_v21 = vrot.slane %v1946_v5, 5  ;;  %v4960_v4 = vpop.f32.mrf.mxu0  ;;  %5476 = vmatpush.bf16.msra.mxu2 %v13231_v63 }
  0xe4   : > { %v11512_v14 = vor.u32 %v13096_v49, %v11509_v1  ;;  %v2360_v22 = vld [vmem:[#allocation2 + $0xc] sm:$0xe]  ;;  %v2361_v25 = vld [vmem:[#allocation2 + $0x10] sm:$0xf]  ;;  %16773 = vst [vmem:[#allocation6_spill] sm:$0xff] %v14231_v26  ;;  %v1952_v23 = vrot.slane %v1950_v8, 4  ;;  %v14245_v29 = vpop.f32.mrf.mxu3 }
  0xe5   : > { %5127 = vmatmul.bf16.vlgmr.msrb.gmra.mxu2 %v11264_v59  ;;  %v1958_v6 = vrot.slane %v1956_v11, 5  ;;  %v2362_v30 = vld [vmem:[#allocation2 + $0x14] sm:$0x1]  ;;  %16774 = vst [vmem:[#allocation7_spill] sm:$0xff] %v14233_v28  ;;  %v1943_v31 = vor.u32 %v1942_v18, %v1939_v62  ;;  %v11221_v17 = vrot.slane %v2360_v22, 9  ;;  %v2458_v0 = vrot.slane %v2361_v25, 5 }
  0xe6   : > { %5073 = vmatmul.bf16.gmra.mxu1 %v11512_v14  ;;  %v2461_v45 = vrot.slane %v2362_v30, 5  ;;  %v1953_v10 = vor.u32 %v1952_v23, %v1948_v21  ;;  %v1802_v36 = vld [vmem:[#allocation2 + $0x18] sm:$0xf]  ;;  %v1803_v53 = vld [vmem:[#allocation2 + $0x1c] sm:$0xf]  ;;  %16775 = vst [vmem:[#allocation8_spill] sm:$0xff] %v14245_v29  ;;  %v4961_v18 = vadd.f32 %v14146_v9, %v4960_v4 }
  0xe7   : > { %v11271_v61 = vld [vmem:[#allocation4 + $0x10] sm:$0xf]  ;;  %v1944_v35 = vrot.slane %v1943_v31, 4  ;;  %v2459_v41 = vsel %vm14155_vm14, %v11221_v17, %v2458_v0  ;;  %v2460_v42 = vrot.slane %v2458_v0, 4  ;;  %1834 = vst [vmem:[#allocation4 + $0x54] sm:$0xf] %v1802_v36  ;;  %v5000_v2 = vpop.f32.mrf.mxu2 }
  0xe8   : > { %v13039_v38 = vld [vmem:[#allocation4 + $0x30] sm:$0xf0]  ;;  %v1954_v47 = vrot.slane %v1953_v10, 4  ;;  %2600 = vst [vmem:[#allocation4 + $0x14] sm:$0xf] %v2459_v41 }
  0xe9   : > { %v11272_v44 = vor.u32 %v13039_v38, %v11271_v61  ;;  %v13034_v49 = vld [vmem:[#allocation4 + $0xc] sm:$0xf]  ;;  %v11265_v51 = vld [vmem:[#allocation4 + $0x2c] sm:$0xf0]  ;;  %v1949_v52 = vsel %vm13693_vm11, %v1944_v35, %v1948_v21  ;;  %v2462_v50 = vsel %vm14155_vm14, %v2460_v42, %v2461_v45  ;;  %1835 = vst [vmem:[#allocation4 + $0x78] sm:$0xf] %v1803_v53  ;;  %v5001_v53 = vadd.f32 %v14146_v9, %v5000_v2 }
  0xea   : > { %v1531_v54 = vld [vmem:[#allocation2 + $0x18] sm:$0xe]  ;;  %v1959_v46 = vsel %vm13693_vm11, %v1954_v47, %v1958_v6  ;;  %2330 = vst [vmem:[#allocation4 + $0x58] sm:$0xf] %v1949_v52  ;;  %v1532_v57 = vld [vmem:[#allocation2 + $0x1c] sm:$0xf]  ;;  %v11268_v14 = vor.u32 %v13034_v49, %v11265_v51 }
  0xeb   : > { %5305 = vmatmul.bf16.vlgmr.msrb.gmra.mxu0 %v11272_v44  ;;  %v1533_v58 = vld [vmem:[#allocation2 + $0x20] sm:$0x1]  ;;  %v13047_v15 = vld [vmem:[#allocation4 + $0x70] sm:$0xf0]  ;;  %2331 = vst [vmem:[#allocation4 + $0x7c] sm:$0xf] %v1959_v46 }
  0xec   : > { %v11299_v34 = vld [vmem:[#allocation4 + $0x50] sm:$0xf]  ;;  %v11207_v59 = vrot.slane %v1531_v54, 9  ;;  %v1640_v60 = vrot.slane %v1532_v57, 5  ;;  %v1643_v48 = vrot.slane %v1533_v58, 5  ;;  %v13239_v57 = vld [vmem:[%s16754_s1 + $0x1f0] sm:$0xff] }
  0xed   : > { %2601 = vst [vmem:[#allocation4 + $0x38] sm:$0xf] %v2462_v50  ;;  %v1870_v62 = vld [vmem:[#allocation2 + $0x24] sm:$0xf]  ;;  %v1871_v56 = vld [vmem:[#allocation2 + $0x28] sm:$0xf]  ;;  %v11300_v31 = vor.u32 %v13047_v15, %v11299_v34  ;;  %5565 = vmatpush.bf16.msra.mxu3 %v13239_v57 }
  0xee   : > { %v1641_v5 = vsel %vm14155_vm14, %v11207_v59, %v1640_v60  ;;  %v1642_v7 = vrot.slane %v1640_v60, 4  ;;  %v1872_v1 = vld [vmem:[#allocation2 + $0x2c] sm:$0x1]  ;;  %v1961_v8 = vshrl.u32 %v1870_v62, 16  ;;  %v1964_v11 = vshll.u32 %v1870_v62, 16 }
  0xef   : > { %1772 = vst [vmem:[#allocation4 + $0x98] sm:$0xf] %v1641_v5  ;;  %v1970_v21 = vshll.u32 %v1871_v56, 16  ;;  %v1974_v22 = vshrl.u32 %v1871_v56, 16  ;;  %v1980_v30 = vshll.u32 %v1872_v1, 16  ;;  %v14269_v5 = vpop.f32.mrf.mxu0  ;;  %v14273_v2 = vpop.f32.mrf.mxu2 }
  0xf0   : > { %v1644_v25 = vsel %vm14155_vm14, %v1642_v7, %v1643_v48  ;;  %v1963_v23 = vrot.slane %v1961_v8, 4  ;;  %v1966_v6 = vrot.slane %v1964_v11, 5  ;;  %v13035_v17 = vld [vmem:[#allocation4 + $0x14] sm:$0xf]  ;;  %v2363_v38 = vld [vmem:[#allocation2 + $0x18] sm:$0xe] }
  0xf1   : > { %1773 = vst [vmem:[#allocation4 + $0xbc] sm:$0xf] %v1644_v25  ;;  %v1972_v0 = vrot.slane %v1970_v21, 5  ;;  %v1976_v45 = vrot.slane %v1974_v22, 4  ;;  %v11307_v61 = vld [vmem:[#allocation4 + $0x58] sm:$0xf]  ;;  %v5089_v51 = vpop.f32.mrf.mxu3 }
  0xf2   : > { %v1967_v10 = vor.u32 %v1966_v6, %v1963_v23  ;;  %v1982_v36 = vrot.slane %v1980_v30, 5  ;;  %v5049_v35 = vpop.f32.mrf.mxu1  ;;  %5216 = vmatmul.bf16.vlgmr.msrb.gmra.mxu3 %v11268_v14  ;;  %v13048_v41 = vld [vmem:[#allocation4 + $0x78] sm:$0xf0]  ;;  %v2364_v44 = vld [vmem:[#allocation2 + $0x1c] sm:$0xf]  ;;  %v11222_v54 = vrot.slane %v2363_v38, 9  ;;  %v14265_v4 = vadd.f32 %v5089_v51, %v5001_v53 }
  0xf3   : > { %v1977_v42 = vor.u32 %v1976_v45, %v1972_v0  ;;  %v2365_v47 = vld [vmem:[#allocation2 + $0x20] sm:$0x1]  ;;  %v14256_v49 = vadd.f32 %v5049_v35, %v4961_v18  ;;  %v2465_v46 = vrot.slane %v2364_v44, 5  ;;  %v1804_v59 = vld [vmem:[#allocation2 + $0x24] sm:$0xf]  ;;  %v11308_v62 = vor.u32 %v13048_v41, %v11307_v61  ;;  %16777 = vst [vmem:[#allocation10_spill] sm:$0xff] %v14273_v2 }
  0xf4   : > { %v11273_v52 = vld [vmem:[#allocation4 + $0x34] sm:$0xf0]  ;;  %v1968_v50 = vrot.slane %v1967_v10, 4  ;;  %v2468_v15 = vrot.slane %v2365_v47, 5  ;;  %1836 = vst [vmem:[#allocation4 + $0x9c] sm:$0xf] %v1804_v59 }
  0xf5   : > { %5132 = vmatmul.bf16.gmra.mxu2 %v11300_v31  ;;  %v11276_v58 = vor.u32 %v13035_v17, %v11273_v52  ;;  %v1978_v34 = vrot.slane %v1977_v42, 4  ;;  %v2466_v48 = vsel %vm14155_vm14, %v11222_v54, %v2465_v46  ;;  %v2467_v63 = vrot.slane %v2465_v46, 4  ;;  %16776 = vst [vmem:[#allocation9_spill] sm:$0xff] %v14265_v4  ;;  %v1534_v7 = vld [vmem:[#allocation2 + $0x24] sm:$0xe]  ;;  %v13247_v44 = vld [vmem:[%s16754_s1 + $0x230] sm:$0xff] }
  0xf6   : > { %v1973_v60 = vsel %vm13693_vm11, %v1968_v50, %v1972_v0  ;;  %v1535_v1 = vld [vmem:[#allocation2 + $0x28] sm:$0xf]  ;;  %v1536_v14 = vld [vmem:[#allocation2 + $0x2c] sm:$0x1]  ;;  %2602 = vst [vmem:[#allocation4 + $0x5c] sm:$0xf] %v2466_v48  ;;  %5654 = vmatpush.bf16.msra.mxu0 %v13247_v44 }
  0xf7   : > { %5394 = vmatmul.bf16.vlgmr.msrb.gmra.mxu1 %v11276_v58  ;;  %v1983_v56 = vsel %vm13693_vm11, %v1978_v34, %v1982_v36  ;;  %2332 = vst [vmem:[#allocation4 + $0xa0] sm:$0xf] %v1973_v60  ;;  %v2469_v8 = vsel %vm14155_vm14, %v2467_v63, %v2468_v15  ;;  %v1805_v11 = vld [vmem:[#allocation2 + $0x28] sm:$0xf]  ;;  %v11208_v18 = vrot.slane %v1534_v7, 9  ;;  %v1647_v21 = vrot.slane %v1535_v1, 5 }
  0xf8   : > { %2333 = vst [vmem:[#allocation4 + $0xc4] sm:$0xf] %v1983_v56  ;;  %v1650_v22 = vrot.slane %v1536_v14, 5  ;;  %v13043_v25 = vld [vmem:[#allocation4 + $0x54] sm:$0xf]  ;;  %v4965_v56 = vpop.f32.mrf.mxu0 }
  0xf9   : > { %v11301_v23 = vld [vmem:[#allocation4 + $0x74] sm:$0xf0]  ;;  %2603 = vst [vmem:[#allocation4 + $0x80] sm:$0xf] %v2469_v8  ;;  %v1873_v6 = vld [vmem:[#allocation2 + $0x30] sm:$0xf]  ;;  %v1648_v31 = vsel %vm14155_vm14, %v11208_v18, %v1647_v21  ;;  %v14277_v38 = vpop.f32.mrf.mxu3 }
  0xfa   : > { %v1874_v30 = vld [vmem:[#allocation2 + $0x34] sm:$0xf]  ;;  %1837 = vst [vmem:[#allocation4 + $0xc0] sm:$0xf] %v1805_v11  ;;  %v1649_v17 = vrot.slane %v1647_v21, 4  ;;  %v1985_v45 = vshrl.u32 %v1873_v6, 16  ;;  %v14284_v52 = vpop.f32.mrf.mxu1  ;;  %v11304_v46 = vor.u32 %v13043_v25, %v11301_v23 }
  0xfb   : > { %5310 = vmatmul.bf16.gmra.mxu0 %v11308_v62  ;;  %v1875_v0 = vld [vmem:[#allocation2 + $0x38] sm:$0x1]  ;;  %v11335_v61 = vld [vmem:[#allocation4 + $0x98] sm:$0xf]  ;;  %1774 = vst [vmem:[#allocation4 + $0xe0] sm:$0xf] %v1648_v31  ;;  %v5005_v21 = vpop.f32.mrf.mxu2 }
  0xfc   : > { %v1988_v10 = vshll.u32 %v1873_v6, 16  ;;  %v1994_v36 = vshll.u32 %v1874_v30, 16  ;;  %v1998_v53 = vshrl.u32 %v1874_v30, 16  ;;  %16778 = vst [vmem:[#allocation11_spill] sm:$0xff] %v14277_v38  ;;  %v1651_v35 = vsel %vm14155_vm14, %v1649_v17, %v1650_v22  ;;  %v2366_v47 = vld [vmem:[#allocation2 + $0x24] sm:$0xe] }
  0xfd   : > { %v1987_v41 = vrot.slane %v1985_v45, 4  ;;  %v2004_v42 = vshll.u32 %v1875_v0, 16  ;;  %v13056_v51 = vld [vmem:[#allocation4 + $0xb8] sm:$0xf0]  ;;  %1775 = vst [vmem:[#allocation4 + $0x104] sm:$0xf] %v1651_v35  ;;  %v5006_v31 = vadd.f32 %v14146_v9, %v5005_v21 }
  0xfe   : > { %v1990_v50 = vrot.slane %v1988_v10, 5  ;;  %v1996_v54 = vrot.slane %v1994_v36, 5  ;;  %v2000_v57 = vrot.slane %v1998_v53, 4  ;;  %v2367_v58 = vld [vmem:[#allocation2 + $0x28] sm:$0xf]  ;;  %v11223_v60 = vrot.slane %v2366_v47, 9 }
  0xff   : > { %v13044_v34 = vld [vmem:[#allocation4 + $0x5c] sm:$0xf]  ;;  %v2472_v48 = vrot.slane %v2367_v58, 5  ;;  %v11336_v63 = vor.u32 %v13056_v51, %v11335_v61  ;;  %v2006_v1 = vrot.slane %v2004_v42, 5  ;;  %v1806_v11 = vld [vmem:[#allocation2 + $0x30] sm:$0xf]  ;;  %v4966_v10 = vadd.f32 %v14146_v9, %v4965_v56 }
 0x100   : > { %v1991_v15 = vor.u32 %v1990_v50, %v1987_v41  ;;  %v2368_v59 = vld [vmem:[#allocation2 + $0x2c] sm:$0x1]  ;;  %v11309_v62 = vld [vmem:[#allocation4 + $0x7c] sm:$0xf0]  ;;  %v2001_v7 = vor.u32 %v2000_v57, %v1996_v54  ;;  %v13057_v23 = vld [vmem:[#allocation4 + $0xc0] sm:$0xf0] }
 0x101   : > { %v2475_v8 = vrot.slane %v2368_v59, 5  ;;  %v11343_v14 = vld [vmem:[#allocation4 + $0xa0] sm:$0xf]  ;;  %v2473_v22 = vsel %vm14155_vm14, %v11223_v60, %v2472_v48  ;;  %v2474_v25 = vrot.slane %v2472_v48, 4  ;;  %v11312_v6 = vor.u32 %v13044_v34, %v11309_v62  ;;  %1838 = vst [vmem:[#allocation4 + $0xe4] sm:$0xf] %v1806_v11 }
 0x102   : > { %v1992_v18 = vrot.slane %v1991_v15, 4  ;;  %5221 = vmatmul.bf16.gmra.mxu3 %v11304_v46  ;;  %v2002_v30 = vrot.slane %v2001_v7, 4  ;;  %2604 = vst [vmem:[#allocation4 + $0xa4] sm:$0xf] %v2473_v22  ;;  %v1537_v45 = vld [vmem:[#allocation2 + $0x30] sm:$0xe]  ;;  %v11344_v51 = vor.u32 %v13057_v23, %v11343_v14 }
 0x103   : > { %v2476_v0 = vsel %vm14155_vm14, %v2474_v25, %v2475_v8  ;;  %v1538_v61 = vld [vmem:[#allocation2 + $0x34] sm:$0xf]  ;;  %v1539_v35 = vld [vmem:[#allocation2 + $0x38] sm:$0x1]  ;;  %v11209_v42 = vrot.slane %v1537_v45, 9 }
 0x104   : > { %v1997_v17 = vsel %vm13693_vm11, %v1992_v18, %v1996_v54  ;;  %v2007_v36 = vsel %vm13693_vm11, %v2002_v30, %v2006_v1  ;;  %v1807_v53 = vld [vmem:[#allocation2 + $0x34] sm:$0xf]  ;;  %v1654_v44 = vrot.slane %v1538_v61, 5  ;;  %v1657_v47 = vrot.slane %v1539_v35, 5  ;;  %2605 = vst [vmem:[#allocation4 + $0xc8] sm:$0xf] %v2476_v0  ;;  %v14304_v18 = vpop.f32.mrf.mxu0 }
 0x105   : > { %5137 = vmatmul.bf16.gmra.mxu2 %v11336_v63  ;;  %2334 = vst [vmem:[#allocation4 + $0xe8] sm:$0xf] %v1997_v17  ;;  %v1876_v54 = vld [vmem:[#allocation2 + $0x3c] sm:$0xf]  ;;  %v1877_v46 = vld [vmem:[#allocation2 + $0x40] sm:$0xf] }
 0x106   : > { %2335 = vst [vmem:[#allocation4 + $0x10c] sm:$0xf] %v2007_v36  ;;  %v5094_v41 = vpop.f32.mrf.mxu3  ;;  %v1655_v58 = vsel %vm14155_vm14, %v11209_v42, %v1654_v44  ;;  %v1656_v34 = vrot.slane %v1654_v44, 4  ;;  %v1878_v15 = vld [vmem:[#allocation2 + $0x44] sm:$0x1]  ;;  %v2009_v59 = vshrl.u32 %v1876_v54, 16  ;;  %v14309_v44 = vpop.f32.mrf.mxu2 }
 0x107   : > { %5399 = vmatmul.bf16.gmra.mxu1 %v11312_v6  ;;  %v14296_v50 = vadd.f32 %v5094_v41, %v5006_v31  ;;  %1839 = vst [vmem:[#allocation4 + $0x108] sm:$0xf] %v1807_v53  ;;  %v2012_v48 = vshll.u32 %v1876_v54, 16  ;;  %v2018_v63 = vshll.u32 %v1877_v46, 16  ;;  %v2022_v62 = vshrl.u32 %v1877_v46, 16  ;;  %v13230_v53 = vld [vmem:[%s16754_s1 + $0x1a8] sm:$0xff] }
 0x108   : > { %v5054_v57 = vpop.f32.mrf.mxu1  ;;  %1776 = vst [vmem:[#allocation4 + $0x128] sm:$0xf] %v1655_v58  ;;  %v13052_v56 = vld [vmem:[#allocation4 + $0x9c] sm:$0xf]  ;;  %v1658_v7 = vsel %vm14155_vm14, %v1656_v34, %v1657_v47  ;;  %v2011_v1 = vrot.slane %v2009_v59, 4  ;;  %v2028_v8 = vshll.u32 %v1878_v15, 16  ;;  %5477 = vmatpush.bf16.msra.mxu2 %v13230_v53 }
 0x109   : > { %16779 = vst [vmem:[#allocation12_spill] sm:$0xff] %v14296_v50  ;;  %v14300_v60 = vadd.f32 %v5054_v57, %v4966_v10  ;;  %v2369_v11 = vld [vmem:[#allocation2 + $0x30] sm:$0xe]  ;;  %v2014_v21 = vrot.slane %v2012_v48, 5  ;;  %v2020_v22 = vrot.slane %v2018_v63, 5  ;;  %v2024_v23 = vrot.slane %v2022_v62, 4 }
 0x10a   : > { %v11337_v14 = vld [vmem:[#allocation4 + $0xbc] sm:$0xf0]  ;;  %1777 = vst [vmem:[#allocation4 + $0x14c] sm:$0xf] %v1658_v7  ;;  %v2370_v6 = vld [vmem:[#allocation2 + $0x34] sm:$0xf] }
 0x10b   : > { %5315 = vmatmul.bf16.gmra.mxu0 %v11344_v51  ;;  %v11371_v25 = vld [vmem:[#allocation4 + $0xe0] sm:$0xf]  ;;  %v13065_v30 = vld [vmem:[#allocation4 + $0x100] sm:$0xf0]  ;;  %v2015_v31 = vor.u32 %v2014_v21, %v2011_v1  ;;  %v2371_v17 = vld [vmem:[#allocation2 + $0x38] sm:$0x1]  ;;  %v2025_v61 = vor.u32 %v2024_v23, %v2020_v22  ;;  %v11340_v41 = vor.u32 %v13052_v56, %v11337_v14 }
 0x10c   : > { %v11224_v0 = vrot.slane %v2369_v11, 9  ;;  %v2479_v45 = vrot.slane %v2370_v6, 5  ;;  %v2030_v10 = vrot.slane %v2028_v8, 5  ;;  %v2482_v36 = vrot.slane %v2371_v17, 5  ;;  %v1808_v35 = vld [vmem:[#allocation2 + $0x3c] sm:$0xf] }
 0x10d   : > { %v13053_v42 = vld [vmem:[#allocation4 + $0xa4] sm:$0xf]  ;;  %16780 = vst [vmem:[#allocation13_spill] sm:$0xff] %v14309_v44  ;;  %v2016_v47 = vrot.slane %v2015_v31, 4  ;;  %v11345_v46 = vld [vmem:[#allocation4 + $0xc4] sm:$0xf0]  ;;  %v11372_v34 = vor.u32 %v13065_v30, %v11371_v25  ;;  %v4970_v31 = vpop.f32.mrf.mxu0 }
 0x10e   : > { %v2480_v51 = vsel %vm14155_vm14, %v11224_v0, %v2479_v45  ;;  %v2481_v54 = vrot.slane %v2479_v45, 4  ;;  %v2026_v58 = vrot.slane %v2025_v61, 4  ;;  %1840 = vst [vmem:[#allocation4 + $0x12c] sm:$0xf] %v1808_v35  ;;  %v1540_v48 = vld [vmem:[#allocation2 + $0x3c] sm:$0xe]  ;;  %v11348_v11 = vor.u32 %v13053_v42, %v11345_v46  ;;  %v14324_v23 = vpop.f32.mrf.mxu3 }
 0x10f   : > { %2606 = vst [vmem:[#allocation4 + $0xec] sm:$0xf] %v2480_v51  ;;  %v2021_v15 = vsel %vm13693_vm11, %v2016_v47, %v2020_v22  ;;  %v1541_v63 = vld [vmem:[#allocation2 + $0x40] sm:$0xf]  ;;  %v11379_v62 = vld [vmem:[#allocation4 + $0xe8] sm:$0xf] }
 0x110   : > { %v14313_v57 = vpop.f32.mrf.mxu1  ;;  %v2483_v59 = vsel %vm14155_vm14, %v2481_v54, %v2482_v36  ;;  %v13066_v56 = vld [vmem:[#allocation4 + $0x108] sm:$0xf0]  ;;  %v2031_v7 = vsel %vm13693_vm11, %v2026_v58, %v2030_v10  ;;  %2336 = vst [vmem:[#allocation4 + $0x130] sm:$0xf] %v2021_v15  ;;  %v1809_v1 = vld [vmem:[#allocation2 + $0x40] sm:$0xf]  ;;  %v4971_v10 = vadd.f32 %v14146_v9, %v4970_v31 }
 0x111   : > { %v1542_v8 = vld [vmem:[#allocation2 + $0x44] sm:$0x1]  ;;  %2337 = vst [vmem:[#allocation4 + $0x154] sm:$0xf] %v2031_v7  ;;  %v13238_v14 = vld [vmem:[%s16754_s1 + $0x1e8] sm:$0xff]  ;;  %v11210_v21 = vrot.slane %v1540_v48, 9 }
 0x112   : > { %5226 = vmatmul.bf16.gmra.mxu3 %v11340_v41  ;;  %v1661_v22 = vrot.slane %v1541_v63, 5  ;;  %v1664_v25 = vrot.slane %v1542_v8, 5  ;;  %2607 = vst [vmem:[#allocation4 + $0x110] sm:$0xf] %v2483_v59  ;;  %v1879_v6 = vld [vmem:[#allocation2 + $0x48] sm:$0xf]  ;;  %v11380_v41 = vor.u32 %v13066_v56, %v11379_v62 }
 0x113   : > { %16781 = vst [vmem:[#allocation14_spill] sm:$0xff] %v14324_v23  ;;  %v1880_v30 = vld [vmem:[#allocation2 + $0x4c] sm:$0xf]  ;;  %5566 = vmatpush.bf16.msra.mxu3 %v13238_v14  ;;  %v1881_v45 = vld [vmem:[#allocation2 + $0x50] sm:$0x1]  ;;  %v2033_v61 = vshrl.u32 %v1879_v6, 16 }
 0x114   : > { %1841 = vst [vmem:[#allocation4 + $0x150] sm:$0xf] %v1809_v1  ;;  %v1662_v17 = vsel %vm14155_vm14, %v11210_v21, %v1661_v22  ;;  %v1663_v0 = vrot.slane %v1661_v22, 4  ;;  %v2036_v36 = vshll.u32 %v1879_v6, 16  ;;  %v2042_v53 = vshll.u32 %v1880_v30, 16  ;;  %v13246_v22 = vld [vmem:[%s16754_s1 + $0x228] sm:$0xff] }
 0x115   : > { %5142 = vmatmul.bf16.gmra.mxu2 %v11372_v34  ;;  %1778 = vst [vmem:[#allocation4 + $0x170] sm:$0xf] %v1662_v17  ;;  %v2046_v35 = vshrl.u32 %v1880_v30, 16  ;;  %v2035_v47 = vrot.slane %v2033_v61, 4  ;;  %v2052_v51 = vshll.u32 %v1881_v45, 16  ;;  %v5010_v34 = vpop.f32.mrf.mxu2  ;;  %5655 = vmatpush.bf16.msra.mxu0 %v13246_v22 }
 0x116   : > { %v1665_v42 = vsel %vm14155_vm14, %v1663_v0, %v1664_v25  ;;  %v2372_v54 = vld [vmem:[#allocation2 + $0x3c] sm:$0xe]  ;;  %v2038_v46 = vrot.slane %v2036_v36, 5  ;;  %v2044_v58 = vrot.slane %v2042_v53, 5  ;;  %v2373_v59 = vld [vmem:[#allocation2 + $0x40] sm:$0xf]  ;;  %v5011_v63 = vadd.f32 %v14146_v9, %v5010_v34 }
 0x117   : > { %5404 = vmatmul.bf16.gmra.mxu1 %v11348_v11  ;;  %1779 = vst [vmem:[#allocation4 + $0x194] sm:$0xf] %v1665_v42  ;;  %v2048_v15 = vrot.slane %v2046_v35, 4  ;;  %v13061_v48 = vld [vmem:[#allocation4 + $0xe4] sm:$0xf]  ;;  %v11225_v62 = vrot.slane %v2372_v54, 9 }
 0x118   : > { %v2039_v1 = vor.u32 %v2038_v46, %v2035_v47  ;;  %v2374_v8 = vld [vmem:[#allocation2 + $0x44] sm:$0x1]  ;;  %v2486_v56 = vrot.slane %v2373_v59, 5  ;;  %v2054_v21 = vrot.slane %v2052_v51, 5  ;;  %v1810_v6 = vld [vmem:[#allocation2 + $0x48] sm:$0xf] }
 0x119   : > { %v2049_v14 = vor.u32 %v2048_v15, %v2044_v58  ;;  %v2489_v25 = vrot.slane %v2374_v8, 5  ;;  %v11373_v30 = vld [vmem:[#allocation4 + $0x104] sm:$0xf0]  ;;  %v13074_v45 = vld [vmem:[#allocation4 + $0x148] sm:$0xf0] }
 0x11a   : > { %v11407_v31 = vld [vmem:[#allocation4 + $0x128] sm:$0xf]  ;;  %v2040_v17 = vrot.slane %v2039_v1, 4  ;;  %v2487_v9 = vsel %vm14155_vm14, %v11225_v62, %v2486_v56  ;;  %v2488_v0 = vrot.slane %v2486_v56, 4  ;;  %v11381_v36 = vld [vmem:[#allocation4 + $0x10c] sm:$0xf0]  ;;  %v11376_v51 = vor.u32 %v13061_v48, %v11373_v30 }
 0x11b   : > { %v5059_v7 = vpop.f32.mrf.mxu1  ;;  %5320 = vmatmul.bf16.gmra.mxu0 %v11380_v41  ;;  %v2050_v61 = vrot.slane %v2049_v14, 4  ;;  %2608 = vst [vmem:[#allocation4 + $0x134] sm:$0xf] %v2487_v9  ;;  %v1543_v42 = vld [vmem:[#allocation2 + $0x48] sm:$0xe]  ;;  %v14347_v14 = vpop.f32.mrf.mxu0 }
 0x11c   : > { %v14332_v11 = vadd.f32 %v5059_v7, %v4971_v10  ;;  %v13062_v10 = vld [vmem:[#allocation4 + $0xec] sm:$0xf]  ;;  %v2045_v35 = vsel %vm13693_vm11, %v2040_v17, %v2044_v58  ;;  %v2490_v41 = vsel %vm14155_vm14, %v2488_v0, %v2489_v25  ;;  %1842 = vst [vmem:[#allocation4 + $0x174] sm:$0xf] %v1810_v6  ;;  %v1544_v47 = vld [vmem:[#allocation2 + $0x4c] sm:$0xf]  ;;  %v11408_v58 = vor.u32 %v13074_v45, %v11407_v31 }
 0x11d   : > { %v2055_v46 = vsel %vm13693_vm11, %v2050_v61, %v2054_v21  ;;  %2338 = vst [vmem:[#allocation4 + $0x178] sm:$0xf] %v2045_v35  ;;  %v1811_v34 = vld [vmem:[#allocation2 + $0x4c] sm:$0xf]  ;;  %v1545_v15 = vld [vmem:[#allocation2 + $0x50] sm:$0x1]  ;;  %v11384_v25 = vor.u32 %v13062_v10, %v11381_v36 }
 0x11e   : > { %2339 = vst [vmem:[#allocation4 + $0x19c] sm:$0xf] %v2055_v46  ;;  %v11211_v59 = vrot.slane %v1543_v42, 9  ;;  %v1668_v7 = vrot.slane %v1544_v47, 5  ;;  %v1671_v1 = vrot.slane %v1545_v15, 5 }
 0x11f   : > { %v5099_v53 = vpop.f32.mrf.mxu3  ;;  %2609 = vst [vmem:[#allocation4 + $0x158] sm:$0xf] %v2490_v41  ;;  %v1882_v8 = vld [vmem:[#allocation2 + $0x54] sm:$0xf]  ;;  %v1883_v62 = vld [vmem:[#allocation2 + $0x58] sm:$0xf]  ;;  %v14353_v41 = vpop.f32.mrf.mxu2 }
 0x120   : > { %v14343_v54 = vadd.f32 %v5099_v53, %v5011_v63  ;;  %v11415_v56 = vld [vmem:[#allocation4 + $0x130] sm:$0xf]  ;;  %1843 = vst [vmem:[#allocation4 + $0x198] sm:$0xf] %v1811_v34  ;;  %v1669_v48 = vsel %vm14155_vm14, %v11211_v59, %v1668_v7  ;;  %v1670_v63 = vrot.slane %v1668_v7, 4  ;;  %v2057_v22 = vshrl.u32 %v1882_v8, 16 }
 0x121   : > { %v1884_v21 = vld [vmem:[#allocation2 + $0x5c] sm:$0x1]  ;;  %1780 = vst [vmem:[#allocation4 + $0x1b8] sm:$0xf] %v1669_v48  ;;  %v2060_v6 = vshll.u32 %v1882_v8, 16  ;;  %v2066_v30 = vshll.u32 %v1883_v62, 16 }
 0x122   : > { %16782 = vst [vmem:[#allocation15_spill] sm:$0xff] %v14343_v54  ;;  %5231 = vmatmul.bf16.gmra.mxu3 %v11376_v51  ;;  %v2070_v17 = vshrl.u32 %v1883_v62, 16  ;;  %v13075_v31 = vld [vmem:[#allocation4 + $0x150] sm:$0xf0]  ;;  %v1672_v9 = vsel %vm14155_vm14, %v1670_v63, %v1671_v1  ;;  %v2059_v0 = vrot.slane %v2057_v22, 4  ;;  %v2076_v45 = vshll.u32 %v1884_v21, 16 }
 0x123   : > { %v2375_v61 = vld [vmem:[#allocation2 + $0x48] sm:$0xe]  ;;  %1781 = vst [vmem:[#allocation4 + $0x1dc] sm:$0xf] %v1672_v9  ;;  %v2062_v53 = vrot.slane %v2060_v6, 5  ;;  %v2068_v35 = vrot.slane %v2066_v30, 5  ;;  %v11416_v10 = vor.u32 %v13075_v31, %v11415_v56  ;;  %v14355_v62 = vpop.f32.mrf.mxu1  ;;  %v4975_v9 = vpop.f32.mrf.mxu0 }
 0x124   : > { %16783 = vst [vmem:[#allocation16_spill] sm:$0xff] %v14353_v41  ;;  %v2072_v42 = vrot.slane %v2070_v17, 4  ;;  %v2376_v47 = vld [vmem:[#allocation2 + $0x4c] sm:$0xf]  ;;  %v2377_v51 = vld [vmem:[#allocation2 + $0x50] sm:$0x1] }
 0x125   : > { %5147 = vmatmul.bf16.gmra.mxu2 %v11408_v58  ;;  %v2063_v36 = vor.u32 %v2062_v53, %v2059_v0  ;;  %v11226_v46 = vrot.slane %v2375_v61, 9  ;;  %v2078_v15 = vrot.slane %v2076_v45, 5  ;;  %v2493_v59 = vrot.slane %v2376_v47, 5  ;;  %v1885_v1 = vld [vmem:[#allocation2 + $0x60] sm:$0xf] }
 0x126   : > { %v2073_v34 = vor.u32 %v2072_v42, %v2068_v35  ;;  %v2496_v7 = vrot.slane %v2377_v51, 5  ;;  %v13070_v8 = vld [vmem:[#allocation4 + $0x12c] sm:$0xf]  ;;  %v2081_v48 = vshrl.u32 %v1885_v1, 16  ;;  %v11409_v63 = vld [vmem:[#allocation4 + $0x14c] sm:$0xf0] }
 0x127   : > { %5409 = vmatmul.bf16.gmra.mxu1 %v11384_v25  ;;  %v2064_v58 = vrot.slane %v2063_v36, 4  ;;  %v2494_v22 = vsel %vm14155_vm14, %v11226_v46, %v2493_v59  ;;  %v2495_v56 = vrot.slane %v2493_v59, 4  ;;  %v1812_v25 = vld [vmem:[#allocation2 + $0x54] sm:$0xf]  ;;  %v13229_v30 = vld [vmem:[%s16754_s1 + $0x1a0] sm:$0xff]  ;;  %v2084_v36 = vshll.u32 %v1885_v1, 16  ;;  %v14368_v59 = vpop.f32.mrf.mxu3 }
 0x128   : > { %v2074_v21 = vrot.slane %v2073_v34, 4  ;;  %2610 = vst [vmem:[#allocation4 + $0x17c] sm:$0xf] %v2494_v22  ;;  %v1813_v17 = vld [vmem:[#allocation2 + $0x58] sm:$0xf]  ;;  %v2083_v47 = vrot.slane %v2081_v48, 4  ;;  %5478 = vmatpush.bf16.msra.mxu2 %v13229_v30  ;;  %v11412_v51 = vor.u32 %v13070_v8, %v11409_v63 }
 0x129   : > { %v2069_v6 = vsel %vm13693_vm11, %v2064_v58, %v2068_v35  ;;  %v1886_v31 = vld [vmem:[#allocation2 + $0x64] sm:$0xf]  ;;  %v11443_v0 = vld [vmem:[#allocation4 + $0x170] sm:$0xf]  ;;  %v2497_v53 = vsel %vm14155_vm14, %v2495_v56, %v2496_v7  ;;  %v1547_v42 = vld [vmem:[#allocation2 + $0x58] sm:$0xf] }
 0x12a   : > { %v13083_v45 = vld [vmem:[#allocation4 + $0x190] sm:$0xf0]  ;;  %v2079_v61 = vsel %vm13693_vm11, %v2074_v21, %v2078_v15  ;;  %2340 = vst [vmem:[#allocation4 + $0x1c0] sm:$0xf] %v2069_v6  ;;  %v1675_v35 = vrot.slane %v1547_v42, 5  ;;  %v2086_v8 = vrot.slane %v2084_v36, 5 }
 0x12b   : > { %5325 = vmatmul.bf16.gmra.mxu0 %v11416_v10  ;;  %2341 = vst [vmem:[#allocation4 + $0x1e4] sm:$0xf] %v2079_v61  ;;  %v1887_v10 = vld [vmem:[#allocation2 + $0x68] sm:$0x1]  ;;  %v13071_v46 = vld [vmem:[#allocation4 + $0x134] sm:$0xf]  ;;  %v11444_v61 = vor.u32 %v13083_v45, %v11443_v0 }
 0x12c   : > { %v11417_v34 = vld [vmem:[#allocation4 + $0x154] sm:$0xf0]  ;;  %16784 = vst [vmem:[#allocation17_spill] sm:$0xff] %v14368_v59  ;;  %v1546_v58 = vld [vmem:[#allocation2 + $0x54] sm:$0xe]  ;;  %v1677_v21 = vrot.slane %v1675_v35, 4 }
 0x12d   : > { %2611 = vst [vmem:[#allocation4 + $0x1a0] sm:$0xf] %v2497_v53  ;;  %v1548_v22 = vld [vmem:[#allocation2 + $0x5c] sm:$0x1]  ;;  %v14373_v15 = vld [vmem:[%s16755_s2] ss:$0 sm:$0xff]  ;;  %v11420_v36 = vor.u32 %v13071_v46, %v11417_v34  ;;  %v14386_v46 = vpop.f32.mrf.mxu0 }
 0x12e   : > { %v4976_v7 = vadd.f32 %v14373_v15, %v4975_v9  ;;  %1844 = vst [vmem:[#allocation4 + $0x1bc] sm:$0xf] %v1812_v25  ;;  %v11212_v48 = vrot.slane %v1546_v58, 9  ;;  %v1678_v56 = vrot.slane %v1548_v22, 5  ;;  %v5015_v1 = vpop.f32.mrf.mxu2  ;;  %v2090_v63 = vshll.u32 %v1886_v31, 16 }
 0x12f   : > { %1845 = vst [vmem:[#allocation4 + $0x1e0] sm:$0xf] %v1813_v17  ;;  %v2094_v6 = vshrl.u32 %v1886_v31, 16  ;;  %v2100_v30 = vshll.u32 %v1887_v10, 16  ;;  %v2378_v59 = vld [vmem:[#allocation2 + $0x54] sm:$0xe]  ;;  %v2087_v25 = vor.u32 %v2086_v8, %v2083_v47  ;;  %v5016_v47 = vadd.f32 %v14373_v15, %v5015_v1 }
 0x130   : > { %v1676_v53 = vsel %vm14155_vm14, %v11212_v48, %v1675_v35  ;;  %v1679_v42 = vsel %vm14155_vm14, %v1677_v21, %v1678_v56  ;;  %v2379_v41 = vld [vmem:[#allocation2 + $0x58] sm:$0xf]  ;;  %v2092_v9 = vrot.slane %v2090_v63, 5  ;;  %v2380_v22 = vld [vmem:[#allocation2 + $0x5c] sm:$0x1]  ;;  %v13237_v31 = vld [vmem:[%s16754_s1 + $0x1e0] sm:$0xff] }
 0x131   : > { %1782 = vst [vmem:[#allocation4 + $0x200] sm:$0xf] %v1676_v53  ;;  %v2096_v58 = vrot.slane %v2094_v6, 4  ;;  %v11451_v17 = vld [vmem:[#allocation4 + $0x178] sm:$0xf]  ;;  %v2102_v0 = vrot.slane %v2100_v30, 5  ;;  %5567 = vmatpush.bf16.msra.mxu3 %v13237_v31 }
 0x132   : > { %5236 = vmatmul.bf16.gmra.mxu3 %v11412_v51  ;;  %1783 = vst [vmem:[#allocation4 + $0x224] sm:$0xf] %v1679_v42  ;;  %v13084_v45 = vld [vmem:[#allocation4 + $0x198] sm:$0xf0]  ;;  %v2088_v10 = vrot.slane %v2087_v25, 4  ;;  %v11227_v21 = vrot.slane %v2378_v59, 9 }
 0x133   : > { %v5064_v23 = vpop.f32.mrf.mxu1  ;;  %v2097_v48 = vor.u32 %v2096_v58, %v2092_v9  ;;  %v2500_v51 = vrot.slane %v2379_v41, 5  ;;  %v2503_v56 = vrot.slane %v2380_v22, 5  ;;  %v11452_v63 = vor.u32 %v13084_v45, %v11451_v17  ;;  %v1888_v41 = vld [vmem:[#allocation2 + $0x6c] sm:$0xf]  ;;  %v13079_v6 = vld [vmem:[#allocation4 + $0x174] sm:$0xf] }
 0x134   : > { %v14383_v35 = vadd.f32 %v5064_v23, %v4976_v7  ;;  %v2093_v34 = vsel %vm13693_vm11, %v2088_v10, %v2092_v9  ;;  %v11445_v30 = vld [vmem:[#allocation4 + $0x194] sm:$0xf0]  ;;  %v2105_v42 = vshrl.u32 %v1888_v41, 16  ;;  %v2108_v25 = vshll.u32 %v1888_v41, 16  ;;  %v1814_v58 = vld [vmem:[#allocation2 + $0x60] sm:$0xf] }
 0x135   : > { %5152 = vmatmul.bf16.gmra.mxu2 %v11444_v61  ;;  %v2098_v8 = vrot.slane %v2097_v48, 4  ;;  %2342 = vst [vmem:[#allocation4 + $0x208] sm:$0xf] %v2093_v34  ;;  %v2501_v23 = vsel %vm14155_vm14, %v11227_v21, %v2500_v51  ;;  %v2502_v7 = vrot.slane %v2500_v51, 4  ;;  %v1889_v22 = vld [vmem:[#allocation2 + $0x70] sm:$0xf] }
 0x136   : > { %2612 = vst [vmem:[#allocation4 + $0x1c4] sm:$0xf] %v2501_v23  ;;  %v14398_v9 = vpop.f32.mrf.mxu2  ;;  %v13245_v17 = vld [vmem:[%s16754_s1 + $0x220] sm:$0xff]  ;;  %v2107_v31 = vrot.slane %v2105_v42, 4  ;;  %v1890_v48 = vld [vmem:[#allocation2 + $0x74] sm:$0x1] }
 0x137   : > { %5414 = vmatmul.bf16.gmra.mxu1 %v11420_v36  ;;  %v2103_v1 = vsel %vm13693_vm11, %v2098_v8, %v2102_v0  ;;  %v2504_v53 = vsel %vm14155_vm14, %v2502_v7, %v2503_v56  ;;  %16786 = vst [vmem:[#allocation19_spill] sm:$0xff] %v14398_v9  ;;  %v1815_v36 = vld [vmem:[#allocation2 + $0x64] sm:$0xf]  ;;  %v11479_v0 = vld [vmem:[#allocation4 + $0x1b8] sm:$0xf]  ;;  %5656 = vmatpush.bf16.msra.mxu0 %v13245_v17  ;;  %v2110_v21 = vrot.slane %v2108_v25, 5 }
 0x138   : > { %v5104_v59 = vpop.f32.mrf.mxu3  ;;  %2343 = vst [vmem:[#allocation4 + $0x22c] sm:$0xf] %v2103_v1  ;;  %v1550_v45 = vld [vmem:[#allocation2 + $0x64] sm:$0xf]  ;;  %v2118_v51 = vshrl.u32 %v1889_v22, 16  ;;  %v11448_v56 = vor.u32 %v13079_v6, %v11445_v30  ;;  %v2124_v9 = vshll.u32 %v1890_v48, 16 }
 0x139   : > { %v14394_v61 = vadd.f32 %v5104_v59, %v5016_v47  ;;  %2613 = vst [vmem:[#allocation4 + $0x1e8] sm:$0xf] %v2504_v53  ;;  %v1682_v10 = vrot.slane %v1550_v45, 5  ;;  %v2114_v47 = vshll.u32 %v1889_v22, 16  ;;  %v13092_v34 = vld [vmem:[#allocation4 + $0x1d8] sm:$0xf0]  ;;  %v2111_v41 = vor.u32 %v2110_v21, %v2107_v31  ;;  %v4980_v53 = vpop.f32.mrf.mxu0 }
 0x13a   : > { %1846 = vst [vmem:[#allocation4 + $0x204] sm:$0xf] %v1814_v58  ;;  %v1549_v8 = vld [vmem:[#allocation2 + $0x60] sm:$0xe]  ;;  %v13080_v23 = vld [vmem:[#allocation4 + $0x17c] sm:$0xf]  ;;  %v11480_v17 = vor.u32 %v13092_v34, %v11479_v0 }
 0x13b   : > { %16785 = vst [vmem:[#allocation18_spill] sm:$0xff] %v14394_v61  ;;  %5330 = vmatmul.bf16.gmra.mxu0 %v11452_v63  ;;  %v1551_v63 = vld [vmem:[#allocation2 + $0x68] sm:$0x1]  ;;  %v11213_v7 = vrot.slane %v1549_v8, 9  ;;  %v1684_v59 = vrot.slane %v1682_v10, 4  ;;  %v2116_v58 = vrot.slane %v2114_v47, 5 }
 0x13c   : > { %1847 = vst [vmem:[#allocation4 + $0x228] sm:$0xf] %v1815_v36  ;;  %v1685_v1 = vrot.slane %v1551_v63, 5  ;;  %v11453_v42 = vld [vmem:[#allocation4 + $0x19c] sm:$0xf0]  ;;  %v2120_v36 = vrot.slane %v2118_v51, 4  ;;  %v14409_v63 = vpop.f32.mrf.mxu1 }
 0x13d   : > { %v1683_v25 = vsel %vm14155_vm14, %v11213_v7, %v1682_v10  ;;  %v2381_v30 = vld [vmem:[#allocation2 + $0x60] sm:$0xe]  ;;  %v2112_v22 = vrot.slane %v2111_v41, 4  ;;  %v2126_v8 = vrot.slane %v2124_v9, 5  ;;  %v2382_v61 = vld [vmem:[#allocation2 + $0x64] sm:$0xf]  ;;  %v11456_v31 = vor.u32 %v13080_v23, %v11453_v42 }
 0x13e   : > { %v1686_v6 = vsel %vm14155_vm14, %v1684_v59, %v1685_v1  ;;  %1784 = vst [vmem:[#allocation4 + $0x248] sm:$0xf] %v1683_v25  ;;  %v2121_v45 = vor.u32 %v2120_v36, %v2116_v58  ;;  %v2383_v21 = vld [vmem:[#allocation2 + $0x68] sm:$0x1]  ;;  %v11487_v47 = vld [vmem:[#allocation4 + $0x1c0] sm:$0xf] }
 0x13f   : > { %1785 = vst [vmem:[#allocation4 + $0x26c] sm:$0xf] %v1686_v6  ;;  %v13093_v51 = vld [vmem:[#allocation4 + $0x1e0] sm:$0xf0]  ;;  %v2117_v0 = vsel %vm13693_vm11, %v2112_v22, %v2116_v58  ;;  %v11228_v34 = vrot.slane %v2381_v30, 9  ;;  %v2507_v7 = vrot.slane %v2382_v61, 5 }
 0x140   : > { %v2122_v10 = vrot.slane %v2121_v45, 4  ;;  %2344 = vst [vmem:[#allocation4 + $0x250] sm:$0xf] %v2117_v0  ;;  %v2510_v59 = vrot.slane %v2383_v21, 5  ;;  %v1891_v41 = vld [vmem:[#allocation2 + $0x78] sm:$0xf]  ;;  %v14415_v42 = vpop.f32.mrf.mxu3  ;;  %v4981_v21 = vadd.f32 %v14373_v15, %v4980_v53 }
 0x141   : > { %v2508_v23 = vsel %vm14155_vm14, %v11228_v34, %v2507_v7  ;;  %v2509_v1 = vrot.slane %v2507_v7, 4  ;;  %16787 = vst [vmem:[#allocation20_spill] sm:$0xff] %v14415_v42  ;;  %v13088_v58 = vld [vmem:[#allocation4 + $0x1bc] sm:$0xf]  ;;  %v11481_v36 = vld [vmem:[#allocation4 + $0x1dc] sm:$0xf0]  ;;  %v14419_v30 = vpop.f32.mrf.mxu0 }
 0x142   : > { %5241 = vmatmul.bf16.gmra.mxu3 %v11448_v56  ;;  %v2127_v9 = vsel %vm13693_vm11, %v2122_v10, %v2126_v8  ;;  %v11488_v56 = vor.u32 %v13093_v51, %v11487_v47  ;;  %2614 = vst [vmem:[#allocation4 + $0x20c] sm:$0xf] %v2508_v23  ;;  %v13101_v25 = vld [vmem:[#allocation4 + $0x220] sm:$0xf0]  ;;  %v1892_v6 = vld [vmem:[#allocation2 + $0x7c] sm:$0xf]  ;;  %v11484_v7 = vor.u32 %v13088_v58, %v11481_v36 }
 0x143   : > { %2345 = vst [vmem:[#allocation4 + $0x274] sm:$0xf] %v2127_v9  ;;  %v2511_v61 = vsel %vm14155_vm14, %v2509_v1, %v2510_v59  ;;  %v1816_v22 = vld [vmem:[#allocation2 + $0x6c] sm:$0xf]  ;;  %v2129_v45 = vshrl.u32 %v1891_v41, 16  ;;  %v2138_v51 = vshll.u32 %v1892_v6, 16 }
 0x144   : > { %v5020_v48 = vpop.f32.mrf.mxu2  ;;  %2615 = vst [vmem:[#allocation4 + $0x230] sm:$0xf] %v2511_v61  ;;  %v1817_v8 = vld [vmem:[#allocation2 + $0x70] sm:$0xf]  ;;  %v2142_v0 = vshrl.u32 %v1892_v6, 16  ;;  %v13228_v58 = vld [vmem:[%s16754_s1 + $0x198] sm:$0xff] }
 0x145   : > { %5157 = vmatmul.bf16.gmra.mxu2 %v11480_v17  ;;  %v11515_v17 = vld [vmem:[#allocation4 + $0x200] sm:$0xf]  ;;  %1848 = vst [vmem:[#allocation4 + $0x24c] sm:$0xf] %v1816_v22  ;;  %v1893_v34 = vld [vmem:[#allocation2 + $0x80] sm:$0x1] }
 0x146   : > { %1849 = vst [vmem:[#allocation4 + $0x270] sm:$0xf] %v1817_v8  ;;  %v1553_v47 = vld [vmem:[#allocation2 + $0x70] sm:$0xf]  ;;  %v11516_v9 = vor.u32 %v13101_v25, %v11515_v17  ;;  %v13089_v23 = vld [vmem:[#allocation4 + $0x1c4] sm:$0xf]  ;;  %5479 = vmatpush.bf16.msra.mxu2 %v13228_v58 }
 0x147   : > { %5419 = vmatmul.bf16.gmra.mxu1 %v11456_v31  ;;  %v2132_v31 = vshll.u32 %v1891_v41, 16  ;;  %v1689_v10 = vrot.slane %v1553_v47, 5  ;;  %v1552_v1 = vld [vmem:[#allocation2 + $0x6c] sm:$0xe]  ;;  %v1554_v61 = vld [vmem:[#allocation2 + $0x74] sm:$0x1] }
 0x148   : > { %v2131_v42 = vrot.slane %v2129_v45, 4  ;;  %v11489_v41 = vld [vmem:[#allocation4 + $0x1e4] sm:$0xf0]  ;;  %v11214_v54 = vrot.slane %v1552_v1, 9  ;;  %v1692_v8 = vrot.slane %v1554_v61, 5  ;;  %v2140_v6 = vrot.slane %v2138_v51, 5 }
 0x149   : > { %v1691_v53 = vrot.slane %v1689_v10, 4  ;;  %v2134_v36 = vrot.slane %v2132_v31, 5  ;;  %v2144_v17 = vrot.slane %v2142_v0, 4  ;;  %v2385_v25 = vld [vmem:[#allocation2 + $0x70] sm:$0xf]  ;;  %v2148_v47 = vshll.u32 %v1893_v34, 16 }
 0x14a   : > { %v1690_v45 = vsel %vm14155_vm14, %v11214_v54, %v1689_v10  ;;  %v2514_v1 = vrot.slane %v2385_v25, 5  ;;  %v2386_v38 = vld [vmem:[#allocation2 + $0x74] sm:$0x1]  ;;  %v11492_v31 = vor.u32 %v13089_v23, %v11489_v41  ;;  %v13236_v51 = vld [vmem:[%s16754_s1 + $0x1d8] sm:$0xff]  ;;  %v1895_v25 = vld [vmem:[#allocation2 + $0x88] sm:$0xf] }
 0x14b   : > { %5335 = vmatmul.bf16.gmra.mxu0 %v11488_v56  ;;  %v5021_v56 = vadd.f32 %v14373_v15, %v5020_v48  ;;  %v1693_v48 = vsel %vm14155_vm14, %v1691_v53, %v1692_v8  ;;  %1786 = vst [vmem:[#allocation4 + $0x290] sm:$0xf] %v1690_v45  ;;  %v2145_v61 = vor.u32 %v2144_v17, %v2140_v6  ;;  %v2150_v54 = vrot.slane %v2148_v47, 5  ;;  %v11523_v34 = vld [vmem:[#allocation4 + $0x208] sm:$0xf] }
 0x14c   : > { %v14422_v59 = vpop.f32.mrf.mxu2  ;;  %1787 = vst [vmem:[#allocation4 + $0x2b4] sm:$0xf] %v1693_v48  ;;  %v4985_v10 = vpop.f32.mrf.mxu0  ;;  %v13102_v53 = vld [vmem:[#allocation4 + $0x228] sm:$0xf0]  ;;  %5568 = vmatpush.bf16.msra.mxu3 %v13236_v51  ;;  %v11559_v29 = vld [vmem:[#allocation4 + $0x250] sm:$0xf] }
 0x14d   : > { %v2146_v58 = vrot.slane %v2145_v61, 4  ;;  %v11524_v17 = vor.u32 %v13102_v53, %v11523_v34  ;;  %v2166_v61 = vshrl.u32 %v1895_v25, 16  ;;  %v1819_v34 = vld [vmem:[#allocation2 + $0x7c] sm:$0xf]  ;;  %v2392_v32 = vld [vmem:[#allocation2 + $0x8c] sm:$0x1] }
 0x14e   : > { %1851 = vst [vmem:[#allocation4 + $0x2b8] sm:$0xf] %v1819_v34 }
 0x14f   : > { %v5069_v22 = vpop.f32.mrf.mxu1  ;;  %v2151_v41 = vsel %vm13693_vm11, %v2146_v58, %v2150_v54  ;;  %v13244_v54 = vld [vmem:[%s16754_s1 + $0x218] sm:$0xff] }
 0x150   : > { %v14425_v44 = vadd.f32 %v5069_v22, %v4981_v21  ;;  %v2135_v21 = vor.u32 %v2134_v36, %v2131_v42  ;;  %v2384_v22 = vld [vmem:[#allocation2 + $0x6c] sm:$0xe]  ;;  %v2516_v36 = vrot.slane %v2514_v1, 4  ;;  %2347 = vst [vmem:[#allocation4 + $0x2bc] sm:$0xf] %v2151_v41  ;;  %5657 = vmatpush.bf16.msra.mxu0 %v13244_v54  ;;  %v2168_v41 = vrot.slane %v2166_v61, 4 }
 0x151   : > { %v11229_v42 = vrot.slane %v2384_v22, 9  ;;  %v5023_v22 = vadd.f32 %v14373_v15, %v14422_v59  ;;  %v11551_v58 = vld [vmem:[#allocation4 + $0x248] sm:$0xf]  ;;  %v1896_v59 = vld [vmem:[#allocation2 + $0x8c] sm:$0x1] }
 0x152   : > { %5246 = vmatmul.bf16.gmra.mxu3 %v11484_v7  ;;  %v2136_v8 = vrot.slane %v2135_v21, 4  ;;  %v2517_v7 = vrot.slane %v2386_v38, 5  ;;  %v2162_v21 = vshll.u32 %v1895_v25, 16  ;;  %v1557_v25 = vld [vmem:[#allocation2 + $0x80] sm:$0x1]  ;;  %v2172_v2 = vshll.u32 %v1896_v59, 16 }
 0x153   : > { %v5109_v50 = vpop.f32.mrf.mxu3  ;;  %v11525_v54 = vld [vmem:[#allocation4 + $0x22c] sm:$0xf0]  ;;  %v13111_v59 = vld [vmem:[#allocation4 + $0x270] sm:$0xf0] }
 0x154   : > { %v14437_v0 = vadd.f32 %v5109_v50, %v5021_v56  ;;  %v2141_v23 = vsel %vm13693_vm11, %v2136_v8, %v2140_v6  ;;  %v2515_v50 = vsel %vm14155_vm14, %v11229_v42, %v2514_v1  ;;  %v2518_v56 = vsel %vm14155_vm14, %v2516_v36, %v2517_v7  ;;  %v13097_v6 = vld [vmem:[#allocation4 + $0x204] sm:$0xf]  ;;  %v1818_v1 = vld [vmem:[#allocation2 + $0x78] sm:$0xf]  ;;  %v1556_v42 = vld [vmem:[#allocation2 + $0x7c] sm:$0xf] }
 0x155   : > { %5162 = vmatmul.bf16.gmra.mxu2 %v11516_v9  ;;  %2346 = vst [vmem:[#allocation4 + $0x298] sm:$0xf] %v2141_v23  ;;  %v1894_v9 = vld [vmem:[#allocation2 + $0x84] sm:$0xf]  ;;  %v1696_v36 = vrot.slane %v1556_v42, 5  ;;  %v2164_v23 = vrot.slane %v2162_v21, 5 }
 0x156   : > { %16788 = vst [vmem:[#allocation21_spill] sm:$0xff] %v14437_v0  ;;  %v2153_v38 = vshrl.u32 %v1894_v9, 16  ;;  %v2156_v47 = vshll.u32 %v1894_v9, 16  ;;  %v1555_v9 = vld [vmem:[#allocation2 + $0x78] sm:$0xe] }
 0x157   : > { %5424 = vmatmul.bf16.gmra.mxu1 %v11492_v31  ;;  %v14447_v48 = vpop.f32.mrf.mxu1  ;;  %2616 = vst [vmem:[#allocation4 + $0x254] sm:$0xf] %v2515_v50  ;;  %v11517_v31 = vld [vmem:[#allocation4 + $0x224] sm:$0xf0]  ;;  %v11215_v0 = vrot.slane %v1555_v9, 9  ;;  %v2169_v42 = vor.u32 %v2168_v41, %v2164_v23 }
 0x158   : > { %v5025_v45 = vpop.f32.mrf.mxu2  ;;  %2617 = vst [vmem:[#allocation4 + $0x278] sm:$0xf] %v2518_v56  ;;  %v2155_v53 = vrot.slane %v2153_v38, 4  ;;  %v2158_v7 = vrot.slane %v2156_v47, 5  ;;  %v11520_v50 = vor.u32 %v13097_v6, %v11517_v31  ;;  %v13110_v56 = vld [vmem:[#allocation4 + $0x268] sm:$0xf0] }
 0x159   : > { %1850 = vst [vmem:[#allocation4 + $0x294] sm:$0xf] %v1818_v1  ;;  %v1698_v1 = vrot.slane %v1696_v36, 4  ;;  %v1699_v38 = vrot.slane %v1557_v25, 5  ;;  %v11552_v47 = vor.u32 %v13110_v56, %v11551_v58  ;;  %v1697_v21 = vsel %vm14155_vm14, %v11215_v0, %v1696_v36  ;;  %v2387_v31 = vld [vmem:[#allocation2 + $0x78] sm:$0xe] }
 0x15a   : > { %1788 = vst [vmem:[#allocation4 + $0x2d8] sm:$0xf] %v1697_v21  ;;  %v2170_v9 = vrot.slane %v2169_v42, 4  ;;  %v2174_v25 = vrot.slane %v2172_v2, 5  ;;  %v2389_v0 = vld [vmem:[#allocation2 + $0x80] sm:$0x1] }
 0x15b   : > { %5340 = vmatmul.bf16.gmra.mxu0 %v11524_v17  ;;  %v5111_v51 = vpop.f32.mrf.mxu3  ;;  %v14456_v17 = vpop.f32.mrf.mxu0  ;;  %v1700_v6 = vsel %vm14155_vm14, %v1698_v1, %v1699_v38  ;;  %v11230_v2 = vrot.slane %v2387_v31, 9  ;;  %v2524_v1 = vrot.slane %v2389_v0, 5  ;;  %v13119_v0 = vld [vmem:[#allocation4 + $0x2b0] sm:$0xf0] }
 0x15c   : > { %v14454_v8 = vadd.f32 %v5111_v51, %v5023_v22  ;;  %v2159_v22 = vor.u32 %v2158_v7, %v2155_v53  ;;  %v4986_v51 = vadd.f32 %v14373_v15, %v4985_v10  ;;  %v2388_v53 = vld [vmem:[#allocation2 + $0x7c] sm:$0xf]  ;;  %v5026_v10 = vadd.f32 %v14373_v15, %v5025_v45  ;;  %1789 = vst [vmem:[#allocation4 + $0x2fc] sm:$0xf] %v1700_v6 }
 0x15d   : > { %v2175_v56 = vsel %vm13693_vm11, %v2170_v9, %v2174_v25  ;;  %v2521_v45 = vrot.slane %v2388_v53, 5  ;;  %v13106_v6 = vld [vmem:[#allocation4 + $0x24c] sm:$0xf]  ;;  %v1820_v9 = vld [vmem:[#allocation2 + $0x84] sm:$0xf] }
 0x15e   : > { %16789 = vst [vmem:[#allocation22_spill] sm:$0xff] %v14454_v8  ;;  %v13098_v8 = vld [vmem:[#allocation4 + $0x20c] sm:$0xf]  ;;  %v2160_v61 = vrot.slane %v2159_v22, 4 }
 0x15f   : > { %v11528_v41 = vor.u32 %v13098_v8, %v11525_v54  ;;  %2349 = vst [vmem:[#allocation4 + $0x304] sm:$0xf] %v2175_v56  ;;  %v11560_v8 = vor.u32 %v13111_v59, %v11559_v29  ;;  %v2523_v22 = vrot.slane %v2521_v45, 4  ;;  %v1898_v54 = vld [vmem:[#allocation2 + $0x94] sm:$0xf] }
 0x160   : > { %v5027_v34 = vpop.f32.mrf.mxu2  ;;  %v2165_v58 = vsel %vm13693_vm11, %v2160_v61, %v2164_v23  ;;  %v2522_v23 = vsel %vm14155_vm14, %v11230_v2, %v2521_v45  ;;  %v2186_v25 = vshll.u32 %v1898_v54, 16  ;;  %v2190_v53 = vshrl.u32 %v1898_v54, 16  ;;  %1852 = vst [vmem:[#allocation4 + $0x2dc] sm:$0xf] %v1820_v9  ;;  %v1899_v2 = vld [vmem:[#allocation2 + $0x98] sm:$0x1] }
 0x161   : > { %2348 = vst [vmem:[#allocation4 + $0x2e0] sm:$0xf] %v2165_v58  ;;  %v2525_v61 = vsel %vm14155_vm14, %v2523_v22, %v2524_v1  ;;  %v11587_v58 = vld [vmem:[#allocation4 + $0x290] sm:$0xf]  ;;  %v5028_v59 = vadd.f32 %v14373_v15, %v5027_v34  ;;  %v1558_v22 = vld [vmem:[#allocation2 + $0x84] sm:$0xe] }
 0x162   : > { %5251 = vmatmul.bf16.gmra.mxu3 %v11520_v50  ;;  %2618 = vst [vmem:[#allocation4 + $0x29c] sm:$0xf] %v2522_v23  ;;  %v2192_v54 = vrot.slane %v2190_v53, 4  ;;  %v11216_v9 = vrot.slane %v1558_v22, 9  ;;  %v11561_v34 = vld [vmem:[#allocation4 + $0x274] sm:$0xf0] }
 0x163   : > { %v5074_v7 = vpop.f32.mrf.mxu1  ;;  %2619 = vst [vmem:[#allocation4 + $0x2c0] sm:$0xf] %v2525_v61  ;;  %v13107_v61 = vld [vmem:[#allocation4 + $0x254] sm:$0xf]  ;;  %v2196_v53 = vshll.u32 %v1899_v2, 16 }
 0x164   : > { %v14466_v36 = vadd.f32 %v5074_v7, %v4986_v51  ;;  %v1897_v51 = vld [vmem:[#allocation2 + $0x90] sm:$0xf]  ;;  %v1821_v7 = vld [vmem:[#allocation2 + $0x88] sm:$0xf]  ;;  %v11564_v28 = vor.u32 %v13107_v61, %v11561_v34  ;;  %v13120_v2 = vld [vmem:[#allocation4 + $0x2b8] sm:$0xf0]  ;;  %v4953_v61 = vadd.f32 %v14373_v15, %v14159_v27 }
 0x165   : > { %5167 = vmatmul.bf16.gmra.mxu2 %v11552_v47  ;;  %v5114_v50 = vpop.f32.mrf.mxu3  ;;  %v2177_v31 = vshrl.u32 %v1897_v51, 16  ;;  %v2180_v29 = vshll.u32 %v1897_v51, 16  ;;  %1853 = vst [vmem:[#allocation4 + $0x300] sm:$0xf] %v1821_v7  ;;  %v1560_v51 = vld [vmem:[#allocation2 + $0x8c] sm:$0x1] }
 0x166   : > { %v14470_v38 = vadd.f32 %v5114_v50, %v5026_v10  ;;  %v11553_v10 = vld [vmem:[#allocation4 + $0x26c] sm:$0xf0]  ;;  %v1706_v4 = vrot.slane %v1560_v51, 5  ;;  %v2391_v22 = vld [vmem:[#allocation2 + $0x88] sm:$0xf] }
 0x167   : > { %5429 = vmatmul.bf16.gmra.mxu1 %v11528_v41  ;;  %v2179_v45 = vrot.slane %v2177_v31, 4  ;;  %v2182_v1 = vrot.slane %v2180_v29, 5  ;;  %v11556_v23 = vor.u32 %v13106_v6, %v11553_v10  ;;  %v13400_v31 = vld [vmem:[%s16756_s3 + $0x38] sm:$0xff]  ;;  %v13227_v6 = vld [vmem:[%s16754_s1 + $0x190] sm:$0xff]  ;;  %v11588_v10 = vor.u32 %v13119_v0, %v11587_v58 }
 0x168   : > { %16790 = vst [vmem:[#allocation23_spill] sm:$0xff] %v14470_v38  ;;  %v14474_v42 = vpop.f32.mrf.mxu0  ;;  %v5128_v21 = vpop.f32.mrf.mxu2  ;;  %10212 = vmatpush.bf16.msra.mxu1 %v13400_v31  ;;  %5480 = vmatpush.bf16.msra.mxu2 %v13227_v6  ;;  %v13235_v58 = vld [vmem:[%s16754_s1 + $0x1d0] sm:$0xff]  ;;  %v2198_v0 = vrot.slane %v2196_v53, 5 }
 0x169   : > { %v14477_v47 = vadd.f32 %v5128_v21, %v14168_v33  ;;  %v1559_v33 = vld [vmem:[#allocation2 + $0x88] sm:$0xf]  ;;  %v2183_v29 = vor.u32 %v2182_v1, %v2179_v45  ;;  %v2528_v1 = vrot.slane %v2391_v22, 5  ;;  %5569 = vmatpush.bf16.msra.mxu3 %v13235_v58  ;;  %v13115_v22 = vld [vmem:[#allocation4 + $0x294] sm:$0xf] }
 0x16a   : > { %v1703_v56 = vrot.slane %v1559_v33, 5  ;;  %v1823_v58 = vld [vmem:[#allocation2 + $0x94] sm:$0xf] }
 0x16b   : > { %5345 = vmatmul.bf16.gmra.mxu0 %v11560_v8  ;;  %v14481_v41 = vpop.f32.mrf.mxu1  ;;  %v2188_v8 = vrot.slane %v2186_v25, 5  ;;  %v2184_v51 = vrot.slane %v2183_v29, 4  ;;  %v2530_v31 = vrot.slane %v2528_v1, 4  ;;  %v1900_v29 = vld [vmem:[#allocation2 + $0x9c] sm:$0xf] }
 0x16c   : > { %v1705_v38 = vrot.slane %v1703_v56, 4  ;;  %v1704_v33 = vsel %vm14155_vm14, %v11216_v9, %v1703_v56  ;;  %v11595_v56 = vld [vmem:[#allocation4 + $0x298] sm:$0xf]  ;;  %v2201_v27 = vshrl.u32 %v1900_v29, 16  ;;  %1855 = vst [vmem:[#allocation4 + $0x348] sm:$0xf] %v1823_v58 }
 0x16d   : > { %v5116_v50 = vpop.f32.mrf.mxu3  ;;  %v2193_v25 = vor.u32 %v2192_v54, %v2188_v8  ;;  %1790 = vst [vmem:[#allocation4 + $0x320] sm:$0xf] %v1704_v33  ;;  %v2531_v54 = vrot.slane %v2392_v32, 5  ;;  %v11596_v6 = vor.u32 %v13120_v2, %v11595_v56  ;;  %v11589_v56 = vld [vmem:[#allocation4 + $0x2b4] sm:$0xf0]  ;;  %v13243_v2 = vld [vmem:[%s16754_s1 + $0x210] sm:$0xff] }
 0x16e   : > { %v14484_v21 = vadd.f32 %v5116_v50, %v5028_v59  ;;  %v1707_v59 = vsel %vm14155_vm14, %v1705_v38, %v1706_v4  ;;  %v2390_v50 = vld [vmem:[#allocation2 + $0x84] sm:$0xe]  ;;  %v2189_v4 = vsel %vm13693_vm11, %v2184_v51, %v2188_v8  ;;  %v1822_v51 = vld [vmem:[#allocation2 + $0x90] sm:$0xf]  ;;  %5658 = vmatpush.bf16.msra.mxu0 %v13243_v2 }
 0x16f   : > { %1791 = vst [vmem:[#allocation4 + $0x344] sm:$0xf] %v1707_v59  ;;  %v11231_v38 = vrot.slane %v2390_v50, 9  ;;  %v2532_v32 = vsel %vm14155_vm14, %v2530_v31, %v2531_v54  ;;  %v13128_v31 = vld [vmem:[#allocation4 + $0x2f8] sm:$0xf0] }
 0x170   : > { %16791 = vst [vmem:[#allocation24_spill] sm:$0xff] %v14484_v21  ;;  %v14486_v7 = vpop.f32.mrf.mxu0  ;;  %v14488_v26 = vpop.f32.mrf.mxu2  ;;  %v2194_v21 = vrot.slane %v2193_v25, 4  ;;  %v1901_v25 = vld [vmem:[#allocation2 + $0xa0] sm:$0xf] }
 0x171   : > { %2350 = vst [vmem:[#allocation4 + $0x328] sm:$0xf] %v2189_v4  ;;  %v2529_v34 = vsel %vm14155_vm14, %v11231_v38, %v2528_v1  ;;  %v2214_v50 = vshrl.u32 %v1901_v25, 16  ;;  %v11623_v4 = vld [vmem:[#allocation4 + $0x2d8] sm:$0xf]  ;;  %v2203_v1 = vrot.slane %v2201_v27, 4 }
 0x172   : > { %5256 = vmatmul.bf16.gmra.mxu3 %v11556_v23  ;;  %v2199_v23 = vsel %vm13693_vm11, %v2194_v21, %v2198_v0  ;;  %2620 = vst [vmem:[#allocation4 + $0x2e4] sm:$0xf] %v2529_v34  ;;  %v1562_v38 = vld [vmem:[#allocation2 + $0x94] sm:$0xf]  ;;  %v11592_v34 = vor.u32 %v13115_v22, %v11589_v56  ;;  %v13116_v27 = vld [vmem:[#allocation4 + $0x29c] sm:$0xf]  ;;  %v11624_v22 = vor.u32 %v13128_v31, %v11623_v4 }
 0x173   : > { %2351 = vst [vmem:[#allocation4 + $0x34c] sm:$0xf] %v2199_v23  ;;  %v1902_v23 = vld [vmem:[#allocation2 + $0xa4] sm:$0x1]  ;;  %v13129_v4 = vld [vmem:[#allocation4 + $0x300] sm:$0xf0] }
 0x174   : > { %v5395_v45 = vpop.f32.mrf.mxu1  ;;  %2621 = vst [vmem:[#allocation4 + $0x308] sm:$0xf] %v2532_v32  ;;  %v2394_v32 = vld [vmem:[#allocation2 + $0x94] sm:$0xf] }
 0x175   : > { %5172 = vmatmul.bf16.gmra.mxu2 %v11588_v10  ;;  %v5217_v9 = vpop.f32.mrf.mxu3  ;;  %v2204_v10 = vshll.u32 %v1900_v29, 16  ;;  %1854 = vst [vmem:[#allocation4 + $0x324] sm:$0xf] %v1822_v51  ;;  %v11597_v51 = vld [vmem:[#allocation4 + $0x2bc] sm:$0xf0] }
 0x176   : > { %v5218_v8 = vadd.f32 %v5217_v9, %v14477_v47  ;;  %v2210_v47 = vshll.u32 %v1901_v25, 16 }
 0x177   : > { %5434 = vmatmul.bf16.gmra.mxu1 %v11564_v28  ;;  %v5042_v28 = vadd.f32 %v14181_v55, %v4953_v61  ;;  %v1710_v55 = vrot.slane %v1562_v38, 5  ;;  %v2206_v54 = vrot.slane %v2204_v10, 5  ;;  %v2220_v10 = vshll.u32 %v1902_v23, 16  ;;  %v2395_v38 = vld [vmem:[#allocation2 + $0x98] sm:$0x1] }
 0x178   : > { %v14512_v53 = vpop.f32.mrf.mxu0  ;;  %v5133_v21 = vpop.f32.mrf.mxu2  ;;  %v5307_v33 = vadd.f32 %v14474_v42, %v5218_v8  ;;  %v2212_v61 = vrot.slane %v2210_v47, 5  ;;  %v1561_v8 = vld [vmem:[#allocation2 + $0x90] sm:$0xe]  ;;  %v2535_v47 = vrot.slane %v2394_v32, 5 }
 0x179   : > { %v14518_v59 = vadd.f32 %v5133_v21, %v14211_v13  ;;  %v5131_v13 = vadd.f32 %v14488_v26, %v5042_v28  ;;  %v11217_v25 = vrot.slane %v1561_v8, 9  ;;  %v1712_v21 = vrot.slane %v1710_v55, 4 }
 0x17a   : > { %v14521_v0 = vadd.f32 %v5395_v45, %v5307_v33  ;;  %v2216_v45 = vrot.slane %v2214_v50, 4  ;;  %v2207_v58 = vor.u32 %v2206_v54, %v2203_v1  ;;  %v11600_v1 = vor.u32 %v13116_v27, %v11597_v51  ;;  %v1903_v27 = vld [vmem:[#allocation2 + $0xa8] sm:$0xf]  ;;  %v1904_v51 = vld [vmem:[#allocation2 + $0xac] sm:$0xf] }
 0x17b   : > { %5350 = vmatmul.bf16.gmra.mxu0 %v11596_v6  ;;  %v1563_v6 = vld [vmem:[#allocation2 + $0x98] sm:$0x1]  ;;  %v1711_v56 = vsel %vm14155_vm14, %v11217_v25, %v1710_v55  ;;  %v2222_v23 = vrot.slane %v2220_v10, 5  ;;  %v2537_v31 = vrot.slane %v2535_v47, 4  ;;  %v2225_v10 = vshrl.u32 %v1903_v27, 16 }
 0x17c   : > { %16792 = vst [vmem:[#allocation25_spill] sm:$0xff] %v14521_v0  ;;  %v5397_v42 = vpop.f32.mrf.mxu1  ;;  %v1713_v26 = vrot.slane %v1563_v6, 5  ;;  %v2217_v2 = vor.u32 %v2216_v45, %v2212_v61  ;;  %v2208_v8 = vrot.slane %v2207_v58, 4 }
 0x17d   : > { %v5219_v9 = vpop.f32.mrf.mxu3  ;;  %1792 = vst [vmem:[#allocation4 + $0x368] sm:$0xf] %v1711_v56  ;;  %v13124_v56 = vld [vmem:[#allocation4 + $0x2dc] sm:$0xf] }
 0x17e   : > { %v5220_v29 = vadd.f32 %v5219_v9, %v5131_v13  ;;  %v2393_v13 = vld [vmem:[#allocation2 + $0x90] sm:$0xe]  ;;  %v1714_v9 = vsel %vm14155_vm14, %v1712_v21, %v1713_v26  ;;  %v2218_v6 = vrot.slane %v2217_v2, 4  ;;  %v2213_v55 = vsel %vm13693_vm11, %v2208_v8, %v2212_v61 }
 0x17f   : > { %1793 = vst [vmem:[#allocation4 + $0x38c] sm:$0xf] %v1714_v9  ;;  %v11232_v54 = vrot.slane %v2393_v13, 9  ;;  %v1824_v13 = vld [vmem:[#allocation2 + $0x9c] sm:$0xf] }
 0x180   : > { %v14527_v33 = vpop.f32.mrf.mxu0  ;;  %v5135_v28 = vpop.f32.mrf.mxu2  ;;  %v5309_v50 = vadd.f32 %v14486_v7, %v5220_v29  ;;  %v11631_v7 = vld [vmem:[#allocation4 + $0x2e0] sm:$0xf]  ;;  %v2538_v29 = vrot.slane %v2395_v38, 5  ;;  %v2223_v25 = vsel %vm13693_vm11, %v2218_v6, %v2222_v23  ;;  %2352 = vst [vmem:[#allocation4 + $0x370] sm:$0xf] %v2213_v55  ;;  %v2227_v6 = vrot.slane %v2225_v10, 4 }
 0x181   : > { %2353 = vst [vmem:[#allocation4 + $0x394] sm:$0xf] %v2223_v25  ;;  %v11632_v32 = vor.u32 %v13129_v4, %v11631_v7  ;;  %v1825_v38 = vld [vmem:[#allocation2 + $0xa0] sm:$0xf]  ;;  %v11625_v8 = vld [vmem:[#allocation4 + $0x2fc] sm:$0xf0] }
 0x182   : > { %v14534_v0 = vadd.f32 %v5397_v42, %v5309_v50  ;;  %5261 = vmatmul.bf16.gmra.mxu3 %v11592_v34  ;;  %v2536_v42 = vsel %vm14155_vm14, %v11232_v54, %v2535_v47  ;;  %v4958_v34 = vadd.f32 %v14373_v15, %v14229_v19  ;;  %v2539_v26 = vsel %vm14155_vm14, %v2537_v31, %v2538_v29  ;;  %v1905_v4 = vld [vmem:[#allocation2 + $0xb0] sm:$0x1] }
 0x183   : > { %2622 = vst [vmem:[#allocation4 + $0x32c] sm:$0xf] %v2536_v42  ;;  %v2228_v47 = vshll.u32 %v1903_v27, 16  ;;  %v2234_v50 = vshll.u32 %v1904_v51, 16  ;;  %v11628_v25 = vor.u32 %v13124_v56, %v11625_v8  ;;  %v13137_v42 = vld [vmem:[#allocation4 + $0x340] sm:$0xf0] }
 0x184   : > { %v5400_v45 = vpop.f32.mrf.mxu1  ;;  %2623 = vst [vmem:[#allocation4 + $0x350] sm:$0xf] %v2539_v26  ;;  %v13125_v26 = vld [vmem:[#allocation4 + $0x2e4] sm:$0xf]  ;;  %v2396_v8 = vld [vmem:[#allocation2 + $0x9c] sm:$0xe] }
 0x185   : > { %5177 = vmatmul.bf16.gmra.mxu2 %v11624_v22  ;;  %v5222_v21 = vpop.f32.mrf.mxu3  ;;  %v2238_v22 = vshrl.u32 %v1904_v51, 16  ;;  %1856 = vst [vmem:[#allocation4 + $0x36c] sm:$0xf] %v1824_v13  ;;  %v2236_v31 = vrot.slane %v2234_v50, 5  ;;  %v13399_v10 = vld [vmem:[%s16756_s3 + $0x30] sm:$0xff] }
 0x186   : > { %v5223_v61 = vadd.f32 %v5222_v21, %v14518_v59  ;;  %v5047_v59 = vadd.f32 %v14237_v43, %v4958_v34  ;;  %1857 = vst [vmem:[#allocation4 + $0x390] sm:$0xf] %v1825_v38  ;;  %v1564_v34 = vld [vmem:[#allocation2 + $0x9c] sm:$0xe]  ;;  %10213 = vmatpush.bf16.msra.mxu1 %v13399_v10 }
 0x187   : > { %5439 = vmatmul.bf16.gmra.mxu1 %v11600_v1  ;;  %v2230_v1 = vrot.slane %v2228_v47, 5  ;;  %v2240_v43 = vrot.slane %v2238_v22, 4  ;;  %v13226_v47 = vld [vmem:[%s16754_s1 + $0x188] sm:$0xff]  ;;  %v2244_v22 = vshll.u32 %v1905_v4, 16 }
 0x188   : > { %v14547_v58 = vpop.f32.mrf.mxu0  ;;  %v5138_v2 = vpop.f32.mrf.mxu2  ;;  %v5312_v19 = vadd.f32 %v14512_v53, %v5223_v61  ;;  %v5136_v23 = vadd.f32 %v5135_v28, %v5047_v59  ;;  %v11659_v53 = vld [vmem:[#allocation4 + $0x320] sm:$0xf]  ;;  %v11218_v61 = vrot.slane %v1564_v34, 9  ;;  %5481 = vmatpush.bf16.msra.mxu2 %v13226_v47  ;;  %v1906_v47 = vld [vmem:[#allocation2 + $0xb4] sm:$0xf] }
 0x189   : > { %v14551_v15 = vadd.f32 %v5138_v2, %v14256_v49  ;;  %v1565_v49 = vld [vmem:[#allocation2 + $0xa0] sm:$0xf]  ;;  %v2231_v55 = vor.u32 %v2230_v1, %v2227_v6  ;;  %v11633_v2 = vld [vmem:[#allocation4 + $0x304] sm:$0xf0]  ;;  %v2241_v50 = vor.u32 %v2240_v43, %v2236_v31  ;;  %v11660_v56 = vor.u32 %v13137_v42, %v11659_v53  ;;  %v2398_v1 = vld [vmem:[#allocation2 + $0xa4] sm:$0x1] }
 0x18a   : > { %v14554_v9 = vadd.f32 %v5400_v45, %v5312_v19  ;;  %v1717_v7 = vrot.slane %v1565_v49, 5  ;;  %v1566_v45 = vld [vmem:[#allocation2 + $0xa4] sm:$0x1]  ;;  %v2397_v6 = vld [vmem:[#allocation2 + $0xa0] sm:$0xf]  ;;  %v2246_v4 = vrot.slane %v2244_v22, 5  ;;  %v11636_v53 = vor.u32 %v13125_v26, %v11633_v2 }
 0x18b   : > { %5355 = vmatmul.bf16.gmra.mxu0 %v11632_v32  ;;  %v1720_v27 = vrot.slane %v1566_v45, 5  ;;  %v2232_v19 = vrot.slane %v2231_v55, 4  ;;  %v2242_v49 = vrot.slane %v2241_v50, 4  ;;  %v11233_v43 = vrot.slane %v2396_v8, 9  ;;  %v14600_v8 = vld [vmem:[#allocation4 + $0x368] sm:$0xf] }
 0x18c   : > { %v5402_v54 = vpop.f32.mrf.mxu1  ;;  %v1719_v32 = vrot.slane %v1717_v7, 4  ;;  %v1718_v13 = vsel %vm14155_vm14, %v11218_v61, %v1717_v7  ;;  %v13234_v7 = vld [vmem:[%s16754_s1 + $0x1c8] sm:$0xff]  ;;  %v2545_v45 = vrot.slane %v2398_v1, 5 }
 0x18d   : > { %v5224_v29 = vpop.f32.mrf.mxu3  ;;  %1794 = vst [vmem:[#allocation4 + $0x3b0] sm:$0xf] %v1718_v13  ;;  %v2247_v34 = vsel %vm13693_vm11, %v2242_v49, %v2246_v4  ;;  %5570 = vmatpush.bf16.msra.mxu3 %v13234_v7  ;;  %v1826_v1 = vld [vmem:[#allocation2 + $0xa8] sm:$0xf]  ;;  %v491_v4 = vld [vmem:[%s13572_s8 + $0xf0] sm:$0xff] }
 0x18e   : > { %v5225_v21 = vadd.f32 %v5224_v29, %v5136_v23  ;;  %v1721_v38 = vsel %vm14155_vm14, %v1719_v32, %v1720_v27  ;;  %v2237_v23 = vsel %vm13693_vm11, %v2232_v19, %v2236_v31  ;;  %v13138_v29 = vld [vmem:[#allocation4 + $0x348] sm:$0xf0]  ;;  %v2542_v31 = vrot.slane %v2397_v6, 5  ;;  %2355 = vst [vmem:[#allocation4 + $0x3dc] sm:$0xf] %v2247_v34 }
 0x18f   : > { %1795 = vst [vmem:[#allocation4 + $0x3d4] sm:$0xf] %v1721_v38  ;;  %v14587_v32 = vld [vmem:[%s16755_s2] ss:$0 sm:$0xff]  ;;  %v1907_v19 = vld [vmem:[#allocation2 + $0xb8] sm:$0xf] }
 0x190   : > { %v14556_v28 = vpop.f32.mrf.mxu0  ;;  %v14558_v51 = vpop.f32.mrf.mxu2  ;;  %v5314_v59 = vadd.f32 %v14527_v33, %v5225_v21  ;;  %v11667_v33 = vld [vmem:[#allocation4 + $0x328] sm:$0xf]  ;;  %2354 = vst [vmem:[#allocation4 + $0x3b8] sm:$0xf] %v2237_v23  ;;  %v2543_v21 = vsel %vm14155_vm14, %v11233_v43, %v2542_v31  ;;  %v2544_v26 = vrot.slane %v2542_v31, 4  ;;  %v4963_v27 = vadd.f32 %v14587_v32, %v14269_v5 }
 0x191   : > { %v11668_v10 = vor.u32 %v13138_v29, %v11667_v33  ;;  %2624 = vst [vmem:[#allocation4 + $0x374] sm:$0xf] %v2543_v21  ;;  %v11661_v38 = vld [vmem:[#allocation4 + $0x344] sm:$0xf0]  ;;  %v2252_v6 = vshll.u32 %v1906_v47, 16  ;;  %v2258_v49 = vshll.u32 %v1907_v19, 16 }
 0x192   : > { %v14573_v55 = vadd.f32 %v5402_v54, %v5314_v59  ;;  %5266 = vmatmul.bf16.gmra.mxu3 %v11628_v25  ;;  %v284_v54 = vld [vmem:[#allocation2 + $0xc0] sm:$0x1]  ;;  %v2546_v59 = vsel %vm14155_vm14, %v2544_v26, %v2545_v45  ;;  %v1827_v23 = vld [vmem:[#allocation2 + $0xac] sm:$0xf]  ;;  %v5052_v33 = vadd.f32 %v14284_v52, %v4963_v27  ;;  %v13146_v7 = vld [vmem:[#allocation4 + $0x388] sm:$0xf0] }
 0x193   : > { %v285_v61 = vsel %vm13588_vm4, 0, %v284_v54  ;;  %2625 = vst [vmem:[#allocation4 + $0x398] sm:$0xf] %v2546_v59  ;;  %v1568_v43 = vld [vmem:[#allocation2 + $0xac] sm:$0xf]  ;;  %v2262_v34 = vshrl.u32 %v1907_v19, 16  ;;  %v11696_v26 = vor.u32 %v13146_v7, %v14600_v8 }
 0x194   : > { %v5405_v42 = vpop.f32.mrf.mxu1  ;;  %286 = vst [vmem:[#allocation2 + $0xc0] sm:$0x1] %v285_v61  ;;  %v5141_v31 = vadd.f32 %v14558_v51, %v5052_v33  ;;  %v1724_v45 = vrot.slane %v1568_v43, 5  ;;  %v1908_v52 = vld [vmem:[#allocation2 + $0xbc] sm:$0x1]  ;;  %v2254_v54 = vrot.slane %v2252_v6, 5 }
 0x195   : > { %5182 = vmatmul.bf16.gmra.mxu2 %v11660_v56  ;;  %v5227_v25 = vpop.f32.mrf.mxu3  ;;  %v2249_v56 = vshrl.u32 %v1906_v47, 16  ;;  %1858 = vst [vmem:[#allocation4 + $0x3b4] sm:$0xf] %v1826_v1  ;;  %v13134_v61 = vld [vmem:[#allocation4 + $0x32c] sm:$0xf] }
 0x196   : > { %v5228_v2 = vadd.f32 %v5227_v25, %v14551_v15  ;;  %v13133_v15 = vld [vmem:[#allocation4 + $0x324] sm:$0xf]  ;;  %1859 = vst [vmem:[#allocation4 + $0x3d8] sm:$0xf] %v1827_v23  ;;  %v1567_v27 = vld [vmem:[#allocation2 + $0xa8] sm:$0xe] }
 0x197   : > { %5444 = vmatmul.bf16.gmra.mxu1 %v11636_v53  ;;  %v2251_v29 = vrot.slane %v2249_v56, 4  ;;  %v11664_v21 = vor.u32 %v13133_v15, %v11661_v38  ;;  %v492_v47 = vld [vmem:[%s13572_s8 + $0xf8] sm:$0xff]  ;;  %v11219_v59 = vrot.slane %v1567_v27, 9  ;;  %v1726_v19 = vrot.slane %v1724_v45, 4  ;;  %v2400_v51 = vld [vmem:[#allocation2 + $0xac] sm:$0xf] }
 0x198   : > { %v14592_v50 = vpop.f32.mrf.mxu0  ;;  %v5143_v22 = vpop.f32.mrf.mxu2  ;;  %v5317_v13 = vadd.f32 %v14547_v58, %v5228_v2  ;;  %v1569_v2 = vld [vmem:[#allocation2 + $0xb0] sm:$0x1]  ;;  %v11669_v6 = vld [vmem:[#allocation4 + $0x34c] sm:$0xf0]  ;;  %v2268_v15 = vshll.u32 %v1908_v52, 16  ;;  %v2549_v38 = vrot.slane %v2400_v51, 5 }
 0x199   : > { %v14598_v5 = vadd.f32 %v5143_v22, %v14300_v60  ;;  %v13242_v60 = vld [vmem:[%s16754_s1 + $0x208] sm:$0xff]  ;;  %v1727_v56 = vrot.slane %v1569_v2, 5  ;;  %v2255_v23 = vor.u32 %v2254_v54, %v2251_v29  ;;  %v2401_v7 = vld [vmem:[#allocation2 + $0xb0] sm:$0x1]  ;;  %v4968_v2 = vadd.f32 %v14587_v32, %v14304_v18 }
 0x19a   : > { %v14604_v53 = vadd.f32 %v5405_v42, %v5317_v13  ;;  %5659 = vmatpush.bf16.msra.mxu0 %v13242_v60  ;;  %v14610_v42 = vpack.c.bf16 %v491_v4, %v491_v4  ;;  %v2264_v4 = vrot.slane %v2262_v34, 4  ;;  %v2399_v33 = vld [vmem:[#allocation2 + $0xa8] sm:$0xe]  ;;  %v524_v60 = vpack.c.bf16 %v492_v47, %v492_v47  ;;  %v340_v34 = vld [vmem:[#allocation2 + $0xc8] sm:$0x1] }
 0x19b   : > { %5360 = vmatmul.bf16.gmra.mxu0 %v11668_v10  ;;  %v2260_v10 = vrot.slane %v2258_v49, 5  ;;  %v1725_v49 = vsel %vm14155_vm14, %v11219_v59, %v1724_v45  ;;  %v2270_v29 = vrot.slane %v2268_v15, 5  ;;  %v11234_v54 = vrot.slane %v2399_v33, 9  ;;  %v11703_v47 = vld [vmem:[#allocation4 + $0x370] sm:$0xf] }
 0x19c   : > { %v5407_v58 = vpop.f32.mrf.mxu1  ;;  %v783_v43 = vshrl.u32 %v14610_v42, 16  ;;  %1796 = vst [vmem:[#allocation4 + $0x3f8] sm:$0xf] %v1725_v49  ;;  %v2551_v45 = vrot.slane %v2549_v38, 4  ;;  %v2552_v51 = vrot.slane %v2401_v7, 5 }
 0x19d   : > { %v5229_v25 = vpop.f32.mrf.mxu3  ;;  %v2265_v27 = vor.u32 %v2264_v4, %v2260_v10  ;;  %v791_v4 = vshrl.u32 %v524_v60, 16  ;;  %v955_v49 = vld [vmem:[#allocation2 + $0xc0] sm:$0xf] }
 0x19e   : > { %v5230_v22 = vadd.f32 %v5229_v25, %v5141_v31  ;;  %v1728_v31 = vsel %vm14155_vm14, %v1726_v19, %v1727_v56  ;;  %v2256_v25 = vrot.slane %v2255_v23, 4 }
 0x19f   : > { %1797 = vst [vmem:[#allocation4 + $0x41c] sm:$0xf] %v1728_v31  ;;  %v2266_v56 = vrot.slane %v2265_v27, 4  ;;  %v1829_v27 = vld [vmem:[#allocation2 + $0xb8] sm:$0xf] }
 0x1a0   : > { %v14614_v13 = vpop.f32.mrf.mxu0  ;;  %v14616_v1 = vpop.f32.mrf.mxu2  ;;  %v5319_v8 = vadd.f32 %v14556_v28, %v5230_v22  ;;  %v11672_v28 = vor.u32 %v13134_v61, %v11669_v6  ;;  %v13147_v22 = vld [vmem:[#allocation4 + $0x390] sm:$0xf0]  ;;  %v2261_v19 = vsel %vm13693_vm11, %v2256_v25, %v2260_v10  ;;  %v785_v61 = vrot.slane %v783_v43, 7  ;;  %1861 = vst [vmem:[#allocation4 + $0x420] sm:$0xf] %v1829_v27 }
 0x1a1   : > { %2356 = vst [vmem:[#allocation4 + $0x400] sm:$0xf] %v2261_v19  ;;  %v786_v6 = vshll.u32 %v14610_v42, 16  ;;  %v2271_v23 = vsel %vm13693_vm11, %v2266_v56, %v2270_v29  ;;  %v2553_v10 = vsel %vm14155_vm14, %v2551_v45, %v2552_v51  ;;  %v793_v43 = vrot.slane %v791_v4, 7  ;;  %v11697_v45 = vld [vmem:[#allocation4 + $0x38c] sm:$0xf0] }
 0x1a2   : > { %v14624_v52 = vadd.f32 %v5407_v58, %v5319_v8  ;;  %5271 = vmatmul.bf16.gmra.mxu3 %v11664_v21  ;;  %v2550_v58 = vsel %vm14155_vm14, %v11234_v54, %v2549_v38  ;;  %v341_v21 = vsel %vm13602_vm5, 0, %v340_v34  ;;  %v11704_v8 = vor.u32 %v13147_v22, %v11703_v47  ;;  %2357 = vst [vmem:[#allocation4 + $0x424] sm:$0xf] %v2271_v23  ;;  %v13142_v54 = vld [vmem:[#allocation4 + $0x36c] sm:$0xf] }
 0x1a3   : > { %2626 = vst [vmem:[#allocation4 + $0x3bc] sm:$0xf] %v2550_v58  ;;  %v788_v38 = vor.u32 %v786_v6, %v785_v61  ;;  %v789_v7 = vrot.slane %v785_v61, 4  ;;  %v5057_v34 = vadd.f32 %v14313_v57, %v4968_v2  ;;  %v13155_v56 = vld [vmem:[#allocation4 + $0x3d0] sm:$0xf0]  ;;  %v798_v58 = vrot.slane %v793_v43, 4 }
 0x1a4   : > { %v5410_v59 = vpop.f32.mrf.mxu1  ;;  %2627 = vst [vmem:[#allocation4 + $0x3e0] sm:$0xf] %v2553_v10  ;;  %v13143_v2 = vld [vmem:[#allocation4 + $0x374] sm:$0xf]  ;;  %v11700_v6 = vor.u32 %v13142_v54, %v11697_v45  ;;  %v2404_v27 = vld [vmem:[#allocation2 + $0xbc] sm:$0x1] }
 0x1a5   : > { %5187 = vmatmul.bf16.gmra.mxu2 %v11696_v26  ;;  %v5232_v18 = vpop.f32.mrf.mxu3  ;;  %v794_v26 = vshll.u32 %v524_v60, 16  ;;  %342 = vst [vmem:[#allocation2 + $0xc8] sm:$0x1] %v341_v21  ;;  %v1828_v60 = vld [vmem:[#allocation2 + $0xb4] sm:$0xf]  ;;  %v956_v29 = vsel %vm13671_vm10, %v788_v38, %v955_v49  ;;  %v5146_v19 = vadd.f32 %v14616_v1, %v5057_v34  ;;  %v13398_v1 = vld [vmem:[%s16756_s3 + $0x28] sm:$0xff] }
 0x1a6   : > { %v5233_v15 = vadd.f32 %v5232_v18, %v14598_v5  ;;  %1860 = vst [vmem:[#allocation4 + $0x3fc] sm:$0xf] %v1828_v60  ;;  %v1572_v21 = vld [vmem:[#allocation2 + $0xbc] sm:$0x1]  ;;  %v11705_v18 = vld [vmem:[#allocation4 + $0x394] sm:$0xf0]  ;;  %10214 = vmatpush.bf16.msra.mxu1 %v13398_v1 }
 0x1a7   : > { %5449 = vmatmul.bf16.gmra.mxu1 %v11672_v28  ;;  %v796_v5 = vor.u32 %v794_v26, %v793_v43  ;;  %957 = vst [vmem:[#allocation2 + $0xc0] sm:$0xf] %v956_v29  ;;  %v2403_v60 = vld [vmem:[#allocation2 + $0xb8] sm:$0xf]  ;;  %v13156_v45 = vld [vmem:[#allocation4 + $0x3d8] sm:$0xf0] }
 0x1a8   : > { %v14640_v33 = vpop.f32.mrf.mxu0  ;;  %v5148_v42 = vpop.f32.mrf.mxu2  ;;  %v5322_v31 = vadd.f32 %v14592_v50, %v5233_v15  ;;  %v11731_v50 = vld [vmem:[#allocation4 + $0x3b0] sm:$0xf]  ;;  %v2556_v54 = vrot.slane %v2403_v60, 5 }
 0x1a9   : > { %v14644_v25 = vadd.f32 %v5148_v42, %v14332_v11  ;;  %v1571_v11 = vld [vmem:[#allocation2 + $0xb8] sm:$0xf]  ;;  %v797_v22 = vsel %vm13632_vm7, %v789_v7, %v796_v5  ;;  %v13225_v15 = vld [vmem:[%s16754_s1 + $0x180] sm:$0xff]  ;;  %v11732_v42 = vor.u32 %v13155_v56, %v11731_v50  ;;  %v11739_v5 = vld [vmem:[#allocation4 + $0x3b8] sm:$0xf]  ;;  %v11708_v50 = vor.u32 %v13143_v2, %v11705_v18 }
 0x1aa   : > { %v14649_v28 = vadd.f32 %v5410_v59, %v5322_v31  ;;  %v1731_v51 = vrot.slane %v1571_v11, 5  ;;  %v1570_v59 = vld [vmem:[#allocation2 + $0xb4] sm:$0xe]  ;;  %958 = vst [vmem:[#allocation2 + $0xc4] sm:$0xf] %v797_v22  ;;  %5482 = vmatpush.bf16.msra.mxu2 %v13225_v15  ;;  %v13233_v11 = vld [vmem:[%s16754_s1 + $0x1c0] sm:$0xff]  ;;  %v4973_v2 = vadd.f32 %v14587_v32, %v14347_v14 }
 0x1ab   : > { %5365 = vmatmul.bf16.gmra.mxu0 %v11704_v8  ;;  %v11220_v23 = vrot.slane %v1570_v59, 9  ;;  %v1734_v8 = vrot.slane %v1572_v21, 5  ;;  %v2402_v31 = vld [vmem:[#allocation2 + $0xb4] sm:$0xe]  ;;  %v2559_v22 = vrot.slane %v2404_v27, 5  ;;  %5571 = vmatpush.bf16.msra.mxu3 %v13233_v11  ;;  %v11740_v21 = vor.u32 %v13156_v45, %v11739_v5 }
 0x1ac   : > { %v5412_v47 = vpop.f32.mrf.mxu1  ;;  %v1733_v10 = vrot.slane %v1731_v51, 4  ;;  %v959_v38 = vld [vmem:[#allocation2 + $0xc8] sm:$0x1]  ;;  %v11235_v34 = vrot.slane %v2402_v31, 9  ;;  %v5062_v27 = vadd.f32 %v14355_v62, %v4973_v2 }
 0x1ad   : > { %v5234_v57 = vpop.f32.mrf.mxu3  ;;  %v1732_v7 = vsel %vm14155_vm14, %v11220_v23, %v1731_v51  ;;  %v960_v43 = vsel %vm13588_vm4, %v798_v58, %v959_v38  ;;  %v2558_v58 = vrot.slane %v2556_v54, 4  ;;  %v11733_v31 = vld [vmem:[#allocation4 + $0x3d4] sm:$0xf0] }
 0x1ae   : > { %v5235_v61 = vadd.f32 %v5234_v57, %v5146_v19  ;;  %v1735_v29 = vsel %vm14155_vm14, %v1733_v10, %v1734_v8  ;;  %1798 = vst [vmem:[#allocation4 + $0x440] sm:$0xf] %v1732_v7  ;;  %v1909_v56 = vld [vmem:[#allocation2 + $0xc0] sm:$0xf]  ;;  %v2557_v51 = vsel %vm14155_vm14, %v11235_v34, %v2556_v54  ;;  %v11767_v45 = vld [vmem:[#allocation4 + $0x3f8] sm:$0xf] }
 0x1af   : > { %1799 = vst [vmem:[#allocation4 + $0x464] sm:$0xf] %v1735_v29  ;;  %v2276_v57 = vshll.u32 %v1909_v56, 16 }
 0x1b0   : > { %v14654_v4 = vpop.f32.mrf.mxu0  ;;  %v14656_v26 = vpop.f32.mrf.mxu2  ;;  %v5324_v49 = vadd.f32 %v14614_v13, %v5235_v61  ;;  %961 = vst [vmem:[#allocation2 + $0xc8] sm:$0x1] %v960_v43  ;;  %v13151_v43 = vld [vmem:[#allocation4 + $0x3b4] sm:$0xf] }
 0x1b1   : > { %2628 = vst [vmem:[#allocation4 + $0x404] sm:$0xf] %v2557_v51  ;;  %v1910_v61 = vld [vmem:[#allocation2 + $0xc4] sm:$0xf]  ;;  %v2278_v10 = vrot.slane %v2276_v57, 5 }
 0x1b2   : > { %v14671_v13 = vadd.f32 %v5412_v47, %v5324_v49  ;;  %5276 = vmatmul.bf16.gmra.mxu3 %v11700_v6  ;;  %v2273_v47 = vshrl.u32 %v1909_v56, 16  ;;  %v2560_v6 = vsel %vm14155_vm14, %v2558_v58, %v2559_v22  ;;  %v2282_v1 = vshll.u32 %v1910_v61, 16  ;;  %v1831_v54 = vld [vmem:[#allocation2 + $0xc4] sm:$0xf]  ;;  %v3194_v56 = vld [vmem:[#allocation2 + $0x1c] sm:$0xf] }
 0x1b3   : > { %2629 = vst [vmem:[#allocation4 + $0x428] sm:$0xf] %v2560_v6  ;;  %v2286_v38 = vshrl.u32 %v1910_v61, 16  ;;  %v5151_v22 = vadd.f32 %v14656_v26, %v5062_v27  ;;  %v13164_v58 = vld [vmem:[#allocation4 + $0x418] sm:$0xf0]  ;;  %v3291_v6 = vrot.slane %v3194_v56, 5 }
 0x1b4   : > { %v5415_v19 = vpop.f32.mrf.mxu1  ;;  %v2275_v23 = vrot.slane %v2273_v47, 4  ;;  %v2284_v7 = vrot.slane %v2282_v1, 5  ;;  %1863 = vst [vmem:[#allocation4 + $0x468] sm:$0xf] %v1831_v54  ;;  %v11741_v1 = vld [vmem:[#allocation4 + $0x3dc] sm:$0xf0] }
 0x1b5   : > { %5192 = vmatmul.bf16.gmra.mxu2 %v11732_v42  ;;  %v5237_v59 = vpop.f32.mrf.mxu3  ;;  %v2288_v60 = vrot.slane %v2286_v38, 4  ;;  %v2405_v27 = vld [vmem:[#allocation2 + $0xc0] sm:$0xe] }
 0x1b6   : > { %v5238_v18 = vadd.f32 %v5237_v59, %v14644_v25  ;;  %v2279_v42 = vor.u32 %v2278_v10, %v2275_v23  ;;  %v1830_v25 = vld [vmem:[#allocation2 + $0xc0] sm:$0xf]  ;;  %v11736_v59 = vor.u32 %v13151_v43, %v11733_v31  ;;  %v13152_v10 = vld [vmem:[#allocation4 + $0x3bc] sm:$0xf]  ;;  %v2633_v43 = vld [vmem:[#allocation2 + $0x18] sm:$0xf] }
 0x1b7   : > { %5454 = vmatmul.bf16.gmra.mxu1 %v11708_v50  ;;  %v1911_v29 = vld [vmem:[#allocation2 + $0xc8] sm:$0x1]  ;;  %v2289_v50 = vor.u32 %v2288_v60, %v2284_v7  ;;  %1862 = vst [vmem:[#allocation4 + $0x444] sm:$0xf] %v1830_v25  ;;  %v2634_v31 = vld [vmem:[#allocation2 + $0x1c] sm:$0xf] }
 0x1b8   : > { %v14683_v15 = vpop.f32.mrf.mxu0  ;;  %v5153_v8 = vpop.f32.mrf.mxu2  ;;  %v5327_v49 = vadd.f32 %v14640_v33, %v5238_v18  ;;  %v2280_v34 = vrot.slane %v2279_v42, 4  ;;  %v13241_v33 = vld [vmem:[%s16754_s1 + $0x200] sm:$0xff]  ;;  %v2292_v11 = vshll.u32 %v1911_v29, 16  ;;  %2665 = vst [vmem:[#allocation4 + $0x18] sm:$0xf] %v2633_v43  ;;  %v3293_v25 = vrot.slane %v3291_v6, 4 }
 0x1b9   : > { %v14687_v14 = vadd.f32 %v5153_v8, %v14383_v35  ;;  %5660 = vmatpush.bf16.msra.mxu0 %v13241_v33  ;;  %v2290_v47 = vrot.slane %v2289_v50, 4  ;;  %v2406_v18 = vld [vmem:[#allocation2 + $0xc4] sm:$0xf]  ;;  %v11744_v33 = vor.u32 %v13152_v10, %v11741_v1  ;;  %2666 = vst [vmem:[#allocation4 + $0x3c] sm:$0xf] %v2634_v31 }
 0x1ba   : > { %v14690_v5 = vadd.f32 %v5415_v19, %v5327_v49  ;;  %v2285_v62 = vsel %vm13693_vm11, %v2280_v34, %v2284_v7  ;;  %v3193_v19 = vld [vmem:[#allocation2 + $0x18] sm:$0xe]  ;;  %v2294_v57 = vrot.slane %v2292_v11, 5  ;;  %v2563_v49 = vrot.slane %v2406_v18, 5  ;;  %v11775_v34 = vld [vmem:[#allocation4 + $0x400] sm:$0xf] }
 0x1bb   : > { %5370 = vmatmul.bf16.gmra.mxu0 %v11740_v21  ;;  %2358 = vst [vmem:[#allocation4 + $0x448] sm:$0xf] %v2285_v62  ;;  %v3195_v21 = vld [vmem:[#allocation2 + $0x20] sm:$0x1]  ;;  %v11237_v61 = vrot.slane %v3193_v19, 9  ;;  %v11768_v7 = vor.u32 %v13164_v58, %v11767_v45  ;;  %v11236_v45 = vrot.slane %v2405_v27, 9  ;;  %v4978_v62 = vadd.f32 %v14587_v32, %v14386_v46 }
 0x1bc   : > { %v14695_v35 = vpop.f32.mrf.mxu1  ;;  %v2295_v8 = vsel %vm13693_vm11, %v2290_v47, %v2294_v57  ;;  %v3294_v38 = vrot.slane %v3195_v21, 5  ;;  %v2565_v29 = vrot.slane %v2563_v49, 4  ;;  %v2407_v54 = vld [vmem:[#allocation2 + $0xc8] sm:$0x1]  ;;  %v13165_v50 = vld [vmem:[#allocation4 + $0x420] sm:$0xf0] }
 0x1bd   : > { %v5239_v51 = vpop.f32.mrf.mxu3  ;;  %2359 = vst [vmem:[#allocation4 + $0x46c] sm:$0xf] %v2295_v8  ;;  %v3292_v60 = vsel %vm14155_vm14, %v11237_v61, %v3291_v6  ;;  %v2697_v19 = vld [vmem:[#allocation2 + $0x18] sm:$0xf]  ;;  %v2698_v47 = vld [vmem:[#allocation2 + $0x1c] sm:$0xf]  ;;  %v11776_v61 = vor.u32 %v13165_v50, %v11775_v34 }
 0x1be   : > { %v5240_v2 = vadd.f32 %v5239_v51, %v5151_v22  ;;  %3433 = vst [vmem:[#allocation4 + $0x20] sm:$0xf] %v3292_v60  ;;  %v2566_v22 = vrot.slane %v2407_v54, 5  ;;  %v2564_v51 = vsel %vm14155_vm14, %v11236_v45, %v2563_v49  ;;  %v2699_v57 = vld [vmem:[#allocation2 + $0x20] sm:$0x1]  ;;  %v2755_v46 = vshll.u32 %v2698_v47, 16 }
 0x1bf   : > { %2630 = vst [vmem:[#allocation4 + $0x44c] sm:$0xf] %v2564_v51  ;;  %v2759_v6 = vshrl.u32 %v2698_v47, 16  ;;  %v5067_v60 = vadd.f32 %v14409_v63, %v4978_v62  ;;  %v3197_v34 = vld [vmem:[#allocation2 + $0x28] sm:$0xf] }
 0x1c0   : > { %v14700_v23 = vpop.f32.mrf.mxu0  ;;  %v14702_v26 = vpop.f32.mrf.mxu2  ;;  %v14707_v42 = vadd.f32 %v14654_v4, %v5240_v2  ;;  %v3295_v4 = vsel %vm14155_vm14, %v3293_v25, %v3294_v38  ;;  %v2567_v58 = vsel %vm14155_vm14, %v2565_v29, %v2566_v22  ;;  %v2746_v2 = vshrl.u32 %v2697_v19, 16  ;;  %v13160_v29 = vld [vmem:[#allocation4 + $0x3fc] sm:$0xf]  ;;  %v11769_v54 = vld [vmem:[#allocation4 + $0x41c] sm:$0xf0] }
 0x1c1   : > { %3434 = vst [vmem:[#allocation4 + $0x44] sm:$0xf] %v3295_v4  ;;  %v2765_v38 = vshll.u32 %v2699_v57, 16  ;;  %v2757_v43 = vrot.slane %v2755_v46, 5  ;;  %v4983_v25 = vadd.f32 %v14587_v32, %v14419_v30  ;;  %v3298_v4 = vrot.slane %v3197_v34, 5 }
 0x1c2   : > { %5281 = vmatmul.bf16.gmra.mxu3 %v11736_v59  ;;  %v2749_v59 = vshll.u32 %v2697_v19, 16  ;;  %2631 = vst [vmem:[#allocation4 + $0x470] sm:$0xf] %v2567_v58  ;;  %v2748_v1 = vrot.slane %v2746_v2, 4  ;;  %v5156_v45 = vadd.f32 %v14702_v26, %v5067_v60  ;;  %v11803_v22 = vld [vmem:[#allocation4 + $0x440] sm:$0xf]  ;;  %v11772_v2 = vor.u32 %v13160_v29, %v11769_v54 }
 0x1c3   : > { %v3196_v19 = vld [vmem:[#allocation2 + $0x24] sm:$0xe]  ;;  %v3198_v63 = vld [vmem:[#allocation2 + $0x2c] sm:$0x1]  ;;  %v3300_v58 = vrot.slane %v3298_v4, 4  ;;  %v5072_v47 = vadd.f32 %v14447_v48, %v4983_v25 }
 0x1c4   : > { %v5420_v11 = vpop.f32.mrf.mxu1  ;;  %v2751_v8 = vrot.slane %v2749_v59, 5  ;;  %v11238_v51 = vrot.slane %v3196_v19, 9  ;;  %v3301_v59 = vrot.slane %v3198_v63, 5  ;;  %v11777_v46 = vld [vmem:[#allocation4 + $0x424] sm:$0xf0] }
 0x1c5   : > { %5197 = vmatmul.bf16.gmra.mxu2 %v11768_v7  ;;  %v5242_v56 = vpop.f32.mrf.mxu3  ;;  %v2700_v60 = vld [vmem:[#allocation2 + $0x24] sm:$0xf]  ;;  %v2701_v25 = vld [vmem:[#allocation2 + $0x28] sm:$0xf] }
 0x1c6   : > { %v5243_v21 = vadd.f32 %v5242_v56, %v14687_v14  ;;  %v2752_v31 = vor.u32 %v2751_v8, %v2748_v1  ;;  %v2761_v14 = vrot.slane %v2759_v6, 4  ;;  %v13173_v56 = vld [vmem:[#allocation4 + $0x460] sm:$0xf0]  ;;  %v13397_v6 = vld [vmem:[%s16756_s3 + $0x20] sm:$0xff]  ;;  %v2770_v29 = vshrl.u32 %v2700_v60, 16 }
 0x1c7   : > { %5459 = vmatmul.bf16.gmra.mxu1 %v11744_v33  ;;  %v11804_v8 = vor.u32 %v13173_v56, %v11803_v22  ;;  %v2773_v34 = vshll.u32 %v2700_v60, 16  ;;  %v2779_v54 = vshll.u32 %v2701_v25, 16 }
 0x1c8   : > { %v14720_v18 = vpop.f32.mrf.mxu0  ;;  %v5158_v10 = vpop.f32.mrf.mxu2  ;;  %v5332_v49 = vadd.f32 %v14683_v15, %v5243_v21  ;;  %v2753_v15 = vrot.slane %v2752_v31, 4  ;;  %v2762_v50 = vor.u32 %v2761_v14, %v2757_v43  ;;  %v11811_v31 = vld [vmem:[#allocation4 + $0x448] sm:$0xf]  ;;  %10215 = vmatpush.bf16.msra.mxu1 %v13397_v6  ;;  %v3302_v14 = vsel %vm14155_vm14, %v3300_v58, %v3301_v59 }
 0x1c9   : > { %v14724_v7 = vadd.f32 %v5158_v10, %v14425_v44  ;;  %v2767_v44 = vrot.slane %v2765_v38, 5  ;;  %v2635_v38 = vld [vmem:[#allocation2 + $0x24] sm:$0xf]  ;;  %3436 = vst [vmem:[#allocation4 + $0x8c] sm:$0xf] %v3302_v14  ;;  %v2775_v22 = vrot.slane %v2773_v34, 5  ;;  %v4988_v6 = vadd.f32 %v14587_v32, %v14456_v17 }
 0x1ca   : > { %v14729_v27 = vadd.f32 %v5420_v11, %v5332_v49  ;;  %v2758_v30 = vsel %vm13693_vm11, %v2753_v15, %v2757_v43  ;;  %v2763_v11 = vrot.slane %v2762_v50, 4  ;;  %v2636_v49 = vld [vmem:[#allocation2 + $0x28] sm:$0xf]  ;;  %v3299_v43 = vsel %vm14155_vm14, %v11238_v51, %v3298_v4  ;;  %2667 = vst [vmem:[#allocation4 + $0x60] sm:$0xf] %v2635_v38 }
 0x1cb   : > { %5375 = vmatmul.bf16.gmra.mxu0 %v11776_v61  ;;  %3161 = vst [vmem:[#allocation4 + $0x1c] sm:$0xf] %v2758_v30  ;;  %v13161_v61 = vld [vmem:[#allocation4 + $0x404] sm:$0xf]  ;;  %v13174_v15 = vld [vmem:[#allocation4 + $0x468] sm:$0xf0] }
 0x1cc   : > { %v14731_v33 = vpop.f32.mrf.mxu1  ;;  %v2768_v10 = vsel %vm13693_vm11, %v2763_v11, %v2767_v44  ;;  %2668 = vst [vmem:[#allocation4 + $0x84] sm:$0xf] %v2636_v49  ;;  %v2783_v44 = vshrl.u32 %v2701_v25, 16  ;;  %v2702_v4 = vld [vmem:[#allocation2 + $0x2c] sm:$0x1]  ;;  %v2781_v63 = vrot.slane %v2779_v54, 5  ;;  %v11812_v11 = vor.u32 %v13174_v15, %v11811_v31 }
 0x1cd   : > { %v5244_v62 = vpop.f32.mrf.mxu3  ;;  %3162 = vst [vmem:[#allocation4 + $0x40] sm:$0xf] %v2768_v10  ;;  %v2789_v56 = vshll.u32 %v2702_v4, 16  ;;  %v3200_v49 = vld [vmem:[#allocation2 + $0x34] sm:$0xf]  ;;  %v5077_v54 = vadd.f32 %v14481_v41, %v4988_v6 }
 0x1ce   : > { %v5245_v57 = vadd.f32 %v5244_v62, %v5156_v45  ;;  %3435 = vst [vmem:[#allocation4 + $0x68] sm:$0xf] %v3299_v43  ;;  %v2772_v45 = vrot.slane %v2770_v29, 4  ;;  %v2785_v62 = vrot.slane %v2783_v44, 4  ;;  %v11279_v31 = vld [vmem:[#allocation4 + $0x18] sm:$0xf] }
 0x1cf   : > { %v3199_v14 = vld [vmem:[#allocation2 + $0x30] sm:$0xe]  ;;  %v3201_v17 = vld [vmem:[#allocation2 + $0x38] sm:$0x1]  ;;  %v13040_v25 = vld [vmem:[#allocation4 + $0x38] sm:$0xf0] }
 0x1d0   : > { %v14737_v21 = vpop.f32.mrf.mxu0  ;;  %v5160_v26 = vpop.f32.mrf.mxu2  ;;  %v14745_v1 = vadd.f32 %v14700_v23, %v5245_v57  ;;  %v11780_v23 = vor.u32 %v13161_v61, %v11777_v46  ;;  %v2776_v51 = vor.u32 %v2775_v22, %v2772_v45  ;;  %v2786_v57 = vor.u32 %v2785_v62, %v2781_v63  ;;  %v13170_v45 = vld [vmem:[#allocation4 + $0x44c] sm:$0xf]  ;;  %v11813_v22 = vld [vmem:[#allocation4 + $0x46c] sm:$0xf0] }
 0x1d1   : > { %v14747_v48 = vadd.f32 %v5160_v26, %v5072_v47  ;;  %v3308_v34 = vrot.slane %v3201_v17, 5 }
 0x1d2   : > { %5286 = vmatmul.bf16.gmra.mxu3 %v11772_v2  ;;  %v2791_v2 = vrot.slane %v2789_v56, 5  ;;  %v2777_v61 = vrot.slane %v2776_v51, 4  ;;  %v2787_v46 = vrot.slane %v2786_v57, 4  ;;  %v11280_v56 = vor.u32 %v13040_v25, %v11279_v31  ;;  %v2704_v51 = vld [vmem:[#allocation2 + $0x34] sm:$0xf] }
 0x1d3   : > { %v11816_v57 = vor.u32 %v13170_v45, %v11813_v22  ;;  %v2807_v6 = vshrl.u32 %v2704_v51, 16  ;;  %v13036_v22 = vld [vmem:[#allocation4 + $0x1c] sm:$0xf] }
 0x1d4   : > { %v5425_v50 = vpop.f32.mrf.mxu1  ;;  %v2782_v38 = vsel %vm13693_vm11, %v2777_v61, %v2781_v63 }
 0x1d5   : > { %5202 = vmatmul.bf16.gmra.mxu2 %v11804_v8  ;;  %v5247_v19 = vpop.f32.mrf.mxu3  ;;  %v11805_v8 = vld [vmem:[#allocation4 + $0x464] sm:$0xf0]  ;;  %3163 = vst [vmem:[#allocation4 + $0x64] sm:$0xf] %v2782_v38 }
 0x1d6   : > { %v5248_v30 = vadd.f32 %v5247_v19, %v14724_v7  ;;  %v13169_v7 = vld [vmem:[#allocation4 + $0x444] sm:$0xf] }
 0x1d7   : > { %5464 = vmatmul.bf16.gmra.mxu1 %v11780_v23  ;;  %v11239_v23 = vrot.slane %v3199_v14, 9 }
 0x1d8   : > { %v14754_v58 = vpop.f32.mrf.mxu0  ;;  %v5163_v47 = vpop.f32.mrf.mxu2  ;;  %v5337_v59 = vadd.f32 %v14720_v18, %v5248_v30  ;;  %v3305_v18 = vrot.slane %v3200_v49, 5  ;;  %v2637_v30 = vld [vmem:[#allocation2 + $0x30] sm:$0xf] }
 0x1d9   : > { %v5164_v26 = vadd.f32 %v5163_v47, %v14466_v36  ;;  %v2792_v36 = vsel %vm13693_vm11, %v2787_v46, %v2791_v2  ;;  %2669 = vst [vmem:[#allocation4 + $0xa8] sm:$0xf] %v2637_v30  ;;  %v11287_v47 = vld [vmem:[#allocation4 + $0x20] sm:$0xf]  ;;  %v2803_v46 = vshll.u32 %v2704_v51, 16 }
 0x1da   : > { %v14760_v10 = vadd.f32 %v5425_v50, %v5337_v59  ;;  %3164 = vst [vmem:[#allocation4 + $0x88] sm:$0xf] %v2792_v36  ;;  %v3307_v29 = vrot.slane %v3305_v18, 4  ;;  %v11808_v50 = vor.u32 %v13169_v7, %v11805_v8  ;;  %v3306_v19 = vsel %vm14155_vm14, %v11239_v23, %v3305_v18  ;;  %v2705_v7 = vld [vmem:[#allocation2 + $0x38] sm:$0x1] }
 0x1db   : > { %5380 = vmatmul.bf16.gmra.mxu0 %v11812_v11  ;;  %v2638_v11 = vld [vmem:[#allocation2 + $0x34] sm:$0xf]  ;;  %3437 = vst [vmem:[#allocation4 + $0xb0] sm:$0xf] %v3306_v19  ;;  %v2805_v31 = vrot.slane %v2803_v46, 5  ;;  %v2809_v36 = vrot.slane %v2807_v6, 4 }
 0x1dc   : > { %v14764_v43 = vpop.f32.mrf.mxu1  ;;  %v3309_v41 = vsel %vm14155_vm14, %v3307_v29, %v3308_v34  ;;  %2670 = vst [vmem:[#allocation4 + $0xcc] sm:$0xf] %v2638_v11  ;;  %v2813_v18 = vshll.u32 %v2705_v7, 16  ;;  %v11281_v19 = vld [vmem:[#allocation4 + $0x3c] sm:$0xf0]  ;;  %v13396_v7 = vld [vmem:[%s16756_s3 + $0x18] sm:$0xff] }
 0x1dd   : > { %v5249_v60 = vpop.f32.mrf.mxu3  ;;  %3438 = vst [vmem:[#allocation4 + $0xd4] sm:$0xf] %v3309_v41  ;;  %v2810_v29 = vor.u32 %v2809_v36, %v2805_v31  ;;  %v11315_v11 = vld [vmem:[#allocation4 + $0x60] sm:$0xf]  ;;  %v2640_v36 = vld [vmem:[#allocation2 + $0x40] sm:$0xf]  ;;  %10216 = vmatpush.bf16.msra.mxu1 %v13396_v7 }
 0x1de   : > { %v5250_v15 = vadd.f32 %v5249_v60, %v14747_v48  ;;  %v2703_v48 = vld [vmem:[#allocation2 + $0x30] sm:$0xf]  ;;  %v2815_v34 = vrot.slane %v2813_v18, 5  ;;  %v2706_v18 = vld [vmem:[#allocation2 + $0x3c] sm:$0xf] }
 0x1df   : > { %v2794_v2 = vshrl.u32 %v2703_v48, 16  ;;  %v2797_v59 = vshll.u32 %v2703_v48, 16  ;;  %v3204_v48 = vld [vmem:[#allocation2 + $0x44] sm:$0x1]  ;;  %2672 = vst [vmem:[#allocation4 + $0x114] sm:$0xf] %v2640_v36 }
 0x1e0   : > { %v14770_v44 = vpop.f32.mrf.mxu0  ;;  %v5165_v4 = vpop.f32.mrf.mxu2  ;;  %v14775_v63 = vadd.f32 %v14737_v21, %v5250_v15  ;;  %v13041_v21 = vld [vmem:[#allocation4 + $0x40] sm:$0xf0] }
 0x1e1   : > { %v5166_v62 = vadd.f32 %v5165_v4, %v5077_v54  ;;  %v2796_v8 = vrot.slane %v2794_v2, 4  ;;  %v2799_v38 = vrot.slane %v2797_v59, 5  ;;  %v11288_v17 = vor.u32 %v13041_v21, %v11287_v47  ;;  %v13049_v47 = vld [vmem:[#allocation4 + $0x80] sm:$0xf0] }
 0x1e2   : > { %5291 = vmatmul.bf16.gmra.mxu3 %v11808_v50  ;;  %v2811_v4 = vrot.slane %v2810_v29, 4  ;;  %v3315_v59 = vrot.slane %v3204_v48, 5  ;;  %v11284_v21 = vor.u32 %v13036_v22, %v11281_v19 }
 0x1e3   : > { %v2800_v60 = vor.u32 %v2799_v38, %v2796_v8 }
 0x1e4   : > { %v5430_v61 = vpop.f32.mrf.mxu1  ;;  %v2816_v41 = vsel %vm13693_vm11, %v2811_v4, %v2815_v34  ;;  %v13050_v34 = vld [vmem:[#allocation4 + $0x88] sm:$0xf0] }
 0x1e5   : > { %5483 = vmatmul.bf16.vlgmr.msra.gmra.mxu2 %v11280_v56  ;;  %v5252_v49 = vpop.f32.mrf.mxu3  ;;  %v2801_v50 = vrot.slane %v2800_v60, 4  ;;  %v3203_v56 = vld [vmem:[#allocation2 + $0x40] sm:$0xf]  ;;  %3166 = vst [vmem:[#allocation4 + $0xd0] sm:$0xf] %v2816_v41  ;;  %v2818_v60 = vshrl.u32 %v2706_v18, 16 }
 0x1e6   : > { %v5253_v14 = vadd.f32 %v5252_v49, %v5164_v26  ;;  %v11316_v49 = vor.u32 %v13049_v47, %v11315_v11 }
 0x1e7   : > { %5469 = vmatmul.bf16.gmra.mxu1 %v11816_v57  ;;  %v2806_v26 = vsel %vm13693_vm11, %v2801_v50, %v2805_v31  ;;  %v2639_v31 = vld [vmem:[#allocation2 + $0x3c] sm:$0xf]  ;;  %v2708_v50 = vld [vmem:[#allocation2 + $0x44] sm:$0x1]  ;;  %v2820_v4 = vrot.slane %v2818_v60, 4 }
 0x1e8   : > { %v14779_v25 = vpop.f32.mrf.mxu0  ;;  %v5168_v23 = vpop.f32.mrf.mxu2  ;;  %v5342_v54 = vadd.f32 %v14754_v58, %v5253_v14  ;;  %3165 = vst [vmem:[#allocation4 + $0xac] sm:$0xf] %v2806_v26  ;;  %v3312_v58 = vrot.slane %v3203_v56, 5  ;;  %v2707_v14 = vld [vmem:[#allocation2 + $0x40] sm:$0xf]  ;;  %v2837_v11 = vshll.u32 %v2708_v50, 16 }
 0x1e9   : > { %v5169_v15 = vadd.f32 %v5168_v23, %v14183_v39  ;;  %v3202_v39 = vld [vmem:[#allocation2 + $0x3c] sm:$0xe]  ;;  %2671 = vst [vmem:[#allocation4 + $0xf0] sm:$0xf] %v2639_v31  ;;  %v2821_v23 = vshll.u32 %v2706_v18, 16 }
 0x1ea   : > { %v14783_v45 = vadd.f32 %v5430_v61, %v5342_v54  ;;  %v11240_v57 = vrot.slane %v3202_v39, 9  ;;  %v3314_v2 = vrot.slane %v3312_v58, 4  ;;  %v2831_v54 = vshrl.u32 %v2707_v14, 16 }
 0x1eb   : > { %5661 = vmatmul.bf16.vlgmr.msra.gmra.mxu0 %v11288_v17  ;;  %v11323_v17 = vld [vmem:[#allocation4 + $0x68] sm:$0xf]  ;;  %v2823_v22 = vrot.slane %v2821_v23, 5  ;;  %v3205_v23 = vld [vmem:[#allocation2 + $0x48] sm:$0xe] }
 0x1ec   : > { %v14787_v30 = vpop.f32.mrf.mxu1  ;;  %v3313_v8 = vsel %vm14155_vm14, %v11240_v57, %v3312_v58  ;;  %v2833_v56 = vrot.slane %v2831_v54, 4  ;;  %v11324_v58 = vor.u32 %v13050_v34, %v11323_v17  ;;  %v2839_v57 = vrot.slane %v2837_v11, 5 }
 0x1ed   : > { %v5254_v51 = vpop.f32.mrf.mxu3  ;;  %3439 = vst [vmem:[#allocation4 + $0xf8] sm:$0xf] %v3313_v8  ;;  %v2824_v39 = vor.u32 %v2823_v22, %v2820_v4  ;;  %v11241_v54 = vrot.slane %v3205_v23, 9 }
 0x1ee   : > { %v5255_v61 = vadd.f32 %v5254_v51, %v5166_v62  ;;  %v3316_v62 = vsel %vm14155_vm14, %v3314_v2, %v3315_v59  ;;  %v4993_v2 = vadd.f32 %v14587_v32, %v14174_v40  ;;  %v11351_v40 = vld [vmem:[#allocation4 + $0xa8] sm:$0xf] }
 0x1ef   : > { %3440 = vst [vmem:[#allocation4 + $0x11c] sm:$0xf] %v3316_v62  ;;  %v2825_v7 = vrot.slane %v2824_v39, 4  ;;  %v11317_v62 = vld [vmem:[#allocation4 + $0x84] sm:$0xf0] }
 0x1f0   : > { %v14791_v46 = vpop.f32.mrf.mxu0  ;;  %v5170_v6 = vpop.f32.mrf.mxu2  ;;  %v14799_v38 = vadd.f32 %v14770_v44, %v5255_v61  ;;  %v2827_v44 = vshll.u32 %v2707_v14, 16  ;;  %v16793_v61 = vld [vmem:[#allocation7_spill] sm:$0xff]  ;;  %v3206_v14 = vld [vmem:[#allocation2 + $0x4c] sm:$0xf] }
 0x1f1   : > { %v2642_v39 = vld [vmem:[#allocation2 + $0x4c] sm:$0xf] }
 0x1f2   : > { %5572 = vmatmul.bf16.vlgmr.msra.gmra.mxu3 %v11284_v21  ;;  %v2829_v26 = vrot.slane %v2827_v44, 5  ;;  %v13058_v44 = vld [vmem:[#allocation4 + $0xc8] sm:$0xf0]  ;;  %2674 = vst [vmem:[#allocation4 + $0x15c] sm:$0xf] %v2642_v39  ;;  %v16797_v39 = vld [vmem:[#allocation8_spill] sm:$0xff] }
 0x1f4   : > { %v5435_v29 = vpop.f32.mrf.mxu1  ;;  %v2834_v47 = vor.u32 %v2833_v56, %v2829_v26  ;;  %v2830_v18 = vsel %vm13693_vm11, %v2825_v7, %v2829_v26 }
 0x1f5   : > { %5488 = vmatmul.bf16.gmra.mxu2 %v11316_v49  ;;  %v5257_v19 = vpop.f32.mrf.mxu3  ;;  %v16794_v49 = vld [vmem:[#allocation5_spill] sm:$0xff]  ;;  %3167 = vst [vmem:[#allocation4 + $0xf4] sm:$0xf] %v2830_v18 }
 0x1f6   : > { %v5258_v41 = vadd.f32 %v5257_v19, %v5169_v15  ;;  %v2835_v8 = vrot.slane %v2834_v47, 4  ;;  %v5082_v31 = vadd.f32 %v16794_v49, %v4993_v2  ;;  %v13045_v15 = vld [vmem:[#allocation4 + $0x64] sm:$0xf]  ;;  %v2709_v47 = vld [vmem:[#allocation2 + $0x48] sm:$0xf] }
 0x1f7   : > { %v11320_v19 = vor.u32 %v13045_v15, %v11317_v62  ;;  %v11359_v2 = vld [vmem:[#allocation4 + $0xb0] sm:$0xf] }
 0x1f8   : > { %v14803_v48 = vpop.f32.mrf.mxu0  ;;  %v5173_v51 = vpop.f32.mrf.mxu2  ;;  %v5347_v59 = vadd.f32 %v14779_v25, %v5258_v41  ;;  %v2840_v32 = vsel %vm13693_vm11, %v2835_v8, %v2839_v57  ;;  %v3319_v25 = vrot.slane %v3206_v14, 5  ;;  %v5171_v60 = vadd.f32 %v5170_v6, %v5082_v31  ;;  %v2710_v57 = vld [vmem:[#allocation2 + $0x4c] sm:$0xf]  ;;  %v13059_v8 = vld [vmem:[#allocation4 + $0xd0] sm:$0xf0] }
 0x1f9   : > { %v5174_v21 = vadd.f32 %v5173_v51, %v16793_v61  ;;  %3168 = vst [vmem:[#allocation4 + $0x118] sm:$0xf] %v2840_v32  ;;  %v11352_v6 = vor.u32 %v13058_v44, %v11351_v40  ;;  %v2845_v61 = vshll.u32 %v2709_v47, 16  ;;  %v2855_v49 = vshrl.u32 %v2710_v57, 16  ;;  %v2711_v31 = vld [vmem:[#allocation2 + $0x50] sm:$0x1] }
 0x1fa   : > { %v14810_v36 = vadd.f32 %v5435_v29, %v5347_v59  ;;  %v3207_v29 = vld [vmem:[#allocation2 + $0x50] sm:$0x1]  ;;  %v3321_v50 = vrot.slane %v3319_v25, 4  ;;  %v3320_v11 = vsel %vm14155_vm14, %v11241_v54, %v3319_v25  ;;  %v2842_v59 = vshrl.u32 %v2709_v47, 16 }
 0x1fb   : > { %5666 = vmatmul.bf16.gmra.mxu0 %v11324_v58  ;;  %v3322_v4 = vrot.slane %v3207_v29, 5  ;;  %v2641_v58 = vld [vmem:[#allocation2 + $0x48] sm:$0xf]  ;;  %3441 = vst [vmem:[#allocation4 + $0x140] sm:$0xf] %v3320_v11  ;;  %v2847_v62 = vrot.slane %v2845_v61, 5 }
 0x1fc   : > { %v14814_v17 = vpop.f32.mrf.mxu1  ;;  %2673 = vst [vmem:[#allocation4 + $0x138] sm:$0xf] %v2641_v58  ;;  %v2844_v15 = vrot.slane %v2842_v59, 4  ;;  %v2857_v40 = vrot.slane %v2855_v49, 4  ;;  %v2861_v32 = vshll.u32 %v2711_v31, 16  ;;  %v16796_v11 = vld [vmem:[#allocation9_spill] sm:$0xff] }
 0x1fd   : > { %v5259_v34 = vpop.f32.mrf.mxu3  ;;  %v3323_v51 = vsel %vm14155_vm14, %v3321_v50, %v3322_v4  ;;  %v14832_v50 = vld [vmem:[%s16755_s2] ss:$0 sm:$0xff]  ;;  %v16795_v4 = vld [vmem:[#allocation6_spill] sm:$0xff] }
 0x1fe   : > { %v5260_v22 = vadd.f32 %v5259_v34, %v5171_v60  ;;  %3442 = vst [vmem:[#allocation4 + $0x164] sm:$0xf] %v3323_v51  ;;  %v11360_v60 = vor.u32 %v13059_v8, %v11359_v2  ;;  %v2848_v23 = vor.u32 %v2847_v62, %v2844_v15  ;;  %v2863_v54 = vrot.slane %v2861_v32, 5  ;;  %v11353_v2 = vld [vmem:[#allocation4 + $0xcc] sm:$0xf0] }
 0x1ff   : > { %v3209_v61 = vld [vmem:[#allocation2 + $0x58] sm:$0xf]  ;;  %v3208_v15 = vld [vmem:[#allocation2 + $0x54] sm:$0xe] }
 0x200   : > { %v14818_v26 = vpop.f32.mrf.mxu0  ;;  %v5175_v56 = vpop.f32.mrf.mxu2  ;;  %v14823_v41 = vadd.f32 %v14791_v46, %v5260_v22  ;;  %v2851_v46 = vshll.u32 %v2710_v57, 16  ;;  %v4998_v22 = vadd.f32 %v14832_v50, %v16795_v4  ;;  %v13054_v57 = vld [vmem:[#allocation4 + $0xac] sm:$0xf]  ;;  %v3326_v49 = vrot.slane %v3209_v61, 5 }
 0x202   : > { %5577 = vmatmul.bf16.gmra.mxu3 %v11320_v19  ;;  %v2853_v14 = vrot.slane %v2851_v46, 5  ;;  %v5087_v51 = vadd.f32 %v16797_v39, %v4998_v22  ;;  %v11387_v46 = vld [vmem:[#allocation4 + $0xf0] sm:$0xf]  ;;  %v3328_v32 = vrot.slane %v3326_v49, 4  ;;  %v2643_v22 = vld [vmem:[#allocation2 + $0x54] sm:$0xf] }
 0x203   : > { %2675 = vst [vmem:[#allocation4 + $0x180] sm:$0xf] %v2643_v22  ;;  %v11395_v39 = vld [vmem:[#allocation4 + $0xf8] sm:$0xf] }
 0x204   : > { %v5440_v7 = vpop.f32.mrf.mxu1  ;;  %v2858_v44 = vor.u32 %v2857_v40, %v2853_v14  ;;  %v5176_v31 = vadd.f32 %v5175_v56, %v5087_v51  ;;  %v11242_v40 = vrot.slane %v3208_v15, 9 }
 0x205   : > { %5493 = vmatmul.bf16.gmra.mxu2 %v11352_v6  ;;  %v5262_v18 = vpop.f32.mrf.mxu3 }
 0x206   : > { %v5263_v25 = vadd.f32 %v5262_v18, %v5174_v21  ;;  %v2849_v21 = vrot.slane %v2848_v23, 4  ;;  %v2859_v58 = vrot.slane %v2858_v44, 4  ;;  %v13067_v18 = vld [vmem:[#allocation4 + $0x110] sm:$0xf0]  ;;  %v13395_v44 = vld [vmem:[%s16756_s3 + $0x10] sm:$0xff]  ;;  %v3327_v56 = vsel %vm14155_vm14, %v11242_v40, %v3326_v49 }
 0x207   : > { %v11388_v4 = vor.u32 %v13067_v18, %v11387_v46  ;;  %3443 = vst [vmem:[#allocation4 + $0x188] sm:$0xf] %v3327_v56  ;;  %10217 = vmatpush.bf16.msra.mxu1 %v13395_v44  ;;  %v2714_v46 = vld [vmem:[#allocation2 + $0x5c] sm:$0x1] }
 0x208   : > { %v14827_v29 = vpop.f32.mrf.mxu0  ;;  %v5178_v34 = vpop.f32.mrf.mxu2  ;;  %v5352_v19 = vadd.f32 %v14803_v48, %v5263_v25  ;;  %v2854_v59 = vsel %vm13693_vm11, %v2849_v21, %v2853_v14  ;;  %v2864_v48 = vsel %vm13693_vm11, %v2859_v58, %v2863_v54  ;;  %v11356_v14 = vor.u32 %v13054_v57, %v11353_v2  ;;  %v2712_v21 = vld [vmem:[#allocation2 + $0x54] sm:$0xf]  ;;  %v2713_v58 = vld [vmem:[#allocation2 + $0x58] sm:$0xf] }
 0x209   : > { %v5179_v6 = vadd.f32 %v5178_v34, %v16796_v11  ;;  %3169 = vst [vmem:[#allocation4 + $0x13c] sm:$0xf] %v2854_v59  ;;  %v2866_v51 = vshrl.u32 %v2712_v21, 16  ;;  %v2869_v57 = vshll.u32 %v2712_v21, 16  ;;  %v13068_v59 = vld [vmem:[#allocation4 + $0x118] sm:$0xf0] }
 0x20a   : > { %v14839_v47 = vadd.f32 %v5440_v7, %v5352_v19  ;;  %3170 = vst [vmem:[#allocation4 + $0x160] sm:$0xf] %v2864_v48  ;;  %v3210_v7 = vld [vmem:[#allocation2 + $0x5c] sm:$0x1]  ;;  %v2644_v19 = vld [vmem:[#allocation2 + $0x58] sm:$0xf]  ;;  %v11396_v40 = vor.u32 %v13068_v59, %v11395_v39 }
 0x20b   : > { %5671 = vmatmul.bf16.gmra.mxu0 %v11360_v60  ;;  %v3329_v25 = vrot.slane %v3210_v7, 5  ;;  %2676 = vst [vmem:[#allocation4 + $0x1a4] sm:$0xf] %v2644_v19  ;;  %v2879_v61 = vshrl.u32 %v2713_v58, 16  ;;  %v2868_v48 = vrot.slane %v2866_v51, 4  ;;  %v2871_v49 = vrot.slane %v2869_v57, 5 }
 0x20c   : > { %v14843_v8 = vpop.f32.mrf.mxu1  ;;  %v16798_v56 = vld [vmem:[#allocation10_spill] sm:$0xff]  ;;  %v16799_v19 = vld [vmem:[#allocation12_spill] sm:$0xff]  ;;  %v16800_v51 = vld [vmem:[#allocation11_spill] sm:$0xff] }
 0x20d   : > { %v5264_v62 = vpop.f32.mrf.mxu3  ;;  %v3330_v11 = vsel %vm14155_vm14, %v3328_v32, %v3329_v25  ;;  %v2881_v7 = vrot.slane %v2879_v61, 4  ;;  %v2872_v32 = vor.u32 %v2871_v49, %v2868_v48  ;;  %v5003_v22 = vadd.f32 %v14832_v50, %v16798_v56  ;;  %v11389_v39 = vld [vmem:[#allocation4 + $0x114] sm:$0xf0]  ;;  %v3212_v61 = vld [vmem:[#allocation2 + $0x64] sm:$0xf] }
 0x20e   : > { %v5265_v60 = vadd.f32 %v5264_v62, %v5176_v31  ;;  %3444 = vst [vmem:[#allocation4 + $0x1ac] sm:$0xf] %v3330_v11  ;;  %v2885_v62 = vshll.u32 %v2714_v46, 16  ;;  %v11423_v48 = vld [vmem:[#allocation4 + $0x138] sm:$0xf]  ;;  %v3333_v49 = vrot.slane %v3212_v61, 5 }
 0x20f   : > { %v2873_v21 = vrot.slane %v2872_v32, 4  ;;  %v5092_v57 = vadd.f32 %v16800_v51, %v5003_v22  ;;  %v2715_v51 = vld [vmem:[#allocation2 + $0x60] sm:$0xf] }
 0x210   : > { %v14847_v23 = vpop.f32.mrf.mxu0  ;;  %v5180_v34 = vpop.f32.mrf.mxu2  ;;  %v14855_v54 = vadd.f32 %v14818_v26, %v5265_v60  ;;  %v2875_v26 = vshll.u32 %v2713_v58, 16  ;;  %v2887_v44 = vrot.slane %v2885_v62, 5  ;;  %v3335_v32 = vrot.slane %v3333_v49, 4 }
 0x212   : > { %5582 = vmatmul.bf16.gmra.mxu3 %v11356_v14  ;;  %v2877_v15 = vrot.slane %v2875_v26, 5 }
 0x214   : > { %v5445_v2 = vpop.f32.mrf.mxu1  ;;  %v2882_v14 = vor.u32 %v2881_v7, %v2877_v15  ;;  %v2878_v59 = vsel %vm13693_vm11, %v2873_v21, %v2877_v15  ;;  %v3211_v7 = vld [vmem:[#allocation2 + $0x60] sm:$0xe]  ;;  %v2646_v21 = vld [vmem:[#allocation2 + $0x64] sm:$0xf] }
 0x215   : > { %5498 = vmatmul.bf16.gmra.mxu2 %v11388_v4  ;;  %v5267_v31 = vpop.f32.mrf.mxu3  ;;  %3171 = vst [vmem:[#allocation4 + $0x184] sm:$0xf] %v2878_v59  ;;  %v2893_v59 = vshll.u32 %v2715_v51, 16 }
 0x216   : > { %v5268_v18 = vadd.f32 %v5267_v31, %v5179_v6  ;;  %v2883_v58 = vrot.slane %v2882_v14, 4  ;;  %v13063_v6 = vld [vmem:[#allocation4 + $0xf4] sm:$0xf]  ;;  %v5181_v31 = vadd.f32 %v5180_v34, %v5092_v57  ;;  %2678 = vst [vmem:[#allocation4 + $0x1ec] sm:$0xf] %v2646_v21 }
 0x217   : > { %v11392_v15 = vor.u32 %v13063_v6, %v11389_v39  ;;  %v2716_v57 = vld [vmem:[#allocation2 + $0x64] sm:$0xf]  ;;  %v11431_v6 = vld [vmem:[#allocation4 + $0x140] sm:$0xf]  ;;  %v2890_v39 = vshrl.u32 %v2715_v51, 16 }
 0x218   : > { %v14859_v25 = vpop.f32.mrf.mxu0  ;;  %v5183_v60 = vpop.f32.mrf.mxu2  ;;  %v5357_v4 = vadd.f32 %v14827_v29, %v5268_v18  ;;  %v2888_v29 = vsel %vm13693_vm11, %v2883_v58, %v2887_v44  ;;  %v13076_v18 = vld [vmem:[#allocation4 + $0x158] sm:$0xf0]  ;;  %v16802_v51 = vld [vmem:[#allocation13_spill] sm:$0xff] }
 0x219   : > { %v5184_v11 = vadd.f32 %v5183_v60, %v16799_v19  ;;  %3172 = vst [vmem:[#allocation4 + $0x1a8] sm:$0xf] %v2888_v29  ;;  %v11424_v34 = vor.u32 %v13076_v18, %v11423_v48  ;;  %v2645_v19 = vld [vmem:[#allocation2 + $0x60] sm:$0xf]  ;;  %v13077_v29 = vld [vmem:[#allocation4 + $0x160] sm:$0xf0] }
 0x21a   : > { %v14866_v26 = vadd.f32 %v5445_v2, %v5357_v4  ;;  %v3213_v2 = vld [vmem:[#allocation2 + $0x68] sm:$0x1]  ;;  %2677 = vst [vmem:[#allocation4 + $0x1c8] sm:$0xf] %v2645_v19 }
 0x21b   : > { %5676 = vmatmul.bf16.gmra.mxu0 %v11396_v40  ;;  %v11243_v40 = vrot.slane %v3211_v7, 9  ;;  %v3336_v60 = vrot.slane %v3213_v2, 5  ;;  %v2717_v48 = vld [vmem:[#allocation2 + $0x68] sm:$0x1]  ;;  %v2895_v7 = vrot.slane %v2893_v59, 5 }
 0x21c   : > { %v14870_v46 = vpop.f32.mrf.mxu1 }
 0x21d   : > { %16801 = vst [vmem:[#allocation7_spill] sm:$0xff] %v14870_v46  ;;  %v5269_v62 = vpop.f32.mrf.mxu3  ;;  %v3334_v4 = vsel %vm14155_vm14, %v11243_v40, %v3333_v49  ;;  %v3337_v58 = vsel %vm14155_vm14, %v3335_v32, %v3336_v60  ;;  %v2903_v49 = vshrl.u32 %v2716_v57, 16  ;;  %v2909_v40 = vshll.u32 %v2717_v48, 16 }
 0x21e   : > { %v5270_v14 = vadd.f32 %v5269_v62, %v5181_v31  ;;  %3445 = vst [vmem:[#allocation4 + $0x1d0] sm:$0xf] %v3334_v4  ;;  %v2892_v31 = vrot.slane %v2890_v39, 4  ;;  %v11432_v60 = vor.u32 %v13077_v29, %v11431_v6  ;;  %v11425_v6 = vld [vmem:[#allocation4 + $0x15c] sm:$0xf0] }
 0x21f   : > { %3446 = vst [vmem:[#allocation4 + $0x1f4] sm:$0xf] %v3337_v58  ;;  %v2905_v18 = vrot.slane %v2903_v49, 4  ;;  %v2911_v21 = vrot.slane %v2909_v40, 5  ;;  %v5008_v58 = vadd.f32 %v14832_v50, %v16802_v51 }
 0x220   : > { %v14874_v56 = vpop.f32.mrf.mxu0  ;;  %v5185_v22 = vpop.f32.mrf.mxu2  ;;  %v14879_v44 = vadd.f32 %v14847_v23, %v5270_v14  ;;  %v2899_v23 = vshll.u32 %v2716_v57, 16  ;;  %v2896_v14 = vor.u32 %v2895_v7, %v2892_v31  ;;  %v16803_v57 = vld [vmem:[#allocation15_spill] sm:$0xff]  ;;  %v3215_v31 = vld [vmem:[#allocation2 + $0x70] sm:$0xf] }
 0x222   : > { %5587 = vmatmul.bf16.gmra.mxu3 %v11392_v15  ;;  %v2901_v62 = vrot.slane %v2899_v23, 5  ;;  %v2897_v59 = vrot.slane %v2896_v14, 4  ;;  %v16804_v23 = vld [vmem:[#allocation14_spill] sm:$0xff] }
 0x223   : > { %v5097_v49 = vadd.f32 %v16804_v23, %v5008_v58  ;;  %v2647_v23 = vld [vmem:[#allocation2 + $0x6c] sm:$0xf] }
 0x224   : > { %v5450_v61 = vpop.f32.mrf.mxu1  ;;  %v2906_v19 = vor.u32 %v2905_v18, %v2901_v62  ;;  %v2902_v29 = vsel %vm13693_vm11, %v2897_v59, %v2901_v62  ;;  %v3340_v18 = vrot.slane %v3215_v31, 5  ;;  %2679 = vst [vmem:[#allocation4 + $0x210] sm:$0xf] %v2647_v23  ;;  %v11467_v31 = vld [vmem:[#allocation4 + $0x188] sm:$0xf] }
 0x225   : > { %5503 = vmatmul.bf16.gmra.mxu2 %v11424_v34  ;;  %v5272_v2 = vpop.f32.mrf.mxu3  ;;  %3173 = vst [vmem:[#allocation4 + $0x1cc] sm:$0xf] %v2902_v29  ;;  %v5186_v40 = vadd.f32 %v5185_v22, %v5097_v49  ;;  %v2648_v49 = vld [vmem:[#allocation2 + $0x70] sm:$0xf] }
 0x226   : > { %v5273_v32 = vadd.f32 %v5272_v2, %v5184_v11  ;;  %v2907_v46 = vrot.slane %v2906_v19, 4  ;;  %v13072_v11 = vld [vmem:[#allocation4 + $0x13c] sm:$0xf]  ;;  %v11459_v2 = vld [vmem:[#allocation4 + $0x180] sm:$0xf]  ;;  %v3342_v19 = vrot.slane %v3340_v18, 4 }
 0x227   : > { %v11428_v62 = vor.u32 %v13072_v11, %v11425_v6  ;;  %v2718_v11 = vld [vmem:[#allocation2 + $0x6c] sm:$0xf]  ;;  %v2719_v6 = vld [vmem:[#allocation2 + $0x70] sm:$0xf]  ;;  %2680 = vst [vmem:[#allocation4 + $0x234] sm:$0xf] %v2648_v49 }
 0x228   : > { %v14883_v15 = vpop.f32.mrf.mxu0  ;;  %v5188_v4 = vpop.f32.mrf.mxu2  ;;  %v5362_v34 = vadd.f32 %v14859_v25, %v5273_v32  ;;  %v2912_v25 = vsel %vm13693_vm11, %v2907_v46, %v2911_v21  ;;  %v3214_v32 = vld [vmem:[#allocation2 + $0x6c] sm:$0xe] }
 0x229   : > { %v5189_v39 = vadd.f32 %v5188_v4, %v16803_v57  ;;  %3174 = vst [vmem:[#allocation4 + $0x1f0] sm:$0xf] %v2912_v25  ;;  %v11244_v4 = vrot.slane %v3214_v32, 9  ;;  %v13394_v46 = vld [vmem:[%s16756_s3 + $0x8] sm:$0xff]  ;;  %v2914_v25 = vshrl.u32 %v2718_v11, 16 }
 0x22a   : > { %v14890_v48 = vadd.f32 %v5450_v61, %v5362_v34  ;;  %v3216_v61 = vld [vmem:[#allocation2 + $0x74] sm:$0x1]  ;;  %10218 = vmatpush.bf16.msra.mxu1 %v13394_v46  ;;  %v13086_v32 = vld [vmem:[#allocation4 + $0x1a8] sm:$0xf0] }
 0x22b   : > { %5681 = vmatmul.bf16.gmra.mxu0 %v11432_v60  ;;  %v13085_v60 = vld [vmem:[#allocation4 + $0x1a0] sm:$0xf0]  ;;  %v3343_v51 = vrot.slane %v3216_v61, 5  ;;  %v3341_v22 = vsel %vm14155_vm14, %v11244_v4, %v3340_v18 }
 0x22c   : > { %16805 = vst [vmem:[#allocation5_spill] sm:$0xff] %v14890_v48  ;;  %v14894_v7 = vpop.f32.mrf.mxu1  ;;  %v11460_v59 = vor.u32 %v13085_v60, %v11459_v2  ;;  %v2927_v2 = vshrl.u32 %v2719_v6, 16  ;;  %v2720_v61 = vld [vmem:[#allocation2 + $0x74] sm:$0x1] }
 0x22d   : > { %16806 = vst [vmem:[#allocation6_spill] sm:$0xff] %v14894_v7  ;;  %v5274_v14 = vpop.f32.mrf.mxu3  ;;  %v3344_v29 = vsel %vm14155_vm14, %v3342_v19, %v3343_v51 }
 0x22e   : > { %v5275_v58 = vadd.f32 %v5274_v14, %v5186_v40  ;;  %3447 = vst [vmem:[#allocation4 + $0x218] sm:$0xf] %v3341_v22  ;;  %v2917_v40 = vshll.u32 %v2718_v11, 16  ;;  %v2916_v14 = vrot.slane %v2914_v25, 4  ;;  %v2929_v51 = vrot.slane %v2927_v2, 4 }
 0x22f   : > { %3448 = vst [vmem:[#allocation4 + $0x23c] sm:$0xf] %v3344_v29  ;;  %v11468_v22 = vor.u32 %v13086_v32, %v11467_v31  ;;  %v11461_v31 = vld [vmem:[#allocation4 + $0x1a4] sm:$0xf0] }
 0x230   : > { %v14898_v34 = vpop.f32.mrf.mxu0  ;;  %v5190_v57 = vpop.f32.mrf.mxu2  ;;  %v14906_v21 = vadd.f32 %v14874_v56, %v5275_v58  ;;  %v2923_v56 = vshll.u32 %v2719_v6, 16  ;;  %v2919_v60 = vrot.slane %v2917_v40, 5  ;;  %v2933_v58 = vshll.u32 %v2720_v61, 16  ;;  %v16809_v6 = vld [vmem:[#allocation18_spill] sm:$0xff] }
 0x232   : > { %16807 = vst [vmem:[#allocation9_spill] sm:$0xff] %v14906_v21  ;;  %5592 = vmatmul.bf16.gmra.mxu3 %v11428_v62  ;;  %v2925_v19 = vrot.slane %v2923_v56, 5  ;;  %v2920_v62 = vor.u32 %v2919_v60, %v2916_v14  ;;  %v2935_v7 = vrot.slane %v2933_v58, 5  ;;  %v16808_v21 = vld [vmem:[#allocation16_spill] sm:$0xff]  ;;  %v16810_v56 = vld [vmem:[#allocation17_spill] sm:$0xff] }
 0x233   : > { %v5013_v29 = vadd.f32 %v14832_v50, %v16808_v21  ;;  %v3218_v14 = vld [vmem:[#allocation2 + $0x7c] sm:$0xf]  ;;  %v11495_v21 = vld [vmem:[#allocation4 + $0x1c8] sm:$0xf] }
 0x234   : > { %v5455_v18 = vpop.f32.mrf.mxu1  ;;  %v2930_v11 = vor.u32 %v2929_v51, %v2925_v19  ;;  %v2921_v40 = vrot.slane %v2920_v62, 4  ;;  %v16812_v51 = vld [vmem:[#allocation19_spill] sm:$0xff] }
 0x235   : > { %5508 = vmatmul.bf16.gmra.mxu2 %v11460_v59  ;;  %v5277_v4 = vpop.f32.mrf.mxu3  ;;  %v5102_v2 = vadd.f32 %v16810_v56, %v5013_v29  ;;  %v5018_v58 = vadd.f32 %v14832_v50, %v16812_v51  ;;  %v2721_v51 = vld [vmem:[#allocation2 + $0x78] sm:$0xf] }
 0x236   : > { %v5278_v46 = vadd.f32 %v5277_v4, %v5189_v39  ;;  %v2931_v48 = vrot.slane %v2930_v11, 4  ;;  %v13081_v39 = vld [vmem:[#allocation4 + $0x184] sm:$0xf]  ;;  %v2926_v32 = vsel %vm13693_vm11, %v2921_v40, %v2925_v19  ;;  %v3347_v4 = vrot.slane %v3218_v14, 5  ;;  %v2650_v14 = vld [vmem:[#allocation2 + $0x7c] sm:$0xf] }
 0x237   : > { %3175 = vst [vmem:[#allocation4 + $0x214] sm:$0xf] %v2926_v32  ;;  %v11464_v56 = vor.u32 %v13081_v39, %v11461_v31  ;;  %v2649_v32 = vld [vmem:[#allocation2 + $0x78] sm:$0xf]  ;;  %v2722_v39 = vld [vmem:[#allocation2 + $0x7c] sm:$0xf] }
 0x238   : > { %v14910_v23 = vpop.f32.mrf.mxu0  ;;  %v5193_v49 = vpop.f32.mrf.mxu2  ;;  %v5367_v59 = vadd.f32 %v14883_v15, %v5278_v46  ;;  %v2936_v15 = vsel %vm13693_vm11, %v2931_v48, %v2935_v7  ;;  %v3217_v46 = vld [vmem:[#allocation2 + $0x78] sm:$0xe]  ;;  %v3349_v19 = vrot.slane %v3347_v4, 4  ;;  %2681 = vst [vmem:[#allocation4 + $0x258] sm:$0xf] %v2649_v32 }
 0x239   : > { %v5194_v25 = vadd.f32 %v5193_v49, %v16809_v6  ;;  %3176 = vst [vmem:[#allocation4 + $0x238] sm:$0xf] %v2936_v15  ;;  %v13094_v49 = vld [vmem:[#allocation4 + $0x1e8] sm:$0xf0]  ;;  %v11245_v11 = vrot.slane %v3217_v46, 9 }
 0x23a   : > { %v14917_v61 = vadd.f32 %v5455_v18, %v5367_v59  ;;  %v5191_v18 = vadd.f32 %v5190_v57, %v5102_v2  ;;  %v16813_v59 = vld [vmem:[#allocation20_spill] sm:$0xff]  ;;  %v11496_v2 = vor.u32 %v13094_v49, %v11495_v21  ;;  %v11503_v31 = vld [vmem:[#allocation4 + $0x1d0] sm:$0xf]  ;;  %2682 = vst [vmem:[#allocation4 + $0x27c] sm:$0xf] %v2650_v14 }
 0x23b   : > { %5686 = vmatmul.bf16.gmra.mxu0 %v11468_v22  ;;  %v3219_v22 = vld [vmem:[#allocation2 + $0x80] sm:$0x1]  ;;  %v5107_v6 = vadd.f32 %v16813_v59, %v5018_v58  ;;  %v3348_v7 = vsel %vm14155_vm14, %v11245_v11, %v3347_v4  ;;  %v2938_v58 = vshrl.u32 %v2721_v51, 16  ;;  %v13095_v46 = vld [vmem:[#allocation4 + $0x1f0] sm:$0xf0] }
 0x23c   : > { %v14921_v60 = vpop.f32.mrf.mxu1  ;;  %v3350_v29 = vrot.slane %v3219_v22, 5  ;;  %3449 = vst [vmem:[#allocation4 + $0x260] sm:$0xf] %v3348_v7  ;;  %v2951_v22 = vshrl.u32 %v2722_v39, 16  ;;  %v2723_v21 = vld [vmem:[#allocation2 + $0x80] sm:$0x1] }
 0x23d   : > { %16811 = vst [vmem:[#allocation8_spill] sm:$0xff] %v14921_v60  ;;  %v5279_v62 = vpop.f32.mrf.mxu3  ;;  %v2957_v59 = vshll.u32 %v2723_v21, 16 }
 0x23e   : > { %v5280_v40 = vadd.f32 %v5279_v62, %v5191_v18  ;;  %v3351_v15 = vsel %vm14155_vm14, %v3349_v19, %v3350_v29  ;;  %v2941_v18 = vshll.u32 %v2721_v51, 16  ;;  %v2940_v62 = vrot.slane %v2938_v58, 4  ;;  %v16815_v51 = vld [vmem:[#allocation21_spill] sm:$0xff] }
 0x23f   : > { %3450 = vst [vmem:[#allocation4 + $0x284] sm:$0xf] %v3351_v15  ;;  %v2953_v29 = vrot.slane %v2951_v22, 4  ;;  %v2959_v14 = vrot.slane %v2957_v59, 5  ;;  %v11531_v22 = vld [vmem:[#allocation4 + $0x210] sm:$0xf] }
 0x240   : > { %v14928_v60 = vpop.f32.mrf.mxu0  ;;  %v5195_v48 = vpop.f32.mrf.mxu2  ;;  %v14933_v50 = vadd.f32 %v14898_v34, %v5280_v40  ;;  %v2947_v34 = vshll.u32 %v2722_v39, 16  ;;  %v2943_v49 = vrot.slane %v2941_v18, 5  ;;  %v11504_v40 = vor.u32 %v13095_v46, %v11503_v31  ;;  %v13090_v18 = vld [vmem:[#allocation4 + $0x1cc] sm:$0xf]  ;;  %v3221_v31 = vld [vmem:[#allocation2 + $0x88] sm:$0xf] }
 0x241   : > { %v5196_v57 = vadd.f32 %v5195_v48, %v5107_v6 }
 0x242   : > { %16814 = vst [vmem:[#allocation10_spill] sm:$0xff] %v14933_v50  ;;  %5597 = vmatmul.bf16.gmra.mxu3 %v11464_v56  ;;  %v2949_v19 = vrot.slane %v2947_v34, 5  ;;  %v2944_v56 = vor.u32 %v2943_v49, %v2940_v62  ;;  %v11497_v34 = vld [vmem:[#allocation4 + $0x1ec] sm:$0xf0]  ;;  %v3220_v62 = vld [vmem:[#allocation2 + $0x84] sm:$0xe] }
 0x243   : > { %v3222_v49 = vld [vmem:[#allocation2 + $0x8c] sm:$0x1] }
 0x244   : > { %v5460_v4 = vpop.f32.mrf.mxu1  ;;  %v2954_v32 = vor.u32 %v2953_v29, %v2949_v19  ;;  %v11246_v29 = vrot.slane %v3220_v62, 9  ;;  %v356_v62 = vld [vmem:[#allocation3 + $0xc] sm:$0x1] }
 0x245   : > { %5513 = vmatmul.bf16.gmra.mxu2 %v11496_v2  ;;  %v5282_v11 = vpop.f32.mrf.mxu3  ;;  %v2945_v2 = vrot.slane %v2944_v56, 4  ;;  %v11500_v56 = vor.u32 %v13090_v18, %v11497_v34  ;;  %v2724_v18 = vld [vmem:[#allocation2 + $0x84] sm:$0xf]  ;;  %v2725_v34 = vld [vmem:[#allocation2 + $0x88] sm:$0xf] }
 0x246   : > { %v5283_v6 = vadd.f32 %v5282_v11, %v5194_v25  ;;  %v2955_v50 = vrot.slane %v2954_v32, 4  ;;  %v13103_v11 = vld [vmem:[#allocation4 + $0x230] sm:$0xf0] }
 0x247   : > { %v2950_v25 = vsel %vm13693_vm11, %v2945_v2, %v2949_v19  ;;  %v13393_v32 = vld [vmem:[%s16756_s3] sm:$0xff]  ;;  %v11532_v2 = vor.u32 %v13103_v11, %v11531_v22  ;;  %v2962_v22 = vshrl.u32 %v2724_v18, 16  ;;  %v2965_v11 = vshll.u32 %v2724_v18, 16 }
 0x248   : > { %v14937_v48 = vpop.f32.mrf.mxu0  ;;  %v5198_v7 = vpop.f32.mrf.mxu2  ;;  %v5372_v15 = vadd.f32 %v14910_v23, %v5283_v6  ;;  %v2960_v21 = vsel %vm13693_vm11, %v2955_v50, %v2959_v14  ;;  %3177 = vst [vmem:[#allocation4 + $0x25c] sm:$0xf] %v2950_v25  ;;  %v3354_v23 = vrot.slane %v3221_v31, 5  ;;  %v3357_v6 = vrot.slane %v3222_v49, 5  ;;  %v2651_v25 = vld [vmem:[#allocation2 + $0x84] sm:$0xf]  ;;  %10219 = vmatpush.bf16.msra.mxu1 %v13393_v32 }
 0x249   : > { %v5199_v39 = vadd.f32 %v5198_v7, %v16815_v51  ;;  %3178 = vst [vmem:[#allocation4 + $0x280] sm:$0xf] %v2960_v21  ;;  %v2652_v31 = vld [vmem:[#allocation2 + $0x88] sm:$0xf]  ;;  %v357_v49 = vsel %vm13588_vm4, 0, %v356_v62  ;;  %v16820_v62 = vld [vmem:[#allocation23_spill] sm:$0xff] }
 0x24a   : > { %v14941_v58 = vadd.f32 %v5460_v4, %v5372_v15  ;;  %v3356_v59 = vrot.slane %v3354_v23, 4  ;;  %v3355_v50 = vsel %vm14155_vm14, %v11246_v29, %v3354_v23  ;;  %v16819_v15 = vld [vmem:[#allocation22_spill] sm:$0xff]  ;;  %2683 = vst [vmem:[#allocation4 + $0x2a0] sm:$0xf] %v2651_v25  ;;  %v11539_v21 = vld [vmem:[#allocation4 + $0x218] sm:$0xf] }
 0x24b   : > { %5691 = vmatmul.bf16.gmra.mxu0 %v11504_v40  ;;  %3451 = vst [vmem:[#allocation4 + $0x2a8] sm:$0xf] %v3355_v50  ;;  %v2971_v29 = vshll.u32 %v2725_v34, 16  ;;  %v2967_v50 = vrot.slane %v2965_v11, 5 }
 0x24c   : > { %16816 = vst [vmem:[#allocation12_spill] sm:$0xff] %v14941_v58  ;;  %v14945_v46 = vpop.f32.mrf.mxu1 }
 0x24d   : > { %16817 = vst [vmem:[#allocation11_spill] sm:$0xff] %v14945_v46  ;;  %v5284_v4 = vpop.f32.mrf.mxu3 }
 0x24e   : > { %v5285_v40 = vadd.f32 %v5284_v4, %v5196_v57  ;;  %v3358_v57 = vsel %vm14155_vm14, %v3356_v59, %v3357_v6  ;;  %2684 = vst [vmem:[#allocation4 + $0x2c4] sm:$0xf] %v2652_v31  ;;  %v2726_v4 = vld [vmem:[#allocation2 + $0x8c] sm:$0x1]  ;;  %v2964_v6 = vrot.slane %v2962_v22, 4 }
 0x24f   : > { %3452 = vst [vmem:[#allocation4 + $0x2cc] sm:$0xf] %v3358_v57 }
 0x250   : > { %v14949_v19 = vpop.f32.mrf.mxu0  ;;  %v5200_v7 = vpop.f32.mrf.mxu2  ;;  %v14957_v14 = vadd.f32 %v14928_v60, %v5285_v40  ;;  %v13104_v60 = vld [vmem:[#allocation4 + $0x238] sm:$0xf0]  ;;  %358 = vst [vmem:[#allocation3 + $0xc] sm:$0x1] %v357_v49  ;;  %v2975_v40 = vshrl.u32 %v2725_v34, 16  ;;  %v2968_v49 = vor.u32 %v2967_v50, %v2964_v6 }
 0x251   : > { %v5201_v51 = vadd.f32 %v5200_v7, %v16819_v15  ;;  %v2981_v7 = vshll.u32 %v2726_v4, 16  ;;  %v11540_v32 = vor.u32 %v13104_v60, %v11539_v21  ;;  %v2973_v15 = vrot.slane %v2971_v29, 5  ;;  %v13099_v34 = vld [vmem:[#allocation4 + $0x214] sm:$0xf]  ;;  %v11533_v21 = vld [vmem:[#allocation4 + $0x234] sm:$0xf0] }
 0x252   : > { %16818 = vst [vmem:[#allocation13_spill] sm:$0xff] %v14957_v14  ;;  %5602 = vmatmul.bf16.gmra.mxu3 %v11500_v56  ;;  %v2977_v58 = vrot.slane %v2975_v40, 4  ;;  %v2969_v22 = vrot.slane %v2968_v49, 4  ;;  %v11567_v60 = vld [vmem:[#allocation4 + $0x258] sm:$0xf] }
 0x253   : > { %v2983_v18 = vrot.slane %v2981_v7, 5  ;;  %v3223_v40 = vld [vmem:[#allocation2 + $0x90] sm:$0xe]  ;;  %v3225_v6 = vld [vmem:[#allocation2 + $0x98] sm:$0x1]  ;;  %v16823_v49 = vld [vmem:[#allocation24_spill] sm:$0xff] }
 0x254   : > { %v5465_v23 = vpop.f32.mrf.mxu1  ;;  %v2978_v46 = vor.u32 %v2977_v58, %v2973_v15  ;;  %v11247_v7 = vrot.slane %v3223_v40, 9 }
 0x255   : > { %5518 = vmatmul.bf16.gmra.mxu2 %v11532_v2  ;;  %v5287_v59 = vpop.f32.mrf.mxu3 }
 0x256   : > { %v5288_v56 = vadd.f32 %v5287_v59, %v5199_v39  ;;  %v3224_v39 = vld [vmem:[#allocation2 + $0x94] sm:$0xf]  ;;  %v2979_v4 = vrot.slane %v2978_v46, 4  ;;  %v13112_v59 = vld [vmem:[#allocation4 + $0x278] sm:$0xf0] }
 0x257   : > { %v3361_v11 = vrot.slane %v3224_v39, 5  ;;  %v11568_v39 = vor.u32 %v13112_v59, %v11567_v60  ;;  %v410_v60 = vld [vmem:[#allocation3 + $0x14] sm:$0x1]  ;;  %v2729_v59 = vld [vmem:[#allocation2 + $0x98] sm:$0x1] }
 0x258   : > { %v14964_v25 = vpop.f32.mrf.mxu0  ;;  %v5203_v31 = vpop.f32.mrf.mxu2  ;;  %v5377_v57 = vadd.f32 %v14937_v48, %v5288_v56  ;;  %v2974_v48 = vsel %vm13693_vm11, %v2969_v22, %v2973_v15 }
 0x259   : > { %v5204_v2 = vadd.f32 %v5203_v31, %v16820_v62  ;;  %3179 = vst [vmem:[#allocation4 + $0x2a4] sm:$0xf] %v2974_v48  ;;  %v3363_v56 = vrot.slane %v3361_v11, 4  ;;  %v11536_v31 = vor.u32 %v13099_v34, %v11533_v21  ;;  %v3362_v62 = vsel %vm14155_vm14, %v11247_v7, %v3361_v11  ;;  %v2728_v34 = vld [vmem:[#allocation2 + $0x94] sm:$0xf] }
 0x25a   : > { %v14968_v14 = vadd.f32 %v5465_v23, %v5377_v57  ;;  %v2984_v23 = vsel %vm13693_vm11, %v2979_v4, %v2983_v18  ;;  %v2653_v18 = vld [vmem:[#allocation2 + $0x90] sm:$0xf]  ;;  %v2654_v4 = vld [vmem:[#allocation2 + $0x94] sm:$0xf]  ;;  %3453 = vst [vmem:[#allocation4 + $0x2f0] sm:$0xf] %v3362_v62 }
 0x25b   : > { %5696 = vmatmul.bf16.gmra.mxu0 %v11540_v32  ;;  %v3364_v32 = vrot.slane %v3225_v6, 5  ;;  %3180 = vst [vmem:[#allocation4 + $0x2c8] sm:$0xf] %v2984_v23  ;;  %v11575_v21 = vld [vmem:[#allocation4 + $0x260] sm:$0xf]  ;;  %v411_v7 = vsel %vm13602_vm5, 0, %v410_v60 }
 0x25c   : > { %v14970_v29 = vpop.f32.mrf.mxu1  ;;  %2685 = vst [vmem:[#allocation4 + $0x2e8] sm:$0xf] %v2653_v18  ;;  %v13113_v6 = vld [vmem:[#allocation4 + $0x280] sm:$0xf0] }
 0x25d   : > { %16821 = vst [vmem:[#allocation15_spill] sm:$0xff] %v14970_v29  ;;  %v5289_v58 = vpop.f32.mrf.mxu3  ;;  %v3365_v48 = vsel %vm14155_vm14, %v3363_v56, %v3364_v32  ;;  %v11576_v62 = vor.u32 %v13113_v6, %v11575_v21  ;;  %v13253_v18 = vld [vmem:[#allocation4 + $0x20] sm:$0xf0]  ;;  %v3005_v29 = vshll.u32 %v2729_v59, 16  ;;  %v3227_v21 = vld [vmem:[#allocation2 + $0xa0] sm:$0xf] }
 0x25e   : > { %v5290_v50 = vadd.f32 %v5289_v58, %v5201_v51  ;;  %v2727_v51 = vld [vmem:[#allocation2 + $0x90] sm:$0xf]  ;;  %2686 = vst [vmem:[#allocation4 + $0x30c] sm:$0xf] %v2654_v4  ;;  %v2999_v58 = vshrl.u32 %v2728_v34, 16 }
 0x25f   : > { %v2986_v40 = vshrl.u32 %v2727_v51, 16  ;;  %v2989_v11 = vshll.u32 %v2727_v51, 16  ;;  %3454 = vst [vmem:[#allocation4 + $0x314] sm:$0xf] %v3365_v48  ;;  %v11569_v6 = vld [vmem:[#allocation4 + $0x27c] sm:$0xf0] }
 0x260   : > { %v14976_v46 = vpop.f32.mrf.mxu0  ;;  %v5205_v57 = vpop.f32.mrf.mxu2  ;;  %v14981_v15 = vadd.f32 %v14949_v19, %v5290_v50  ;;  %v2995_v19 = vshll.u32 %v2728_v34, 16  ;;  %412 = vst [vmem:[#allocation3 + $0x14] sm:$0x1] %v411_v7  ;;  %v3001_v34 = vrot.slane %v2999_v58, 4  ;;  %v359_v58 = vld [vmem:[#allocation3 + $0x18] sm:$0x1] }
 0x261   : > { %v5206_v22 = vadd.f32 %v5205_v57, %v16823_v49  ;;  %v2988_v56 = vrot.slane %v2986_v40, 4  ;;  %v2991_v32 = vrot.slane %v2989_v11, 5  ;;  %v12167_v49 = vld [vmem:[#allocation4] sm:$0xf]  ;;  %v3007_v11 = vrot.slane %v3005_v29, 5 }
 0x262   : > { %16822 = vst [vmem:[#allocation14_spill] sm:$0xff] %v14981_v15  ;;  %5607 = vmatmul.bf16.gmra.mxu3 %v11536_v31  ;;  %v2997_v50 = vrot.slane %v2995_v19, 5  ;;  %v12168_v51 = vor.u32 %v13253_v18, %v12167_v49  ;;  %v3226_v59 = vld [vmem:[#allocation2 + $0x9c] sm:$0xe]  ;;  %v360_v29 = vsel %vm13588_vm4, 0, %v359_v58  ;;  %v16825_v58 = vld [vmem:[#allocation25_spill] sm:$0xff] }
 0x263   : > { %361 = vst [vmem:[#allocation3 + $0x18] sm:$0x1] %v360_v29 }
 0x264   : > { %v5470_v31 = vpop.f32.mrf.mxu1  ;;  %10220 = vmatmul.bf16.vlgmr.msra.gmra.mxu1 %v12168_v51  ;;  %v3002_v40 = vor.u32 %v3001_v34, %v2997_v50 }
 0x265   : > { %5523 = vmatmul.bf16.gmra.mxu2 %v11568_v39  ;;  %v5292_v23 = vpop.f32.mrf.mxu3  ;;  %v2992_v39 = vor.u32 %v2991_v32, %v2988_v56  ;;  %v3368_v56 = vrot.slane %v3227_v21, 5  ;;  %v13121_v32 = vld [vmem:[#allocation4 + $0x2c0] sm:$0xf0] }
 0x266   : > { %v5293_v57 = vadd.f32 %v5292_v23, %v5204_v2  ;;  %v13108_v2 = vld [vmem:[#allocation4 + $0x25c] sm:$0xf]  ;;  %v11603_v23 = vld [vmem:[#allocation4 + $0x2a0] sm:$0xf]  ;;  %v3003_v49 = vrot.slane %v3002_v40, 4 }
 0x267   : > { %v2993_v60 = vrot.slane %v2992_v39, 4  ;;  %v11572_v18 = vor.u32 %v13108_v2, %v11569_v6  ;;  %v3370_v51 = vrot.slane %v3368_v56, 4  ;;  %v11604_v21 = vor.u32 %v13121_v32, %v11603_v23  ;;  %v11611_v2 = vld [vmem:[#allocation4 + $0x2a8] sm:$0xf]  ;;  %v13122_v6 = vld [vmem:[#allocation4 + $0x2c8] sm:$0xf0] }
 0x268   : > { %v14988_v4 = vpop.f32.mrf.mxu0  ;;  %v5484_v48 = vpop.f32.mrf.mxu2  ;;  %v5382_v15 = vadd.f32 %v14964_v25, %v5293_v57  ;;  %v3228_v57 = vld [vmem:[#allocation2 + $0xa4] sm:$0x1] }
 0x269   : > { %v2998_v7 = vsel %vm13693_vm11, %v2993_v60, %v2997_v50  ;;  %v3371_v50 = vrot.slane %v3228_v57, 5 }
 0x26a   : > { %v14991_v19 = vadd.f32 %v5470_v31, %v5382_v15  ;;  %3181 = vst [vmem:[#allocation4 + $0x2ec] sm:$0xf] %v2998_v7  ;;  %v3008_v15 = vsel %vm13693_vm11, %v3003_v49, %v3007_v11  ;;  %v11248_v31 = vrot.slane %v3226_v59, 9  ;;  %v2655_v7 = vld [vmem:[#allocation2 + $0x9c] sm:$0xf]  ;;  %v5485_v59 = vadd.f32 %v5484_v48, %v16825_v58 }
 0x26b   : > { %5701 = vmatmul.bf16.gmra.mxu0 %v11576_v62  ;;  %3182 = vst [vmem:[#allocation4 + $0x310] sm:$0xf] %v3008_v15  ;;  %v2656_v11 = vld [vmem:[#allocation2 + $0xa0] sm:$0xf]  ;;  %v2730_v49 = vld [vmem:[#allocation2 + $0x9c] sm:$0xf] }
 0x26c   : > { %v3369_v60 = vsel %vm14155_vm14, %v11248_v31, %v3368_v56  ;;  %2687 = vst [vmem:[#allocation4 + $0x330] sm:$0xf] %v2655_v7  ;;  %v413_v56 = vld [vmem:[#allocation3 + $0x20] sm:$0x1]  ;;  %v3013_v23 = vshll.u32 %v2730_v49, 16 }
 0x26d   : > { %v5294_v25 = vpop.f32.mrf.mxu3  ;;  %3455 = vst [vmem:[#allocation4 + $0x338] sm:$0xf] %v3369_v60  ;;  %v414_v29 = vsel %vm13602_vm5, 0, %v413_v56  ;;  %v2732_v48 = vld [vmem:[#allocation2 + $0xa4] sm:$0x1] }
 0x26e   : > { %v5295_v62 = vadd.f32 %v5294_v25, %v5206_v22  ;;  %v3372_v22 = vsel %vm14155_vm14, %v3370_v51, %v3371_v50  ;;  %2688 = vst [vmem:[#allocation4 + $0x354] sm:$0xf] %v2656_v11  ;;  %v3010_v25 = vshrl.u32 %v2730_v49, 16  ;;  %v3015_v51 = vrot.slane %v3013_v23, 5 }
 0x26f   : > { %3456 = vst [vmem:[#allocation4 + $0x35c] sm:$0xf] %v3372_v22  ;;  %v3029_v49 = vshll.u32 %v2732_v48, 16 }
 0x270   : > { %v14999_v39 = vpop.f32.mrf.mxu0  ;;  %v5486_v34 = vpop.f32.mrf.mxu2  ;;  %v15004_v40 = vadd.f32 %v14976_v46, %v5295_v62  ;;  %v2731_v46 = vld [vmem:[#allocation2 + $0xa0] sm:$0xf]  ;;  %v11612_v62 = vor.u32 %v13122_v6, %v11611_v2  ;;  %415 = vst [vmem:[#allocation3 + $0x20] sm:$0x1] %v414_v29  ;;  %v11605_v2 = vld [vmem:[#allocation4 + $0x2c4] sm:$0xf0] }
 0x271   : > { %v3019_v15 = vshll.u32 %v2731_v46, 16  ;;  %v3023_v57 = vshrl.u32 %v2731_v46, 16  ;;  %v3031_v46 = vrot.slane %v3029_v49, 5  ;;  %v13408_v6 = vld [vmem:[%s16756_s3 + $0x78] sm:$0xff]  ;;  %v5487_v23 = vadd.f32 %v5486_v34, %v14534_v0  ;;  %v3230_v0 = vld [vmem:[#allocation2 + $0xac] sm:$0xf] }
 0x272   : > { %16824 = vst [vmem:[#allocation16_spill] sm:$0xff] %v15004_v40  ;;  %5612 = vmatmul.bf16.gmra.mxu3 %v11572_v18  ;;  %v3012_v18 = vrot.slane %v3010_v25, 4  ;;  %v11639_v29 = vld [vmem:[#allocation4 + $0x2e8] sm:$0xf]  ;;  %10301 = vmatpush.bf16.msrb.mxu2 %v13408_v6  ;;  %v6127_v6 = vld [vmem:[#allocation3 + $0xc] sm:$0xf] }
 0x273   : > { %v3025_v7 = vrot.slane %v3023_v57, 4 }
 0x274   : > { %v3016_v22 = vor.u32 %v3015_v51, %v3012_v18 }
 0x275   : > { %5528 = vmatmul.bf16.gmra.mxu2 %v11604_v21  ;;  %v5573_v32 = vpop.f32.mrf.mxu3  ;;  %v3021_v21 = vrot.slane %v3019_v15, 5  ;;  %v362_v15 = vld [vmem:[#allocation3 + $0x24] sm:$0x1] }
 0x276   : > { %v5574_v31 = vadd.f32 %v5573_v32, %v5485_v59  ;;  %v3017_v56 = vrot.slane %v3016_v22, 4  ;;  %v13117_v59 = vld [vmem:[#allocation4 + $0x2a4] sm:$0xf] }
 0x277   : > { %v3026_v58 = vor.u32 %v3025_v7, %v3021_v21  ;;  %v11608_v7 = vor.u32 %v13117_v59, %v11605_v2  ;;  %v11647_v59 = vld [vmem:[#allocation4 + $0x2f0] sm:$0xf] }
 0x278   : > { %v15011_v50 = vpop.f32.mrf.mxu0  ;;  %v5489_v60 = vpop.f32.mrf.mxu2  ;;  %v5663_v11 = vadd.f32 %v14988_v4, %v5574_v31  ;;  %v3022_v4 = vsel %vm13693_vm11, %v3017_v56, %v3021_v21  ;;  %v13130_v31 = vld [vmem:[#allocation4 + $0x308] sm:$0xf0]  ;;  %v3229_v21 = vld [vmem:[#allocation2 + $0xa8] sm:$0xe] }
 0x279   : > { %v3027_v25 = vrot.slane %v3026_v58, 4  ;;  %3183 = vst [vmem:[#allocation4 + $0x334] sm:$0xf] %v3022_v4  ;;  %v11640_v56 = vor.u32 %v13130_v31, %v11639_v29  ;;  %v13416_v4 = vld [vmem:[%s16756_s3 + $0xb8] sm:$0xff]  ;;  %v416_v31 = vld [vmem:[#allocation3 + $0x2c] sm:$0x1] }
 0x27a   : > { %v5742_v40 = vmax.f32 %v5663_v11, 0.0  ;;  %v3231_v11 = vld [vmem:[#allocation2 + $0xb0] sm:$0x1]  ;;  %10390 = vmatpush.bf16.msrb.mxu3 %v13416_v4  ;;  %v2734_v4 = vld [vmem:[#allocation2 + $0xac] sm:$0xf] }
 0x27b   : > { %5706 = vmatmul.bf16.gmra.mxu0 %v11612_v62  ;;  %v363_v62 = vsel %vm13588_vm4, 0, %v362_v15  ;;  %v3032_v18 = vsel %vm13693_vm11, %v3027_v25, %v3031_v46  ;;  %v11249_v46 = vrot.slane %v3229_v21, 9  ;;  %v3375_v25 = vrot.slane %v3230_v0, 5 }
 0x27c   : > { %v5774_v32 = vpack.c.bf16 %v5742_v40, %v5742_v40  ;;  %364 = vst [vmem:[#allocation3 + $0x24] sm:$0x1] %v363_v62  ;;  %v3378_v2 = vrot.slane %v3231_v11, 5  ;;  %v2657_v62 = vld [vmem:[#allocation2 + $0xa8] sm:$0xf] }
 0x27d   : > { %v5575_v57 = vpop.f32.mrf.mxu3  ;;  %3184 = vst [vmem:[#allocation4 + $0x358] sm:$0xf] %v3032_v18  ;;  %v3377_v18 = vrot.slane %v3375_v25, 4  ;;  %v3376_v0 = vsel %vm14155_vm14, %v11249_v46, %v3375_v25 }
 0x27e   : > { %v5807_v51 = vshrl.u32 %v5774_v32, 16  ;;  %v5576_v48 = vadd.f32 %v5575_v57, %v5487_v23  ;;  %v5810_v49 = vshll.u32 %v5774_v32, 16  ;;  %v13131_v57 = vld [vmem:[#allocation4 + $0x310] sm:$0xf0]  ;;  %2689 = vst [vmem:[#allocation4 + $0x378] sm:$0xf] %v2657_v62 }
 0x27f   : > { %3457 = vst [vmem:[#allocation4 + $0x380] sm:$0xf] %v3376_v0  ;;  %v6131_v62 = vld [vmem:[#allocation3 + $0x14] sm:$0x1] }
 0x280   : > { %v15024_v34 = vpop.f32.mrf.mxu0  ;;  %v15026_v40 = vpop.f32.mrf.mxu2  ;;  %v5809_v22 = vrot.slane %v5807_v51, 7  ;;  %v5665_v58 = vadd.f32 %v14999_v39, %v5576_v48  ;;  %v5490_v39 = vadd.f32 %v5489_v60, %v14554_v9  ;;  %v2658_v51 = vld [vmem:[#allocation2 + $0xac] sm:$0xf]  ;;  %v3379_v9 = vsel %vm14155_vm14, %v3377_v18, %v3378_v2  ;;  %v13126_v18 = vld [vmem:[#allocation4 + $0x2ec] sm:$0xf] }
 0x281   : > { %2690 = vst [vmem:[#allocation4 + $0x39c] sm:$0xf] %v2658_v51  ;;  %v5492_v0 = vadd.f32 %v15026_v40, %v14573_v55  ;;  %v13407_v55 = vld [vmem:[%s16756_s3 + $0x70] sm:$0xff] }
 0x282   : > { %v5812_v15 = vor.u32 %v5810_v49, %v5809_v22  ;;  %v5743_v23 = vmax.f32 %v5665_v58, 0.0  ;;  %5617 = vmatmul.bf16.gmra.mxu3 %v11608_v7  ;;  %v417_v7 = vsel %vm13602_vm5, 0, %v416_v31  ;;  %v11648_v49 = vor.u32 %v13131_v57, %v11647_v59  ;;  %3458 = vst [vmem:[#allocation4 + $0x3a4] sm:$0xf] %v3379_v9  ;;  %v11641_v31 = vld [vmem:[#allocation4 + $0x30c] sm:$0xf0]  ;;  %10302 = vmatpush.bf16.msrb.mxu2 %v13407_v55 }
 0x283   : > { %418 = vst [vmem:[#allocation3 + $0x2c] sm:$0x1] %v417_v7  ;;  %v5813_v25 = vrot.slane %v5809_v22, 4  ;;  %v3043_v22 = vshll.u32 %v2734_v4, 16  ;;  %v11675_v9 = vld [vmem:[#allocation4 + $0x330] sm:$0xf] }
 0x284   : > { %v6128_v32 = vsel %vm13671_vm10, %v5812_v15, %v6127_v6  ;;  %v5775_v29 = vpack.c.bf16 %v5743_v23, %v5743_v23  ;;  %v2733_v6 = vld [vmem:[#allocation2 + $0xa8] sm:$0xf] }
 0x285   : > { %5533 = vmatmul.bf16.gmra.mxu2 %v11640_v56  ;;  %6129 = vst [vmem:[#allocation3 + $0xc] sm:$0xf] %v6128_v32  ;;  %v5578_v48 = vpop.f32.mrf.mxu3  ;;  %v3034_v46 = vshrl.u32 %v2733_v6, 16  ;;  %v3037_v59 = vshll.u32 %v2733_v6, 16 }
 0x286   : > { %v5815_v21 = vshrl.u32 %v5775_v29, 16  ;;  %v5579_v11 = vadd.f32 %v5578_v48, %v5490_v39  ;;  %v5818_v60 = vshll.u32 %v5775_v29, 16  ;;  %v13424_v29 = vld [vmem:[%s16756_s3 + $0xf8] sm:$0xff] }
 0x287   : > { %v3036_v39 = vrot.slane %v3034_v46, 4  ;;  %v3039_v51 = vrot.slane %v3037_v59, 5  ;;  %10479 = vmatpush.bf16.msrb.mxu0 %v13424_v29  ;;  %v11644_v46 = vor.u32 %v13126_v18, %v11641_v31 }
 0x288   : > { %v15041_v58 = vpop.f32.mrf.mxu0  ;;  %v15043_v56 = vpop.f32.mrf.mxu2  ;;  %v5817_v15 = vrot.slane %v5815_v21, 7  ;;  %v5668_v23 = vadd.f32 %v15011_v50, %v5579_v11  ;;  %v13432_v50 = vld [vmem:[%s16756_s3 + $0x138] sm:$0xff] }
 0x289   : > { %10568 = vmatpush.bf16.msrb.mxu1 %v13432_v50  ;;  %v3040_v6 = vor.u32 %v3039_v51, %v3036_v39  ;;  %v365_v50 = vld [vmem:[#allocation3 + $0x30] sm:$0x1]  ;;  %v6134_v51 = vld [vmem:[#allocation3 + $0x18] sm:$0xf] }
 0x28a   : > { %v5820_v57 = vor.u32 %v5818_v60, %v5817_v15  ;;  %v5822_v32 = vrot.slane %v5817_v15, 4  ;;  %v5744_v2 = vmax.f32 %v5668_v23, 0.0  ;;  %v13139_v60 = vld [vmem:[#allocation4 + $0x350] sm:$0xf0]  ;;  %v366_v18 = vsel %vm13588_vm4, 0, %v365_v50 }
 0x28b   : > { %5711 = vmatmul.bf16.gmra.mxu0 %v11648_v49  ;;  %v3041_v40 = vrot.slane %v3040_v6, 4  ;;  %v11676_v39 = vor.u32 %v13139_v60, %v11675_v9  ;;  %367 = vst [vmem:[#allocation3 + $0x30] sm:$0x1] %v366_v18  ;;  %v5495_v9 = vadd.f32 %v15043_v56, %v14604_v53  ;;  %v6138_v53 = vld [vmem:[#allocation3 + $0x20] sm:$0x1] }
 0x28c   : > { %v5821_v48 = vsel %vm13632_vm7, %v5813_v25, %v5820_v57  ;;  %v6132_v7 = vsel %vm13588_vm4, %v5822_v32, %v6131_v62  ;;  %v5776_v21 = vpack.c.bf16 %v5744_v2, %v5744_v2  ;;  %v6241_v11 = vld [vmem:[#allocation3 + $0xc] sm:$0xf]  ;;  %v3045_v62 = vrot.slane %v3043_v22, 5 }
 0x28d   : > { %6130 = vst [vmem:[#allocation3 + $0x10] sm:$0xf] %v5821_v48  ;;  %v5580_v49 = vpop.f32.mrf.mxu3  ;;  %v3047_v57 = vshrl.u32 %v2734_v4, 16  ;;  %v13140_v4 = vld [vmem:[#allocation4 + $0x358] sm:$0xf0] }
 0x28e   : > { %6133 = vst [vmem:[#allocation3 + $0x14] sm:$0x1] %v6132_v7  ;;  %v5824_v15 = vshrl.u32 %v5776_v21, 16  ;;  %v5581_v23 = vadd.f32 %v5580_v49, %v5492_v0  ;;  %v5827_v2 = vshll.u32 %v5776_v21, 16  ;;  %v3046_v31 = vsel %vm13693_vm11, %v3041_v40, %v3045_v62  ;;  %v11683_v0 = vld [vmem:[#allocation4 + $0x338] sm:$0xf] }
 0x28f   : > { %6273 = vst [vmem:[#allocation4 + $0x48] sm:$0xf] %v6241_v11  ;;  %v3049_v22 = vrot.slane %v3047_v57, 4  ;;  %v2735_v49 = vld [vmem:[#allocation2 + $0xb0] sm:$0x1] }
 0x290   : > { %v15058_v25 = vpop.f32.mrf.mxu0  ;;  %v5496_v59 = vpop.f32.mrf.mxu2  ;;  %v5826_v32 = vrot.slane %v5824_v15, 7  ;;  %v5670_v29 = vadd.f32 %v15024_v34, %v5581_v23  ;;  %3185 = vst [vmem:[#allocation4 + $0x37c] sm:$0xf] %v3046_v31  ;;  %v11684_v15 = vor.u32 %v13140_v4, %v11683_v0  ;;  %v13415_v40 = vld [vmem:[%s16756_s3 + $0xb0] sm:$0xff]  ;;  %v11677_v4 = vld [vmem:[#allocation4 + $0x354] sm:$0xf0] }
 0x291   : > { %v3050_v57 = vor.u32 %v3049_v22, %v3045_v62  ;;  %10391 = vmatpush.bf16.msrb.mxu3 %v13415_v40 }
 0x292   : > { %v5829_v48 = vor.u32 %v5827_v2, %v5826_v32  ;;  %v5745_v7 = vmax.f32 %v5670_v29, 0.0  ;;  %5622 = vmatmul.bf16.gmra.mxu3 %v11644_v46  ;;  %v3053_v2 = vshll.u32 %v2735_v49, 16 }
 0x293   : > { %v3051_v22 = vrot.slane %v3050_v57, 4 }
 0x294   : > { %v7072_v21 = vld [vmem:[#allocation3 + $0x10] sm:$0xf]  ;;  %v6135_v34 = vsel %vm13671_vm10, %v5829_v48, %v6134_v51  ;;  %v5777_v11 = vpack.c.bf16 %v5745_v7, %v5745_v7  ;;  %v5830_v51 = vrot.slane %v5826_v32, 4  ;;  %v13135_v48 = vld [vmem:[#allocation4 + $0x334] sm:$0xf]  ;;  %v5497_v32 = vadd.f32 %v5496_v59, %v14624_v52  ;;  %v13431_v52 = vld [vmem:[%s16756_s3 + $0x130] sm:$0xff] }
 0x295   : > { %5538 = vmatmul.bf16.gmra.mxu2 %v11676_v39  ;;  %v5583_v60 = vpop.f32.mrf.mxu3  ;;  %7104 = vst [vmem:[#allocation4 + $0x30] sm:$0xf] %v7072_v21  ;;  %v6242_v50 = vld [vmem:[#allocation3 + $0x10] sm:$0xf]  ;;  %v419_v7 = vld [vmem:[#allocation3 + $0x38] sm:$0x1]  ;;  %10569 = vmatpush.bf16.msrb.mxu1 %v13431_v52 }
 0x296   : > { %v5832_v6 = vshrl.u32 %v5777_v11, 16  ;;  %6136 = vst [vmem:[#allocation3 + $0x18] sm:$0xf] %v6135_v34  ;;  %v5584_v23 = vadd.f32 %v5583_v60, %v5495_v9  ;;  %v5835_v39 = vshll.u32 %v5777_v11, 16  ;;  %v420_v62 = vsel %vm13602_vm5, 0, %v419_v7 }
 0x297   : > { %6274 = vst [vmem:[#allocation4 + $0x6c] sm:$0xf] %v6242_v50  ;;  %v3055_v21 = vrot.slane %v3053_v2, 5  ;;  %v11711_v9 = vld [vmem:[#allocation4 + $0x378] sm:$0xf] }
 0x298   : > { %v15072_v46 = vpop.f32.mrf.mxu0  ;;  %v15074_v55 = vpop.f32.mrf.mxu2  ;;  %v5834_v29 = vrot.slane %v5832_v6, 7  ;;  %v5673_v56 = vadd.f32 %v15041_v58, %v5584_v23  ;;  %421 = vst [vmem:[#allocation3 + $0x38] sm:$0x1] %v420_v62  ;;  %v13148_v60 = vld [vmem:[#allocation4 + $0x398] sm:$0xf0] }
 0x299   : > { %v2659_v23 = vld [vmem:[#allocation2 + $0xb4] sm:$0xf]  ;;  %v12203_v2 = vld [vmem:[#allocation4 + $0x48] sm:$0xf]  ;;  %v3056_v59 = vsel %vm13693_vm11, %v3051_v22, %v3055_v21  ;;  %v6141_v50 = vld [vmem:[#allocation3 + $0x24] sm:$0xf] }
 0x29a   : > { %v5837_v18 = vor.u32 %v5835_v39, %v5834_v29  ;;  %v5839_v31 = vrot.slane %v5834_v29, 4  ;;  %v5746_v0 = vmax.f32 %v5673_v56, 0.0  ;;  %v13423_v39 = vld [vmem:[%s16756_s3 + $0xf0] sm:$0xff]  ;;  %3186 = vst [vmem:[#allocation4 + $0x3a0] sm:$0xf] %v3056_v59 }
 0x29b   : > { %5716 = vmatmul.bf16.gmra.mxu0 %v11684_v15  ;;  %v11680_v15 = vor.u32 %v13135_v48, %v11677_v4  ;;  %v11719_v4 = vld [vmem:[#allocation4 + $0x380] sm:$0xf]  ;;  %v13149_v62 = vld [vmem:[#allocation4 + $0x3a0] sm:$0xf0]  ;;  %2691 = vst [vmem:[#allocation4 + $0x3c0] sm:$0xf] %v2659_v23 }
 0x29c   : > { %v5838_v34 = vsel %vm13632_vm7, %v5830_v51, %v5837_v18  ;;  %v6139_v58 = vsel %vm13588_vm4, %v5839_v31, %v6138_v53  ;;  %v5778_v11 = vpack.c.bf16 %v5746_v0, %v5746_v0  ;;  %v11712_v51 = vor.u32 %v13148_v60, %v11711_v9  ;;  %v3233_v31 = vld [vmem:[#allocation2 + $0xb8] sm:$0xf]  ;;  %10480 = vmatpush.bf16.msrb.mxu0 %v13423_v39  ;;  %v368_v9 = vld [vmem:[#allocation3 + $0x3c] sm:$0x1]  ;;  %v6145_v23 = vld [vmem:[#allocation3 + $0x2c] sm:$0x1] }
 0x29d   : > { %6137 = vst [vmem:[#allocation3 + $0x1c] sm:$0xf] %v5838_v34  ;;  %v5585_v49 = vpop.f32.mrf.mxu3  ;;  %v6243_v18 = vld [vmem:[#allocation3 + $0x18] sm:$0xf]  ;;  %v3382_v21 = vrot.slane %v3233_v31, 5  ;;  %v5500_v60 = vadd.f32 %v15074_v55, %v14649_v28 }
 0x29e   : > { %6140 = vst [vmem:[#allocation3 + $0x20] sm:$0x1] %v6139_v58  ;;  %v5586_v6 = vadd.f32 %v5585_v49, %v5497_v32  ;;  %v5841_v40 = vshrl.u32 %v5778_v11, 16  ;;  %v13262_v56 = vld [vmem:[#allocation4 + $0x68] sm:$0xf0]  ;;  %v5844_v7 = vshll.u32 %v5778_v11, 16 }
 0x29f   : > { %v12204_v0 = vor.u32 %v13262_v56, %v12203_v2  ;;  %6275 = vst [vmem:[#allocation4 + $0x90] sm:$0xf] %v6243_v18  ;;  %v3232_v58 = vld [vmem:[#allocation2 + $0xb4] sm:$0xe]  ;;  %v11720_v2 = vor.u32 %v13149_v62, %v11719_v4  ;;  %v369_v56 = vsel %vm13588_vm4, 0, %v368_v9 }
 0x2a0   : > { %v15087_v57 = vpop.f32.mrf.mxu0  ;;  %v5501_v29 = vpop.f32.mrf.mxu2  ;;  %v5675_v53 = vadd.f32 %v15058_v25, %v5586_v6  ;;  %v5843_v48 = vrot.slane %v5841_v40, 7  ;;  %v3234_v25 = vld [vmem:[#allocation2 + $0xbc] sm:$0x1]  ;;  %v11250_v40 = vrot.slane %v3232_v58, 9  ;;  %v2660_v31 = vld [vmem:[#allocation2 + $0xb8] sm:$0xf] }
 0x2a1   : > { %10225 = vmatmul.bf16.gmra.mxu1 %v12204_v0  ;;  %v3385_v39 = vrot.slane %v3234_v25, 5  ;;  %v13144_v4 = vld [vmem:[#allocation4 + $0x37c] sm:$0xf]  ;;  %370 = vst [vmem:[#allocation3 + $0x3c] sm:$0x1] %v369_v56 }
 0x2a2   : > { %v5747_v34 = vmax.f32 %v5675_v53, 0.0  ;;  %5627 = vmatmul.bf16.gmra.mxu3 %v11680_v15  ;;  %v5846_v22 = vor.u32 %v5844_v7, %v5843_v48  ;;  %v5847_v7 = vrot.slane %v5843_v48, 4  ;;  %v3383_v62 = vsel %vm14155_vm14, %v11250_v40, %v3382_v21  ;;  %2692 = vst [vmem:[#allocation4 + $0x3e4] sm:$0xf] %v2660_v31  ;;  %v2738_v40 = vld [vmem:[#allocation2 + $0xbc] sm:$0x1] }
 0x2a3   : > { %3459 = vst [vmem:[#allocation4 + $0x3c8] sm:$0xf] %v3383_v62 }
 0x2a4   : > { %v7905_v32 = vld [vmem:[#allocation3 + $0x1c] sm:$0xf]  ;;  %v5779_v49 = vpack.c.bf16 %v5747_v34, %v5747_v34  ;;  %v6142_v11 = vsel %vm13671_vm10, %v5846_v22, %v6141_v50  ;;  %v3384_v50 = vrot.slane %v3382_v21, 4  ;;  %v11713_v22 = vld [vmem:[#allocation4 + $0x39c] sm:$0xf0] }
 0x2a5   : > { %5543 = vmatmul.bf16.gmra.mxu2 %v11712_v51  ;;  %v5588_v6 = vpop.f32.mrf.mxu3  ;;  %7937 = vst [vmem:[#allocation4 + $0x3c] sm:$0xf] %v7905_v32  ;;  %v2736_v51 = vld [vmem:[#allocation2 + $0xb4] sm:$0xf]  ;;  %v5502_v32 = vadd.f32 %v5501_v29, %v14671_v13  ;;  %v11716_v56 = vor.u32 %v13144_v4, %v11713_v22 }
 0x2a6   : > { %v5849_v15 = vshrl.u32 %v5779_v49, 16  ;;  %6143 = vst [vmem:[#allocation3 + $0x24] sm:$0xf] %v6142_v11  ;;  %v5589_v52 = vadd.f32 %v5588_v6, %v5500_v60  ;;  %v5852_v28 = vshll.u32 %v5779_v49, 16  ;;  %v6244_v55 = vld [vmem:[#allocation3 + $0x1c] sm:$0xf]  ;;  %v3386_v48 = vsel %vm14155_vm14, %v3384_v50, %v3385_v39 }
 0x2a7   : > { %6276 = vst [vmem:[#allocation4 + $0xb4] sm:$0xf] %v6244_v55  ;;  %v3058_v25 = vshrl.u32 %v2736_v51, 16  ;;  %v422_v49 = vld [vmem:[#allocation3 + $0x44] sm:$0x1] }
 0x2a8   : > { %v15102_v59 = vpop.f32.mrf.mxu0  ;;  %v15104_v53 = vpop.f32.mrf.mxu2  ;;  %v5851_v18 = vrot.slane %v5849_v15, 7  ;;  %v5678_v0 = vadd.f32 %v15072_v46, %v5589_v52  ;;  %v423_v11 = vsel %vm13602_vm5, 0, %v422_v49  ;;  %v2737_v60 = vld [vmem:[#allocation2 + $0xb8] sm:$0xf]  ;;  %v3061_v15 = vshll.u32 %v2736_v51, 16 }
 0x2a9   : > { %v3060_v6 = vrot.slane %v3058_v25, 4  ;;  %v12239_v52 = vld [vmem:[#allocation4 + $0x90] sm:$0xf]  ;;  %v11747_v50 = vld [vmem:[#allocation4 + $0x3c0] sm:$0xf] }
 0x2aa   : > { %v5854_v34 = vor.u32 %v5852_v28, %v5851_v18  ;;  %v5856_v58 = vrot.slane %v5851_v18, 4  ;;  %v5748_v9 = vmax.f32 %v5678_v0, 0.0  ;;  %v3071_v28 = vshrl.u32 %v2737_v60, 16  ;;  %3460 = vst [vmem:[#allocation4 + $0x3ec] sm:$0xf] %v3386_v48 }
 0x2ab   : > { %5721 = vmatmul.bf16.gmra.mxu0 %v11720_v2  ;;  %v3067_v2 = vshll.u32 %v2737_v60, 16  ;;  %v3063_v0 = vrot.slane %v3061_v15, 5  ;;  %424 = vst [vmem:[#allocation3 + $0x44] sm:$0x1] %v423_v11  ;;  %v6148_v49 = vld [vmem:[#allocation3 + $0x30] sm:$0xf] }
 0x2ac   : > { %v5855_v46 = vsel %vm13632_vm7, %v5847_v7, %v5854_v34  ;;  %v6146_v21 = vsel %vm13588_vm4, %v5856_v58, %v6145_v23  ;;  %v5780_v13 = vpack.c.bf16 %v5748_v9, %v5748_v9  ;;  %v3077_v23 = vshll.u32 %v2738_v40, 16  ;;  %v13406_v9 = vld [vmem:[%s16756_s3 + $0x68] sm:$0xff]  ;;  %v13157_v48 = vld [vmem:[#allocation4 + $0x3e0] sm:$0xf0]  ;;  %v11755_v15 = vld [vmem:[#allocation4 + $0x3c8] sm:$0xf] }
 0x2ad   : > { %6144 = vst [vmem:[#allocation3 + $0x28] sm:$0xf] %v5855_v46  ;;  %v5590_v29 = vpop.f32.mrf.mxu3  ;;  %v6245_v18 = vld [vmem:[#allocation3 + $0x24] sm:$0xf]  ;;  %v3069_v62 = vrot.slane %v3067_v2, 5  ;;  %v3073_v58 = vrot.slane %v3071_v28, 4  ;;  %v11748_v11 = vor.u32 %v13157_v48, %v11747_v50  ;;  %10303 = vmatpush.bf16.msrb.mxu2 %v13406_v9 }
 0x2ae   : > { %6147 = vst [vmem:[#allocation3 + $0x2c] sm:$0x1] %v6146_v21  ;;  %v5591_v39 = vadd.f32 %v5590_v29, %v5502_v32  ;;  %v5858_v55 = vshrl.u32 %v5780_v13, 16  ;;  %v13271_v51 = vld [vmem:[#allocation4 + $0xb0] sm:$0xf0]  ;;  %v5861_v4 = vshll.u32 %v5780_v13, 16  ;;  %v3064_v32 = vor.u32 %v3063_v0, %v3060_v6 }
 0x2af   : > { %v12240_v22 = vor.u32 %v13271_v51, %v12239_v52  ;;  %6277 = vst [vmem:[#allocation4 + $0xd8] sm:$0xf] %v6245_v18  ;;  %v3074_v21 = vor.u32 %v3073_v58, %v3069_v62  ;;  %v3079_v60 = vrot.slane %v3077_v23, 5  ;;  %v371_v13 = vld [vmem:[#allocation3 + $0x48] sm:$0x1]  ;;  %v5505_v6 = vadd.f32 %v15104_v53, %v14690_v5  ;;  %v13414_v50 = vld [vmem:[%s16756_s3 + $0xa8] sm:$0xff] }
 0x2b0   : > { %v15120_v31 = vpop.f32.mrf.mxu0  ;;  %v15122_v7 = vpop.f32.mrf.mxu2  ;;  %v5680_v34 = vadd.f32 %v15087_v57, %v5591_v39  ;;  %v15125_v25 = vrot.slane %v5858_v55, 7  ;;  %v3065_v29 = vrot.slane %v3064_v32, 4  ;;  %v2661_v28 = vld [vmem:[#allocation2 + $0xc0] sm:$0xf]  ;;  %v13422_v5 = vld [vmem:[%s16756_s3 + $0xe8] sm:$0xff]  ;;  %10392 = vmatpush.bf16.msrb.mxu3 %v13414_v50 }
 0x2b1   : > { %10230 = vmatmul.bf16.gmra.mxu1 %v12240_v22  ;;  %v3075_v39 = vrot.slane %v3074_v21, 4  ;;  %v3235_v23 = vld [vmem:[#allocation2 + $0xc0] sm:$0xe]  ;;  %v13158_v0 = vld [vmem:[#allocation4 + $0x3e8] sm:$0xf0]  ;;  %10481 = vmatpush.bf16.msrb.mxu0 %v13422_v5 }
 0x2b2   : > { %v5749_v46 = vmax.f32 %v5680_v34, 0.0  ;;  %5632 = vmatmul.bf16.gmra.mxu3 %v11716_v56  ;;  %v5863_v57 = vor.u32 %v5861_v4, %v15125_v25  ;;  %v3070_v18 = vsel %vm13693_vm11, %v3065_v29, %v3069_v62  ;;  %v372_v62 = vsel %vm13588_vm4, 0, %v371_v13  ;;  %v6152_v51 = vld [vmem:[#allocation3 + $0x38] sm:$0x1]  ;;  %v2662_v32 = vld [vmem:[#allocation2 + $0xc4] sm:$0xf] }
 0x2b3   : > { %v3080_v34 = vsel %vm13693_vm11, %v3075_v39, %v3079_v60  ;;  %v11756_v4 = vor.u32 %v13158_v0, %v11755_v15  ;;  %3187 = vst [vmem:[#allocation4 + $0x3c4] sm:$0xf] %v3070_v18  ;;  %v3236_v9 = vld [vmem:[#allocation2 + $0xc4] sm:$0xf]  ;;  %v11251_v21 = vrot.slane %v3235_v23, 9  ;;  %v5418_v60 = vadd.f32 %v14695_v35, %v14707_v42 }
 0x2b4   : > { %v5781_v40 = vpack.c.bf16 %v5749_v46, %v5749_v46  ;;  %v6246_v2 = vld [vmem:[#allocation3 + $0x28] sm:$0xf]  ;;  %v6149_v52 = vsel %vm13671_vm10, %v5863_v57, %v6148_v49  ;;  %3188 = vst [vmem:[#allocation4 + $0x3e8] sm:$0xf] %v3080_v34  ;;  %v5864_v57 = vrot.slane %v15125_v25, 4  ;;  %v3389_v29 = vrot.slane %v3236_v9, 5 }
 0x2b5   : > { %v5593_v56 = vpop.f32.mrf.mxu3  ;;  %5548 = vmatmul.bf16.gmra.mxu2 %v11748_v11  ;;  %6278 = vst [vmem:[#allocation4 + $0xfc] sm:$0xf] %v6246_v2  ;;  %v3237_v11 = vld [vmem:[#allocation2 + $0xc8] sm:$0x1]  ;;  %v13405_v39 = vld [vmem:[%s16756_s3 + $0x60] sm:$0xff] }
 0x2b6   : > { %6150 = vst [vmem:[#allocation3 + $0x30] sm:$0xf] %v6149_v52  ;;  %v5866_v53 = vshrl.u32 %v5781_v40, 16  ;;  %v5594_v55 = vadd.f32 %v5593_v56, %v5505_v6  ;;  %v5869_v46 = vshll.u32 %v5781_v40, 16  ;;  %v3392_v2 = vrot.slane %v3237_v11, 5  ;;  %10304 = vmatpush.bf16.msrb.mxu2 %v13405_v39 }
 0x2b7   : > { %373 = vst [vmem:[#allocation3 + $0x48] sm:$0x1] %v372_v62  ;;  %v5507_v40 = vadd.f32 %v15122_v7, %v5418_v60  ;;  %v3390_v35 = vsel %vm14155_vm14, %v11251_v21, %v3389_v29  ;;  %v3391_v42 = vrot.slane %v3389_v29, 4  ;;  %v425_v25 = vld [vmem:[#allocation3 + $0x50] sm:$0x1] }
 0x2b8   : > { %v15147_v58 = vpop.f32.mrf.mxu0  ;;  %v15149_v22 = vpop.f32.mrf.mxu2  ;;  %v5868_v49 = vrot.slane %v5866_v53, 7  ;;  %v5683_v48 = vadd.f32 %v15102_v59, %v5594_v55  ;;  %2693 = vst [vmem:[#allocation4 + $0x408] sm:$0xf] %v2661_v28  ;;  %v13421_v59 = vld [vmem:[%s16756_s3 + $0xe0] sm:$0xff]  ;;  %v12275_v50 = vld [vmem:[#allocation4 + $0xd8] sm:$0xf] }
 0x2b9   : > { %2694 = vst [vmem:[#allocation4 + $0x42c] sm:$0xf] %v2662_v32  ;;  %v426_v7 = vsel %vm13602_vm5, 0, %v425_v25  ;;  %10482 = vmatpush.bf16.msrb.mxu0 %v13421_v59  ;;  %v3393_v5 = vsel %vm14155_vm14, %v3391_v42, %v3392_v2  ;;  %v2739_v55 = vld [vmem:[#allocation2 + $0xc0] sm:$0xf] }
 0x2ba   : > { %v5871_v13 = vor.u32 %v5869_v46, %v5868_v49  ;;  %v5873_v6 = vrot.slane %v5868_v49, 4  ;;  %v5750_v15 = vmax.f32 %v5683_v48, 0.0  ;;  %3461 = vst [vmem:[#allocation4 + $0x410] sm:$0xf] %v3390_v35  ;;  %v13153_v62 = vld [vmem:[#allocation4 + $0x3c4] sm:$0xf] }
 0x2bb   : > { %5726 = vmatmul.bf16.gmra.mxu0 %v11756_v4  ;;  %v11749_v32 = vld [vmem:[#allocation4 + $0x3e4] sm:$0xf0]  ;;  %3462 = vst [vmem:[#allocation4 + $0x434] sm:$0xf] %v3393_v5  ;;  %v13430_v49 = vld [vmem:[%s16756_s3 + $0x128] sm:$0xff]  ;;  %v3082_v46 = vshrl.u32 %v2739_v55, 16 }
 0x2bc   : > { %v5872_v52 = vsel %vm13632_vm7, %v5864_v57, %v5871_v13  ;;  %v6153_v56 = vsel %vm13588_vm4, %v5873_v6, %v6152_v51  ;;  %v5782_v18 = vpack.c.bf16 %v5750_v15, %v5750_v15  ;;  %v13280_v28 = vld [vmem:[#allocation4 + $0xf8] sm:$0xf0]  ;;  %v6155_v60 = vld [vmem:[#allocation3 + $0x3c] sm:$0xf]  ;;  %v11752_v11 = vor.u32 %v13153_v62, %v11749_v32  ;;  %427 = vst [vmem:[#allocation3 + $0x50] sm:$0x1] %v426_v7 }
 0x2bd   : > { %6151 = vst [vmem:[#allocation3 + $0x34] sm:$0xf] %v5872_v52  ;;  %v5595_v23 = vpop.f32.mrf.mxu3  ;;  %v6247_v53 = vld [vmem:[#allocation3 + $0x30] sm:$0xf]  ;;  %v12276_v4 = vor.u32 %v13280_v28, %v12275_v50  ;;  %10570 = vmatpush.bf16.msrb.mxu1 %v13430_v49  ;;  %v2740_v13 = vld [vmem:[#allocation2 + $0xc4] sm:$0xf]  ;;  %v5510_v15 = vadd.f32 %v15149_v22, %v14729_v27  ;;  %v5423_v62 = vadd.f32 %v14731_v33, %v14745_v1 }
 0x2be   : > { %6154 = vst [vmem:[#allocation3 + $0x38] sm:$0x1] %v6153_v56  ;;  %v5875_v0 = vshrl.u32 %v5782_v18, 16  ;;  %v5596_v34 = vadd.f32 %v5595_v23, %v5507_v40  ;;  %v5878_v21 = vshll.u32 %v5782_v18, 16  ;;  %v2741_v40 = vld [vmem:[#allocation2 + $0xc8] sm:$0x1] }
 0x2bf   : > { %v11783_v29 = vld [vmem:[#allocation4 + $0x408] sm:$0xf]  ;;  %6279 = vst [vmem:[#allocation4 + $0x120] sm:$0xf] %v6247_v53  ;;  %v3084_v25 = vrot.slane %v3082_v46, 4  ;;  %v3091_v39 = vshll.u32 %v2740_v13, 16 }
 0x2c0   : > { %v15172_v51 = vpop.f32.mrf.mxu0  ;;  %v15174_v9 = vpop.f32.mrf.mxu2  ;;  %v15179_v48 = vrot.slane %v5875_v0, 7  ;;  %v5685_v57 = vadd.f32 %v15120_v31, %v5596_v34  ;;  %v13166_v59 = vld [vmem:[#allocation4 + $0x428] sm:$0xf0]  ;;  %v3085_v31 = vshll.u32 %v2739_v55, 16  ;;  %v3095_v50 = vshrl.u32 %v2740_v13, 16 }
 0x2c1   : > { %10235 = vmatmul.bf16.gmra.mxu1 %v12276_v4  ;;  %v11784_v35 = vor.u32 %v13166_v59, %v11783_v29  ;;  %v11791_v42 = vld [vmem:[#allocation4 + $0x410] sm:$0xf]  ;;  %v3101_v28 = vshll.u32 %v2741_v40, 16  ;;  %v374_v7 = vld [vmem:[#allocation3 + $0x54] sm:$0x1]  ;;  %v3093_v23 = vrot.slane %v3091_v39, 5 }
 0x2c2   : > { %v5880_v6 = vor.u32 %v5878_v21, %v15179_v48  ;;  %v5751_v2 = vmax.f32 %v5685_v57, 0.0  ;;  %5637 = vmatmul.bf16.gmra.mxu3 %v11752_v11  ;;  %v3087_v22 = vrot.slane %v3085_v31, 5  ;;  %v375_v5 = vsel %vm13588_vm4, 0, %v374_v7  ;;  %v13420_v53 = vld [vmem:[%s16756_s3 + $0xd8] sm:$0xff]  ;;  %v13167_v34 = vld [vmem:[#allocation4 + $0x430] sm:$0xf0] }
 0x2c3   : > { %v6159_v4 = vld [vmem:[#allocation3 + $0x44] sm:$0x1]  ;;  %v11792_v49 = vor.u32 %v13167_v34, %v11791_v42  ;;  %376 = vst [vmem:[#allocation3 + $0x54] sm:$0x1] %v375_v5  ;;  %10483 = vmatpush.bf16.msrb.mxu0 %v13420_v53  ;;  %v5881_v57 = vrot.slane %v15179_v48, 4  ;;  %v13403_v48 = vld [vmem:[%s16756_s3 + $0x50] sm:$0xff] }
 0x2c4   : > { %v6156_v52 = vsel %vm13671_vm10, %v5880_v6, %v6155_v60  ;;  %v5783_v56 = vpack.c.bf16 %v5751_v2, %v5751_v2  ;;  %v6248_v18 = vld [vmem:[#allocation3 + $0x34] sm:$0xf]  ;;  %v3088_v21 = vor.u32 %v3087_v22, %v3084_v25  ;;  %v3097_v60 = vrot.slane %v3095_v50, 4  ;;  %v13404_v33 = vld [vmem:[%s16756_s3 + $0x58] sm:$0xff]  ;;  %v404_v40 = vld [vmem:[#allocation3 + $0xcc] sm:$0x1] }
 0x2c5   : > { %6157 = vst [vmem:[#allocation3 + $0x3c] sm:$0xf] %v6156_v52  ;;  %v5598_v27 = vpop.f32.mrf.mxu3  ;;  %5553 = vmatmul.bf16.gmra.mxu2 %v11784_v35  ;;  %v287_v6 = vld [vmem:[#allocation2 + $0xcc] sm:$0x1]  ;;  %v3103_v2 = vrot.slane %v3101_v28, 5  ;;  %v5512_v28 = vadd.f32 %v15174_v9, %v5423_v62 }
 0x2c6   : > { %v5883_v55 = vshrl.u32 %v5783_v56, 16  ;;  %v5599_v0 = vadd.f32 %v5598_v27, %v5510_v15  ;;  %6280 = vst [vmem:[#allocation4 + $0x144] sm:$0xf] %v6248_v18  ;;  %v5886_v29 = vshll.u32 %v5783_v56, 16  ;;  %v3089_v1 = vrot.slane %v3088_v21, 4  ;;  %10305 = vmatpush.bf16.msrb.mxu2 %v13404_v33  ;;  %v13419_v56 = vld [vmem:[%s16756_s3 + $0xd0] sm:$0xff] }
 0x2c7   : > { %v3098_v15 = vor.u32 %v3097_v60, %v3093_v23  ;;  %v288_v59 = vsel %vm13588_vm4, 0, %v287_v6  ;;  %v2664_v52 = vld [vmem:[#allocation2 + $0xd0] sm:$0xf]  ;;  %v343_v22 = vld [vmem:[#allocation2 + $0xd4] sm:$0x1]  ;;  %10484 = vmatpush.bf16.msrb.mxu0 %v13419_v56 }
 0x2c8   : > { %v15194_v32 = vpop.f32.mrf.mxu0  ;;  %v15196_v46 = vpop.f32.mrf.mxu2  ;;  %v5885_v11 = vrot.slane %v5883_v55, 7  ;;  %v5688_v13 = vadd.f32 %v15147_v58, %v5599_v0  ;;  %289 = vst [vmem:[#allocation2 + $0xcc] sm:$0x1] %v288_v59  ;;  %v405_v58 = vsel %vm13588_vm4, 0, %v404_v40  ;;  %v3094_v31 = vsel %vm13693_vm11, %v3089_v1, %v3093_v23  ;;  %v12311_v27 = vld [vmem:[#allocation4 + $0x120] sm:$0xf] }
 0x2c9   : > { %v3099_v39 = vrot.slane %v3098_v15, 4  ;;  %406 = vst [vmem:[#allocation3 + $0xcc] sm:$0x1] %v405_v58  ;;  %v458_v23 = vld [vmem:[#allocation3 + $0xd4] sm:$0x1]  ;;  %v344_v0 = vsel %vm13602_vm5, 0, %v343_v22 }
 0x2ca   : > { %v5888_v35 = vor.u32 %v5886_v29, %v5885_v11  ;;  %v5890_v42 = vrot.slane %v5885_v11, 4  ;;  %v5752_v25 = vmax.f32 %v5688_v13, 0.0  ;;  %3189 = vst [vmem:[#allocation4 + $0x40c] sm:$0xf] %v3094_v31  ;;  %v459_v9 = vsel %vm13602_vm5, 0, %v458_v23  ;;  %10306 = vmatpush.bf16.msrb.mxu2 %v13403_v48  ;;  %v13413_v48 = vld [vmem:[%s16756_s3 + $0xa0] sm:$0xff] }
 0x2cb   : > { %5731 = vmatmul.bf16.gmra.mxu0 %v11792_v49  ;;  %v3104_v55 = vsel %vm13693_vm11, %v3099_v39, %v3103_v2  ;;  %v6162_v62 = vld [vmem:[#allocation3 + $0x48] sm:$0xf]  ;;  %v3238_v11 = vld [vmem:[#allocation2 + $0xcc] sm:$0xe]  ;;  %v3239_v29 = vld [vmem:[#allocation2 + $0xd0] sm:$0xf]  ;;  %v5515_v39 = vadd.f32 %v15196_v46, %v14760_v10  ;;  %10393 = vmatpush.bf16.msrb.mxu3 %v13413_v48  ;;  %v5428_v10 = vadd.f32 %v14764_v43, %v14775_v63 }
 0x2cc   : > { %v5889_v18 = vsel %vm13632_vm7, %v5881_v57, %v5888_v35  ;;  %v6160_v50 = vsel %vm13588_vm4, %v5890_v42, %v6159_v4  ;;  %v5784_v7 = vpack.c.bf16 %v5752_v25, %v5752_v25  ;;  %3190 = vst [vmem:[#allocation4 + $0x430] sm:$0xf] %v3104_v55  ;;  %v11252_v33 = vrot.slane %v3238_v11, 9  ;;  %v15231_v1 = vld [vmem:[#allocation3 + $0xcc] sm:$0xe]  ;;  %v13418_v43 = vld [vmem:[%s16756_s3 + $0xc8] sm:$0xff] }
 0x2cd   : > { %6158 = vst [vmem:[#allocation3 + $0x40] sm:$0xf] %v5889_v18  ;;  %v5600_v5 = vpop.f32.mrf.mxu3  ;;  %v13289_v53 = vld [vmem:[#allocation4 + $0x140] sm:$0xf0]  ;;  %v3396_v2 = vrot.slane %v3239_v29, 5  ;;  %v12164_v35 = vrot.slane %v15231_v1, 9  ;;  %10485 = vmatpush.bf16.msrb.mxu0 %v13418_v43 }
 0x2ce   : > { %6161 = vst [vmem:[#allocation3 + $0x44] sm:$0x1] %v6160_v50  ;;  %v5892_v34 = vshrl.u32 %v5784_v7, 16  ;;  %v5895_v4 = vshll.u32 %v5784_v7, 16  ;;  %v5601_v49 = vadd.f32 %v5600_v5, %v5512_v28  ;;  %v12312_v60 = vor.u32 %v13289_v53, %v12311_v27  ;;  %v7935_v58 = vld [vmem:[#allocation3 + $0xd0] sm:$0xf] }
 0x2cf   : > { %2696 = vst [vmem:[#allocation4 + $0x474] sm:$0xf] %v2664_v52  ;;  %v2663_v15 = vld [vmem:[#allocation2 + $0xcc] sm:$0xf]  ;;  %v8510_v56 = vld [vmem:[#allocation3 + $0xd0] sm:$0xf] }
 0x2d0   : > { %v15226_v21 = vpop.f32.mrf.mxu0  ;;  %v5516_v57 = vpop.f32.mrf.mxu2  ;;  %v15228_v13 = vrot.slane %v5892_v34, 7  ;;  %v5690_v6 = vadd.f32 %v15172_v51, %v5601_v49  ;;  %345 = vst [vmem:[#allocation2 + $0xd4] sm:$0x1] %v344_v0  ;;  %v3397_v51 = vsel %vm14155_vm14, %v11252_v33, %v3396_v2  ;;  %v428_v18 = vld [vmem:[#allocation3 + $0x5c] sm:$0x1]  ;;  %v3398_v7 = vrot.slane %v3396_v2, 4 }
 0x2d1   : > { %2695 = vst [vmem:[#allocation4 + $0x450] sm:$0xf] %v2663_v15  ;;  %10240 = vmatmul.bf16.gmra.mxu1 %v12312_v60  ;;  %v13162_v25 = vld [vmem:[#allocation4 + $0x40c] sm:$0xf]  ;;  %v7934_v28 = vld [vmem:[#allocation3 + $0xcc] sm:$0xf]  ;;  %v5517_v63 = vadd.f32 %v5516_v57, %v5428_v10 }
 0x2d2   : > { %v5897_v59 = vor.u32 %v5895_v4, %v15228_v13  ;;  %v5753_v40 = vmax.f32 %v5690_v6, 0.0  ;;  %v5898_v42 = vrot.slane %v15228_v13, 4  ;;  %460 = vst [vmem:[#allocation3 + $0xd4] sm:$0x1] %v459_v9  ;;  %v429_v27 = vsel %vm13602_vm5, 0, %v428_v18  ;;  %v13402_v60 = vld [vmem:[%s16756_s3 + $0x48] sm:$0xff] }
 0x2d3   : > { %3463 = vst [vmem:[#allocation4 + $0x458] sm:$0xf] %v3397_v51  ;;  %v6249_v22 = vld [vmem:[#allocation3 + $0x3c] sm:$0xf]  ;;  %v11785_v5 = vld [vmem:[#allocation4 + $0x42c] sm:$0xf0]  ;;  %10307 = vmatpush.bf16.msrb.mxu2 %v13402_v60 }
 0x2d4   : > { %v6163_v31 = vsel %vm13671_vm10, %v5897_v59, %v6162_v62  ;;  %v5785_v52 = vpack.c.bf16 %v5753_v40, %v5753_v40  ;;  %v8667_v55 = vrot.slane %v8510_v56, 5  ;;  %430 = vst [vmem:[#allocation3 + $0x5c] sm:$0x1] %v429_v27  ;;  %v6166_v0 = vld [vmem:[#allocation3 + $0x50] sm:$0x1]  ;;  %v11788_v34 = vor.u32 %v13162_v25, %v11785_v5  ;;  %v13412_v1 = vld [vmem:[%s16756_s3 + $0x98] sm:$0xff] }
 0x2d5   : > { %6164 = vst [vmem:[#allocation3 + $0x48] sm:$0xf] %v6163_v31  ;;  %v5603_v50 = vpop.f32.mrf.mxu3  ;;  %v6250_v62 = vld [vmem:[#allocation3 + $0x40] sm:$0xf]  ;;  %10394 = vmatpush.bf16.msrb.mxu3 %v13412_v1  ;;  %v13401_v48 = vld [vmem:[%s16756_s3 + $0x40] sm:$0xff] }
 0x2d6   : > { %v5900_v23 = vshrl.u32 %v5785_v52, 16  ;;  %v5604_v53 = vadd.f32 %v5603_v50, %v5515_v39  ;;  %v5903_v46 = vshll.u32 %v5785_v52, 16  ;;  %v13175_v49 = vld [vmem:[#allocation4 + $0x470] sm:$0xf0]  ;;  %5642 = vmatmul.bf16.gmra.mxu3 %v11788_v34  ;;  %6281 = vst [vmem:[#allocation4 + $0x168] sm:$0xf] %v6249_v22  ;;  %v8668_v57 = vsel %vm14155_vm14, %v12164_v35, %v8667_v55 }
 0x2d7   : > { %7967 = vst [vmem:[#allocation4 + $0x474] sm:$0xf] %v7935_v58  ;;  %v3240_v13 = vld [vmem:[#allocation2 + $0xd4] sm:$0x1]  ;;  %v8669_v58 = vrot.slane %v8667_v55, 4  ;;  %10308 = vmatpush.bf16.msrb.mxu2 %v13401_v48 }
 0x2d8   : > { %v15249_v4 = vpop.f32.mrf.mxu0  ;;  %v15251_v9 = vpop.f32.mrf.mxu2  ;;  %v5902_v11 = vrot.slane %v5900_v23, 7  ;;  %v5693_v29 = vadd.f32 %v15194_v32, %v5604_v53  ;;  %v11819_v6 = vld [vmem:[#allocation4 + $0x450] sm:$0xf]  ;;  %v3399_v33 = vrot.slane %v3240_v13, 5  ;;  %6282 = vst [vmem:[#allocation4 + $0x18c] sm:$0xf] %v6250_v62 }
 0x2d9   : > { %v11820_v32 = vor.u32 %v13175_v49, %v11819_v6  ;;  %7966 = vst [vmem:[#allocation4 + $0x450] sm:$0xf] %v7934_v28  ;;  %v8511_v40 = vld [vmem:[#allocation3 + $0xd4] sm:$0x1]  ;;  %v2743_v18 = vld [vmem:[#allocation2 + $0xd0] sm:$0xf] }
 0x2da   : > { %v5905_v15 = vor.u32 %v5903_v46, %v5902_v11  ;;  %v5907_v2 = vrot.slane %v5902_v11, 4  ;;  %v5754_v59 = vmax.f32 %v5693_v29, 0.0  ;;  %v3400_v25 = vsel %vm14155_vm14, %v3398_v7, %v3399_v33  ;;  %v2742_v56 = vld [vmem:[#allocation2 + $0xcc] sm:$0xf]  ;;  %v11827_v35 = vld [vmem:[#allocation4 + $0x458] sm:$0xf] }
 0x2db   : > { %v8670_v51 = vrot.slane %v8511_v40, 5  ;;  %5558 = vmatmul.bf16.gmra.mxu2 %v11820_v32  ;;  %3464 = vst [vmem:[#allocation4 + $0x47c] sm:$0xf] %v3400_v25  ;;  %v2744_v28 = vld [vmem:[#allocation2 + $0xd4] sm:$0x1]  ;;  %v3106_v23 = vshrl.u32 %v2742_v56, 16 }
 0x2dc   : > { %v5906_v31 = vsel %vm13632_vm7, %v5898_v42, %v5905_v15  ;;  %v6167_v39 = vsel %vm13588_vm4, %v5907_v2, %v6166_v0  ;;  %v5786_v52 = vpack.c.bf16 %v5754_v59, %v5754_v59  ;;  %v13417_v42 = vld [vmem:[%s16756_s3 + $0xc0] sm:$0xff]  ;;  %v6169_v5 = vld [vmem:[#allocation3 + $0x54] sm:$0xf]  ;;  %8734 = vst [vmem:[#allocation4 + $0x458] sm:$0xf] %v8668_v57  ;;  %v3109_v55 = vshll.u32 %v2742_v56, 16 }
 0x2dd   : > { %6165 = vst [vmem:[#allocation3 + $0x4c] sm:$0xf] %v5906_v31  ;;  %v5605_v50 = vpop.f32.mrf.mxu3  ;;  %v3115_v10 = vshll.u32 %v2743_v18, 16  ;;  %v3119_v46 = vshrl.u32 %v2743_v18, 16  ;;  %v3125_v0 = vshll.u32 %v2744_v28, 16  ;;  %v8671_v62 = vsel %vm14155_vm14, %v8669_v58, %v8670_v51  ;;  %10486 = vmatpush.bf16.msrb.mxu0 %v13417_v42 }
 0x2de   : > { %6168 = vst [vmem:[#allocation3 + $0x50] sm:$0x1] %v6167_v39  ;;  %v5909_v7 = vshrl.u32 %v5786_v52, 16  ;;  %v5912_v27 = vshll.u32 %v5786_v52, 16  ;;  %v5606_v22 = vadd.f32 %v5605_v50, %v5517_v63  ;;  %v12347_v11 = vld [vmem:[#allocation4 + $0x168] sm:$0xf]  ;;  %v5520_v59 = vadd.f32 %v15251_v9, %v14783_v45 }
 0x2df   : > { %v3108_v29 = vrot.slane %v3106_v23, 4  ;;  %v8013_v13 = vld [vmem:[#allocation3 + $0xcc] sm:$0xf]  ;;  %v3111_v43 = vrot.slane %v3109_v55, 5  ;;  %v3117_v63 = vrot.slane %v3115_v10, 5  ;;  %v3121_v6 = vrot.slane %v3119_v46, 4 }
 0x2e0   : > { %v15277_v53 = vpop.f32.mrf.mxu0  ;;  %v15279_v34 = vpop.f32.mrf.mxu2  ;;  %v15281_v49 = vrot.slane %v5909_v7, 7  ;;  %v5695_v60 = vadd.f32 %v15226_v21, %v5606_v22  ;;  %v3127_v33 = vrot.slane %v3125_v0, 5  ;;  %v8014_v1 = vld [vmem:[#allocation3 + $0xd0] sm:$0xf]  ;;  %v13298_v40 = vld [vmem:[#allocation4 + $0x188] sm:$0xf0] }
 0x2e1   : > { %v8015_v25 = vld [vmem:[#allocation3 + $0xd4] sm:$0x1]  ;;  %v12348_v57 = vor.u32 %v13298_v40, %v12347_v11  ;;  %v3112_v58 = vor.u32 %v3111_v43, %v3108_v29  ;;  %v3122_v51 = vor.u32 %v3121_v6, %v3117_v63  ;;  %v8377_v48 = vshrl.u32 %v8013_v13, 16  ;;  %v377_v31 = vld [vmem:[#allocation3 + $0x60] sm:$0x1]  ;;  %v13411_v39 = vld [vmem:[%s16756_s3 + $0x90] sm:$0xff] }
 0x2e2   : > { %v5914_v15 = vor.u32 %v5912_v27, %v15281_v49  ;;  %v5915_v2 = vrot.slane %v15281_v49, 4  ;;  %v5755_v32 = vmax.f32 %v5695_v60, 0.0  ;;  %v13176_v21 = vld [vmem:[#allocation4 + $0x478] sm:$0xf0]  ;;  %v8380_v45 = vshll.u32 %v8013_v13, 16  ;;  %10395 = vmatpush.bf16.msrb.mxu3 %v13411_v39 }
 0x2e3   : > { %v11828_v56 = vor.u32 %v13176_v21, %v11827_v35  ;;  %8735 = vst [vmem:[#allocation4 + $0x47c] sm:$0xf] %v8671_v62  ;;  %v13249_v9 = vld [vmem:[#allocation4 + $0x4] sm:$0xf]  ;;  %v13410_v50 = vld [vmem:[%s16756_s3 + $0x88] sm:$0xff]  ;;  %10245 = vmatmul.bf16.gmra.mxu1 %v12348_v57  ;;  %v3113_v28 = vrot.slane %v3112_v58, 4 }
 0x2e4   : > { %v6170_v52 = vsel %vm13671_vm10, %v5914_v15, %v6169_v5  ;;  %v5787_v18 = vpack.c.bf16 %v5755_v32, %v5755_v32  ;;  %v3123_v7 = vrot.slane %v3122_v51, 4  ;;  %v8379_v27 = vrot.slane %v8377_v48, 4  ;;  %v12169_v10 = vld [vmem:[#allocation4 + $0x24] sm:$0xf0]  ;;  %v6173_v46 = vld [vmem:[#allocation3 + $0x5c] sm:$0x1] }
 0x2e5   : > { %6171 = vst [vmem:[#allocation3 + $0x54] sm:$0xf] %v6170_v52  ;;  %v8386_v22 = vshll.u32 %v8014_v1, 16  ;;  %v5608_v23 = vpop.f32.mrf.mxu3  ;;  %5736 = vmatmul.bf16.gmra.mxu0 %v11828_v56  ;;  %v8382_v35 = vrot.slane %v8380_v45, 5  ;;  %v8390_v55 = vshrl.u32 %v8014_v1, 16  ;;  %v3118_v0 = vsel %vm13693_vm11, %v3113_v28, %v3117_v63  ;;  %v13409_v63 = vld [vmem:[%s16756_s3 + $0x80] sm:$0xff] }
 0x2e6   : > { %v5917_v42 = vshrl.u32 %v5787_v18, 16  ;;  %v5920_v5 = vshll.u32 %v5787_v18, 16  ;;  %v3128_v62 = vsel %vm13693_vm11, %v3123_v7, %v3127_v33  ;;  %v8396_v11 = vshll.u32 %v8015_v25, 16  ;;  %v7071_v13 = vld [vmem:[#allocation3 + $0xc] sm:$0xf]  ;;  %10396 = vmatpush.bf16.msrb.mxu3 %v13410_v50 }
 0x2e7   : > { %v8388_v60 = vrot.slane %v8386_v22, 5  ;;  %3191 = vst [vmem:[#allocation4 + $0x454] sm:$0xf] %v3118_v0  ;;  %v8383_v15 = vor.u32 %v8382_v35, %v8379_v27  ;;  %v8392_v32 = vrot.slane %v8390_v55, 4  ;;  %v378_v1 = vsel %vm13588_vm4, 0, %v377_v31  ;;  %v13429_v58 = vld [vmem:[%s16756_s3 + $0x120] sm:$0xff] }
 0x2e8   : > { %v15302_v29 = vpop.f32.mrf.mxu0  ;;  %v5524_v43 = vpop.f32.mrf.mxu2  ;;  %v5919_v6 = vrot.slane %v5917_v42, 7  ;;  %v5433_v33 = vadd.f32 %v14787_v30, %v14799_v38  ;;  %3192 = vst [vmem:[#allocation4 + $0x478] sm:$0xf] %v3128_v62  ;;  %v8398_v40 = vrot.slane %v8396_v11, 5  ;;  %v5609_v25 = vadd.f32 %v5608_v23, %v5520_v59  ;;  %v431_v57 = vld [vmem:[#allocation3 + $0x68] sm:$0x1]  ;;  %10571 = vmatpush.bf16.msrb.mxu1 %v13429_v58 }
 0x2e9   : > { %v12172_v21 = vor.u32 %v13249_v9, %v12169_v10  ;;  %v8384_v31 = vrot.slane %v8383_v15, 4  ;;  %v8393_v39 = vor.u32 %v8392_v32, %v8388_v60  ;;  %379 = vst [vmem:[#allocation3 + $0x60] sm:$0x1] %v378_v1  ;;  %v432_v30 = vsel %vm13602_vm5, 0, %v431_v57  ;;  %v6251_v45 = vld [vmem:[#allocation3 + $0x48] sm:$0xf] }
 0x2ea   : > { %v5922_v51 = vor.u32 %v5920_v5, %v5919_v6  ;;  %v5924_v48 = vrot.slane %v5919_v6, 4  ;;  %v5698_v52 = vadd.f32 %v15249_v4, %v5609_v25  ;;  %7103 = vst [vmem:[#allocation4 + $0xc] sm:$0xf] %v7071_v13  ;;  %v5522_v18 = vadd.f32 %v15279_v34, %v5433_v33  ;;  %v6252_v28 = vld [vmem:[#allocation3 + $0x4c] sm:$0xf]  ;;  %10397 = vmatpush.bf16.msrb.mxu3 %v13409_v63 }
 0x2eb   : > { %v8394_v56 = vrot.slane %v8393_v39, 4  ;;  %10309 = vmatmul.bf16.vlgmr.msrb.gmra.mxu2 %v12172_v21  ;;  %433 = vst [vmem:[#allocation3 + $0x68] sm:$0x1] %v432_v30  ;;  %v8389_v4 = vsel %vm13693_vm11, %v8384_v31, %v8388_v60  ;;  %v380_v7 = vld [vmem:[#allocation3 + $0x6c] sm:$0x1]  ;;  %v5525_v6 = vadd.f32 %v5524_v43, %v14810_v36 }
 0x2ec   : > { %v5923_v38 = vsel %vm13632_vm7, %v5915_v2, %v5922_v51  ;;  %v6174_v59 = vsel %vm13588_vm4, %v5924_v48, %v6173_v46  ;;  %v5756_v9 = vmax.f32 %v5698_v52, 0.0  ;;  %v6306_v27 = vld [vmem:[#allocation3 + $0xc] sm:$0xf]  ;;  %v12177_v23 = vld [vmem:[#allocation4 + $0x2c] sm:$0xf0]  ;;  %v381_v46 = vsel %vm13588_vm4, 0, %v380_v7 }
 0x2ed   : > { %6172 = vst [vmem:[#allocation3 + $0x58] sm:$0xf] %v5923_v38  ;;  %v5610_v50 = vpop.f32.mrf.mxu3  ;;  %v8399_v49 = vsel %vm13693_vm11, %v8394_v56, %v8398_v40  ;;  %v6376_v35 = vshrl.u32 %v6306_v27, 16  ;;  %v6307_v60 = vld [vmem:[#allocation3 + $0x10] sm:$0xf]  ;;  %v6379_v33 = vshll.u32 %v6306_v27, 16 }
 0x2ee   : > { %6175 = vst [vmem:[#allocation3 + $0x5c] sm:$0x1] %v6174_v59  ;;  %v5611_v2 = vadd.f32 %v5610_v50, %v5522_v18  ;;  %v13171_v22 = vld [vmem:[#allocation4 + $0x454] sm:$0xf]  ;;  %v5788_v34 = vpack.c.bf16 %v5756_v9, %v5756_v9  ;;  %v6308_v25 = vld [vmem:[#allocation3 + $0x14] sm:$0x1] }
 0x2ef   : > { %6283 = vst [vmem:[#allocation4 + $0x1b0] sm:$0xf] %v6251_v45  ;;  %v11821_v55 = vld [vmem:[#allocation4 + $0x474] sm:$0xf0]  ;;  %v6378_v63 = vrot.slane %v6376_v35, 4  ;;  %v6385_v21 = vshll.u32 %v6307_v60, 16 }
 0x2f0   : > { %v15328_v42 = vpop.f32.mrf.mxu0  ;;  %v15330_v5 = vpop.f32.mrf.mxu2  ;;  %8462 = vst [vmem:[#allocation4 + $0x454] sm:$0xf] %v8389_v4  ;;  %v5700_v10 = vadd.f32 %v15277_v53, %v5611_v2  ;;  %v11824_v0 = vor.u32 %v13171_v22, %v11821_v55  ;;  %v5926_v62 = vshrl.u32 %v5788_v34, 16  ;;  %v6176_v11 = vld [vmem:[#allocation3 + $0x60] sm:$0xf]  ;;  %v5929_v1 = vshll.u32 %v5788_v34, 16 }
 0x2f1   : > { %8463 = vst [vmem:[#allocation4 + $0x478] sm:$0xf] %v8399_v49  ;;  %v13250_v13 = vld [vmem:[#allocation4 + $0xc] sm:$0xf]  ;;  %v6389_v57 = vshrl.u32 %v6307_v60, 16  ;;  %v6381_v31 = vrot.slane %v6379_v33, 5  ;;  %v5438_v22 = vadd.f32 %v14814_v17, %v14823_v41 }
 0x2f2   : > { %v5757_v15 = vmax.f32 %v5700_v10, 0.0  ;;  %6284 = vst [vmem:[#allocation4 + $0x1d4] sm:$0xf] %v6252_v28  ;;  %5647 = vmatmul.bf16.gmra.mxu3 %v11824_v0  ;;  %v5928_v32 = vrot.slane %v5926_v62, 7  ;;  %v12180_v53 = vor.u32 %v13250_v13, %v12177_v23  ;;  %v7073_v58 = vld [vmem:[#allocation3 + $0x18] sm:$0xf] }
 0x2f3   : > { %382 = vst [vmem:[#allocation3 + $0x6c] sm:$0x1] %v381_v46  ;;  %v6387_v43 = vrot.slane %v6385_v21, 5  ;;  %v6395_v52 = vshll.u32 %v6308_v25, 16  ;;  %v7074_v30 = vld [vmem:[#allocation3 + $0x1c] sm:$0xf]  ;;  %v6382_v4 = vor.u32 %v6381_v31, %v6378_v63 }
 0x2f4   : > { %v5789_v40 = vpack.c.bf16 %v5757_v15, %v5757_v15  ;;  %v5931_v51 = vor.u32 %v5929_v1, %v5928_v32  ;;  %v6180_v56 = vld [vmem:[#allocation3 + $0x68] sm:$0x1]  ;;  %v6391_v9 = vrot.slane %v6389_v57, 4  ;;  %7105 = vst [vmem:[#allocation4 + $0x54] sm:$0xf] %v7073_v58  ;;  %v5932_v34 = vrot.slane %v5928_v32, 4 }
 0x2f5   : > { %v5613_v48 = vpop.f32.mrf.mxu3  ;;  %10487 = vmatmul.bf16.vlgmr.msrb.gmra.mxu0 %v12180_v53  ;;  %v434_v28 = vld [vmem:[#allocation3 + $0x74] sm:$0x1]  ;;  %v6383_v35 = vrot.slane %v6382_v4, 4  ;;  %7106 = vst [vmem:[#allocation4 + $0x78] sm:$0xf] %v7074_v30  ;;  %v6397_v15 = vrot.slane %v6395_v52, 5 }
 0x2f6   : > { %v5934_v39 = vshrl.u32 %v5789_v40, 16  ;;  %v5614_v36 = vadd.f32 %v5613_v48, %v5525_v6  ;;  %v6177_v38 = vsel %vm13671_vm10, %v5931_v51, %v6176_v11  ;;  %v5937_v59 = vshll.u32 %v5789_v40, 16  ;;  %v12383_v18 = vld [vmem:[#allocation4 + $0x1b0] sm:$0xf]  ;;  %v6253_v27 = vld [vmem:[#allocation3 + $0x54] sm:$0xf] }
 0x2f7   : > { %6178 = vst [vmem:[#allocation3 + $0x60] sm:$0xf] %v6177_v38  ;;  %v435_v7 = vsel %vm13602_vm5, 0, %v434_v28  ;;  %v6392_v55 = vor.u32 %v6391_v9, %v6387_v43  ;;  %v12175_v62 = vld [vmem:[#allocation4 + $0x8] sm:$0xf]  ;;  %v6388_v13 = vsel %vm13693_vm11, %v6383_v35, %v6387_v43 }
 0x2f8   : > { %v15338_v45 = vpop.f32.mrf.mxu0  ;;  %v15340_v50 = vpop.f32.mrf.mxu2  ;;  %v5936_v49 = vrot.slane %v5934_v39, 7  ;;  %v5703_v2 = vadd.f32 %v15302_v29, %v5614_v36  ;;  %v13254_v60 = vld [vmem:[#allocation4 + $0x28] sm:$0xf0]  ;;  %436 = vst [vmem:[#allocation3 + $0x74] sm:$0x1] %v435_v7  ;;  %v5527_v29 = vadd.f32 %v15330_v5, %v5438_v22 }
 0x2f9   : > { %v13307_v23 = vld [vmem:[#allocation4 + $0x1d0] sm:$0xf0]  ;;  %v6393_v6 = vrot.slane %v6392_v55, 4  ;;  %v6254_v17 = vld [vmem:[#allocation3 + $0x58] sm:$0xf]  ;;  %v12176_v51 = vor.u32 %v13254_v60, %v12175_v62 }
 0x2fa   : > { %v5939_v10 = vor.u32 %v5937_v59, %v5936_v49  ;;  %v5941_v46 = vrot.slane %v5936_v49, 4  ;;  %v12384_v0 = vor.u32 %v13307_v23, %v12383_v18  ;;  %v5758_v11 = vmax.f32 %v5703_v2, 0.0  ;;  %6285 = vst [vmem:[#allocation4 + $0x1f8] sm:$0xf] %v6253_v27  ;;  %v6802_v63 = vld [vmem:[#allocation3 + $0xc] sm:$0xe] }
 0x2fb   : > { %6769 = vst [vmem:[#allocation4 + $0x4c] sm:$0xf] %v6388_v13  ;;  %v6803_v33 = vld [vmem:[#allocation3 + $0x10] sm:$0xf]  ;;  %v6398_v5 = vsel %vm13693_vm11, %v6393_v6, %v6397_v15  ;;  %v6804_v40 = vld [vmem:[#allocation3 + $0x14] sm:$0x1]  ;;  %v5530_v23 = vadd.f32 %v15340_v50, %v14839_v47 }
 0x2fc   : > { %v5940_v41 = vsel %vm13632_vm7, %v5932_v34, %v5939_v10  ;;  %v6181_v32 = vsel %vm13588_vm4, %v5941_v46, %v6180_v56  ;;  %10250 = vmatmul.bf16.gmra.mxu1 %v12384_v0  ;;  %v5790_v1 = vpack.c.bf16 %v5758_v11, %v5758_v11  ;;  %v12118_v25 = vrot.slane %v6802_v63, 9  ;;  %v6183_v48 = vld [vmem:[#allocation3 + $0x6c] sm:$0xf]  ;;  %6770 = vst [vmem:[#allocation4 + $0x70] sm:$0xf] %v6398_v5  ;;  %v13428_v56 = vld [vmem:[%s16756_s3 + $0x118] sm:$0xff] }
 0x2fd   : > { %6179 = vst [vmem:[#allocation3 + $0x64] sm:$0xf] %v5940_v41  ;;  %v5615_v53 = vpop.f32.mrf.mxu3  ;;  %v6904_v21 = vrot.slane %v6803_v33, 5  ;;  %v6907_v43 = vrot.slane %v6804_v40, 5  ;;  %v12213_v18 = vld [vmem:[#allocation4 + $0x74] sm:$0xf0]  ;;  %10572 = vmatpush.bf16.msrb.mxu1 %v13428_v56 }
 0x2fe   : > { %6182 = vst [vmem:[#allocation3 + $0x68] sm:$0x1] %v6181_v32  ;;  %v5943_v57 = vshrl.u32 %v5790_v1, 16  ;;  %v5616_v58 = vadd.f32 %v5615_v53, %v5527_v29  ;;  %v5946_v38 = vshll.u32 %v5790_v1, 16  ;;  %v383_v9 = vld [vmem:[#allocation3 + $0x78] sm:$0x1]  ;;  %v15377_v29 = vpop.f32.mrf.mxu1 }
 0x2ff   : > { %v6905_v39 = vsel %vm14155_vm14, %v12118_v25, %v6904_v21  ;;  %v6906_v36 = vrot.slane %v6904_v21, 4  ;;  %6286 = vst [vmem:[#allocation4 + $0x21c] sm:$0xf] %v6254_v17  ;;  %v13259_v2 = vld [vmem:[#allocation4 + $0x54] sm:$0xf] }
 0x300   : > { %v15356_v31 = vpop.f32.mrf.mxu0  ;;  %v15360_v52 = vpop.f32.mrf.mxu2  ;;  %v15362_v30 = vrot.slane %v5943_v57, 7  ;;  %v5705_v59 = vadd.f32 %v15328_v42, %v5616_v58  ;;  %7041 = vst [vmem:[#allocation4 + $0x50] sm:$0xf] %v6905_v39  ;;  %v384_v42 = vsel %vm13588_vm4, 0, %v383_v9  ;;  %v6309_v7 = vld [vmem:[#allocation3 + $0x18] sm:$0xf]  ;;  %v12216_v34 = vor.u32 %v13259_v2, %v12213_v18 }
 0x301   : > { %v6908_v4 = vsel %vm14155_vm14, %v6906_v36, %v6907_v43  ;;  %385 = vst [vmem:[#allocation3 + $0x78] sm:$0x1] %v384_v42  ;;  %v6310_v55 = vld [vmem:[#allocation3 + $0x1c] sm:$0xf]  ;;  %v12419_v10 = vld [vmem:[#allocation4 + $0x1f8] sm:$0xf]  ;;  %v5443_v58 = vadd.f32 %v14843_v8, %v14855_v54 }
 0x302   : > { %v5948_v28 = vor.u32 %v5946_v38, %v15362_v30  ;;  %v5759_v49 = vmax.f32 %v5705_v59, 0.0  ;;  %7042 = vst [vmem:[#allocation4 + $0x74] sm:$0xf] %v6908_v4  ;;  %10398 = vmatmul.bf16.vlgmr.msrb.gmra.mxu3 %v12176_v51  ;;  %v13258_v22 = vld [vmem:[#allocation4 + $0x4c] sm:$0xf]  ;;  %v6400_v0 = vshrl.u32 %v6309_v7, 16 }
 0x303   : > { %v6403_v62 = vshll.u32 %v6309_v7, 16  ;;  %v6409_v60 = vshll.u32 %v6310_v55, 16  ;;  %v6413_v11 = vshrl.u32 %v6310_v55, 16  ;;  %v12205_v13 = vld [vmem:[#allocation4 + $0x6c] sm:$0xf0]  ;;  %v5949_v51 = vrot.slane %v15362_v30, 4 }
 0x304   : > { %v6184_v27 = vsel %vm13671_vm10, %v5948_v28, %v6183_v48  ;;  %v5791_v35 = vpack.c.bf16 %v5759_v49, %v5759_v49  ;;  %v6311_v41 = vld [vmem:[#allocation3 + $0x20] sm:$0x1]  ;;  %v12208_v32 = vor.u32 %v13258_v22, %v12205_v13  ;;  %v6402_v1 = vrot.slane %v6400_v0, 4  ;;  %v7075_v57 = vld [vmem:[#allocation3 + $0x24] sm:$0xf] }
 0x305   : > { %6185 = vst [vmem:[#allocation3 + $0x6c] sm:$0xf] %v6184_v27  ;;  %v5618_v46 = vpop.f32.mrf.mxu3  ;;  %10492 = vmatmul.bf16.gmra.mxu0 %v12216_v34  ;;  %v6405_v63 = vrot.slane %v6403_v62, 5  ;;  %v6411_v33 = vrot.slane %v6409_v60, 5  ;;  %v6415_v21 = vrot.slane %v6413_v11, 4  ;;  %v6419_v36 = vshll.u32 %v6311_v41, 16 }
 0x306   : > { %v5951_v6 = vshrl.u32 %v5791_v35, 16  ;;  %v5954_v15 = vshll.u32 %v5791_v35, 16  ;;  %v5619_v17 = vadd.f32 %v5618_v46, %v5530_v23  ;;  %v13316_v47 = vld [vmem:[#allocation4 + $0x218] sm:$0xf0]  ;;  %10314 = vmatmul.bf16.gmra.mxu2 %v12208_v32  ;;  %v7076_v43 = vld [vmem:[#allocation3 + $0x28] sm:$0xf]  ;;  %v5532_v4 = vadd.f32 %v15360_v52, %v5443_v58  ;;  %v15396_v35 = vpop.f32.mrf.mxu1 }
 0x307   : > { %v12420_v40 = vor.u32 %v13316_v47, %v12419_v10  ;;  %v6187_v48 = vld [vmem:[#allocation3 + $0x74] sm:$0x1]  ;;  %v6406_v39 = vor.u32 %v6405_v63, %v6402_v1  ;;  %7107 = vst [vmem:[#allocation4 + $0x9c] sm:$0xf] %v7075_v57  ;;  %v437_v18 = vld [vmem:[#allocation3 + $0x80] sm:$0x1]  ;;  %v6416_v9 = vor.u32 %v6415_v21, %v6411_v33 }
 0x308   : > { %v15379_v50 = vpop.f32.mrf.mxu0  ;;  %v15381_v5 = vpop.f32.mrf.mxu2  ;;  %v5953_v53 = vrot.slane %v5951_v6, 7  ;;  %v5708_v25 = vadd.f32 %v15338_v45, %v5619_v17  ;;  %7108 = vst [vmem:[#allocation4 + $0xc0] sm:$0xf] %v7076_v43  ;;  %v438_v8 = vsel %vm13602_vm5, 0, %v437_v18  ;;  %v6255_v2 = vld [vmem:[#allocation3 + $0x60] sm:$0xf] }
 0x309   : > { %v6407_v45 = vrot.slane %v6406_v39, 4  ;;  %v13263_v28 = vld [vmem:[#allocation4 + $0x70] sm:$0xf0]  ;;  %439 = vst [vmem:[#allocation3 + $0x80] sm:$0x1] %v438_v8  ;;  %v6417_v42 = vrot.slane %v6416_v9, 4  ;;  %v5535_v43 = vadd.f32 %v15381_v5, %v14866_v26 }
 0x30a   : > { %v5956_v38 = vor.u32 %v5954_v15, %v5953_v53  ;;  %v5958_v59 = vrot.slane %v5953_v53, 4  ;;  %v5760_v56 = vmax.f32 %v5708_v25, 0.0  ;;  %v6421_v7 = vrot.slane %v6419_v36, 5  ;;  %v6256_v22 = vld [vmem:[#allocation3 + $0x64] sm:$0xf] }
 0x30b   : > { %v6412_v52 = vsel %vm13693_vm11, %v6407_v45, %v6411_v33  ;;  %v6805_v34 = vld [vmem:[#allocation3 + $0x18] sm:$0xe]  ;;  %v12211_v23 = vld [vmem:[#allocation4 + $0x50] sm:$0xf]  ;;  %v6806_v46 = vld [vmem:[#allocation3 + $0x1c] sm:$0xf] }
 0x30c   : > { %v5957_v54 = vsel %vm13632_vm7, %v5949_v51, %v5956_v38  ;;  %v6188_v30 = vsel %vm13588_vm4, %v5958_v59, %v6187_v48  ;;  %10255 = vmatmul.bf16.gmra.mxu1 %v12420_v40  ;;  %v5792_v49 = vpack.c.bf16 %v5760_v56, %v5760_v56  ;;  %v6190_v0 = vld [vmem:[#allocation3 + $0x78] sm:$0xf]  ;;  %v6422_v62 = vsel %vm13693_vm11, %v6417_v42, %v6421_v7  ;;  %v6807_v11 = vld [vmem:[#allocation3 + $0x20] sm:$0x1]  ;;  %v386_v47 = vld [vmem:[#allocation3 + $0x84] sm:$0x1] }
 0x30d   : > { %6186 = vst [vmem:[#allocation3 + $0x70] sm:$0xf] %v5957_v54  ;;  %v5620_v27 = vpop.f32.mrf.mxu3  ;;  %v12119_v13 = vrot.slane %v6805_v34, 9  ;;  %v6911_v6 = vrot.slane %v6806_v46, 5  ;;  %v12212_v1 = vor.u32 %v13263_v28, %v12211_v23  ;;  %v6914_v40 = vrot.slane %v6807_v11, 5  ;;  %v16826_v11 = vld [vmem:[#allocation7_spill] sm:$0xff] }
 0x30e   : > { %6189 = vst [vmem:[#allocation3 + $0x74] sm:$0x1] %v6188_v30  ;;  %v5960_v55 = vshrl.u32 %v5792_v49, 16  ;;  %v5621_v10 = vadd.f32 %v5620_v27, %v5532_v4  ;;  %v5963_v41 = vshll.u32 %v5792_v49, 16  ;;  %v13268_v63 = vld [vmem:[#allocation4 + $0x9c] sm:$0xf]  ;;  %v15423_v23 = vpop.f32.mrf.mxu1 }
 0x30f   : > { %6771 = vst [vmem:[#allocation4 + $0x94] sm:$0xf] %v6412_v52  ;;  %v6912_v33 = vsel %vm14155_vm14, %v12119_v13, %v6911_v6  ;;  %v6913_v53 = vrot.slane %v6911_v6, 4  ;;  %v12249_v21 = vld [vmem:[#allocation4 + $0xbc] sm:$0xf0]  ;;  %v387_v51 = vsel %vm13588_vm4, 0, %v386_v47  ;;  %v5448_v13 = vadd.f32 %v16826_v11, %v14879_v44 }
 0x310   : > { %v15400_v60 = vpop.f32.mrf.mxu0  ;;  %v15402_v15 = vpop.f32.mrf.mxu2  ;;  %v15404_v17 = vrot.slane %v5960_v55, 7  ;;  %6772 = vst [vmem:[#allocation4 + $0xb8] sm:$0xf] %v6422_v62  ;;  %v5710_v32 = vadd.f32 %v15356_v31, %v5621_v10  ;;  %v6312_v48 = vld [vmem:[#allocation3 + $0x24] sm:$0xf]  ;;  %v12252_v36 = vor.u32 %v13268_v63, %v12249_v21 }
 0x311   : > { %6287 = vst [vmem:[#allocation4 + $0x240] sm:$0xf] %v6255_v2  ;;  %v6915_v31 = vsel %vm14155_vm14, %v6913_v53, %v6914_v40  ;;  %v6313_v59 = vld [vmem:[#allocation3 + $0x28] sm:$0xf]  ;;  %v6314_v56 = vld [vmem:[#allocation3 + $0x2c] sm:$0x1]  ;;  %v5537_v21 = vadd.f32 %v15402_v15, %v5448_v13 }
 0x312   : > { %v5965_v25 = vor.u32 %v5963_v41, %v15404_v17  ;;  %v5761_v57 = vmax.f32 %v5710_v32, 0.0  ;;  %6288 = vst [vmem:[#allocation4 + $0x264] sm:$0xf] %v6256_v22  ;;  %10403 = vmatmul.bf16.gmra.mxu3 %v12212_v1  ;;  %v5966_v58 = vrot.slane %v15404_v17, 4  ;;  %v6424_v4 = vshrl.u32 %v6312_v48, 16 }
 0x313   : > { %7043 = vst [vmem:[#allocation4 + $0x98] sm:$0xf] %v6912_v33  ;;  %v6427_v45 = vshll.u32 %v6312_v48, 16  ;;  %v6433_v9 = vshll.u32 %v6313_v59, 16  ;;  %v6437_v8 = vshrl.u32 %v6313_v59, 16 }
 0x314   : > { %v6191_v39 = vsel %vm13671_vm10, %v5965_v25, %v6190_v0  ;;  %v5793_v38 = vpack.c.bf16 %v5761_v57, %v5761_v57  ;;  %7044 = vst [vmem:[#allocation4 + $0xbc] sm:$0xf] %v6915_v31  ;;  %v6194_v52 = vld [vmem:[#allocation3 + $0x80] sm:$0x1]  ;;  %v6426_v26 = vrot.slane %v6424_v4, 4  ;;  %v6443_v0 = vshll.u32 %v6314_v56, 16 }
 0x315   : > { %6192 = vst [vmem:[#allocation3 + $0x78] sm:$0xf] %v6191_v39  ;;  %v5623_v18 = vpop.f32.mrf.mxu3  ;;  %10497 = vmatmul.bf16.gmra.mxu0 %v12252_v36  ;;  %v6429_v5 = vrot.slane %v6427_v45, 5  ;;  %v6435_v7 = vrot.slane %v6433_v9, 5  ;;  %v6439_v27 = vrot.slane %v6437_v8, 4 }
 0x316   : > { %v13267_v54 = vld [vmem:[#allocation4 + $0x94] sm:$0xf]  ;;  %v5968_v30 = vshrl.u32 %v5793_v38, 16  ;;  %v5971_v28 = vshll.u32 %v5793_v38, 16  ;;  %388 = vst [vmem:[#allocation3 + $0x84] sm:$0x1] %v387_v51  ;;  %v5624_v49 = vadd.f32 %v5623_v18, %v5535_v43 }
 0x317   : > { %v12241_v2 = vld [vmem:[#allocation4 + $0xb4] sm:$0xf0]  ;;  %v6430_v17 = vor.u32 %v6429_v5, %v6426_v26  ;;  %v6440_v41 = vor.u32 %v6439_v27, %v6435_v7  ;;  %v7078_v32 = vld [vmem:[#allocation3 + $0x34] sm:$0xf]  ;;  %v6445_v25 = vrot.slane %v6443_v0, 5 }
 0x318   : > { %v15419_v42 = vpop.f32.mrf.mxu0  ;;  %v15421_v22 = vpop.f32.mrf.mxu2  ;;  %v12244_v34 = vor.u32 %v13267_v54, %v12241_v2  ;;  %v5970_v55 = vrot.slane %v5968_v30, 7  ;;  %v12455_v10 = vld [vmem:[#allocation4 + $0x240] sm:$0xf]  ;;  %v5713_v46 = vadd.f32 %v15379_v50, %v5624_v49  ;;  %v7077_v62 = vld [vmem:[#allocation3 + $0x30] sm:$0xf] }
 0x319   : > { %v13325_v6 = vld [vmem:[#allocation4 + $0x260] sm:$0xf0]  ;;  %7109 = vst [vmem:[#allocation4 + $0xe4] sm:$0xf] %v7077_v62  ;;  %v6431_v53 = vrot.slane %v6430_v17, 4  ;;  %v6441_v40 = vrot.slane %v6440_v41, 4 }
 0x31a   : > { %10319 = vmatmul.bf16.gmra.mxu2 %v12244_v34  ;;  %v5973_v47 = vor.u32 %v5971_v28, %v5970_v55  ;;  %v5975_v1 = vrot.slane %v5970_v55, 4  ;;  %v12456_v63 = vor.u32 %v13325_v6, %v12455_v10  ;;  %v5762_v33 = vmax.f32 %v5713_v46, 0.0  ;;  %7110 = vst [vmem:[#allocation4 + $0x108] sm:$0xf] %v7078_v32  ;;  %v440_v31 = vld [vmem:[#allocation3 + $0x8c] sm:$0x1] }
 0x31b   : > { %v13272_v51 = vld [vmem:[#allocation4 + $0xb8] sm:$0xf0]  ;;  %v6436_v48 = vsel %vm13693_vm11, %v6431_v53, %v6435_v7  ;;  %v6446_v39 = vsel %vm13693_vm11, %v6441_v40, %v6445_v25  ;;  %v6257_v43 = vld [vmem:[#allocation3 + $0x6c] sm:$0xf]  ;;  %v441_v59 = vsel %vm13602_vm5, 0, %v440_v31  ;;  %v16827_v46 = vld [vmem:[#allocation5_spill] sm:$0xff] }
 0x31c   : > { %v5974_v50 = vsel %vm13632_vm7, %v5966_v58, %v5973_v47  ;;  %v6195_v44 = vsel %vm13588_vm4, %v5975_v1, %v6194_v52  ;;  %10260 = vmatmul.bf16.gmra.mxu1 %v12456_v63  ;;  %v5794_v57 = vpack.c.bf16 %v5762_v33, %v5762_v33  ;;  %v12247_v58 = vld [vmem:[#allocation4 + $0x98] sm:$0xf]  ;;  %v6808_v18 = vld [vmem:[#allocation3 + $0x24] sm:$0xe]  ;;  %6773 = vst [vmem:[#allocation4 + $0xdc] sm:$0xf] %v6436_v48 }
 0x31d   : > { %6193 = vst [vmem:[#allocation3 + $0x7c] sm:$0xf] %v5974_v50  ;;  %v5625_v36 = vpop.f32.mrf.mxu3  ;;  %v6258_v15 = vld [vmem:[#allocation3 + $0x70] sm:$0xf]  ;;  %v6197_v4 = vld [vmem:[#allocation3 + $0x84] sm:$0xf]  ;;  %v12248_v52 = vor.u32 %v13272_v51, %v12247_v58  ;;  %v5540_v0 = vadd.f32 %v15421_v22, %v16827_v46 }
 0x31e   : > { %6196 = vst [vmem:[#allocation3 + $0x80] sm:$0x1] %v6195_v44  ;;  %v5977_v38 = vshrl.u32 %v5794_v57, 16  ;;  %v5626_v56 = vadd.f32 %v5625_v36, %v5537_v21  ;;  %v6809_v9 = vld [vmem:[#allocation3 + $0x28] sm:$0xf]  ;;  %v5980_v30 = vshll.u32 %v5794_v57, 16  ;;  %v15445_v28 = vpop.f32.mrf.mxu1 }
 0x31f   : > { %6774 = vst [vmem:[#allocation4 + $0x100] sm:$0xf] %v6446_v39  ;;  %v6810_v2 = vld [vmem:[#allocation3 + $0x2c] sm:$0x1]  ;;  %v12120_v7 = vrot.slane %v6808_v18, 9  ;;  %v6918_v27 = vrot.slane %v6809_v9, 5 }
 0x320   : > { %v15439_v45 = vpop.f32.mrf.mxu0  ;;  %v15441_v8 = vpop.f32.mrf.mxu2  ;;  %v15443_v54 = vrot.slane %v5977_v38, 7  ;;  %v5715_v49 = vadd.f32 %v15400_v60, %v5626_v56  ;;  %v13277_v26 = vld [vmem:[#allocation4 + $0xe4] sm:$0xf]  ;;  %442 = vst [vmem:[#allocation3 + $0x8c] sm:$0x1] %v441_v59  ;;  %v6921_v11 = vrot.slane %v6810_v2, 5 }
 0x321   : > { %v12285_v5 = vld [vmem:[#allocation4 + $0x104] sm:$0xf0]  ;;  %6289 = vst [vmem:[#allocation4 + $0x288] sm:$0xf] %v6257_v43  ;;  %v389_v10 = vld [vmem:[#allocation3 + $0x90] sm:$0x1]  ;;  %v6919_v60 = vsel %vm14155_vm14, %v12120_v7, %v6918_v27 }
 0x322   : > { %v5982_v34 = vor.u32 %v5980_v30, %v15443_v54  ;;  %v5763_v55 = vmax.f32 %v5715_v49, 0.0  ;;  %10408 = vmatmul.bf16.gmra.mxu3 %v12248_v52  ;;  %6290 = vst [vmem:[#allocation4 + $0x2ac] sm:$0xf] %v6258_v15  ;;  %v6920_v62 = vrot.slane %v6918_v27, 4  ;;  %v6315_v13 = vld [vmem:[#allocation3 + $0x30] sm:$0xf]  ;;  %v12288_v17 = vor.u32 %v13277_v26, %v12285_v5 }
 0x323   : > { %7045 = vst [vmem:[#allocation4 + $0xe0] sm:$0xf] %v6919_v60  ;;  %v390_v32 = vsel %vm13588_vm4, 0, %v389_v10  ;;  %v6316_v47 = vld [vmem:[#allocation3 + $0x34] sm:$0xf]  ;;  %v6448_v63 = vshrl.u32 %v6315_v13, 16 }
 0x324   : > { %v6198_v6 = vsel %vm13671_vm10, %v5982_v34, %v6197_v4  ;;  %v5795_v41 = vpack.c.bf16 %v5763_v55, %v5763_v55  ;;  %v6922_v22 = vsel %vm14155_vm14, %v6920_v62, %v6921_v11  ;;  %v6451_v33 = vshll.u32 %v6315_v13, 16  ;;  %v13427_v40 = vld [vmem:[%s16756_s3 + $0x110] sm:$0xff]  ;;  %v13276_v50 = vld [vmem:[#allocation4 + $0xdc] sm:$0xf]  ;;  %391 = vst [vmem:[#allocation3 + $0x90] sm:$0x1] %v390_v32 }
 0x325   : > { %6199 = vst [vmem:[#allocation3 + $0x84] sm:$0xf] %v6198_v6  ;;  %v5628_v1 = vpop.f32.mrf.mxu3  ;;  %v6457_v53 = vshll.u32 %v6316_v47, 16  ;;  %v5983_v25 = vrot.slane %v15443_v54, 4  ;;  %10502 = vmatmul.bf16.gmra.mxu0 %v12288_v17  ;;  %v6317_v57 = vld [vmem:[#allocation3 + $0x38] sm:$0x1]  ;;  %10573 = vmatpush.bf16.msrb.mxu1 %v13427_v40 }
 0x326   : > { %v5985_v44 = vshrl.u32 %v5795_v41, 16  ;;  %7046 = vst [vmem:[#allocation4 + $0x104] sm:$0xf] %v6922_v22  ;;  %v5629_v21 = vadd.f32 %v5628_v1, %v5540_v0  ;;  %v12277_v31 = vld [vmem:[#allocation4 + $0xfc] sm:$0xf0]  ;;  %v6450_v48 = vrot.slane %v6448_v63, 4  ;;  %v15467_v56 = vpop.f32.mrf.mxu1 }
 0x327   : > { %v6453_v39 = vrot.slane %v6451_v33, 5  ;;  %v12280_v43 = vor.u32 %v13276_v50, %v12277_v31  ;;  %v5988_v38 = vshll.u32 %v5795_v41, 16  ;;  %v6201_v59 = vld [vmem:[#allocation3 + $0x8c] sm:$0x1]  ;;  %v7079_v18 = vld [vmem:[#allocation3 + $0x3c] sm:$0xf] }
 0x328   : > { %v15463_v51 = vpop.f32.mrf.mxu0  ;;  %v15465_v36 = vpop.f32.mrf.mxu2  ;;  %v5987_v58 = vrot.slane %v5985_v44, 7  ;;  %v5718_v15 = vadd.f32 %v15419_v42, %v5629_v21  ;;  %v12491_v4 = vld [vmem:[#allocation4 + $0x288] sm:$0xf]  ;;  %v6459_v54 = vrot.slane %v6457_v53, 5  ;;  %v6461_v30 = vshrl.u32 %v6316_v47, 16  ;;  %v16828_v2 = vld [vmem:[#allocation9_spill] sm:$0xff] }
 0x329   : > { %v6454_v9 = vor.u32 %v6453_v39, %v6450_v48  ;;  %v7080_v49 = vld [vmem:[#allocation3 + $0x40] sm:$0xf]  ;;  %v13334_v27 = vld [vmem:[#allocation4 + $0x2a8] sm:$0xf0]  ;;  %7111 = vst [vmem:[#allocation4 + $0x12c] sm:$0xf] %v7079_v18 }
 0x32a   : > { %v16829_v52 = vld [vmem:[#allocation6_spill] sm:$0xff]  ;;  %10324 = vmatmul.bf16.gmra.mxu2 %v12280_v43  ;;  %v5990_v5 = vor.u32 %v5988_v38, %v5987_v58  ;;  %v5992_v7 = vrot.slane %v5987_v58, 4  ;;  %v5764_v34 = vmax.f32 %v5718_v15, 0.0  ;;  %v12492_v55 = vor.u32 %v13334_v27, %v12491_v4  ;;  %7112 = vst [vmem:[#allocation4 + $0x150] sm:$0xf] %v7080_v49 }
 0x32b   : > { %v5453_v26 = vadd.f32 %v16829_v52, %v16828_v2  ;;  %v6455_v10 = vrot.slane %v6454_v9, 4  ;;  %v6463_v46 = vrot.slane %v6461_v30, 4  ;;  %v6467_v0 = vshll.u32 %v6317_v57, 16  ;;  %v443_v13 = vld [vmem:[#allocation3 + $0x98] sm:$0x1] }
 0x32c   : > { %v5991_v42 = vsel %vm13632_vm7, %v5983_v25, %v5990_v5  ;;  %v6202_v60 = vsel %vm13588_vm4, %v5992_v7, %v6201_v59  ;;  %v5796_v11 = vpack.c.bf16 %v5764_v34, %v5764_v34  ;;  %10265 = vmatmul.bf16.gmra.mxu1 %v12492_v55  ;;  %v444_v41 = vsel %vm13602_vm5, 0, %v443_v13  ;;  %v6259_v47 = vld [vmem:[#allocation3 + $0x78] sm:$0xf]  ;;  %v6260_v25 = vld [vmem:[#allocation3 + $0x7c] sm:$0xf] }
 0x32d   : > { %v5542_v62 = vadd.f32 %v15441_v8, %v5453_v26  ;;  %6200 = vst [vmem:[#allocation3 + $0x88] sm:$0xf] %v5991_v42  ;;  %v6460_v6 = vsel %vm13693_vm11, %v6455_v10, %v6459_v54  ;;  %v6464_v17 = vor.u32 %v6463_v46, %v6459_v54  ;;  %v5630_v32 = vpop.f32.mrf.mxu3  ;;  %v12283_v22 = vld [vmem:[#allocation4 + $0xe0] sm:$0xf]  ;;  %v13281_v1 = vld [vmem:[#allocation4 + $0x100] sm:$0xf0] }
 0x32e   : > { %6203 = vst [vmem:[#allocation3 + $0x8c] sm:$0x1] %v6202_v60  ;;  %v5994_v63 = vshrl.u32 %v5796_v11, 16  ;;  %v6204_v8 = vld [vmem:[#allocation3 + $0x90] sm:$0xf]  ;;  %v6469_v40 = vrot.slane %v6467_v0, 5  ;;  %v15483_v57 = vpop.f32.mrf.mxu1  ;;  %v12284_v39 = vor.u32 %v13281_v1, %v12283_v22 }
 0x32f   : > { %v5631_v33 = vadd.f32 %v5630_v32, %v5542_v62  ;;  %v6465_v53 = vrot.slane %v6464_v17, 4  ;;  %6775 = vst [vmem:[#allocation4 + $0x124] sm:$0xf] %v6460_v6  ;;  %v5997_v21 = vshll.u32 %v5796_v11, 16  ;;  %v6811_v48 = vld [vmem:[#allocation3 + $0x30] sm:$0xe] }
 0x330   : > { %v5546_v50 = vpop.f32.mrf.mxu2  ;;  %v15481_v44 = vrot.slane %v5994_v63, 7  ;;  %445 = vst [vmem:[#allocation3 + $0x98] sm:$0x1] %v444_v41  ;;  %v13286_v58 = vld [vmem:[#allocation4 + $0x12c] sm:$0xf]  ;;  %v15488_v38 = vpop.f32.mrf.mxu0  ;;  %v12121_v54 = vrot.slane %v6811_v48, 9 }
 0x331   : > { %v5720_v31 = vadd.f32 %v15439_v45, %v5631_v33  ;;  %v6470_v43 = vsel %vm13693_vm11, %v6465_v53, %v6469_v40  ;;  %6291 = vst [vmem:[#allocation4 + $0x2d0] sm:$0xf] %v6259_v47  ;;  %v6812_v59 = vld [vmem:[#allocation3 + $0x34] sm:$0xf]  ;;  %v6813_v4 = vld [vmem:[#allocation3 + $0x38] sm:$0x1]  ;;  %v5545_v45 = vadd.f32 %v15465_v36, %v14917_v61 }
 0x332   : > { %v5999_v15 = vor.u32 %v5997_v21, %v15481_v44  ;;  %6776 = vst [vmem:[#allocation4 + $0x148] sm:$0xf] %v6470_v43  ;;  %10413 = vmatmul.bf16.gmra.mxu3 %v12284_v39  ;;  %v12321_v9 = vld [vmem:[#allocation4 + $0x14c] sm:$0xf0]  ;;  %v6925_v30 = vrot.slane %v6812_v59, 5  ;;  %v6928_v26 = vrot.slane %v6813_v4, 5 }
 0x333   : > { %v5765_v18 = vmax.f32 %v5720_v31, 0.0  ;;  %6292 = vst [vmem:[#allocation4 + $0x2f4] sm:$0xf] %v6260_v25  ;;  %v12324_v2 = vor.u32 %v13286_v58, %v12321_v9  ;;  %v392_v5 = vld [vmem:[#allocation3 + $0x9c] sm:$0x1]  ;;  %v16830_v36 = vld [vmem:[#allocation10_spill] sm:$0xff] }
 0x334   : > { %v6205_v49 = vsel %vm13671_vm10, %v5999_v15, %v6204_v8  ;;  %v6926_v7 = vsel %vm14155_vm14, %v12121_v54, %v6925_v30  ;;  %v6927_v27 = vrot.slane %v6925_v30, 4  ;;  %v393_v34 = vsel %vm13588_vm4, 0, %v392_v5  ;;  %v6318_v61 = vld [vmem:[#allocation3 + $0x3c] sm:$0xf]  ;;  %v16831_v10 = vld [vmem:[#allocation8_spill] sm:$0xff] }
 0x335   : > { %v5797_v52 = vpack.c.bf16 %v5765_v18, %v5765_v18  ;;  %6206 = vst [vmem:[#allocation3 + $0x90] sm:$0xf] %v6205_v49  ;;  %v5633_v55 = vpop.f32.mrf.mxu3  ;;  %v5458_v46 = vadd.f32 %v16831_v10, %v16830_v36  ;;  %10507 = vmatmul.bf16.gmra.mxu0 %v12324_v2  ;;  %v6319_v60 = vld [vmem:[#allocation3 + $0x40] sm:$0xf]  ;;  %v6320_v1 = vld [vmem:[#allocation3 + $0x44] sm:$0x1] }
 0x336   : > { %7047 = vst [vmem:[#allocation4 + $0x128] sm:$0xf] %v6926_v7  ;;  %v5634_v42 = vadd.f32 %v5633_v55, %v5545_v45  ;;  %v13285_v62 = vld [vmem:[#allocation4 + $0x124] sm:$0xf]  ;;  %v6929_v6 = vsel %vm14155_vm14, %v6927_v27, %v6928_v26  ;;  %v15503_v47 = vpop.f32.mrf.mxu1  ;;  %v6472_v63 = vshrl.u32 %v6318_v61, 16  ;;  %v6000_v8 = vrot.slane %v15481_v44, 4 }
 0x337   : > { %v6002_v0 = vshrl.u32 %v5797_v52, 16  ;;  %v6005_v11 = vshll.u32 %v5797_v52, 16  ;;  %v6208_v13 = vld [vmem:[#allocation3 + $0x98] sm:$0x1]  ;;  %394 = vst [vmem:[#allocation3 + $0x9c] sm:$0x1] %v393_v34  ;;  %v5547_v32 = vadd.f32 %v5546_v50, %v5458_v46 }
 0x338   : > { %v12527_v41 = vld [vmem:[#allocation4 + $0x2d0] sm:$0xf]  ;;  %7048 = vst [vmem:[#allocation4 + $0x14c] sm:$0xf] %v6929_v6  ;;  %v5723_v22 = vadd.f32 %v15463_v51, %v5634_v42  ;;  %v15506_v33 = vpop.f32.mrf.mxu2  ;;  %v6475_v40 = vshll.u32 %v6318_v61, 16  ;;  %v6481_v25 = vshll.u32 %v6319_v60, 16  ;;  %v15509_v15 = vpop.f32.mrf.mxu0 }
 0x339   : > { %v6004_v17 = vrot.slane %v6002_v0, 7  ;;  %v12313_v53 = vld [vmem:[#allocation4 + $0x144] sm:$0xf0]  ;;  %v6485_v21 = vshrl.u32 %v6319_v60, 16  ;;  %v7081_v50 = vld [vmem:[#allocation3 + $0x48] sm:$0xf] }
 0x33a   : > { %v12316_v31 = vor.u32 %v13285_v62, %v12313_v53  ;;  %v13343_v43 = vld [vmem:[#allocation4 + $0x2f0] sm:$0xf0]  ;;  %v5766_v58 = vmax.f32 %v5723_v22, 0.0  ;;  %v6474_v51 = vrot.slane %v6472_v63, 4  ;;  %v6477_v18 = vrot.slane %v6475_v40, 5 }
 0x33b   : > { %v6007_v48 = vor.u32 %v6005_v11, %v6004_v17  ;;  %v6009_v39 = vrot.slane %v6004_v17, 4  ;;  %v12528_v59 = vor.u32 %v13343_v43, %v12527_v41  ;;  %v6483_v4 = vrot.slane %v6481_v25, 5  ;;  %v7082_v9 = vld [vmem:[#allocation3 + $0x4c] sm:$0xf]  ;;  %7113 = vst [vmem:[#allocation4 + $0x174] sm:$0xf] %v7081_v50 }
 0x33c   : > { %10329 = vmatmul.bf16.gmra.mxu2 %v12316_v31  ;;  %v5798_v54 = vpack.c.bf16 %v5766_v58, %v5766_v58  ;;  %v6487_v30 = vrot.slane %v6485_v21, 4  ;;  %v446_v49 = vld [vmem:[#allocation3 + $0xa4] sm:$0x1]  ;;  %v6478_v2 = vor.u32 %v6477_v18, %v6474_v51  ;;  %v6491_v52 = vshll.u32 %v6320_v1, 16  ;;  %7114 = vst [vmem:[#allocation4 + $0x198] sm:$0xf] %v7082_v9 }
 0x33d   : > { %v6008_v44 = vsel %vm13632_vm7, %v6000_v8, %v6007_v48  ;;  %v6209_v45 = vsel %vm13588_vm4, %v6009_v39, %v6208_v13  ;;  %10270 = vmatmul.bf16.gmra.mxu1 %v12528_v59  ;;  %v447_v26 = vsel %vm13602_vm5, 0, %v446_v49  ;;  %v5635_v5 = vpop.f32.mrf.mxu3  ;;  %v12319_v7 = vld [vmem:[#allocation4 + $0x128] sm:$0xf]  ;;  %v6261_v13 = vld [vmem:[#allocation3 + $0x84] sm:$0xf]  ;;  %v16832_v43 = vld [vmem:[#allocation13_spill] sm:$0xff] }
 0x33e   : > { %6207 = vst [vmem:[#allocation3 + $0x94] sm:$0xf] %v6008_v44  ;;  %v6011_v27 = vshrl.u32 %v5798_v54, 16  ;;  %v6014_v34 = vshll.u32 %v5798_v54, 16  ;;  %v6488_v55 = vor.u32 %v6487_v30, %v6483_v4  ;;  %v5636_v61 = vadd.f32 %v5635_v5, %v5547_v32  ;;  %v6211_v10 = vld [vmem:[#allocation3 + $0x9c] sm:$0xf]  ;;  %v15519_v62 = vpop.f32.mrf.mxu1 }
 0x33f   : > { %6210 = vst [vmem:[#allocation3 + $0x98] sm:$0x1] %v6209_v45  ;;  %v13290_v36 = vld [vmem:[#allocation4 + $0x148] sm:$0xf0]  ;;  %v6479_v46 = vrot.slane %v6478_v2, 4  ;;  %v6493_v0 = vrot.slane %v6491_v52, 5 }
 0x340   : > { %v15517_v42 = vrot.slane %v6011_v27, 7  ;;  %v6489_v60 = vrot.slane %v6488_v55, 4  ;;  %448 = vst [vmem:[#allocation3 + $0xa4] sm:$0x1] %v447_v26  ;;  %v5725_v11 = vadd.f32 %v15488_v38, %v5636_v61  ;;  %v12320_v6 = vor.u32 %v13290_v36, %v12319_v7  ;;  %v6262_v41 = vld [vmem:[#allocation3 + $0x88] sm:$0xf]  ;;  %v5551_v22 = vpop.f32.mrf.mxu2  ;;  %v15533_v18 = vpop.f32.mrf.mxu0 }
 0x341   : > { %v6484_v17 = vsel %vm13693_vm11, %v6479_v46, %v6483_v4  ;;  %6293 = vst [vmem:[#allocation4 + $0x318] sm:$0xf] %v6261_v13  ;;  %v6814_v32 = vld [vmem:[#allocation3 + $0x3c] sm:$0xe]  ;;  %v6815_v53 = vld [vmem:[#allocation3 + $0x40] sm:$0xf] }
 0x342   : > { %v6016_v1 = vor.u32 %v6014_v34, %v15517_v42  ;;  %v6494_v63 = vsel %vm13693_vm11, %v6489_v60, %v6493_v0  ;;  %6777 = vst [vmem:[#allocation4 + $0x16c] sm:$0xf] %v6484_v17  ;;  %v5767_v8 = vmax.f32 %v5725_v11, 0.0  ;;  %10418 = vmatmul.bf16.gmra.mxu3 %v12320_v6  ;;  %v6816_v38 = vld [vmem:[#allocation3 + $0x44] sm:$0x1]  ;;  %v12122_v31 = vrot.slane %v6814_v32, 9 }
 0x343   : > { %6778 = vst [vmem:[#allocation4 + $0x190] sm:$0xf] %v6494_v63  ;;  %v13295_v25 = vld [vmem:[#allocation4 + $0x174] sm:$0xf]  ;;  %v6932_v48 = vrot.slane %v6815_v53, 5  ;;  %v16834_v59 = vld [vmem:[#allocation12_spill] sm:$0xff] }
 0x344   : > { %v6212_v40 = vsel %vm13671_vm10, %v6016_v1, %v6211_v10  ;;  %v5799_v21 = vpack.c.bf16 %v5767_v8, %v5767_v8  ;;  %6294 = vst [vmem:[#allocation4 + $0x33c] sm:$0xf] %v6262_v41  ;;  %v395_v39 = vld [vmem:[#allocation3 + $0xa8] sm:$0x1]  ;;  %v5550_v51 = vadd.f32 %v15506_v33, %v16834_v59  ;;  %v12357_v45 = vld [vmem:[#allocation4 + $0x194] sm:$0xf0] }
 0x345   : > { %v16833_v58 = vld [vmem:[#allocation11_spill] sm:$0xff]  ;;  %6213 = vst [vmem:[#allocation3 + $0x9c] sm:$0xf] %v6212_v40  ;;  %v396_v4 = vsel %vm13588_vm4, 0, %v395_v39  ;;  %v5638_v9 = vpop.f32.mrf.mxu3  ;;  %v6933_v30 = vsel %vm14155_vm14, %v12122_v31, %v6932_v48  ;;  %v6934_v49 = vrot.slane %v6932_v48, 4  ;;  %v6935_v2 = vrot.slane %v6816_v38, 5 }
 0x346   : > { %v5463_v50 = vadd.f32 %v16833_v58, %v16832_v43  ;;  %v6321_v44 = vld [vmem:[#allocation3 + $0x48] sm:$0xf]  ;;  %v6019_v54 = vshrl.u32 %v5799_v21, 16  ;;  %v13426_v52 = vld [vmem:[%s16756_s3 + $0x108] sm:$0xff]  ;;  %v6017_v33 = vrot.slane %v15517_v42, 4  ;;  %v12360_v26 = vor.u32 %v13295_v25, %v12357_v45  ;;  %v15545_v61 = vpop.f32.mrf.mxu1 }
 0x347   : > { %v6022_v5 = vshll.u32 %v5799_v21, 16  ;;  %v6215_v7 = vld [vmem:[#allocation3 + $0xa4] sm:$0x1]  ;;  %7049 = vst [vmem:[#allocation4 + $0x170] sm:$0xf] %v6933_v30  ;;  %v5639_v27 = vadd.f32 %v5638_v9, %v5550_v51  ;;  %v6936_v55 = vsel %vm14155_vm14, %v6934_v49, %v6935_v2  ;;  %v6496_v10 = vshrl.u32 %v6321_v44, 16  ;;  %10574 = vmatpush.bf16.msrb.mxu1 %v13426_v52 }
 0x348   : > { %v6021_v34 = vrot.slane %v6019_v54, 7  ;;  %397 = vst [vmem:[#allocation3 + $0xa8] sm:$0x1] %v396_v4  ;;  %v6322_v36 = vld [vmem:[#allocation3 + $0x4c] sm:$0xf]  ;;  %10512 = vmatmul.bf16.gmra.mxu0 %v12360_v26  ;;  %v5552_v42 = vadd.f32 %v5551_v22, %v5463_v50  ;;  %v6499_v32 = vshll.u32 %v6321_v44, 16  ;;  %v15548_v40 = vpop.f32.mrf.mxu2  ;;  %v15554_v30 = vpop.f32.mrf.mxu0 }
 0x349   : > { %v13294_v46 = vld [vmem:[#allocation4 + $0x16c] sm:$0xf]  ;;  %v12563_v0 = vld [vmem:[#allocation4 + $0x318] sm:$0xf]  ;;  %7050 = vst [vmem:[#allocation4 + $0x194] sm:$0xf] %v6936_v55  ;;  %v5728_v60 = vadd.f32 %v15509_v15, %v5639_v27 }
 0x34a   : > { %v6323_v11 = vld [vmem:[#allocation3 + $0x50] sm:$0x1]  ;;  %v12349_v13 = vld [vmem:[#allocation4 + $0x18c] sm:$0xf0]  ;;  %v6024_v6 = vor.u32 %v6022_v5, %v6021_v34  ;;  %v6026_v17 = vrot.slane %v6021_v34, 4  ;;  %v6498_v41 = vrot.slane %v6496_v10, 4 }
 0x34b   : > { %v12352_v1 = vor.u32 %v13294_v46, %v12349_v13  ;;  %v13352_v63 = vld [vmem:[#allocation4 + $0x338] sm:$0xf0]  ;;  %v5768_v8 = vmax.f32 %v5728_v60, 0.0  ;;  %v6505_v53 = vshll.u32 %v6322_v36, 16  ;;  %v6509_v38 = vshrl.u32 %v6322_v36, 16 }
 0x34c   : > { %v6025_v25 = vsel %vm13632_vm7, %v6017_v33, %v6024_v6  ;;  %v6216_v22 = vsel %vm13588_vm4, %v6026_v17, %v6215_v7  ;;  %v12564_v15 = vor.u32 %v13352_v63, %v12563_v0  ;;  %v6501_v21 = vrot.slane %v6499_v32, 5  ;;  %v7083_v31 = vld [vmem:[#allocation3 + $0x54] sm:$0xf]  ;;  %v7084_v51 = vld [vmem:[#allocation3 + $0x58] sm:$0xf] }
 0x34d   : > { %10334 = vmatmul.bf16.gmra.mxu2 %v12352_v1  ;;  %6214 = vst [vmem:[#allocation3 + $0xa0] sm:$0xf] %v6025_v25  ;;  %v5800_v48 = vpack.c.bf16 %v5768_v8, %v5768_v8  ;;  %v6507_v39 = vrot.slane %v6505_v53, 5  ;;  %v6511_v43 = vrot.slane %v6509_v38, 4  ;;  %v6515_v58 = vshll.u32 %v6323_v11, 16  ;;  %v5640_v50 = vpop.f32.mrf.mxu3 }
 0x34e   : > { %6217 = vst [vmem:[#allocation3 + $0xa4] sm:$0x1] %v6216_v22  ;;  %10275 = vmatmul.bf16.gmra.mxu1 %v12564_v15  ;;  %v6502_v59 = vor.u32 %v6501_v21, %v6498_v41  ;;  %v449_v4 = vld [vmem:[#allocation3 + $0xb0] sm:$0x1]  ;;  %v5641_v9 = vadd.f32 %v5640_v50, %v5552_v42  ;;  %v12355_v44 = vld [vmem:[#allocation4 + $0x170] sm:$0xf]  ;;  %v15561_v10 = vpop.f32.mrf.mxu1 }
 0x34f   : > { %v6028_v45 = vshrl.u32 %v5800_v48, 16  ;;  %v6031_v54 = vshll.u32 %v5800_v48, 16  ;;  %v6512_v49 = vor.u32 %v6511_v43, %v6507_v39  ;;  %v15556_v2 = vld [vmem:[#allocation3 + $0xc] sm:$0xf]  ;;  %v6218_v33 = vld [vmem:[#allocation3 + $0xa8] sm:$0xf] }
 0x350   : > { %v13299_v52 = vld [vmem:[#allocation4 + $0x190] sm:$0xf0]  ;;  %v6503_v26 = vrot.slane %v6502_v59, 4  ;;  %7115 = vst [vmem:[#allocation4 + $0x1bc] sm:$0xf] %v7083_v31  ;;  %v450_v5 = vsel %vm13602_vm5, 0, %v449_v4  ;;  %v5730_v7 = vadd.f32 %v15533_v18, %v5641_v9  ;;  %v15570_v53 = vpop.f32.mrf.mxu2 }
 0x351   : > { %v12356_v27 = vor.u32 %v13299_v52, %v12355_v44  ;;  %v6030_v34 = vrot.slane %v6028_v45, 7  ;;  %v6513_v55 = vrot.slane %v6512_v49, 4  ;;  %v6517_v36 = vrot.slane %v6515_v58, 5  ;;  %7116 = vst [vmem:[#allocation4 + $0x1e0] sm:$0xf] %v7084_v51  ;;  %v15576_v51 = vpop.f32.mrf.mxu0 }
 0x352   : > { %v6508_v46 = vsel %vm13693_vm11, %v6503_v26, %v6507_v39  ;;  %451 = vst [vmem:[#allocation3 + $0xb0] sm:$0x1] %v450_v5  ;;  %v5769_v0 = vmax.f32 %v5730_v7, 0.0  ;;  %v6263_v42 = vld [vmem:[#allocation3 + $0x90] sm:$0xf]  ;;  %v7184_v32 = vshrl.u32 %v15556_v2, 16  ;;  %v5555_v26 = vadd.f32 %v15548_v40, %v14968_v14 }
 0x353   : > { %10423 = vmatmul.bf16.gmra.mxu3 %v12356_v27  ;;  %v6033_v60 = vor.u32 %v6031_v54, %v6030_v34  ;;  %v6518_v11 = vsel %vm13693_vm11, %v6513_v55, %v6517_v36  ;;  %6779 = vst [vmem:[#allocation4 + $0x1b4] sm:$0xf] %v6508_v46  ;;  %v6264_v18 = vld [vmem:[#allocation3 + $0x94] sm:$0xf]  ;;  %v6817_v13 = vld [vmem:[#allocation3 + $0x48] sm:$0xe] }
 0x354   : > { %6780 = vst [vmem:[#allocation4 + $0x1d8] sm:$0xf] %v6518_v11  ;;  %v5801_v6 = vpack.c.bf16 %v5769_v0, %v5769_v0  ;;  %v6818_v17 = vld [vmem:[#allocation3 + $0x4c] sm:$0xf]  ;;  %v6819_v41 = vld [vmem:[#allocation3 + $0x50] sm:$0x1] }
 0x355   : > { %v6219_v1 = vsel %vm13671_vm10, %v6033_v60, %v6218_v33  ;;  %6295 = vst [vmem:[#allocation4 + $0x360] sm:$0xf] %v6263_v42  ;;  %v12123_v63 = vrot.slane %v6817_v13, 9  ;;  %v6939_v8 = vrot.slane %v6818_v17, 5  ;;  %v6942_v25 = vrot.slane %v6819_v41, 5 }
 0x356   : > { %6220 = vst [vmem:[#allocation3 + $0xa8] sm:$0xf] %v6219_v1  ;;  %v6036_v38 = vshrl.u32 %v5801_v6, 16  ;;  %v398_v22 = vld [vmem:[#allocation3 + $0xb4] sm:$0x1]  ;;  %v6039_v58 = vshll.u32 %v5801_v6, 16  ;;  %v15582_v5 = vpop.f32.mrf.mxu1 }
 0x357   : > { %v13304_v15 = vld [vmem:[#allocation4 + $0x1bc] sm:$0xf]  ;;  %6296 = vst [vmem:[#allocation4 + $0x384] sm:$0xf] %v6264_v18  ;;  %v6940_v21 = vsel %vm14155_vm14, %v12123_v63, %v6939_v8  ;;  %v6941_v31 = vrot.slane %v6939_v8, 4  ;;  %v399_v48 = vsel %vm13588_vm4, 0, %v398_v22 }
 0x358   : > { %v12393_v39 = vld [vmem:[#allocation4 + $0x1dc] sm:$0xf0]  ;;  %v6038_v43 = vrot.slane %v6036_v38, 7  ;;  %7051 = vst [vmem:[#allocation4 + $0x1b8] sm:$0xf] %v6940_v21  ;;  %v6034_v44 = vrot.slane %v6030_v34, 4 }
 0x359   : > { %v12396_v50 = vor.u32 %v13304_v15, %v12393_v39  ;;  %v6222_v59 = vld [vmem:[#allocation3 + $0xb0] sm:$0x1]  ;;  %v6943_v4 = vsel %vm14155_vm14, %v6941_v31, %v6942_v25  ;;  %400 = vst [vmem:[#allocation3 + $0xb4] sm:$0x1] %v399_v48  ;;  %v6324_v9 = vld [vmem:[#allocation3 + $0x54] sm:$0xf]  ;;  %v5643_v36 = vpop.f32.mrf.mxu3 }
 0x35a   : > { %v6041_v45 = vor.u32 %v6039_v58, %v6038_v43  ;;  %v6043_v54 = vrot.slane %v6038_v43, 4  ;;  %7052 = vst [vmem:[#allocation4 + $0x1dc] sm:$0xf] %v6943_v4  ;;  %v6520_v49 = vshrl.u32 %v6324_v9, 16  ;;  %v13303_v52 = vld [vmem:[#allocation4 + $0x1b4] sm:$0xf]  ;;  %v5644_v60 = vadd.f32 %v5643_v36, %v5555_v26 }
 0x35b   : > { %v12385_v33 = vld [vmem:[#allocation4 + $0x1d4] sm:$0xf0]  ;;  %10517 = vmatmul.bf16.gmra.mxu0 %v12396_v50  ;;  %v6325_v7 = vld [vmem:[#allocation3 + $0x58] sm:$0xf]  ;;  %v6326_v46 = vld [vmem:[#allocation3 + $0x5c] sm:$0x1] }
 0x35c   : > { %v12388_v27 = vor.u32 %v13303_v52, %v12385_v33  ;;  %v6042_v55 = vsel %vm13632_vm7, %v6034_v44, %v6041_v45  ;;  %v6223_v34 = vsel %vm13588_vm4, %v6043_v54, %v6222_v59  ;;  %v6522_v0 = vrot.slane %v6520_v49, 4  ;;  %v7085_v42 = vld [vmem:[#allocation3 + $0x60] sm:$0xf]  ;;  %v12599_v14 = vld [vmem:[#allocation4 + $0x360] sm:$0xf]  ;;  %v16836_v21 = vld [vmem:[#allocation15_spill] sm:$0xff] }
 0x35d   : > { %6221 = vst [vmem:[#allocation3 + $0xac] sm:$0xf] %v6042_v55  ;;  %v6523_v11 = vshll.u32 %v6324_v9, 16  ;;  %v6529_v18 = vshll.u32 %v6325_v7, 16  ;;  %v6533_v13 = vshrl.u32 %v6325_v7, 16  ;;  %v5733_v17 = vadd.f32 %v15554_v30, %v5644_v60  ;;  %v16835_v15 = vld [vmem:[#allocation14_spill] sm:$0xff] }
 0x35e   : > { %10339 = vmatmul.bf16.gmra.mxu2 %v12388_v27  ;;  %6224 = vst [vmem:[#allocation3 + $0xb0] sm:$0x1] %v6223_v34  ;;  %v13361_v40 = vld [vmem:[#allocation4 + $0x380] sm:$0xf0]  ;;  %v7086_v63 = vld [vmem:[#allocation3 + $0x64] sm:$0xf]  ;;  %v15589_v8 = vpop.f32.mrf.mxu2  ;;  %v5468_v31 = vadd.f32 %v16836_v21, %v16835_v15 }
 0x35f   : > { %v12600_v6 = vor.u32 %v13361_v40, %v12599_v14  ;;  %v6525_v41 = vrot.slane %v6523_v11, 5  ;;  %v6531_v1 = vrot.slane %v6529_v18, 5  ;;  %v12391_v38 = vld [vmem:[#allocation4 + $0x1b8] sm:$0xf]  ;;  %v6535_v25 = vrot.slane %v6533_v13, 4 }
 0x360   : > { %v6539_v22 = vshll.u32 %v6326_v46, 16  ;;  %7117 = vst [vmem:[#allocation4 + $0x204] sm:$0xf] %v7085_v42  ;;  %v7187_v48 = vshll.u32 %v15556_v2, 16  ;;  %v5770_v43 = vmax.f32 %v5733_v17, 0.0  ;;  %v5557_v44 = vadd.f32 %v15570_v53, %v5468_v31  ;;  %v15601_v53 = vpop.f32.mrf.mxu1 }
 0x361   : > { %10280 = vmatmul.bf16.gmra.mxu1 %v12600_v6  ;;  %v13308_v39 = vld [vmem:[#allocation4 + $0x1d8] sm:$0xf0]  ;;  %v6526_v58 = vor.u32 %v6525_v41, %v6522_v0  ;;  %7118 = vst [vmem:[#allocation4 + $0x228] sm:$0xf] %v7086_v63  ;;  %v6536_v50 = vor.u32 %v6535_v25, %v6531_v1  ;;  %v452_v59 = vld [vmem:[#allocation3 + $0xbc] sm:$0x1]  ;;  %v5645_v27 = vpop.f32.mrf.mxu3 }
 0x362   : > { %v12392_v30 = vor.u32 %v13308_v39, %v12391_v38  ;;  %v6265_v4 = vld [vmem:[#allocation3 + $0x9c] sm:$0xf]  ;;  %v6266_v9 = vld [vmem:[#allocation3 + $0xa0] sm:$0xf]  ;;  %v5802_v45 = vpack.c.bf16 %v5770_v43, %v5770_v43  ;;  %v15595_v54 = vpop.f32.mrf.mxu0  ;;  %v453_v52 = vsel %vm13602_vm5, 0, %v452_v59  ;;  %v6541_v7 = vrot.slane %v6539_v22, 5 }
 0x363   : > { %v6527_v49 = vrot.slane %v6526_v58, 4  ;;  %6297 = vst [vmem:[#allocation4 + $0x3a8] sm:$0xf] %v6265_v4  ;;  %v6820_v33 = vld [vmem:[#allocation3 + $0x54] sm:$0xe]  ;;  %v6537_v26 = vrot.slane %v6536_v50, 4  ;;  %v5646_v46 = vadd.f32 %v5645_v27, %v5557_v44 }
 0x364   : > { %10428 = vmatmul.bf16.gmra.mxu3 %v12392_v30  ;;  %454 = vst [vmem:[#allocation3 + $0xbc] sm:$0x1] %v453_v52  ;;  %v6821_v55 = vld [vmem:[#allocation3 + $0x58] sm:$0xf]  ;;  %v6045_v34 = vshrl.u32 %v5802_v45, 16  ;;  %v12124_v42 = vrot.slane %v6820_v33, 9 }
 0x365   : > { %v6532_v36 = vsel %vm13693_vm11, %v6527_v49, %v6531_v1  ;;  %6298 = vst [vmem:[#allocation4 + $0x3cc] sm:$0xf] %v6266_v9  ;;  %v6822_v0 = vld [vmem:[#allocation3 + $0x5c] sm:$0x1]  ;;  %v15603_v60 = vld [vmem:[#allocation3 + $0x10] sm:$0xf]  ;;  %v6542_v13 = vsel %vm13693_vm11, %v6537_v26, %v6541_v7  ;;  %v5735_v41 = vadd.f32 %v15576_v51, %v5646_v46 }
 0x366   : > { %v6048_v11 = vshll.u32 %v5802_v45, 16  ;;  %v6225_v18 = vld [vmem:[#allocation3 + $0xb4] sm:$0xf]  ;;  %6781 = vst [vmem:[#allocation4 + $0x1fc] sm:$0xf] %v6532_v36  ;;  %v6946_v14 = vrot.slane %v6821_v55, 5  ;;  %v15610_v1 = vpop.f32.mrf.mxu2 }
 0x367   : > { %v401_v40 = vld [vmem:[#allocation3 + $0xc0] sm:$0x1]  ;;  %v15607_v6 = vrot.slane %v6045_v34, 7  ;;  %6782 = vst [vmem:[#allocation4 + $0x220] sm:$0xf] %v6542_v13  ;;  %v6949_v15 = vrot.slane %v6822_v0, 5 }
 0x368   : > { %v13313_v17 = vld [vmem:[#allocation4 + $0x204] sm:$0xf]  ;;  %v402_v63 = vsel %vm13588_vm4, 0, %v401_v40  ;;  %v12429_v38 = vld [vmem:[#allocation4 + $0x224] sm:$0xf0]  ;;  %v6947_v25 = vsel %vm14155_vm14, %v12124_v42, %v6946_v14  ;;  %v6948_v22 = vrot.slane %v6946_v14, 4 }
 0x369   : > { %403 = vst [vmem:[#allocation3 + $0xc0] sm:$0x1] %v402_v63  ;;  %v6050_v21 = vor.u32 %v6048_v11, %v15607_v6  ;;  %v12432_v31 = vor.u32 %v13313_v17, %v12429_v38  ;;  %v5771_v39 = vmax.f32 %v5735_v41, 0.0  ;;  %v6327_v43 = vld [vmem:[#allocation3 + $0x60] sm:$0xf]  ;;  %v15619_v51 = vrot.slane %v7184_v32, 4  ;;  %v15640_v41 = vpop.f32.mrf.mxu1 }
 0x36a   : > { %7053 = vst [vmem:[#allocation4 + $0x200] sm:$0xf] %v6947_v25  ;;  %v15621_v58 = vrot.slane %v7187_v48, 5  ;;  %v15626_v30 = vld [vmem:[%s16757_s4] ss:$0 sm:$0xff]  ;;  %v6950_v50 = vsel %vm14155_vm14, %v6948_v22, %v6949_v15  ;;  %v7193_v4 = vshll.u32 %v15603_v60, 16  ;;  %v15633_v32 = vpop.f32.mrf.mxu0 }
 0x36b   : > { %v6328_v59 = vld [vmem:[#allocation3 + $0x64] sm:$0xf]  ;;  %v6226_v9 = vsel %vm13671_vm10, %v6050_v21, %v6225_v18  ;;  %10522 = vmatmul.bf16.gmra.mxu0 %v12432_v31  ;;  %v5803_v2 = vpack.c.bf16 %v5771_v39, %v5771_v39  ;;  %v12635_v48 = vld [vmem:[#allocation4 + $0x3a8] sm:$0xf]  ;;  %7054 = vst [vmem:[#allocation4 + $0x224] sm:$0xf] %v6950_v50  ;;  %v10222_v36 = vadd.f32 %v15626_v30, %v15396_v35 }
 0x36c   : > { %v6544_v44 = vshrl.u32 %v6327_v43, 16  ;;  %6227 = vst [vmem:[#allocation3 + $0xb4] sm:$0xf] %v6226_v9  ;;  %v13370_v45 = vld [vmem:[#allocation4 + $0x3c8] sm:$0xf0]  ;;  %v6547_v49 = vshll.u32 %v6327_v43, 16 }
 0x36d   : > { %v6553_v52 = vshll.u32 %v6328_v59, 16  ;;  %v13312_v33 = vld [vmem:[#allocation4 + $0x1fc] sm:$0xf]  ;;  %v6053_v26 = vshrl.u32 %v5803_v2, 16  ;;  %v12636_v7 = vor.u32 %v13370_v45, %v12635_v48  ;;  %v6329_v27 = vld [vmem:[#allocation3 + $0x68] sm:$0x1] }
 0x36e   : > { %v6546_v55 = vrot.slane %v6544_v44, 4  ;;  %v15635_v34 = vld [vmem:[#allocation3 + $0x14] sm:$0x1]  ;;  %v12421_v46 = vld [vmem:[#allocation4 + $0x21c] sm:$0xf0]  ;;  %v6549_v42 = vrot.slane %v6547_v49, 5  ;;  %v10310_v38 = vpop.f32.mrf.mxu2 }
 0x36f   : > { %v6229_v0 = vld [vmem:[#allocation3 + $0xbc] sm:$0x1]  ;;  %v6555_v11 = vrot.slane %v6553_v52, 5  ;;  %v6557_v18 = vshrl.u32 %v6328_v59, 16  ;;  %v7197_v13 = vshrl.u32 %v15603_v60, 16  ;;  %v12424_v14 = vor.u32 %v13312_v33, %v12421_v46  ;;  %v13425_v25 = vld [vmem:[%s16756_s3 + $0x100] sm:$0xff] }
 0x370   : > { %v6055_v40 = vrot.slane %v6053_v26, 7  ;;  %v6056_v17 = vshll.u32 %v5803_v2, 16  ;;  %v7087_v63 = vld [vmem:[#allocation3 + $0x6c] sm:$0xf]  ;;  %v6550_v35 = vor.u32 %v6549_v42, %v6546_v55  ;;  %v6563_v21 = vshll.u32 %v6329_v27, 16  ;;  %10575 = vmatpush.bf16.msrb.mxu1 %v13425_v25 }
 0x371   : > { %v12427_v22 = vld [vmem:[#allocation4 + $0x200] sm:$0xf]  ;;  %v6559_v15 = vrot.slane %v6557_v18, 4  ;;  %v7088_v31 = vld [vmem:[#allocation3 + $0x70] sm:$0xf]  ;;  %v15645_v39 = vadd.f32 %v10310_v38, %v10222_v36  ;;  %v6051_v43 = vrot.slane %v15607_v6, 4  ;;  %10344 = vmatmul.bf16.gmra.mxu2 %v12424_v14  ;;  %10285 = vmatmul.bf16.gmra.mxu1 %v12636_v7  ;;  %v5560_v42 = vadd.f32 %v15589_v8, %v14991_v19 }
 0x372   : > { %v6058_v50 = vor.u32 %v6056_v17, %v6055_v40  ;;  %v6060_v59 = vrot.slane %v6055_v40, 4  ;;  %7119 = vst [vmem:[#allocation4 + $0x24c] sm:$0xf] %v7087_v63  ;;  %v455_v9 = vld [vmem:[#allocation3 + $0xc8] sm:$0x1]  ;;  %v6551_v48 = vrot.slane %v6550_v35, 4  ;;  %v15655_v26 = vpop.f32.mrf.mxu0 }
 0x373   : > { %v13317_v2 = vld [vmem:[#allocation4 + $0x220] sm:$0xf0]  ;;  %v6560_v44 = vor.u32 %v6559_v15, %v6555_v11  ;;  %7120 = vst [vmem:[#allocation4 + $0x270] sm:$0xf] %v7088_v31  ;;  %v456_v45 = vsel %vm13602_vm5, 0, %v455_v9  ;;  %v7203_v49 = vshll.u32 %v15635_v34, 16 }
 0x374   : > { %v6059_v52 = vsel %vm13632_vm7, %v6051_v43, %v6058_v50  ;;  %v6230_v6 = vsel %vm13588_vm4, %v6060_v59, %v6229_v0  ;;  %v12428_v33 = vor.u32 %v13317_v2, %v12427_v22  ;;  %457 = vst [vmem:[#allocation3 + $0xc8] sm:$0x1] %v456_v45  ;;  %v6267_v7 = vld [vmem:[#allocation3 + $0xa8] sm:$0xf]  ;;  %v6556_v27 = vsel %vm13693_vm11, %v6551_v48, %v6555_v11  ;;  %v6268_v36 = vld [vmem:[#allocation3 + $0xac] sm:$0xf] }
 0x375   : > { %6228 = vst [vmem:[#allocation3 + $0xb8] sm:$0xf] %v6059_v52  ;;  %v6561_v20 = vrot.slane %v6560_v44, 4  ;;  %v6565_v55 = vrot.slane %v6563_v21, 5  ;;  %v6823_v46 = vld [vmem:[#allocation3 + $0x60] sm:$0xe]  ;;  %v5648_v14 = vpop.f32.mrf.mxu3 }
 0x376   : > { %6231 = vst [vmem:[#allocation3 + $0xbc] sm:$0x1] %v6230_v6  ;;  %10433 = vmatmul.bf16.gmra.mxu3 %v12428_v33  ;;  %v6824_v18 = vld [vmem:[#allocation3 + $0x64] sm:$0xf]  ;;  %v6825_v0 = vld [vmem:[#allocation3 + $0x68] sm:$0x1]  ;;  %v5649_v25 = vadd.f32 %v5648_v14, %v5560_v42 }
 0x377   : > { %v6566_v40 = vsel %vm13693_vm11, %v6561_v20, %v6565_v55  ;;  %6783 = vst [vmem:[#allocation4 + $0x244] sm:$0xf] %v6556_v27  ;;  %v12125_v17 = vrot.slane %v6823_v46, 9  ;;  %v6953_v63 = vrot.slane %v6824_v18, 5  ;;  %v6956_v38 = vrot.slane %v6825_v0, 5  ;;  %v13440_v11 = vld [vmem:[%s16756_s3 + $0x178] sm:$0xff] }
 0x378   : > { %6784 = vst [vmem:[#allocation4 + $0x268] sm:$0xf] %v6566_v40  ;;  %v6330_v22 = vld [vmem:[#allocation3 + $0x6c] sm:$0xf]  ;;  %v6331_v19 = vld [vmem:[#allocation3 + $0x70] sm:$0xf]  ;;  %10657 = vmatpush.bf16.msra.mxu2 %v13440_v11  ;;  %v5738_v50 = vadd.f32 %v15595_v54, %v5649_v25 }
 0x379   : > { %v13322_v8 = vld [vmem:[#allocation4 + $0x24c] sm:$0xf]  ;;  %6299 = vst [vmem:[#allocation4 + $0x3f0] sm:$0xf] %v6267_v7  ;;  %v6954_v35 = vsel %vm14155_vm14, %v12125_v17, %v6953_v63  ;;  %v6955_v15 = vrot.slane %v6953_v63, 4  ;;  %v6568_v21 = vshrl.u32 %v6330_v22, 16  ;;  %v15671_v9 = vpop.f32.mrf.mxu1 }
 0x37a   : > { %v16837_v31 = vld [vmem:[#allocation16_spill] sm:$0xff]  ;;  %v12465_v59 = vld [vmem:[#allocation4 + $0x26c] sm:$0xf0]  ;;  %6300 = vst [vmem:[#allocation4 + $0x414] sm:$0xf] %v6268_v36  ;;  %v15675_v48 = vrot.slane %v7193_v4, 5  ;;  %v15686_v6 = vpop.f32.mrf.mxu0 }
 0x37b   : > { %v5473_v43 = vadd.f32 %v15377_v29, %v16837_v31  ;;  %v6332_v2 = vld [vmem:[#allocation3 + $0x74] sm:$0x1]  ;;  %v15679_v44 = vrot.slane %v7197_v13, 4  ;;  %v12468_v45 = vor.u32 %v13322_v8, %v12465_v59  ;;  %v6957_v52 = vsel %vm14155_vm14, %v6955_v15, %v6956_v38  ;;  %7055 = vst [vmem:[#allocation4 + $0x248] sm:$0xf] %v6954_v35  ;;  %v13448_v29 = vld [vmem:[%s16756_s3 + $0x1b8] sm:$0xff] }
 0x37c   : > { %v5772_v54 = vmax.f32 %v5738_v50, 0.0  ;;  %7056 = vst [vmem:[#allocation4 + $0x26c] sm:$0xf] %v6957_v52  ;;  %v6571_v33 = vshll.u32 %v6330_v22, 16  ;;  %v6577_v4 = vshll.u32 %v6331_v19, 16  ;;  %v6581_v7 = vshrl.u32 %v6331_v19, 16  ;;  %10746 = vmatpush.bf16.msra.mxu3 %v13448_v29  ;;  %v15703_v29 = vpop.f32.mrf.mxu2 }
 0x37d   : > { %v5562_v60 = vadd.f32 %v15610_v1, %v5473_v43  ;;  %10527 = vmatmul.bf16.gmra.mxu0 %v12468_v45  ;;  %v6570_v13 = vrot.slane %v6568_v21, 4  ;;  %v6587_v27 = vshll.u32 %v6332_v2, 16  ;;  %v7089_v20 = vld [vmem:[#allocation3 + $0x78] sm:$0xf]  ;;  %v7090_v55 = vld [vmem:[#allocation3 + $0x7c] sm:$0xf]  ;;  %v5650_v17 = vpop.f32.mrf.mxu3  ;;  %v7190_v45 = vor.u32 %v15621_v58, %v15619_v51 }
 0x37e   : > { %v5804_v36 = vpack.c.bf16 %v5772_v54, %v5772_v54  ;;  %v13321_v46 = vld [vmem:[#allocation4 + $0x244] sm:$0xf]  ;;  %v6573_v42 = vrot.slane %v6571_v33, 5  ;;  %v6579_v18 = vrot.slane %v6577_v4, 5  ;;  %v6583_v0 = vrot.slane %v6581_v7, 4  ;;  %v13456_v2 = vld [vmem:[%s16756_s3 + $0x1f8] sm:$0xff] }
 0x37f   : > { %v15691_v14 = vrot.slane %v7203_v49, 5  ;;  %v12457_v40 = vld [vmem:[#allocation4 + $0x264] sm:$0xf0]  ;;  %v6589_v63 = vrot.slane %v6587_v27, 5  ;;  %7121 = vst [vmem:[#allocation4 + $0x294] sm:$0xf] %v7089_v20  ;;  %v5651_v25 = vadd.f32 %v5650_v17, %v5562_v60  ;;  %10835 = vmatpush.bf16.msra.mxu0 %v13456_v2 }
 0x380   : > { %v6062_v1 = vshrl.u32 %v5804_v36, 16  ;;  %v6065_v38 = vshll.u32 %v5804_v36, 16  ;;  %v12460_v11 = vor.u32 %v13321_v46, %v12457_v40  ;;  %v12671_v22 = vld [vmem:[#allocation4 + $0x3f0] sm:$0xf]  ;;  %7122 = vst [vmem:[#allocation4 + $0x2b8] sm:$0xf] %v7090_v55  ;;  %v6574_v35 = vor.u32 %v6573_v42, %v6570_v13 }
 0x381   : > { %v6232_v19 = vld [vmem:[#allocation3 + $0xc0] sm:$0xf]  ;;  %v13379_v8 = vld [vmem:[#allocation4 + $0x410] sm:$0xf0]  ;;  %v6584_v15 = vor.u32 %v6583_v0, %v6579_v18  ;;  %v6269_v21 = vld [vmem:[#allocation3 + $0xb4] sm:$0xf]  ;;  %v5740_v34 = vadd.f32 %v15633_v32, %v5651_v25  ;;  %v15696_v59 = vpop.f32.mrf.mxu1  ;;  %v7200_v32 = vor.u32 %v15679_v44, %v15675_v48 }
 0x382   : > { %v6270_v31 = vld [vmem:[#allocation3 + $0xb8] sm:$0xf]  ;;  %v15693_v43 = vrot.slane %v6062_v1, 7  ;;  %10349 = vmatmul.bf16.gmra.mxu2 %v12460_v11  ;;  %v12672_v49 = vor.u32 %v13379_v8, %v12671_v22  ;;  %v12463_v50 = vld [vmem:[#allocation4 + $0x248] sm:$0xf]  ;;  %v6575_v54 = vrot.slane %v6574_v35, 4  ;;  %v15708_v13 = vpop.f32.mrf.mxu0 }
 0x383   : > { %6301 = vst [vmem:[#allocation4 + $0x438] sm:$0xf] %v6269_v21  ;;  %v13326_v52 = vld [vmem:[#allocation4 + $0x268] sm:$0xf0]  ;;  %v6585_v33 = vrot.slane %v6584_v15, 4  ;;  %v5773_v7 = vmax.f32 %v5740_v34, 0.0 }
 0x384   : > { %6302 = vst [vmem:[#allocation4 + $0x45c] sm:$0xf] %v6270_v31  ;;  %v6067_v4 = vor.u32 %v6065_v38, %v15693_v43  ;;  %10290 = vmatmul.bf16.gmra.mxu1 %v12672_v49  ;;  %v12464_v60 = vor.u32 %v13326_v52, %v12463_v50  ;;  %v6826_v27 = vld [vmem:[#allocation3 + $0x6c] sm:$0xe]  ;;  %v6827_v20 = vld [vmem:[#allocation3 + $0x70] sm:$0xf]  ;;  %v6580_v51 = vsel %vm13693_vm11, %v6575_v54, %v6579_v18 }
 0x385   : > { %v6590_v58 = vsel %vm13693_vm11, %v6585_v33, %v6589_v63  ;;  %v6828_v55 = vld [vmem:[#allocation3 + $0x74] sm:$0x1]  ;;  %v12126_v36 = vrot.slane %v6826_v27, 9  ;;  %v6960_v46 = vrot.slane %v6827_v20, 5  ;;  %v6333_v44 = vld [vmem:[#allocation3 + $0x78] sm:$0xf]  ;;  %v5805_v0 = vpack.c.bf16 %v5773_v7, %v5773_v7  ;;  %v10399_v1 = vpop.f32.mrf.mxu3 }
 0x386   : > { %v6233_v42 = vsel %vm13671_vm10, %v6067_v4, %v6232_v19  ;;  %10438 = vmatmul.bf16.gmra.mxu3 %v12464_v60  ;;  %6785 = vst [vmem:[#allocation4 + $0x28c] sm:$0xf] %v6580_v51  ;;  %v6963_v40 = vrot.slane %v6828_v55, 5  ;;  %v6592_v17 = vshrl.u32 %v6333_v44, 16  ;;  %v6595_v63 = vshll.u32 %v6333_v44, 16 }
 0x387   : > { %6234 = vst [vmem:[#allocation3 + $0xc0] sm:$0xf] %v6233_v42  ;;  %v12501_v38 = vld [vmem:[#allocation4 + $0x2b4] sm:$0xf0]  ;;  %v6961_v18 = vsel %vm14155_vm14, %v12126_v36, %v6960_v46  ;;  %v6962_v11 = vrot.slane %v6960_v46, 4  ;;  %v6070_v25 = vshrl.u32 %v5805_v0, 16  ;;  %v15719_v22 = vadd.f32 %v10399_v1, %v15645_v39 }
 0x388   : > { %6786 = vst [vmem:[#allocation4 + $0x2b0] sm:$0xf] %v6590_v58  ;;  %v6334_v3 = vld [vmem:[#allocation3 + $0x7c] sm:$0xf]  ;;  %v7191_v19 = vrot.slane %v7190_v45, 4  ;;  %v7201_v8 = vrot.slane %v7200_v32, 4  ;;  %v10227_v45 = vadd.f32 %v15626_v30, %v15445_v28 }
 0x389   : > { %v6073_v35 = vshll.u32 %v5805_v0, 16  ;;  %v6236_v15 = vld [vmem:[#allocation3 + $0xc8] sm:$0x1]  ;;  %v13331_v21 = vld [vmem:[#allocation4 + $0x294] sm:$0xf]  ;;  %v6964_v31 = vsel %vm14155_vm14, %v6962_v11, %v6963_v40  ;;  %v6072_v34 = vrot.slane %v6070_v25, 7  ;;  %v15723_v49 = vpop.f32.mrf.mxu1  ;;  %v10315_v28 = vpop.f32.mrf.mxu2 }
 0x38a   : > { %7057 = vst [vmem:[#allocation4 + $0x290] sm:$0xf] %v6961_v18  ;;  %v6335_v50 = vld [vmem:[#allocation3 + $0x80] sm:$0x1]  ;;  %v6594_v2 = vrot.slane %v6592_v17, 4  ;;  %v7196_v39 = vsel %vm13693_vm11, %v7191_v19, %v15675_v48  ;;  %v12504_v52 = vor.u32 %v13331_v21, %v12501_v38  ;;  %v6597_v33 = vrot.slane %v6595_v63, 5  ;;  %v15731_v51 = vpop.f32.mrf.mxu0 }
 0x38b   : > { %7058 = vst [vmem:[#allocation4 + $0x2b4] sm:$0xf] %v6964_v31  ;;  %v13388_v54 = vld [vmem:[#allocation4 + $0x458] sm:$0xf0]  ;;  %v6601_v32 = vshll.u32 %v6334_v3, 16  ;;  %v6068_v60 = vrot.slane %v15693_v43, 4  ;;  %v6075_v27 = vor.u32 %v6073_v35, %v6072_v34  ;;  %v7206_v43 = vsel %vm13693_vm11, %v7201_v8, %v15691_v14 }
 0x38c   : > { %v7091_v4 = vld [vmem:[#allocation3 + $0x84] sm:$0xf]  ;;  %v7092_v7 = vld [vmem:[#allocation3 + $0x88] sm:$0xf]  ;;  %v6077_v20 = vrot.slane %v6072_v34, 4  ;;  %v6605_v58 = vshrl.u32 %v6334_v3, 16  ;;  %v6598_v46 = vor.u32 %v6597_v33, %v6594_v2  ;;  %v10316_v17 = vadd.f32 %v10315_v28, %v10227_v45 }
 0x38d   : > { %7123 = vst [vmem:[#allocation4 + $0x2dc] sm:$0xf] %v7091_v4  ;;  %v13464_v48 = vld [vmem:[%s16756_s3 + $0x238] sm:$0xff]  ;;  %10532 = vmatmul.bf16.gmra.mxu0 %v12504_v52  ;;  %v12707_v36 = vld [vmem:[#allocation4 + $0x438] sm:$0xf]  ;;  %v6603_v44 = vrot.slane %v6601_v32, 5  ;;  %v6076_v0 = vsel %vm13632_vm7, %v6068_v60, %v6075_v27  ;;  %v15743_v11 = vpop.f32.mrf.mxu3 }
 0x38e   : > { %v13330_v55 = vld [vmem:[#allocation4 + $0x28c] sm:$0xf]  ;;  %v6611_v42 = vshll.u32 %v6335_v50, 16  ;;  %7124 = vst [vmem:[#allocation4 + $0x300] sm:$0xf] %v7092_v7  ;;  %v6237_v40 = vsel %vm13588_vm4, %v6077_v20, %v6236_v15  ;;  %v6607_v1 = vrot.slane %v6605_v58, 4  ;;  %10924 = vmatpush.bf16.msra.mxu1 %v13464_v48  ;;  %v12708_v3 = vor.u32 %v13388_v54, %v12707_v36 }
 0x38f   : > { %7599 = vst [vmem:[#allocation4 + $0x10] sm:$0xf] %v7196_v39  ;;  %v6829_v38 = vld [vmem:[#allocation3 + $0x78] sm:$0xe]  ;;  %v12493_v18 = vld [vmem:[#allocation4 + $0x2ac] sm:$0xf0] }
 0x390   : > { %6235 = vst [vmem:[#allocation3 + $0xc4] sm:$0xf] %v6076_v0  ;;  %v6599_v63 = vrot.slane %v6598_v46, 4  ;;  %v12496_v25 = vor.u32 %v13330_v55, %v12493_v18  ;;  %v6608_v19 = vor.u32 %v6607_v1, %v6603_v44  ;;  %v6830_v37 = vld [vmem:[#allocation3 + $0x7c] sm:$0xf]  ;;  %v6613_v31 = vrot.slane %v6611_v42, 5 }
 0x391   : > { %6238 = vst [vmem:[#allocation3 + $0xc8] sm:$0x1] %v6237_v40  ;;  %v12499_v14 = vld [vmem:[#allocation4 + $0x290] sm:$0xf]  ;;  %v6831_v35 = vld [vmem:[#allocation3 + $0x80] sm:$0x1]  ;;  %v15747_v15 = vpop.f32.mrf.mxu1  ;;  %v10317_v60 = vpop.f32.mrf.mxu2 }
 0x392   : > { %v13335_v8 = vld [vmem:[#allocation4 + $0x2b0] sm:$0xf0]  ;;  %v6604_v12 = vsel %vm13693_vm11, %v6599_v63, %v6603_v44  ;;  %7600 = vst [vmem:[#allocation4 + $0x34] sm:$0xf] %v7206_v43  ;;  %10354 = vmatmul.bf16.gmra.mxu2 %v12496_v25  ;;  %v6609_v21 = vrot.slane %v6608_v19, 4  ;;  %v12127_v34 = vrot.slane %v6829_v38, 9  ;;  %v15749_v52 = vpop.f32.mrf.mxu0 }
 0x393   : > { %6787 = vst [vmem:[#allocation4 + $0x2d4] sm:$0xf] %v6604_v12  ;;  %v6967_v50 = vrot.slane %v6830_v37, 5  ;;  %v12500_v2 = vor.u32 %v13335_v8, %v12499_v14  ;;  %v6970_v39 = vrot.slane %v6831_v35, 5  ;;  %v6336_v45 = vld [vmem:[#allocation3 + $0x84] sm:$0xf]  ;;  %v10232_v14 = vadd.f32 %v15626_v30, %v15483_v57 }
 0x394   : > { %10295 = vmatmul.bf16.gmra.mxu1 %v12708_v3  ;;  %v6614_v54 = vsel %vm13693_vm11, %v6609_v21, %v6613_v31  ;;  %v6337_v4 = vld [vmem:[#allocation3 + $0x88] sm:$0xf]  ;;  %v6616_v7 = vshrl.u32 %v6336_v45, 16  ;;  %v6338_v27 = vld [vmem:[#allocation3 + $0x8c] sm:$0x1]  ;;  %v6619_v55 = vshll.u32 %v6336_v45, 16  ;;  %v10229_v3 = vadd.f32 %v15626_v30, %v15467_v56 }
 0x395   : > { %v6968_v33 = vsel %vm14155_vm14, %v12127_v34, %v6967_v50  ;;  %v6969_v32 = vrot.slane %v6967_v50, 4  ;;  %6788 = vst [vmem:[#allocation4 + $0x2f8] sm:$0xf] %v6614_v54  ;;  %v12537_v20 = vld [vmem:[#allocation4 + $0x2fc] sm:$0xf0]  ;;  %v10404_v36 = vpop.f32.mrf.mxu3  ;;  %v6625_v46 = vshll.u32 %v6337_v4, 16 }
 0x396   : > { %10443 = vmatmul.bf16.gmra.mxu3 %v12500_v2  ;;  %7059 = vst [vmem:[#allocation4 + $0x2d8] sm:$0xf] %v6968_v33  ;;  %v6618_v48 = vrot.slane %v6616_v7, 4  ;;  %v7093_v28 = vld [vmem:[#allocation3 + $0x90] sm:$0xf]  ;;  %v6629_v44 = vshrl.u32 %v6337_v4, 16  ;;  %v15760_v43 = vadd.f32 %v10404_v36, %v10316_v17 }
 0x397   : > { %v6971_v58 = vsel %vm14155_vm14, %v6969_v32, %v6970_v39  ;;  %v13439_v42 = vld [vmem:[%s16756_s3 + $0x170] sm:$0xff]  ;;  %v6621_v0 = vrot.slane %v6619_v55, 5  ;;  %v6635_v40 = vshll.u32 %v6338_v27, 16  ;;  %v7094_v1 = vld [vmem:[#allocation3 + $0x94] sm:$0xf]  ;;  %v6627_v63 = vrot.slane %v6625_v46, 5 }
 0x398   : > { %7060 = vst [vmem:[#allocation4 + $0x2fc] sm:$0xf] %v6971_v58  ;;  %v13447_v38 = vld [vmem:[%s16756_s3 + $0x1b0] sm:$0xff]  ;;  %v13340_v18 = vld [vmem:[#allocation4 + $0x2dc] sm:$0xf]  ;;  %v6631_v25 = vrot.slane %v6629_v44, 4  ;;  %10658 = vmatpush.bf16.msra.mxu2 %v13439_v42  ;;  %v10318_v27 = vadd.f32 %v10317_v60, %v10229_v3 }
 0x399   : > { %v15769_v19 = vpop.f32.mrf.mxu1  ;;  %v6622_v17 = vor.u32 %v6621_v0, %v6618_v48  ;;  %7125 = vst [vmem:[#allocation4 + $0x324] sm:$0xf] %v7093_v28  ;;  %v7138_v37 = vld [vmem:[#allocation3 + $0x18] sm:$0xf]  ;;  %v7139_v8 = vld [vmem:[#allocation3 + $0x1c] sm:$0xf]  ;;  %10747 = vmatpush.bf16.msra.mxu3 %v13447_v38  ;;  %v12540_v12 = vor.u32 %v13340_v18, %v12537_v20 }
 0x39a   : > { %v6632_v35 = vor.u32 %v6631_v25, %v6627_v63  ;;  %7126 = vst [vmem:[#allocation4 + $0x348] sm:$0xf] %v7094_v1  ;;  %v7140_v21 = vld [vmem:[#allocation3 + $0x20] sm:$0x1]  ;;  %v7208_v31 = vshrl.u32 %v7138_v37, 16  ;;  %v7211_v34 = vshll.u32 %v7138_v37, 16  ;;  %v15771_v2 = vpop.f32.mrf.mxu0 }
 0x39b   : > { %16838 = vst [vmem:[#allocation18_spill] sm:$0xff] %v15771_v2  ;;  %v6623_v56 = vrot.slane %v6622_v17, 4  ;;  %v6637_v39 = vrot.slane %v6635_v40, 5  ;;  %v7217_v45 = vshll.u32 %v7139_v8, 16  ;;  %v7221_v57 = vshrl.u32 %v7139_v8, 16 }
 0x39c   : > { %v12529_v50 = vld [vmem:[#allocation4 + $0x2f4] sm:$0xf0]  ;;  %v13255_v54 = vld [vmem:[#allocation4 + $0x30] sm:$0xf0]  ;;  %v6633_v33 = vrot.slane %v6632_v35, 4  ;;  %v7210_v32 = vrot.slane %v7208_v31, 4 }
 0x39d   : > { %10537 = vmatmul.bf16.gmra.mxu0 %v12540_v12  ;;  %v7213_v4 = vrot.slane %v7211_v34, 5  ;;  %v7227_v7 = vshll.u32 %v7140_v21, 16  ;;  %v13339_v20 = vld [vmem:[#allocation4 + $0x2d4] sm:$0xf]  ;;  %v10320_v58 = vpop.f32.mrf.mxu2  ;;  %v12183_v48 = vld [vmem:[#allocation4 + $0x10] sm:$0xf]  ;;  %v6628_v28 = vsel %vm13693_vm11, %v6623_v56, %v6627_v63  ;;  %v10406_v0 = vpop.f32.mrf.mxu3 }
 0x39e   : > { %v7219_v36 = vrot.slane %v7217_v45, 5  ;;  %v7223_v46 = vrot.slane %v7221_v57, 4  ;;  %v12532_v44 = vor.u32 %v13339_v20, %v12529_v50  ;;  %v10321_v42 = vadd.f32 %v10320_v58, %v10232_v14  ;;  %6789 = vst [vmem:[#allocation4 + $0x31c] sm:$0xf] %v6628_v28  ;;  %v6832_v38 = vld [vmem:[#allocation3 + $0x84] sm:$0xe] }
 0x39f   : > { %v13344_v55 = vld [vmem:[#allocation4 + $0x2f8] sm:$0xf0]  ;;  %v6638_v40 = vsel %vm13693_vm11, %v6633_v33, %v6637_v39  ;;  %v7214_v1 = vor.u32 %v7213_v4, %v7210_v32  ;;  %v6833_v18 = vld [vmem:[#allocation3 + $0x88] sm:$0xf]  ;;  %v15777_v60 = vadd.f32 %v10406_v0, %v10318_v27  ;;  %v6834_v3 = vld [vmem:[#allocation3 + $0x8c] sm:$0x1]  ;;  %v12184_v14 = vor.u32 %v13255_v54, %v12183_v48 }
 0x3a0   : > { %6790 = vst [vmem:[#allocation4 + $0x340] sm:$0xf] %v6638_v40  ;;  %v7224_v25 = vor.u32 %v7223_v46, %v7219_v36  ;;  %v12128_v17 = vrot.slane %v6832_v38, 9  ;;  %v6974_v37 = vrot.slane %v6833_v18, 5  ;;  %v15779_v63 = vld [vmem:[#allocation3 + $0xc] sm:$0xe] }
 0x3a1   : > { %v15781_v8 = vld [vmem:[#allocation3 + $0x10] sm:$0xf]  ;;  %v7215_v35 = vrot.slane %v7214_v1, 4  ;;  %v7229_v21 = vrot.slane %v7227_v7, 5  ;;  %v15783_v34 = vpop.f32.mrf.mxu1  ;;  %v6977_v45 = vrot.slane %v6834_v3, 5  ;;  %v13455_v7 = vld [vmem:[%s16756_s3 + $0x1f0] sm:$0xff] }
 0x3a2   : > { %v12535_v12 = vld [vmem:[#allocation4 + $0x2d8] sm:$0xf]  ;;  %10359 = vmatmul.bf16.gmra.mxu2 %v12532_v44  ;;  %v7225_v50 = vrot.slane %v7224_v25, 4  ;;  %v6975_v56 = vsel %vm14155_vm14, %v12128_v17, %v6974_v37  ;;  %v6976_v39 = vrot.slane %v6974_v37, 4  ;;  %v6340_v57 = vld [vmem:[#allocation3 + $0x94] sm:$0xf]  ;;  %v15792_v27 = vpop.f32.mrf.mxu0  ;;  %10836 = vmatpush.bf16.msra.mxu0 %v13455_v7 }
 0x3a3   : > { %v6339_v31 = vld [vmem:[#allocation3 + $0x90] sm:$0xf]  ;;  %v12536_v33 = vor.u32 %v13344_v55, %v12535_v12  ;;  %v7220_v32 = vsel %vm13693_vm11, %v7215_v35, %v7219_v36  ;;  %7061 = vst [vmem:[#allocation4 + $0x320] sm:$0xf] %v6975_v56  ;;  %v6341_v54 = vld [vmem:[#allocation3 + $0x98] sm:$0x1]  ;;  %v10234_v56 = vadd.f32 %v15626_v30, %v15503_v47 }
 0x3a4   : > { %v6640_v4 = vshrl.u32 %v6339_v31, 16  ;;  %10576 = vmatmul.bf16.vlgmr.msrb.gmra.mxu1 %v12184_v14  ;;  %16839 = vst [vmem:[#allocation17_spill] sm:$0xff] %v15792_v27  ;;  %v7230_v20 = vsel %vm13693_vm11, %v7225_v50, %v7229_v21  ;;  %v6978_v58 = vsel %vm14155_vm14, %v6976_v39, %v6977_v45  ;;  %v6643_v48 = vshll.u32 %v6339_v31, 16  ;;  %v7095_v28 = vld [vmem:[#allocation3 + $0x9c] sm:$0xf] }
 0x3a5   : > { %7601 = vst [vmem:[#allocation4 + $0x58] sm:$0xf] %v7220_v32  ;;  %v6649_v55 = vshll.u32 %v6340_v57, 16  ;;  %v6653_v46 = vshrl.u32 %v6340_v57, 16  ;;  %v13463_v44 = vld [vmem:[%s16756_s3 + $0x230] sm:$0xff]  ;;  %v16759_v40 = vrot.slane %v15781_v8, 5  ;;  %v10322_v1 = vpop.f32.mrf.mxu2  ;;  %v10409_v25 = vpop.f32.mrf.mxu3 }
 0x3a6   : > { %7602 = vst [vmem:[#allocation4 + $0x7c] sm:$0xf] %v7230_v20  ;;  %v6642_v36 = vrot.slane %v6640_v4, 4  ;;  %10448 = vmatmul.bf16.gmra.mxu3 %v12536_v33  ;;  %v6645_v38 = vrot.slane %v6643_v48, 5  ;;  %v13349_v3 = vld [vmem:[#allocation4 + $0x324] sm:$0xf]  ;;  %10925 = vmatpush.bf16.msra.mxu1 %v13463_v44  ;;  %v15803_v35 = vadd.f32 %v10409_v25, %v10321_v42 }
 0x3a7   : > { %7062 = vst [vmem:[#allocation4 + $0x344] sm:$0xf] %v6978_v58  ;;  %v6651_v18 = vrot.slane %v6649_v55, 5  ;;  %v12573_v17 = vld [vmem:[#allocation4 + $0x344] sm:$0xf0]  ;;  %v6655_v37 = vrot.slane %v6653_v46, 4 }
 0x3a8   : > { %v6659_v14 = vshll.u32 %v6341_v54, 16  ;;  %v7096_v12 = vld [vmem:[#allocation3 + $0xa0] sm:$0xf]  ;;  %v6646_v21 = vor.u32 %v6645_v38, %v6642_v36  ;;  %7127 = vst [vmem:[#allocation4 + $0x36c] sm:$0xf] %v7095_v28  ;;  %v12576_v32 = vor.u32 %v13349_v3, %v12573_v17  ;;  %v10237_v3 = vadd.f32 %v15626_v30, %v15519_v62 }
 0x3a9   : > { %v7141_v31 = vld [vmem:[#allocation3 + $0x24] sm:$0xf]  ;;  %v7142_v50 = vld [vmem:[#allocation3 + $0x28] sm:$0xf]  ;;  %v6656_v39 = vor.u32 %v6655_v37, %v6651_v18  ;;  %7128 = vst [vmem:[#allocation4 + $0x390] sm:$0xf] %v7096_v12  ;;  %v15807_v58 = vpop.f32.mrf.mxu1 }
 0x3aa   : > { %v7143_v45 = vld [vmem:[#allocation3 + $0x2c] sm:$0x1]  ;;  %v7232_v57 = vshrl.u32 %v7141_v31, 16  ;;  %v7235_v33 = vshll.u32 %v7141_v31, 16  ;;  %v6647_v4 = vrot.slane %v6646_v21, 4  ;;  %v7241_v7 = vshll.u32 %v7142_v50, 16  ;;  %v15809_v36 = vpop.f32.mrf.mxu0 }
 0x3ab   : > { %v7245_v54 = vshrl.u32 %v7142_v50, 16  ;;  %v12565_v20 = vld [vmem:[#allocation4 + $0x33c] sm:$0xf0]  ;;  %v6657_v42 = vrot.slane %v6656_v39, 4  ;;  %v6661_v48 = vrot.slane %v6659_v14, 5  ;;  %16840 = vst [vmem:[#allocation19_spill] sm:$0xff] %v15809_v36  ;;  %v10323_v31 = vadd.f32 %v10322_v1, %v10234_v56 }
 0x3ac   : > { %v7234_v55 = vrot.slane %v7232_v57, 4  ;;  %v7237_v28 = vrot.slane %v7235_v33, 5  ;;  %v6652_v47 = vsel %vm13693_vm11, %v6647_v4, %v6651_v18  ;;  %v7243_v46 = vrot.slane %v7241_v7, 5  ;;  %v6835_v25 = vld [vmem:[#allocation3 + $0x90] sm:$0xe] }
 0x3ad   : > { %v7247_v44 = vrot.slane %v7245_v54, 4  ;;  %v7251_v38 = vshll.u32 %v7143_v45, 16  ;;  %v13348_v17 = vld [vmem:[#allocation4 + $0x31c] sm:$0xf]  ;;  %10542 = vmatmul.bf16.gmra.mxu0 %v12576_v32  ;;  %v6662_v14 = vsel %vm13693_vm11, %v6657_v42, %v6661_v48  ;;  %6791 = vst [vmem:[#allocation4 + $0x364] sm:$0xf] %v6652_v47  ;;  %v10325_v18 = vpop.f32.mrf.mxu2  ;;  %v10411_v4 = vpop.f32.mrf.mxu3 }
 0x3ae   : > { %v13264_v37 = vld [vmem:[#allocation4 + $0x78] sm:$0xf0]  ;;  %v7238_v12 = vor.u32 %v7237_v28, %v7234_v55  ;;  %v12568_v50 = vor.u32 %v13348_v17, %v12565_v20  ;;  %6792 = vst [vmem:[#allocation4 + $0x388] sm:$0xf] %v6662_v14  ;;  %v6837_v57 = vld [vmem:[#allocation3 + $0x98] sm:$0x1]  ;;  %v10326_v33 = vadd.f32 %v10325_v18, %v10237_v3  ;;  %v15821_v42 = vadd.f32 %v10411_v4, %v10323_v31 }
 0x3af   : > { %v15817_v21 = vld [vmem:[#allocation3 + $0x14] sm:$0x1]  ;;  %v7248_v39 = vor.u32 %v7247_v44, %v7243_v46  ;;  %v12219_v62 = vld [vmem:[#allocation4 + $0x58] sm:$0xf]  ;;  %v12129_v32 = vrot.slane %v6835_v25, 9  ;;  %v7253_v1 = vrot.slane %v7251_v38, 5 }
 0x3b0   : > { %v6836_v45 = vld [vmem:[#allocation3 + $0x94] sm:$0xf]  ;;  %v7239_v7 = vrot.slane %v7238_v12, 4  ;;  %v15819_v0 = vld [vmem:[#allocation3 + $0x18] sm:$0xf]  ;;  %v12220_v48 = vor.u32 %v13264_v37, %v12219_v62  ;;  %v6984_v17 = vrot.slane %v6837_v57, 5 }
 0x3b1   : > { %v6981_v54 = vrot.slane %v6836_v45, 5  ;;  %v13353_v55 = vld [vmem:[#allocation4 + $0x340] sm:$0xf0]  ;;  %v7249_v28 = vrot.slane %v7248_v39, 4  ;;  %v12571_v20 = vld [vmem:[#allocation4 + $0x320] sm:$0xf]  ;;  %v15830_v39 = vpop.f32.mrf.mxu1 }
 0x3b2   : > { %v6342_v56 = vld [vmem:[#allocation3 + $0x9c] sm:$0xf]  ;;  %v7244_v47 = vsel %vm13693_vm11, %v7239_v7, %v7243_v46  ;;  %v6343_v25 = vld [vmem:[#allocation3 + $0xa0] sm:$0xf]  ;;  %v6344_v14 = vld [vmem:[#allocation3 + $0xa4] sm:$0x1]  ;;  %10364 = vmatmul.bf16.gmra.mxu2 %v12568_v50  ;;  %v12572_v4 = vor.u32 %v13353_v55, %v12571_v20  ;;  %v10239_v55 = vadd.f32 %v15626_v30, %v15545_v61 }
 0x3b3   : > { %v6982_v44 = vsel %vm14155_vm14, %v12129_v32, %v6981_v54  ;;  %v6983_v3 = vrot.slane %v6981_v54, 4  ;;  %v7254_v12 = vsel %vm13693_vm11, %v7249_v28, %v7253_v1  ;;  %7603 = vst [vmem:[#allocation4 + $0xa0] sm:$0xf] %v7244_v47  ;;  %v6664_v37 = vshrl.u32 %v6342_v56, 16  ;;  %v7097_v57 = vld [vmem:[#allocation3 + $0xa8] sm:$0xf] }
 0x3b4   : > { %v6667_v31 = vshll.u32 %v6342_v56, 16  ;;  %v6673_v38 = vshll.u32 %v6343_v25, 16  ;;  %7604 = vst [vmem:[#allocation4 + $0xc4] sm:$0xf] %v7254_v12  ;;  %v6677_v45 = vshrl.u32 %v6343_v25, 16  ;;  %v15836_v50 = vrot.slane %v16759_v40, 4  ;;  %10581 = vmatmul.bf16.gmra.mxu1 %v12220_v48 }
 0x3b5   : > { %v6985_v46 = vsel %vm14155_vm14, %v6983_v3, %v6984_v17  ;;  %7063 = vst [vmem:[#allocation4 + $0x368] sm:$0xf] %v6982_v44  ;;  %v6666_v62 = vrot.slane %v6664_v37, 4  ;;  %v6683_v1 = vshll.u32 %v6344_v14, 16  ;;  %v10327_v47 = vpop.f32.mrf.mxu2  ;;  %v15840_v3 = vpop.f32.mrf.mxu0  ;;  %v12609_v17 = vld [vmem:[#allocation4 + $0x38c] sm:$0xf0] }
 0x3b6   : > { %v6669_v7 = vrot.slane %v6667_v31, 5  ;;  %7064 = vst [vmem:[#allocation4 + $0x38c] sm:$0xf] %v6985_v46  ;;  %v6675_v54 = vrot.slane %v6673_v38, 5  ;;  %v6679_v28 = vrot.slane %v6677_v45, 4  ;;  %10453 = vmatmul.bf16.gmra.mxu3 %v12572_v4  ;;  %v13438_v48 = vld [vmem:[%s16756_s3 + $0x168] sm:$0xff]  ;;  %v10414_v20 = vpop.f32.mrf.mxu3 }
 0x3b7   : > { %16841 = vst [vmem:[#allocation20_spill] sm:$0xff] %v15840_v3  ;;  %v7098_v12 = vld [vmem:[#allocation3 + $0xac] sm:$0xf]  ;;  %v7144_v14 = vld [vmem:[#allocation3 + $0x30] sm:$0xf]  ;;  %v15847_v31 = vadd.f32 %v10414_v20, %v10326_v33  ;;  %10659 = vmatpush.bf16.msra.mxu2 %v13438_v48 }
 0x3b8   : > { %v6670_v25 = vor.u32 %v6669_v7, %v6666_v62  ;;  %7129 = vst [vmem:[#allocation4 + $0x3b4] sm:$0xf] %v7097_v57  ;;  %v6680_v44 = vor.u32 %v6679_v28, %v6675_v54  ;;  %v7145_v37 = vld [vmem:[#allocation3 + $0x34] sm:$0xf]  ;;  %v7146_v46 = vld [vmem:[#allocation3 + $0x38] sm:$0x1] }
 0x3b9   : > { %7130 = vst [vmem:[#allocation4 + $0x3d8] sm:$0xf] %v7098_v12  ;;  %v7256_v45 = vshrl.u32 %v7144_v14, 16  ;;  %v7259_v4 = vshll.u32 %v7144_v14, 16  ;;  %v6685_v62 = vrot.slane %v6683_v1, 5  ;;  %v7265_v7 = vshll.u32 %v7145_v37, 16 }
 0x3ba   : > { %16842 = vst [vmem:[#allocation21_spill] sm:$0xff] %v15847_v31  ;;  %v6671_v38 = vrot.slane %v6670_v25, 4  ;;  %v6681_v57 = vrot.slane %v6680_v44, 4  ;;  %v7269_v18 = vshrl.u32 %v7145_v37, 16  ;;  %v13358_v40 = vld [vmem:[#allocation4 + $0x36c] sm:$0xf]  ;;  %v15851_v3 = vpop.f32.mrf.mxu1  ;;  %v10328_v37 = vadd.f32 %v10327_v47, %v10239_v55 }
 0x3bb   : > { %v7258_v56 = vrot.slane %v7256_v45, 4  ;;  %v7261_v28 = vrot.slane %v7259_v4, 5  ;;  %v7275_v12 = vshll.u32 %v7146_v46, 16  ;;  %v12612_v32 = vor.u32 %v13358_v40, %v12609_v17  ;;  %v6838_v20 = vld [vmem:[#allocation3 + $0x9c] sm:$0xe] }
 0x3bc   : > { %v6676_v61 = vsel %vm13693_vm11, %v6671_v38, %v6675_v54  ;;  %v6686_v33 = vsel %vm13693_vm11, %v6681_v57, %v6685_v62  ;;  %v7267_v25 = vrot.slane %v7265_v7, 5  ;;  %v7271_v48 = vrot.slane %v7269_v18, 4  ;;  %v13357_v1 = vld [vmem:[#allocation4 + $0x364] sm:$0xf]  ;;  %v12601_v44 = vld [vmem:[#allocation4 + $0x384] sm:$0xf0] }
 0x3bd   : > { %6793 = vst [vmem:[#allocation4 + $0x3ac] sm:$0xf] %v6676_v61  ;;  %v7262_v14 = vor.u32 %v7261_v28, %v7258_v56  ;;  %10547 = vmatmul.bf16.gmra.mxu0 %v12612_v32  ;;  %v13273_v54 = vld [vmem:[#allocation4 + $0xc0] sm:$0xf0]  ;;  %v6839_v45 = vld [vmem:[#allocation3 + $0xa0] sm:$0xf]  ;;  %v10242_v18 = vadd.f32 %v15626_v30, %v15561_v10  ;;  %v12604_v62 = vor.u32 %v13357_v1, %v12601_v44 }
 0x3be   : > { %6794 = vst [vmem:[#allocation4 + $0x3d0] sm:$0xf] %v6686_v33  ;;  %v7272_v38 = vor.u32 %v7271_v48, %v7267_v25  ;;  %v6840_v46 = vld [vmem:[#allocation3 + $0xa4] sm:$0x1]  ;;  %v7277_v17 = vrot.slane %v7275_v12, 5  ;;  %v12130_v4 = vrot.slane %v6838_v20, 9  ;;  %v10416_v7 = vpop.f32.mrf.mxu3  ;;  %v15862_v33 = vpop.f32.mrf.mxu0 }
 0x3bf   : > { %v7263_v40 = vrot.slane %v7262_v14, 4  ;;  %v6988_v36 = vrot.slane %v6839_v45, 5  ;;  %v13446_v57 = vld [vmem:[%s16756_s3 + $0x1a8] sm:$0xff]  ;;  %v6991_v47 = vrot.slane %v6840_v46, 5  ;;  %v6345_v32 = vld [vmem:[#allocation3 + $0xa8] sm:$0xf]  ;;  %v10330_v61 = vpop.f32.mrf.mxu2  ;;  %v15860_v28 = vadd.f32 %v10416_v7, %v10328_v37 }
 0x3c0   : > { %v7273_v56 = vrot.slane %v7272_v38, 4  ;;  %v6346_v55 = vld [vmem:[#allocation3 + $0xac] sm:$0xf]  ;;  %16844 = vst [vmem:[#allocation23_spill] sm:$0xff] %v15862_v33  ;;  %v12255_v12 = vld [vmem:[#allocation4 + $0xa0] sm:$0xf]  ;;  %10748 = vmatpush.bf16.msra.mxu3 %v13446_v57  ;;  %v10331_v30 = vadd.f32 %v10330_v61, %v10242_v18 }
 0x3c1   : > { %16843 = vst [vmem:[#allocation22_spill] sm:$0xff] %v15860_v28  ;;  %v13362_v48 = vld [vmem:[#allocation4 + $0x388] sm:$0xf0]  ;;  %v7268_v20 = vsel %vm13693_vm11, %v7263_v40, %v7267_v25  ;;  %v6989_v14 = vsel %vm14155_vm14, %v12130_v4, %v6988_v36  ;;  %v6990_v10 = vrot.slane %v6988_v36, 4  ;;  %v12607_v1 = vld [vmem:[#allocation4 + $0x368] sm:$0xf]  ;;  %v12256_v46 = vor.u32 %v13273_v54, %v12255_v12 }
 0x3c2   : > { %v7278_v44 = vsel %vm13693_vm11, %v7273_v56, %v7277_v17  ;;  %7605 = vst [vmem:[#allocation4 + $0xe8] sm:$0xf] %v7268_v20  ;;  %v6347_v37 = vld [vmem:[#allocation3 + $0xb0] sm:$0x1]  ;;  %v6688_v38 = vshrl.u32 %v6345_v32, 16  ;;  %v6691_v45 = vshll.u32 %v6345_v32, 16  ;;  %10369 = vmatmul.bf16.gmra.mxu2 %v12604_v62  ;;  %v15872_v36 = vpop.f32.mrf.mxu1  ;;  %v12608_v17 = vor.u32 %v13362_v48, %v12607_v1 }
 0x3c3   : > { %7606 = vst [vmem:[#allocation4 + $0x10c] sm:$0xf] %v7278_v44  ;;  %v6992_v25 = vsel %vm14155_vm14, %v6990_v10, %v6991_v47  ;;  %v6697_v40 = vshll.u32 %v6346_v55, 16  ;;  %v6701_v7 = vshrl.u32 %v6346_v55, 16  ;;  %v7147_v4 = vld [vmem:[#allocation3 + $0x3c] sm:$0xf] }
 0x3c4   : > { %7065 = vst [vmem:[#allocation4 + $0x3b0] sm:$0xf] %v6989_v14  ;;  %v6690_v57 = vrot.slane %v6688_v38, 4  ;;  %v6693_v18 = vrot.slane %v6691_v45, 5  ;;  %v7148_v61 = vld [vmem:[#allocation3 + $0x40] sm:$0xf]  ;;  %10586 = vmatmul.bf16.gmra.mxu1 %v12256_v46 }
 0x3c5   : > { %7066 = vst [vmem:[#allocation4 + $0x3d4] sm:$0xf] %v6992_v25  ;;  %v6699_v56 = vrot.slane %v6697_v40, 5  ;;  %v6703_v32 = vrot.slane %v6701_v7, 4  ;;  %v7099_v62 = vld [vmem:[#allocation3 + $0xb4] sm:$0xf] }
 0x3c6   : > { %v15874_v54 = vld [vmem:[#allocation3 + $0x1c] sm:$0xf]  ;;  %v6694_v12 = vor.u32 %v6693_v18, %v6690_v57  ;;  %v6707_v20 = vshll.u32 %v6347_v37, 16  ;;  %v7100_v47 = vld [vmem:[#allocation3 + $0xb8] sm:$0xf]  ;;  %v13454_v55 = vld [vmem:[%s16756_s3 + $0x1e8] sm:$0xff]  ;;  %10458 = vmatmul.bf16.gmra.mxu3 %v12608_v17  ;;  %v10419_v1 = vpop.f32.mrf.mxu3  ;;  %v15891_v33 = vpop.f32.mrf.mxu0 }
 0x3c7   : > { %7131 = vst [vmem:[#allocation4 + $0x3fc] sm:$0xf] %v7099_v62  ;;  %v6704_v14 = vor.u32 %v6703_v32, %v6699_v56  ;;  %v7149_v10 = vld [vmem:[#allocation3 + $0x44] sm:$0x1]  ;;  %v7280_v44 = vshrl.u32 %v7147_v4, 16  ;;  %v7283_v48 = vshll.u32 %v7147_v4, 16  ;;  %10837 = vmatpush.bf16.msra.mxu0 %v13454_v55  ;;  %v10332_v40 = vpop.f32.mrf.mxu2  ;;  %v15882_v7 = vadd.f32 %v10419_v1, %v10331_v30 }
 0x3c8   : > { %7132 = vst [vmem:[#allocation4 + $0x420] sm:$0xf] %v7100_v47  ;;  %v6695_v38 = vrot.slane %v6694_v12, 4  ;;  %v6709_v45 = vrot.slane %v6707_v20, 5  ;;  %v7289_v46 = vshll.u32 %v7148_v61, 16  ;;  %v7293_v25 = vshrl.u32 %v7148_v61, 16 }
 0x3c9   : > { %v13462_v37 = vld [vmem:[%s16756_s3 + $0x228] sm:$0xff]  ;;  %16845 = vst [vmem:[#allocation24_spill] sm:$0xff] %v15882_v7  ;;  %v6705_v18 = vrot.slane %v6704_v14, 4  ;;  %v7282_v17 = vrot.slane %v7280_v44, 4  ;;  %v7285_v32 = vrot.slane %v7283_v48, 5  ;;  %v16846_v62 = vshrl.u32 %v15819_v0, 16 }
 0x3ca   : > { %v12645_v57 = vld [vmem:[#allocation4 + $0x3d4] sm:$0xf0]  ;;  %v13367_v12 = vld [vmem:[#allocation4 + $0x3b4] sm:$0xf]  ;;  %v6700_v20 = vsel %vm13693_vm11, %v6695_v38, %v6699_v56  ;;  %v7291_v61 = vrot.slane %v7289_v46, 5  ;;  %v7295_v47 = vrot.slane %v7293_v25, 4  ;;  %10926 = vmatpush.bf16.msra.mxu1 %v13462_v37 }
 0x3cb   : > { %v15886_v4 = vrot.slane %v16846_v62, 4  ;;  %v8026_v55 = vshll.u32 %v15874_v54, 16  ;;  %16847 = vst [vmem:[#allocation25_spill] sm:$0xff] %v15891_v33  ;;  %v6710_v30 = vsel %vm13693_vm11, %v6705_v18, %v6709_v45  ;;  %v7286_v14 = vor.u32 %v7285_v32, %v7282_v17  ;;  %v6841_v48 = vld [vmem:[#allocation3 + $0xa8] sm:$0xe]  ;;  %v15905_v25 = vpop.f32.mrf.mxu1 }
 0x3cc   : > { %6795 = vst [vmem:[#allocation4 + $0x3f4] sm:$0xf] %v6700_v20  ;;  %v7299_v44 = vshll.u32 %v7149_v10, 16  ;;  %v13366_v1 = vld [vmem:[#allocation4 + $0x3ac] sm:$0xf]  ;;  %v12648_v7 = vor.u32 %v13367_v12, %v12645_v57  ;;  %v7296_v28 = vor.u32 %v7295_v47, %v7291_v61  ;;  %v8030_v38 = vshrl.u32 %v15874_v54, 16 }
 0x3cd   : > { %v12637_v62 = vld [vmem:[#allocation4 + $0x3cc] sm:$0xf0]  ;;  %6796 = vst [vmem:[#allocation4 + $0x418] sm:$0xf] %v6710_v30  ;;  %v6842_v56 = vld [vmem:[#allocation3 + $0xac] sm:$0xf] }
 0x3ce   : > { %v15899_v46 = vld [vmem:[%s16757_s4] ss:$0 sm:$0xff]  ;;  %v13282_v37 = vld [vmem:[#allocation4 + $0x108] sm:$0xf0]  ;;  %v7287_v57 = vrot.slane %v7286_v14, 4  ;;  %10552 = vmatmul.bf16.gmra.mxu0 %v12648_v7  ;;  %v7297_v17 = vrot.slane %v7296_v28, 4  ;;  %v12640_v30 = vor.u32 %v13366_v1, %v12637_v62 }
 0x3cf   : > { %v10244_v45 = vadd.f32 %v15899_v46, %v15582_v5  ;;  %v10247_v10 = vadd.f32 %v15899_v46, %v15601_v53  ;;  %v6843_v18 = vld [vmem:[#allocation3 + $0xb0] sm:$0x1]  ;;  %v7301_v32 = vrot.slane %v7299_v44, 5  ;;  %v12131_v54 = vrot.slane %v6841_v48, 9  ;;  %v13437_v20 = vld [vmem:[%s16756_s3 + $0x160] sm:$0xff]  ;;  %v10421_v44 = vpop.f32.mrf.mxu3 }
 0x3d0   : > { %v6995_v12 = vrot.slane %v6842_v56, 5  ;;  %v12291_v5 = vld [vmem:[#allocation4 + $0xe8] sm:$0xf]  ;;  %v7292_v53 = vsel %vm13693_vm11, %v7287_v57, %v7291_v61  ;;  %v6998_v33 = vrot.slane %v6843_v18, 5  ;;  %v13453_v14 = vld [vmem:[%s16756_s3 + $0x1e0] sm:$0xff]  ;;  %10660 = vmatpush.bf16.msra.mxu2 %v13437_v20  ;;  %v15923_v31 = vrot.slane %v8026_v55, 5 }
 0x3d1   : > { %v10333_v47 = vadd.f32 %v10332_v40, %v10244_v45  ;;  %v6348_v7 = vld [vmem:[#allocation3 + $0xb4] sm:$0xf]  ;;  %v6349_v28 = vld [vmem:[#allocation3 + $0xb8] sm:$0xf]  ;;  %v7302_v48 = vsel %vm13693_vm11, %v7297_v17, %v7301_v32  ;;  %7607 = vst [vmem:[#allocation4 + $0x130] sm:$0xf] %v7292_v53  ;;  %10838 = vmatpush.bf16.msra.mxu0 %v13453_v14  ;;  %v10335_v17 = vpop.f32.mrf.mxu2  ;;  %v12292_v32 = vor.u32 %v13282_v37, %v12291_v5 }
 0x3d2   : > { %v6996_v40 = vsel %vm14155_vm14, %v12131_v54, %v6995_v12  ;;  %v6997_v1 = vrot.slane %v6995_v12, 4  ;;  %v6350_v62 = vld [vmem:[#allocation3 + $0xbc] sm:$0x1]  ;;  %v6712_v56 = vshrl.u32 %v6348_v7, 16  ;;  %v15919_v61 = vld [vmem:[#allocation3 + $0x20] sm:$0x1]  ;;  %10374 = vmatmul.bf16.gmra.mxu2 %v12640_v30  ;;  %v10336_v20 = vadd.f32 %v10335_v17, %v10247_v10 }
 0x3d3   : > { %v15921_v45 = vadd.f32 %v10421_v44, %v10333_v47  ;;  %7608 = vst [vmem:[#allocation4 + $0x154] sm:$0xf] %v7302_v48  ;;  %v6715_v57 = vshll.u32 %v6348_v7, 16  ;;  %v6721_v18 = vshll.u32 %v6349_v28, 16  ;;  %v6725_v27 = vshrl.u32 %v6349_v28, 16  ;;  %v13452_v10 = vld [vmem:[%s16756_s3 + $0x1d8] sm:$0xff] }
 0x3d4   : > { %v12643_v53 = vld [vmem:[#allocation4 + $0x3b0] sm:$0xf]  ;;  %v13371_v2 = vld [vmem:[#allocation4 + $0x3d0] sm:$0xf0]  ;;  %v6999_v54 = vsel %vm14155_vm14, %v6997_v1, %v6998_v33  ;;  %7067 = vst [vmem:[#allocation4 + $0x3f8] sm:$0xf] %v6996_v40  ;;  %10591 = vmatmul.bf16.gmra.mxu1 %v12292_v32  ;;  %v15940_v1 = vpop.f32.mrf.mxu1 }
 0x3d5   : > { %16848 = vst [vmem:[#allocation7_spill] sm:$0xff] %v15921_v45  ;;  %v6714_v12 = vrot.slane %v6712_v56, 4  ;;  %v6717_v47 = vrot.slane %v6715_v57, 5  ;;  %v6723_v44 = vrot.slane %v6721_v18, 5  ;;  %v6731_v14 = vshll.u32 %v6350_v62, 16  ;;  %v15927_v45 = vpop.f32.mrf.mxu0  ;;  %v13436_v33 = vld [vmem:[%s16756_s3 + $0x158] sm:$0xff]  ;;  %10839 = vmatpush.bf16.msra.mxu0 %v13452_v10 }
 0x3d6   : > { %7068 = vst [vmem:[#allocation4 + $0x41c] sm:$0xf] %v6999_v54  ;;  %v8032_v7 = vrot.slane %v8030_v38, 4  ;;  %v6727_v48 = vrot.slane %v6725_v27, 4  ;;  %v7101_v28 = vld [vmem:[#allocation3 + $0xc0] sm:$0xf]  ;;  %v12644_v37 = vor.u32 %v13371_v2, %v12643_v53  ;;  %10661 = vmatpush.bf16.msra.mxu2 %v13436_v33 }
 0x3d7   : > { %v7102_v55 = vld [vmem:[#allocation3 + $0xc4] sm:$0xf]  ;;  %16849 = vst [vmem:[#allocation5_spill] sm:$0xff] %v15927_v45  ;;  %v6718_v5 = vor.u32 %v6717_v47, %v6714_v12  ;;  %v7150_v30 = vld [vmem:[#allocation3 + $0x48] sm:$0xf]  ;;  %v16850_v38 = vshll.u32 %v15819_v0, 16  ;;  %v10424_v0 = vpop.f32.mrf.mxu3 }
 0x3d8   : > { %7133 = vst [vmem:[#allocation4 + $0x444] sm:$0xf] %v7101_v28  ;;  %v6728_v2 = vor.u32 %v6727_v48, %v6723_v44  ;;  %v7151_v62 = vld [vmem:[#allocation3 + $0x4c] sm:$0xf]  ;;  %10463 = vmatmul.bf16.gmra.mxu3 %v12644_v37  ;;  %v6733_v57 = vrot.slane %v6731_v14, 5  ;;  %v13435_v18 = vld [vmem:[%s16756_s3 + $0x150] sm:$0xff]  ;;  %v8033_v28 = vor.u32 %v8032_v7, %v15923_v31  ;;  %v15949_v14 = vadd.f32 %v10424_v0, %v10336_v20 }
 0x3d9   : > { %v15937_v27 = vrot.slane %v16850_v38, 5  ;;  %7134 = vst [vmem:[#allocation4 + $0x468] sm:$0xf] %v7102_v55  ;;  %v6719_v56 = vrot.slane %v6718_v5, 4  ;;  %v7152_v17 = vld [vmem:[#allocation3 + $0x50] sm:$0x1]  ;;  %v10337_v38 = vpop.f32.mrf.mxu2 }
 0x3da   : > { %v7304_v32 = vshrl.u32 %v7150_v30, 16  ;;  %v6729_v53 = vrot.slane %v6728_v2, 4  ;;  %v13451_v54 = vld [vmem:[%s16756_s3 + $0x1d0] sm:$0xff]  ;;  %v7307_v12 = vshll.u32 %v7150_v30, 16  ;;  %v7313_v47 = vshll.u32 %v7151_v62, 16  ;;  %v13445_v33 = vld [vmem:[%s16756_s3 + $0x1a0] sm:$0xff]  ;;  %10662 = vmatpush.bf16.msra.mxu2 %v13435_v18 }
 0x3db   : > { %v7317_v48 = vshrl.u32 %v7151_v62, 16  ;;  %v12681_v55 = vld [vmem:[#allocation4 + $0x41c] sm:$0xf0]  ;;  %v6724_v37 = vsel %vm13693_vm11, %v6719_v56, %v6723_v44  ;;  %v6844_v10 = vld [vmem:[#allocation3 + $0xb4] sm:$0xe]  ;;  %v8023_v20 = vor.u32 %v15937_v27, %v15886_v4  ;;  %v7323_v56 = vshll.u32 %v7152_v17, 16  ;;  %10749 = vmatpush.bf16.msra.mxu3 %v13445_v33  ;;  %10840 = vmatpush.bf16.msra.mxu0 %v13451_v54 }
 0x3dc   : > { %v7306_v5 = vrot.slane %v7304_v32, 4  ;;  %v13376_v2 = vld [vmem:[#allocation4 + $0x3fc] sm:$0xf]  ;;  %v6734_v30 = vsel %vm13693_vm11, %v6729_v53, %v6733_v57  ;;  %6797 = vst [vmem:[#allocation4 + $0x43c] sm:$0xf] %v6724_v37  ;;  %v7309_v62 = vrot.slane %v7307_v12, 5  ;;  %v10249_v27 = vadd.f32 %v15899_v46, %v15640_v41 }
 0x3dd   : > { %v7315_v7 = vrot.slane %v7313_v47, 5  ;;  %6798 = vst [vmem:[#allocation4 + $0x460] sm:$0xf] %v6734_v30  ;;  %v7319_v44 = vrot.slane %v7317_v48, 4  ;;  %v6845_v32 = vld [vmem:[#allocation3 + $0xb8] sm:$0xf]  ;;  %v12684_v57 = vor.u32 %v13376_v2, %v12681_v55  ;;  %v15984_v2 = vpop.f32.mrf.mxu0 }
 0x3de   : > { %v16851_v0 = vrot.slane %v15781_v8, 5  ;;  %v16852_v40 = vrot.slane %v15779_v63, 9  ;;  %v7310_v53 = vor.u32 %v7309_v62, %v7306_v5  ;;  %v6846_v12 = vld [vmem:[#allocation3 + $0xbc] sm:$0x1]  ;;  %v12132_v47 = vrot.slane %v6844_v10, 9  ;;  %v13434_v8 = vld [vmem:[%s16756_s3 + $0x148] sm:$0xff] }
 0x3df   : > { %v7002_v37 = vrot.slane %v6845_v32, 5  ;;  %v8034_v4 = vrot.slane %v8033_v28, 4  ;;  %v12673_v18 = vld [vmem:[#allocation4 + $0x414] sm:$0xf0]  ;;  %v7320_v17 = vor.u32 %v7319_v44, %v7315_v7  ;;  %v13375_v48 = vld [vmem:[#allocation4 + $0x3f4] sm:$0xf]  ;;  %10557 = vmatmul.bf16.gmra.mxu0 %v12684_v57  ;;  %v10338_v10 = vadd.f32 %v10337_v38, %v10249_v27  ;;  %10663 = vmatpush.bf16.msra.mxu2 %v13434_v8  ;;  %v15988_v32 = vpop.f32.mrf.mxu1 }
 0x3e0   : > { %v7730_v45 = vsel %vm14155_vm14, %v16852_v40, %v16851_v0  ;;  %v13450_v63 = vld [vmem:[%s16756_s3 + $0x1c8] sm:$0xff]  ;;  %v16853_v40 = vrot.slane %v15817_v21, 5  ;;  %v7311_v28 = vrot.slane %v7310_v53, 4  ;;  %v7005_v5 = vrot.slane %v6846_v12, 5  ;;  %v13444_v33 = vld [vmem:[%s16756_s3 + $0x198] sm:$0xff]  ;;  %v10426_v0 = vpop.f32.mrf.mxu3  ;;  %v13433_v38 = vld [vmem:[%s16756_s3 + $0x140] sm:$0xff] }
 0x3e1   : > { %v7003_v41 = vsel %vm14155_vm14, %v12132_v47, %v7002_v37  ;;  %v7004_v55 = vrot.slane %v7002_v37, 4  ;;  %7871 = vst [vmem:[#allocation4 + $0x14] sm:$0xf] %v7730_v45  ;;  %v13291_v21 = vld [vmem:[#allocation4 + $0x150] sm:$0xf0]  ;;  %v7321_v30 = vrot.slane %v7320_v17, 4  ;;  %10841 = vmatpush.bf16.msra.mxu0 %v13450_v63  ;;  %10750 = vmatpush.bf16.msra.mxu3 %v13444_v33  ;;  %v12676_v53 = vor.u32 %v13375_v48, %v12673_v18  ;;  %v10340_v63 = vpop.f32.mrf.mxu2 }
 0x3e2   : > { %v7733_v54 = vsel %vm14155_vm14, %v15836_v50, %v16853_v40  ;;  %v7325_v62 = vrot.slane %v7323_v56, 5  ;;  %7069 = vst [vmem:[#allocation4 + $0x440] sm:$0xf] %v7003_v41  ;;  %v16854_v50 = vshll.u32 %v15919_v61, 16  ;;  %v7316_v57 = vsel %vm13693_vm11, %v7311_v28, %v7315_v7  ;;  %v13449_v61 = vld [vmem:[%s16756_s3 + $0x1c0] sm:$0xff]  ;;  %v13443_v37 = vld [vmem:[%s16756_s3 + $0x190] sm:$0xff] }
 0x3e3   : > { %v7006_v45 = vsel %vm14155_vm14, %v7004_v55, %v7005_v5  ;;  %7872 = vst [vmem:[#allocation4 + $0x38] sm:$0xf] %v7733_v54  ;;  %v8024_v56 = vrot.slane %v8023_v20, 4  ;;  %v16000_v12 = vadd.f32 %v10426_v0, %v10338_v10  ;;  %v12327_v47 = vld [vmem:[#allocation4 + $0x130] sm:$0xf]  ;;  %v10252_v27 = vadd.f32 %v15899_v46, %v15671_v9  ;;  %10379 = vmatmul.bf16.gmra.mxu2 %v12676_v53 }
 0x3e4   : > { %v8038_v44 = vrot.slane %v16854_v50, 5  ;;  %v7326_v7 = vsel %vm13693_vm11, %v7321_v30, %v7325_v62  ;;  %7609 = vst [vmem:[#allocation4 + $0x178] sm:$0xf] %v7316_v57  ;;  %v12679_v17 = vld [vmem:[#allocation4 + $0x3f8] sm:$0xf]  ;;  %v12328_v40 = vor.u32 %v13291_v21, %v12327_v47  ;;  %10664 = vmatpush.bf16.msra.mxu2 %v13433_v38  ;;  %v13441_v53 = vld [vmem:[%s16756_s3 + $0x180] sm:$0xff] }
 0x3e5   : > { %v13380_v8 = vld [vmem:[#allocation4 + $0x418] sm:$0xf0]  ;;  %7610 = vst [vmem:[#allocation4 + $0x19c] sm:$0xf] %v7326_v7  ;;  %v8029_v20 = vsel %vm13693_vm11, %v8024_v56, %v15923_v31  ;;  %v7904_v54 = vld [vmem:[#allocation3 + $0x18] sm:$0xf]  ;;  %v10341_v28 = vadd.f32 %v10340_v63, %v10252_v27  ;;  %10842 = vmatpush.bf16.msra.mxu0 %v13449_v61  ;;  %10751 = vmatpush.bf16.msra.mxu3 %v13443_v37  ;;  %v16019_v57 = vpop.f32.mrf.mxu0 }
 0x3e6   : > { %v8039_v18 = vsel %vm13693_vm11, %v8034_v4, %v8038_v44  ;;  %7070 = vst [vmem:[#allocation4 + $0x464] sm:$0xf] %v7006_v45  ;;  %v7635_v48 = vld [vmem:[#allocation3 + $0x1c] sm:$0xf]  ;;  %v7634_v9 = vld [vmem:[#allocation3 + $0x18] sm:$0xe]  ;;  %10596 = vmatmul.bf16.gmra.mxu1 %v12328_v40  ;;  %v12680_v55 = vor.u32 %v13380_v8, %v12679_v17 }
 0x3e7   : > { %8432 = vst [vmem:[#allocation4 + $0x1c] sm:$0xf] %v8029_v20  ;;  %v7736_v41 = vrot.slane %v7635_v48, 5  ;;  %v13442_v31 = vld [vmem:[%s16756_s3 + $0x188] sm:$0xff]  ;;  %v7636_v4 = vld [vmem:[#allocation3 + $0x20] sm:$0x1]  ;;  %v16017_v30 = vpop.f32.mrf.mxu1 }
 0x3e8   : > { %8433 = vst [vmem:[#allocation4 + $0x40] sm:$0xf] %v8039_v18  ;;  %10468 = vmatmul.bf16.gmra.mxu3 %v12680_v55  ;;  %v7153_v33 = vld [vmem:[#allocation3 + $0x54] sm:$0xf]  ;;  %v7154_v10 = vld [vmem:[#allocation3 + $0x58] sm:$0xf]  ;;  %v10429_v45 = vpop.f32.mrf.mxu3 }
 0x3e9   : > { %7936 = vst [vmem:[#allocation4 + $0x18] sm:$0xf] %v7904_v54  ;;  %v7738_v5 = vrot.slane %v7736_v41, 4  ;;  %v12134_v21 = vrot.slane %v7634_v9, 9  ;;  %v7155_v62 = vld [vmem:[#allocation3 + $0x5c] sm:$0x1]  ;;  %10752 = vmatpush.bf16.msra.mxu3 %v13442_v31  ;;  %v16026_v7 = vadd.f32 %v10429_v45, %v10341_v28  ;;  %v10342_v48 = vpop.f32.mrf.mxu2 }
 0x3ea   : > { %v7328_v50 = vshrl.u32 %v7153_v33, 16  ;;  %v7331_v44 = vshll.u32 %v7153_v33, 16  ;;  %v7739_v0 = vrot.slane %v7636_v4, 5  ;;  %16855 = vst [vmem:[#allocation9_spill] sm:$0xff] %v16019_v57  ;;  %v12717_v38 = vld [vmem:[#allocation4 + $0x464] sm:$0xf0] }
 0x3eb   : > { %v7337_v61 = vshll.u32 %v7154_v10, 16  ;;  %v7341_v56 = vshrl.u32 %v7154_v10, 16  ;;  %v7737_v47 = vsel %vm14155_vm14, %v12134_v21, %v7736_v41  ;;  %v13385_v37 = vld [vmem:[#allocation4 + $0x444] sm:$0xf]  ;;  %v13461_v8 = vld [vmem:[%s16756_s3 + $0x220] sm:$0xff]  ;;  %v7347_v54 = vshll.u32 %v7155_v62, 16 }
 0x3ec   : > { %v7330_v27 = vrot.slane %v7328_v50, 4  ;;  %v7333_v17 = vrot.slane %v7331_v44, 5  ;;  %v7740_v20 = vsel %vm14155_vm14, %v7738_v5, %v7739_v0  ;;  %v12709_v18 = vld [vmem:[#allocation4 + $0x45c] sm:$0xf0]  ;;  %v12720_v9 = vor.u32 %v13385_v37, %v12717_v38  ;;  %10927 = vmatpush.bf16.msra.mxu1 %v13461_v8  ;;  %7873 = vst [vmem:[#allocation4 + $0x5c] sm:$0xf] %v7737_v47 }
 0x3ed   : > { %v7339_v63 = vrot.slane %v7337_v61, 5  ;;  %v7343_v40 = vrot.slane %v7341_v56, 4  ;;  %v7971_v28 = vld [vmem:[#allocation3 + $0x24] sm:$0xf]  ;;  %v10254_v41 = vadd.f32 %v15899_v46, %v15696_v59  ;;  %v13384_v31 = vld [vmem:[#allocation4 + $0x43c] sm:$0xf]  ;;  %10753 = vmatpush.bf16.msra.mxu3 %v13441_v53 }
 0x3ee   : > { %v7334_v55 = vor.u32 %v7333_v17, %v7330_v27  ;;  %7874 = vst [vmem:[#allocation4 + $0x80] sm:$0xf] %v7740_v20  ;;  %v7972_v33 = vld [vmem:[#allocation3 + $0x28] sm:$0xf]  ;;  %v12712_v10 = vor.u32 %v13384_v31, %v12709_v18  ;;  %v13300_v5 = vld [vmem:[#allocation4 + $0x198] sm:$0xf0]  ;;  %v16043_v31 = vpop.f32.mrf.mxu0 }
 0x3ef   : > { %v7344_v4 = vor.u32 %v7343_v40, %v7339_v63  ;;  %10562 = vmatmul.bf16.gmra.mxu0 %v12720_v9  ;;  %v7973_v50 = vld [vmem:[#allocation3 + $0x2c] sm:$0x1]  ;;  %v8041_v62 = vshrl.u32 %v7971_v28, 16  ;;  %v8044_v44 = vshll.u32 %v7971_v28, 16  ;;  %v7349_v45 = vrot.slane %v7347_v54, 5  ;;  %v16035_v37 = vpop.f32.mrf.mxu1  ;;  %16857 = vst [vmem:[#allocation10_spill] sm:$0xff] %v16043_v31 }
 0x3f0   : > { %v7335_v21 = vrot.slane %v7334_v55, 4  ;;  %v8050_v38 = vshll.u32 %v7972_v33, 16  ;;  %v8054_v61 = vshrl.u32 %v7972_v33, 16  ;;  %v7906_v56 = vld [vmem:[#allocation3 + $0x24] sm:$0xf]  ;;  %v10343_v47 = vadd.f32 %v10342_v48, %v10254_v41  ;;  %v10431_v20 = vpop.f32.mrf.mxu3 }
 0x3f1   : > { %v7345_v0 = vrot.slane %v7344_v4, 4  ;;  %v12363_v59 = vld [vmem:[#allocation4 + $0x178] sm:$0xf]  ;;  %v8043_v27 = vrot.slane %v8041_v62, 4  ;;  %v8046_v17 = vrot.slane %v8044_v44, 5  ;;  %v8060_v9 = vshll.u32 %v7973_v50, 16 }
 0x3f2   : > { %v7340_v53 = vsel %vm13693_vm11, %v7335_v21, %v7339_v63  ;;  %v7907_v8 = vld [vmem:[#allocation3 + $0x28] sm:$0xf]  ;;  %7938 = vst [vmem:[#allocation4 + $0x60] sm:$0xf] %v7906_v56  ;;  %v8052_v40 = vrot.slane %v8050_v38, 5  ;;  %v8056_v54 = vrot.slane %v8054_v61, 4  ;;  %v16041_v55 = vadd.f32 %v10431_v20, %v10343_v47 }
 0x3f3   : > { %v7350_v18 = vsel %vm13693_vm11, %v7345_v0, %v7349_v45  ;;  %7611 = vst [vmem:[#allocation4 + $0x1c0] sm:$0xf] %v7340_v53  ;;  %v13389_v48 = vld [vmem:[#allocation4 + $0x460] sm:$0xf0]  ;;  %v8047_v28 = vor.u32 %v8046_v17, %v8043_v27  ;;  %v7638_v41 = vld [vmem:[#allocation3 + $0x28] sm:$0xf]  ;;  %10384 = vmatmul.bf16.gmra.mxu2 %v12712_v10  ;;  %v12364_v63 = vor.u32 %v13300_v5, %v12363_v59 }
 0x3f4   : > { %16856 = vst [vmem:[#allocation6_spill] sm:$0xff] %v16041_v55  ;;  %v8057_v4 = vor.u32 %v8056_v54, %v8052_v40  ;;  %v7637_v33 = vld [vmem:[#allocation3 + $0x24] sm:$0xe]  ;;  %v7639_v21 = vld [vmem:[#allocation3 + $0x2c] sm:$0x1]  ;;  %v7743_v0 = vrot.slane %v7638_v41, 5  ;;  %v10257_v50 = vadd.f32 %v15899_v46, %v15723_v49  ;;  %v10345_v47 = vpop.f32.mrf.mxu2 }
 0x3f5   : > { %7612 = vst [vmem:[#allocation4 + $0x1e4] sm:$0xf] %v7350_v18  ;;  %v12715_v62 = vld [vmem:[#allocation4 + $0x440] sm:$0xf]  ;;  %v8048_v44 = vrot.slane %v8047_v28, 4  ;;  %v8062_v61 = vrot.slane %v8060_v9, 5 }
 0x3f6   : > { %7939 = vst [vmem:[#allocation4 + $0x84] sm:$0xf] %v7907_v8  ;;  %10601 = vmatmul.bf16.gmra.mxu1 %v12364_v63  ;;  %v12716_v45 = vor.u32 %v13389_v48, %v12715_v62  ;;  %v8058_v38 = vrot.slane %v8057_v4, 4  ;;  %v7974_v56 = vld [vmem:[#allocation3 + $0x30] sm:$0xf]  ;;  %v12135_v5 = vrot.slane %v7637_v33, 9  ;;  %v10346_v27 = vadd.f32 %v10345_v47, %v10257_v50 }
 0x3f7   : > { %v8053_v10 = vsel %vm13693_vm11, %v8048_v44, %v8052_v40  ;;  %v7745_v59 = vrot.slane %v7743_v0, 4  ;;  %v7746_v53 = vrot.slane %v7639_v21, 5  ;;  %v7156_v8 = vld [vmem:[#allocation3 + $0x60] sm:$0xf]  ;;  %v7157_v49 = vld [vmem:[#allocation3 + $0x64] sm:$0xf]  ;;  %v16051_v20 = vpop.f32.mrf.mxu1 }
 0x3f8   : > { %10473 = vmatmul.bf16.gmra.mxu3 %v12716_v45  ;;  %v8063_v17 = vsel %vm13693_vm11, %v8058_v38, %v8062_v61  ;;  %8434 = vst [vmem:[#allocation4 + $0x64] sm:$0xf] %v8053_v10  ;;  %v12193_v18 = vld [vmem:[#allocation4 + $0x3c] sm:$0xf0]  ;;  %v7744_v54 = vsel %vm14155_vm14, %v12135_v5, %v7743_v0  ;;  %v8065_v9 = vshrl.u32 %v7974_v56, 16  ;;  %v7352_v28 = vshrl.u32 %v7156_v8, 16 }
 0x3f9   : > { %8435 = vst [vmem:[#allocation4 + $0x88] sm:$0xf] %v8063_v17  ;;  %v13252_v40 = vld [vmem:[#allocation4 + $0x1c] sm:$0xf]  ;;  %v7158_v48 = vld [vmem:[#allocation3 + $0x68] sm:$0x1]  ;;  %v7747_v4 = vsel %vm14155_vm14, %v7745_v59, %v7746_v53  ;;  %v10434_v33 = vpop.f32.mrf.mxu3 }
 0x3fa   : > { %v7355_v41 = vshll.u32 %v7156_v8, 16  ;;  %v7361_v63 = vshll.u32 %v7157_v49, 16  ;;  %v7365_v21 = vshrl.u32 %v7157_v49, 16  ;;  %v7975_v62 = vld [vmem:[#allocation3 + $0x34] sm:$0xf]  ;;  %v16057_v50 = vadd.f32 %v10434_v33, %v10346_v27  ;;  %v16059_v8 = vpop.f32.mrf.mxu0 }
 0x3fb   : > { %v7908_v44 = vld [vmem:[#allocation3 + $0x30] sm:$0xf]  ;;  %v7354_v45 = vrot.slane %v7352_v28, 4  ;;  %7875 = vst [vmem:[#allocation4 + $0xa4] sm:$0xf] %v7744_v54  ;;  %v12196_v47 = vor.u32 %v13252_v40, %v12193_v18  ;;  %v7371_v5 = vshll.u32 %v7158_v48, 16  ;;  %v10259_v18 = vadd.f32 %v15899_v46, %v15747_v15 }
 0x3fc   : > { %v7357_v38 = vrot.slane %v7355_v41, 5  ;;  %v7363_v61 = vrot.slane %v7361_v63, 5  ;;  %v7976_v0 = vld [vmem:[#allocation3 + $0x38] sm:$0x1]  ;;  %v7367_v10 = vrot.slane %v7365_v21, 4  ;;  %v8067_v17 = vrot.slane %v8065_v9, 4  ;;  %v10347_v55 = vpop.f32.mrf.mxu2 }
 0x3fd   : > { %7876 = vst [vmem:[#allocation4 + $0xc8] sm:$0xf] %v7747_v4  ;;  %v8068_v59 = vshll.u32 %v7974_v56, 16  ;;  %v8074_v53 = vshll.u32 %v7975_v62, 16  ;;  %v8078_v49 = vshrl.u32 %v7975_v62, 16  ;;  %v7373_v4 = vrot.slane %v7371_v5, 5 }
 0x3fe   : > { %16858 = vst [vmem:[#allocation8_spill] sm:$0xff] %v16059_v8  ;;  %v7358_v31 = vor.u32 %v7357_v38, %v7354_v45  ;;  %v7909_v57 = vld [vmem:[#allocation3 + $0x34] sm:$0xf]  ;;  %v13251_v27 = vld [vmem:[#allocation4 + $0x14] sm:$0xf]  ;;  %v7368_v28 = vor.u32 %v7367_v10, %v7363_v61  ;;  %v8084_v21 = vshll.u32 %v7976_v0, 16  ;;  %v10348_v62 = vadd.f32 %v10347_v55, %v10259_v18 }
 0x3ff   : > { %v12185_v33 = vld [vmem:[#allocation4 + $0x34] sm:$0xf0]  ;;  %10843 = vmatmul.bf16.vlgmr.msra.gmra.mxu0 %v12196_v47  ;;  %7940 = vst [vmem:[#allocation4 + $0xa8] sm:$0xf] %v7908_v44  ;;  %v13309_v54 = vld [vmem:[#allocation4 + $0x1e0] sm:$0xf0] }
 0x400   : > { %v7359_v40 = vrot.slane %v7358_v31, 4  ;;  %v8070_v48 = vrot.slane %v8068_v59, 5  ;;  %v8076_v9 = vrot.slane %v8074_v53, 5  ;;  %v13256_v41 = vld [vmem:[#allocation4 + $0x38] sm:$0xf0]  ;;  %v7369_v63 = vrot.slane %v7368_v28, 4 }
 0x401   : > { %v8080_v56 = vrot.slane %v8078_v49, 4  ;;  %7941 = vst [vmem:[#allocation4 + $0xcc] sm:$0xf] %v7909_v57  ;;  %v12188_v45 = vor.u32 %v13251_v27, %v12185_v33  ;;  %v12399_v38 = vld [vmem:[#allocation4 + $0x1c0] sm:$0xf]  ;;  %v16065_v15 = vpop.f32.mrf.mxu1  ;;  %v10436_v31 = vpop.f32.mrf.mxu3  ;;  %v8086_v33 = vrot.slane %v8084_v21, 5 }
 0x402   : > { %v7364_v47 = vsel %vm13693_vm11, %v7359_v40, %v7363_v61  ;;  %v8071_v44 = vor.u32 %v8070_v48, %v8067_v17  ;;  %v7640_v10 = vld [vmem:[#allocation3 + $0x30] sm:$0xe]  ;;  %v7641_v8 = vld [vmem:[#allocation3 + $0x34] sm:$0xf]  ;;  %v7374_v59 = vsel %vm13693_vm11, %v7369_v63, %v7373_v4  ;;  %v7642_v53 = vld [vmem:[#allocation3 + $0x38] sm:$0x1]  ;;  %v16069_v55 = vadd.f32 %v10436_v31, %v10348_v62  ;;  %v16079_v62 = vpop.f32.mrf.mxu0 }
 0x403   : > { %7613 = vst [vmem:[#allocation4 + $0x208] sm:$0xf] %v7364_v47  ;;  %v8081_v5 = vor.u32 %v8080_v56, %v8076_v9  ;;  %v12136_v0 = vrot.slane %v7640_v10, 9  ;;  %v7750_v57 = vrot.slane %v7641_v8, 5  ;;  %10665 = vmatmul.bf16.vlgmr.msra.gmra.mxu2 %v12188_v45  ;;  %v12400_v49 = vor.u32 %v13309_v54, %v12399_v38  ;;  %v12191_v27 = vld [vmem:[#allocation4 + $0x18] sm:$0xf] }
 0x404   : > { %16859 = vst [vmem:[#allocation13_spill] sm:$0xff] %v16069_v55  ;;  %v8072_v61 = vrot.slane %v8071_v44, 4  ;;  %v7977_v40 = vld [vmem:[#allocation3 + $0x3c] sm:$0xf]  ;;  %v10262_v48 = vadd.f32 %v15899_v46, %v15769_v19  ;;  %v12192_v63 = vor.u32 %v13256_v41, %v12191_v27  ;;  %v7753_v4 = vrot.slane %v7642_v53, 5  ;;  %v13460_v53 = vld [vmem:[%s16756_s3 + $0x218] sm:$0xff] }
 0x405   : > { %7614 = vst [vmem:[#allocation4 + $0x22c] sm:$0xf] %v7374_v59  ;;  %v8082_v17 = vrot.slane %v8081_v5, 4  ;;  %v7751_v28 = vsel %vm14155_vm14, %v12136_v0, %v7750_v57  ;;  %v7752_v18 = vrot.slane %v7750_v57, 4  ;;  %v10350_v54 = vpop.f32.mrf.mxu2  ;;  %v8089_v21 = vshrl.u32 %v7977_v40, 16  ;;  %10928 = vmatpush.bf16.msra.mxu1 %v13460_v53 }
 0x406   : > { %10606 = vmatmul.bf16.gmra.mxu1 %v12400_v49  ;;  %v8077_v8 = vsel %vm13693_vm11, %v8072_v61, %v8076_v9  ;;  %7877 = vst [vmem:[#allocation4 + $0xec] sm:$0xf] %v7751_v28  ;;  %v10351_v45 = vadd.f32 %v10350_v54, %v10262_v48  ;;  %v12229_v38 = vld [vmem:[#allocation4 + $0x84] sm:$0xf0]  ;;  %v7159_v19 = vld [vmem:[#allocation3 + $0x6c] sm:$0xf] }
 0x407   : > { %v8087_v56 = vsel %vm13693_vm11, %v8082_v17, %v8086_v33  ;;  %8436 = vst [vmem:[#allocation4 + $0xac] sm:$0xf] %v8077_v8  ;;  %v7160_v47 = vld [vmem:[#allocation3 + $0x70] sm:$0xf]  ;;  %v7754_v41 = vsel %vm14155_vm14, %v7752_v18, %v7753_v4  ;;  %v7161_v9 = vld [vmem:[#allocation3 + $0x74] sm:$0x1] }
 0x408   : > { %16860 = vst [vmem:[#allocation11_spill] sm:$0xff] %v16079_v62  ;;  %10754 = vmatmul.bf16.vlgmr.msra.gmra.mxu3 %v12192_v63  ;;  %v7376_v44 = vshrl.u32 %v7159_v19, 16  ;;  %v7379_v10 = vshll.u32 %v7159_v19, 16  ;;  %v7385_v31 = vshll.u32 %v7160_v47, 16  ;;  %v7389_v59 = vshrl.u32 %v7160_v47, 16 }
 0x409   : > { %8437 = vst [vmem:[#allocation4 + $0xd0] sm:$0xf] %v8087_v56  ;;  %v7395_v5 = vshll.u32 %v7161_v9, 16  ;;  %v8092_v0 = vshll.u32 %v7977_v40, 16  ;;  %v7910_v57 = vld [vmem:[#allocation3 + $0x3c] sm:$0xf]  ;;  %v16086_v49 = vpop.f32.mrf.mxu1  ;;  %v10439_v27 = vpop.f32.mrf.mxu3 }
 0x40a   : > { %v7378_v61 = vrot.slane %v7376_v44, 4  ;;  %v7381_v17 = vrot.slane %v7379_v10, 5  ;;  %v7387_v33 = vrot.slane %v7385_v31, 5  ;;  %v7391_v28 = vrot.slane %v7389_v59, 4  ;;  %v7978_v18 = vld [vmem:[#allocation3 + $0x40] sm:$0xf] }
 0x40b   : > { %v16088_v48 = vadd.f32 %v10439_v27, %v10351_v45  ;;  %v13261_v63 = vld [vmem:[#allocation4 + $0x64] sm:$0xf]  ;;  %7878 = vst [vmem:[#allocation4 + $0x110] sm:$0xf] %v7754_v41  ;;  %v7911_v8 = vld [vmem:[#allocation3 + $0x40] sm:$0xf]  ;;  %v10264_v41 = vadd.f32 %v15899_v46, %v15783_v34 }
 0x40c   : > { %v12232_v4 = vor.u32 %v13261_v63, %v12229_v38  ;;  %v7382_v54 = vor.u32 %v7381_v17, %v7378_v61  ;;  %v7392_v56 = vor.u32 %v7391_v28, %v7387_v33  ;;  %v7979_v19 = vld [vmem:[#allocation3 + $0x44] sm:$0x1]  ;;  %v8091_v40 = vrot.slane %v8089_v21, 4  ;;  %7942 = vst [vmem:[#allocation4 + $0xf0] sm:$0xf] %v7910_v57 }
 0x40d   : > { %16861 = vst [vmem:[#allocation12_spill] sm:$0xff] %v16088_v48  ;;  %v12221_v47 = vld [vmem:[#allocation4 + $0x7c] sm:$0xf0]  ;;  %v8094_v9 = vrot.slane %v8092_v0, 5  ;;  %v8098_v62 = vshll.u32 %v7978_v18, 16  ;;  %v8102_v44 = vshrl.u32 %v7978_v18, 16  ;;  %v10352_v10 = vpop.f32.mrf.mxu2 }
 0x40e   : > { %v13260_v31 = vld [vmem:[#allocation4 + $0x5c] sm:$0xf]  ;;  %v7383_v59 = vrot.slane %v7382_v54, 4  ;;  %v7393_v45 = vrot.slane %v7392_v56, 4  ;;  %v7397_v27 = vrot.slane %v7395_v5, 5  ;;  %v8108_v53 = vshll.u32 %v7979_v19, 16  ;;  %v16096_v5 = vpop.f32.mrf.mxu0 }
 0x40f   : > { %10848 = vmatmul.bf16.gmra.mxu0 %v12232_v4  ;;  %7943 = vst [vmem:[#allocation4 + $0x114] sm:$0xf] %v7911_v8  ;;  %v8095_v38 = vor.u32 %v8094_v9, %v8091_v40  ;;  %v7643_v61 = vld [vmem:[#allocation3 + $0x3c] sm:$0xe]  ;;  %v7644_v17 = vld [vmem:[#allocation3 + $0x40] sm:$0xf]  ;;  %v10353_v8 = vadd.f32 %v10352_v10, %v10264_v41  ;;  %v12224_v54 = vor.u32 %v13260_v31, %v12221_v47 }
 0x410   : > { %v13318_v21 = vld [vmem:[#allocation4 + $0x228] sm:$0xf0]  ;;  %v13265_v57 = vld [vmem:[#allocation4 + $0x80] sm:$0xf0]  ;;  %v7388_v0 = vsel %vm13693_vm11, %v7383_v59, %v7387_v33  ;;  %v7398_v28 = vsel %vm13693_vm11, %v7393_v45, %v7397_v27  ;;  %v8100_v18 = vrot.slane %v8098_v62, 5  ;;  %v8104_v63 = vrot.slane %v8102_v44, 4 }
 0x411   : > { %v7980_v4 = vld [vmem:[#allocation3 + $0x48] sm:$0xf]  ;;  %16862 = vst [vmem:[#allocation14_spill] sm:$0xff] %v16096_v5  ;;  %v12435_v34 = vld [vmem:[#allocation4 + $0x208] sm:$0xf]  ;;  %v8096_v56 = vrot.slane %v8095_v38, 4  ;;  %v16098_v40 = vpop.f32.mrf.mxu1  ;;  %v10441_v9 = vpop.f32.mrf.mxu3 }
 0x412   : > { %7615 = vst [vmem:[#allocation4 + $0x250] sm:$0xf] %v7388_v0  ;;  %v7757_v19 = vrot.slane %v7644_v17, 5  ;;  %v8105_v48 = vor.u32 %v8104_v63, %v8100_v18  ;;  %v7645_v33 = vld [vmem:[#allocation3 + $0x44] sm:$0x1]  ;;  %v12137_v59 = vrot.slane %v7643_v61, 9  ;;  %v16100_v62 = vadd.f32 %v10441_v9, %v10353_v8 }
 0x413   : > { %7616 = vst [vmem:[#allocation4 + $0x274] sm:$0xf] %v7398_v28  ;;  %v8113_v55 = vshrl.u32 %v7980_v4, 16  ;;  %10670 = vmatmul.bf16.gmra.mxu2 %v12224_v54  ;;  %v12436_v44 = vor.u32 %v13318_v21, %v12435_v34  ;;  %v12227_v45 = vld [vmem:[#allocation4 + $0x60] sm:$0xf]  ;;  %v8101_v47 = vsel %vm13693_vm11, %v8096_v56, %v8100_v18  ;;  %v8110_v41 = vrot.slane %v8108_v53, 5 }
 0x414   : > { %v7981_v10 = vld [vmem:[#allocation3 + $0x4c] sm:$0xf]  ;;  %v7912_v31 = vld [vmem:[#allocation3 + $0x48] sm:$0xf]  ;;  %v8106_v27 = vrot.slane %v8105_v48, 4  ;;  %v7758_v38 = vsel %vm14155_vm14, %v12137_v59, %v7757_v19  ;;  %v7759_v17 = vrot.slane %v7757_v19, 4  ;;  %v10267_v61 = vadd.f32 %v15899_v46, %v15807_v58 }
 0x415   : > { %8438 = vst [vmem:[#allocation4 + $0xf4] sm:$0xf] %v8101_v47  ;;  %v12228_v0 = vor.u32 %v13265_v57, %v12227_v45  ;;  %v7760_v28 = vrot.slane %v7645_v33, 5  ;;  %v8116_v21 = vshll.u32 %v7980_v4, 16  ;;  %v10355_v63 = vpop.f32.mrf.mxu2  ;;  %v8115_v8 = vrot.slane %v8113_v55, 4 }
 0x416   : > { %10611 = vmatmul.bf16.gmra.mxu1 %v12436_v44  ;;  %7879 = vst [vmem:[#allocation4 + $0x134] sm:$0xf] %v7758_v38  ;;  %v8111_v18 = vsel %vm13693_vm11, %v8106_v27, %v8110_v41  ;;  %v8122_v48 = vshll.u32 %v7981_v10, 16  ;;  %v8126_v53 = vshrl.u32 %v7981_v10, 16  ;;  %v10356_v54 = vadd.f32 %v10355_v63, %v10267_v61  ;;  %v12265_v34 = vld [vmem:[#allocation4 + $0xcc] sm:$0xf0] }
 0x417   : > { %7944 = vst [vmem:[#allocation4 + $0x138] sm:$0xf] %v7912_v31  ;;  %v7162_v56 = vld [vmem:[#allocation3 + $0x78] sm:$0xf]  ;;  %v7163_v19 = vld [vmem:[#allocation3 + $0x7c] sm:$0xf]  ;;  %v7761_v58 = vsel %vm14155_vm14, %v7759_v17, %v7760_v28  ;;  %v10224_v57 = vadd.f32 %v15899_v46, %v15423_v23 }
 0x418   : > { %10759 = vmatmul.bf16.gmra.mxu3 %v12228_v0  ;;  %8439 = vst [vmem:[#allocation4 + $0x118] sm:$0xf] %v8111_v18  ;;  %v7164_v4 = vld [vmem:[#allocation3 + $0x80] sm:$0x1]  ;;  %v7400_v9 = vshrl.u32 %v7162_v56, 16  ;;  %v7403_v33 = vshll.u32 %v7162_v56, 16  ;;  %v16117_v0 = vpop.f32.mrf.mxu0 }
 0x419   : > { %v7913_v59 = vld [vmem:[#allocation3 + $0x4c] sm:$0xf]  ;;  %v13270_v55 = vld [vmem:[#allocation4 + $0xac] sm:$0xf]  ;;  %v7409_v44 = vshll.u32 %v7163_v19, 16  ;;  %v7413_v45 = vshrl.u32 %v7163_v19, 16  ;;  %v10313_v31 = vadd.f32 %v15703_v29, %v10224_v57  ;;  %v16115_v27 = vpop.f32.mrf.mxu1  ;;  %v10444_v41 = vpop.f32.mrf.mxu3  ;;  %v10269_v57 = vadd.f32 %v15899_v46, %v15830_v39 }
 0x41a   : > { %v7982_v47 = vld [vmem:[#allocation3 + $0x50] sm:$0x1]  ;;  %v8118_v10 = vrot.slane %v8116_v21, 5  ;;  %v7402_v38 = vrot.slane %v7400_v9, 4  ;;  %v7405_v61 = vrot.slane %v7403_v33, 5  ;;  %v8124_v17 = vrot.slane %v8122_v48, 5 }
 0x41b   : > { %7880 = vst [vmem:[#allocation4 + $0x158] sm:$0xf] %v7761_v58  ;;  %v16119_v23 = vadd.f32 %v10444_v41, %v10356_v54  ;;  %v7411_v28 = vrot.slane %v7409_v44, 5  ;;  %v7415_v63 = vrot.slane %v7413_v45, 4  ;;  %v7419_v18 = vshll.u32 %v7164_v4, 16 }
 0x41c   : > { %7945 = vst [vmem:[#allocation4 + $0x15c] sm:$0xf] %v7913_v59  ;;  %v12257_v56 = vld [vmem:[#allocation4 + $0xc4] sm:$0xf0]  ;;  %v12268_v19 = vor.u32 %v13270_v55, %v12265_v34  ;;  %v7406_v21 = vor.u32 %v7405_v61, %v7402_v38  ;;  %v8119_v5 = vor.u32 %v8118_v10, %v8115_v8  ;;  %v8128_v29 = vrot.slane %v8126_v53, 4 }
 0x41d   : > { %v13269_v9 = vld [vmem:[#allocation4 + $0xa4] sm:$0xf]  ;;  %v7416_v33 = vor.u32 %v7415_v63, %v7411_v28  ;;  %v8132_v58 = vshll.u32 %v7982_v47, 16  ;;  %v16124_v48 = vadd.f32 %v15743_v11, %v10313_v31  ;;  %v10357_v54 = vpop.f32.mrf.mxu2  ;;  %v13327_v44 = vld [vmem:[#allocation4 + $0x270] sm:$0xf0]  ;;  %v7421_v53 = vrot.slane %v7419_v18, 5 }
 0x41e   : > { %v7407_v45 = vrot.slane %v7406_v21, 4  ;;  %v8120_v4 = vrot.slane %v8119_v5, 4  ;;  %v8129_v59 = vor.u32 %v8128_v29, %v8124_v17  ;;  %v7647_v41 = vld [vmem:[#allocation3 + $0x4c] sm:$0xf]  ;;  %v10358_v34 = vadd.f32 %v10357_v54, %v10269_v57  ;;  %v7646_v10 = vld [vmem:[#allocation3 + $0x48] sm:$0xe] }
 0x41f   : > { %10853 = vmatmul.bf16.gmra.mxu0 %v12268_v19  ;;  %v12260_v55 = vor.u32 %v13269_v9, %v12257_v56  ;;  %v7417_v8 = vrot.slane %v7416_v33, 4  ;;  %v7983_v38 = vld [vmem:[#allocation3 + $0x54] sm:$0xf]  ;;  %v12471_v39 = vld [vmem:[#allocation4 + $0x250] sm:$0xf]  ;;  %v8134_v61 = vrot.slane %v8132_v58, 5  ;;  %v10489_v5 = vadd.f32 %v15655_v26, %v15719_v22 }
 0x420   : > { %v13274_v46 = vld [vmem:[#allocation4 + $0xc8] sm:$0xf0]  ;;  %v7412_v47 = vsel %vm13693_vm11, %v7407_v45, %v7411_v28  ;;  %v8125_v11 = vsel %vm13693_vm11, %v8120_v4, %v8124_v17  ;;  %v8130_v31 = vrot.slane %v8129_v59, 4  ;;  %v7648_v63 = vld [vmem:[#allocation3 + $0x50] sm:$0x1]  ;;  %v12472_v19 = vor.u32 %v13327_v44, %v12471_v39 }
 0x421   : > { %v7422_v18 = vsel %vm13693_vm11, %v7417_v8, %v7421_v53  ;;  %7617 = vst [vmem:[#allocation4 + $0x298] sm:$0xf] %v7412_v47  ;;  %v7764_v56 = vrot.slane %v7647_v41, 5  ;;  %v7984_v21 = vld [vmem:[#allocation3 + $0x58] sm:$0xf]  ;;  %v10577_v29 = vpop.f32.mrf.mxu1  ;;  %v10446_v57 = vpop.f32.mrf.mxu3  ;;  %v12138_v17 = vrot.slane %v7646_v10, 9 }
 0x422   : > { %7618 = vst [vmem:[#allocation4 + $0x2bc] sm:$0xf] %v7422_v18  ;;  %v8135_v28 = vsel %vm13693_vm11, %v8130_v31, %v8134_v61  ;;  %v8137_v9 = vshrl.u32 %v7983_v38, 16  ;;  %v8140_v33 = vshll.u32 %v7983_v38, 16  ;;  %v16136_v58 = vadd.f32 %v10577_v29, %v10489_v5  ;;  %v12263_v22 = vld [vmem:[#allocation4 + $0xa8] sm:$0xf] }
 0x423   : > { %10675 = vmatmul.bf16.gmra.mxu2 %v12260_v55  ;;  %v16138_v26 = vadd.f32 %v10446_v57, %v10358_v34  ;;  %8440 = vst [vmem:[#allocation4 + $0x13c] sm:$0xf] %v8125_v11  ;;  %v7766_v54 = vrot.slane %v7764_v56, 4  ;;  %v7767_v44 = vrot.slane %v7648_v63, 5  ;;  %v7765_v45 = vsel %vm14155_vm14, %v12138_v17, %v7764_v56  ;;  %v16145_v8 = vld [vmem:[%s16757_s4] ss:$0 sm:$0xff]  ;;  %v16149_v55 = vpop.f32.mrf.mxu0 }
 0x424   : > { %8441 = vst [vmem:[#allocation4 + $0x160] sm:$0xf] %v8135_v28  ;;  %v8139_v4 = vrot.slane %v8137_v9, 4  ;;  %v8142_v59 = vrot.slane %v8140_v33, 5  ;;  %v8146_v41 = vshll.u32 %v7984_v21, 16  ;;  %v10272_v34 = vadd.f32 %v16145_v8, %v15851_v3 }
 0x425   : > { %v12264_v53 = vor.u32 %v13274_v46, %v12263_v22  ;;  %v7768_v10 = vsel %vm14155_vm14, %v7766_v54, %v7767_v44  ;;  %7881 = vst [vmem:[#allocation4 + $0x17c] sm:$0xf] %v7765_v45  ;;  %v7985_v38 = vld [vmem:[#allocation3 + $0x5c] sm:$0x1]  ;;  %v8150_v39 = vshrl.u32 %v7984_v21, 16  ;;  %v10360_v47 = vpop.f32.mrf.mxu2  ;;  %v10274_v3 = vadd.f32 %v16145_v8, %v15872_v36 }
 0x426   : > { %10616 = vmatmul.bf16.gmra.mxu1 %v12472_v19  ;;  %v16153_v11 = vld [vmem:[#allocation4 + $0x10c] sm:$0xf0]  ;;  %7882 = vst [vmem:[#allocation4 + $0x1a0] sm:$0xf] %v7768_v10  ;;  %v8143_v31 = vor.u32 %v8142_v59, %v8139_v4  ;;  %v8148_v61 = vrot.slane %v8146_v41, 5  ;;  %v10361_v5 = vadd.f32 %v10360_v47, %v10272_v34  ;;  %v10491_v33 = vadd.f32 %v15686_v6, %v16124_v48  ;;  %v13459_v36 = vld [vmem:[%s16756_s3 + $0x210] sm:$0xff] }
 0x427   : > { %v7914_v63 = vld [vmem:[#allocation3 + $0x54] sm:$0xf]  ;;  %v12301_v19 = vld [vmem:[#allocation4 + $0x114] sm:$0xf0]  ;;  %v7165_v46 = vld [vmem:[#allocation3 + $0x84] sm:$0xf]  ;;  %10929 = vmatpush.bf16.msra.mxu1 %v13459_v36 }
 0x428   : > { %10764 = vmatmul.bf16.gmra.mxu3 %v12264_v53  ;;  %v7166_v18 = vld [vmem:[#allocation3 + $0x88] sm:$0xf]  ;;  %v7167_v56 = vld [vmem:[#allocation3 + $0x8c] sm:$0x1]  ;;  %v16157_v29 = vld [vmem:[#allocation4 + $0xec] sm:$0xf] }
 0x429   : > { %v7424_v57 = vshrl.u32 %v7165_v46, 16  ;;  %v7427_v21 = vshll.u32 %v7165_v46, 16  ;;  %v7433_v28 = vshll.u32 %v7166_v18, 16  ;;  %v7437_v17 = vshrl.u32 %v7166_v18, 16  ;;  %v7915_v9 = vld [vmem:[#allocation3 + $0x58] sm:$0xf]  ;;  %v10579_v4 = vpop.f32.mrf.mxu1  ;;  %v10449_v59 = vpop.f32.mrf.mxu3 }
 0x42a   : > { %v7443_v22 = vshll.u32 %v7167_v56, 16  ;;  %v8152_v54 = vrot.slane %v8150_v39, 4  ;;  %v8156_v44 = vshll.u32 %v7985_v38, 16  ;;  %v7649_v45 = vld [vmem:[#allocation3 + $0x54] sm:$0xe]  ;;  %v8144_v10 = vrot.slane %v8143_v31, 4 }
 0x42b   : > { %v7426_v41 = vrot.slane %v7424_v57, 4  ;;  %v7429_v34 = vrot.slane %v7427_v21, 5  ;;  %v7435_v53 = vrot.slane %v7433_v28, 5  ;;  %v7650_v47 = vld [vmem:[#allocation3 + $0x58] sm:$0xf]  ;;  %v16164_v46 = vadd.f32 %v10579_v4, %v10491_v33 }
 0x42c   : > { %v16166_v18 = vadd.f32 %v10449_v59, %v10361_v5  ;;  %v12296_v6 = vor.u32 %v16157_v29, %v16153_v11  ;;  %v13279_v48 = vld [vmem:[#allocation4 + $0xf4] sm:$0xf]  ;;  %v7439_v56 = vrot.slane %v7437_v17, 4  ;;  %7946 = vst [vmem:[#allocation4 + $0x180] sm:$0xf] %v7914_v63  ;;  %v8149_v57 = vsel %vm13693_vm11, %v8144_v10, %v8148_v61  ;;  %v16174_v59 = vpop.f32.mrf.mxu0 }
 0x42d   : > { %v12304_v38 = vor.u32 %v13279_v48, %v12301_v19  ;;  %v7430_v39 = vor.u32 %v7429_v34, %v7426_v41  ;;  %v8153_v21 = vor.u32 %v8152_v54, %v8148_v61  ;;  %7947 = vst [vmem:[#allocation4 + $0x1a4] sm:$0xf] %v7915_v9  ;;  %v7651_v31 = vld [vmem:[#allocation3 + $0x5c] sm:$0x1]  ;;  %v10494_v28 = vadd.f32 %v15708_v13, %v15760_v43  ;;  %v10362_v11 = vpop.f32.mrf.mxu2  ;;  %v7986_v36 = vld [vmem:[#allocation3 + $0x60] sm:$0xf] }
 0x42e   : > { %v7440_v5 = vor.u32 %v7439_v56, %v7435_v53  ;;  %8442 = vst [vmem:[#allocation4 + $0x184] sm:$0xf] %v8149_v57  ;;  %v12139_v33 = vrot.slane %v7649_v45, 9  ;;  %v7771_v4 = vrot.slane %v7650_v47, 5  ;;  %v7445_v17 = vrot.slane %v7443_v22, 5 }
 0x42f   : > { %10858 = vmatmul.bf16.gmra.mxu0 %v12304_v38  ;;  %v7431_v29 = vrot.slane %v7430_v39, 4  ;;  %v8154_v63 = vrot.slane %v8153_v21, 4  ;;  %v8158_v19 = vrot.slane %v8156_v44, 5  ;;  %v10363_v41 = vadd.f32 %v10362_v11, %v10274_v3  ;;  %v7987_v13 = vld [vmem:[#allocation3 + $0x64] sm:$0xf] }
 0x430   : > { %v7441_v61 = vrot.slane %v7440_v5, 4  ;;  %v7772_v9 = vsel %vm14155_vm14, %v12139_v33, %v7771_v4  ;;  %v7774_v54 = vrot.slane %v7651_v31, 5  ;;  %v12507_v43 = vld [vmem:[#allocation4 + $0x298] sm:$0xf]  ;;  %v13336_v34 = vld [vmem:[#allocation4 + $0x2b8] sm:$0xf0] }
 0x431   : > { %v13283_v45 = vld [vmem:[#allocation4 + $0x110] sm:$0xf0]  ;;  %v7436_v10 = vsel %vm13693_vm11, %v7431_v29, %v7435_v53  ;;  %v8159_v22 = vsel %vm13693_vm11, %v8154_v63, %v8158_v19  ;;  %v7773_v44 = vrot.slane %v7771_v4, 4  ;;  %7883 = vst [vmem:[#allocation4 + $0x1c4] sm:$0xf] %v7772_v9  ;;  %v8161_v47 = vshrl.u32 %v7986_v36, 16  ;;  %v10582_v39 = vpop.f32.mrf.mxu1  ;;  %v10451_v57 = vpop.f32.mrf.mxu3 }
 0x432   : > { %v7446_v3 = vsel %vm13693_vm11, %v7441_v61, %v7445_v17  ;;  %7619 = vst [vmem:[#allocation4 + $0x2e0] sm:$0xf] %v7436_v10  ;;  %v8164_v48 = vshll.u32 %v7986_v36, 16  ;;  %v8170_v56 = vshll.u32 %v7987_v13, 16  ;;  %v8174_v38 = vshrl.u32 %v7987_v13, 16 }
 0x433   : > { %7620 = vst [vmem:[#allocation4 + $0x304] sm:$0xf] %v7446_v3  ;;  %v7775_v21 = vsel %vm14155_vm14, %v7773_v44, %v7774_v54  ;;  %v8163_v53 = vrot.slane %v8161_v47, 4  ;;  %v7916_v31 = vld [vmem:[#allocation3 + $0x60] sm:$0xf]  ;;  %10680 = vmatmul.bf16.gmra.mxu2 %v12296_v6  ;;  %v16186_v5 = vadd.f32 %v10582_v39, %v10494_v28  ;;  %v16188_v33 = vadd.f32 %v10451_v57, %v10363_v41 }
 0x434   : > { %v12508_v4 = vor.u32 %v13336_v34, %v12507_v43  ;;  %8443 = vst [vmem:[#allocation4 + $0x1a8] sm:$0xf] %v8159_v22  ;;  %v8166_v11 = vrot.slane %v8164_v48, 5  ;;  %v12299_v29 = vld [vmem:[#allocation4 + $0xf0] sm:$0xf]  ;;  %v10277_v17 = vadd.f32 %v16145_v8, %v15905_v25  ;;  %v8172_v19 = vrot.slane %v8170_v56, 5  ;;  %v16192_v25 = vpop.f32.mrf.mxu0 }
 0x435   : > { %7884 = vst [vmem:[#allocation4 + $0x1e8] sm:$0xf] %v7775_v21  ;;  %v12300_v63 = vor.u32 %v13283_v45, %v12299_v29  ;;  %v8176_v36 = vrot.slane %v8174_v38, 4  ;;  %v7917_v61 = vld [vmem:[#allocation3 + $0x64] sm:$0xf]  ;;  %v10365_v9 = vpop.f32.mrf.mxu2  ;;  %v10496_v45 = vadd.f32 %v15731_v51, %v15777_v60 }
 0x436   : > { %10621 = vmatmul.bf16.gmra.mxu1 %v12508_v4  ;;  %7948 = vst [vmem:[#allocation4 + $0x1c8] sm:$0xf] %v7916_v31  ;;  %v7988_v6 = vld [vmem:[#allocation3 + $0x68] sm:$0x1]  ;;  %v8167_v28 = vor.u32 %v8166_v11, %v8163_v53  ;;  %v10366_v41 = vadd.f32 %v10365_v9, %v10277_v17  ;;  %v7168_v54 = vld [vmem:[#allocation3 + $0x90] sm:$0xf]  ;;  %v10279_v17 = vadd.f32 %v16145_v8, %v15940_v1 }
 0x437   : > { %7949 = vst [vmem:[#allocation4 + $0x1ec] sm:$0xf] %v7917_v61  ;;  %v7169_v13 = vld [vmem:[#allocation3 + $0x94] sm:$0xf]  ;;  %v7170_v43 = vld [vmem:[#allocation3 + $0x98] sm:$0x1]  ;;  %v8177_v38 = vor.u32 %v8176_v36, %v8172_v19 }
 0x438   : > { %10769 = vmatmul.bf16.gmra.mxu3 %v12300_v63  ;;  %v7448_v34 = vshrl.u32 %v7168_v54, 16  ;;  %v7451_v10 = vshll.u32 %v7168_v54, 16  ;;  %v7457_v22 = vshll.u32 %v7169_v13, 16  ;;  %v7461_v44 = vshrl.u32 %v7169_v13, 16  ;;  %v16196_v47 = vld [vmem:[#allocation4 + $0x134] sm:$0xf] }
 0x439   : > { %v12329_v3 = vld [vmem:[#allocation4 + $0x154] sm:$0xf0]  ;;  %v12337_v48 = vld [vmem:[#allocation4 + $0x15c] sm:$0xf0]  ;;  %v7467_v56 = vshll.u32 %v7170_v43, 16  ;;  %v8180_v39 = vshll.u32 %v7988_v6, 16  ;;  %v10584_v57 = vpop.f32.mrf.mxu1  ;;  %v10454_v21 = vpop.f32.mrf.mxu3 }
 0x43a   : > { %v13288_v53 = vld [vmem:[#allocation4 + $0x13c] sm:$0xf]  ;;  %v7450_v31 = vrot.slane %v7448_v34, 4  ;;  %v7453_v4 = vrot.slane %v7451_v10, 5  ;;  %v7459_v11 = vrot.slane %v7457_v22, 5  ;;  %v8168_v29 = vrot.slane %v8167_v28, 4 }
 0x43b   : > { %v16200_v63 = vadd.f32 %v10584_v57, %v10496_v45  ;;  %v16202_v51 = vadd.f32 %v10454_v21, %v10366_v41  ;;  %v7463_v60 = vrot.slane %v7461_v44, 4  ;;  %v7652_v61 = vld [vmem:[#allocation3 + $0x60] sm:$0xe]  ;;  %v7653_v9 = vld [vmem:[#allocation3 + $0x64] sm:$0xf]  ;;  %v12332_v36 = vor.u32 %v16196_v47, %v12329_v3 }
 0x43c   : > { %v12340_v6 = vor.u32 %v13288_v53, %v12337_v48  ;;  %v7454_v54 = vor.u32 %v7453_v4, %v7450_v31  ;;  %v8173_v13 = vsel %vm13693_vm11, %v8168_v29, %v8172_v19  ;;  %v7654_v43 = vld [vmem:[#allocation3 + $0x68] sm:$0x1]  ;;  %v10499_v28 = vadd.f32 %v15749_v52, %v15803_v35  ;;  %v7989_v41 = vld [vmem:[#allocation3 + $0x6c] sm:$0xf]  ;;  %v7990_v3 = vld [vmem:[#allocation3 + $0x70] sm:$0xf] }
 0x43d   : > { %v7464_v34 = vor.u32 %v7463_v60, %v7459_v11  ;;  %v8178_v1 = vrot.slane %v8177_v38, 4  ;;  %v8182_v10 = vrot.slane %v8180_v39, 5  ;;  %8444 = vst [vmem:[#allocation4 + $0x1cc] sm:$0xf] %v8173_v13  ;;  %v10367_v22 = vpop.f32.mrf.mxu2  ;;  %v7469_v45 = vrot.slane %v7467_v56, 5 }
 0x43e   : > { %v7455_v44 = vrot.slane %v7454_v54, 4  ;;  %v12140_v57 = vrot.slane %v7652_v61, 9  ;;  %v7778_v47 = vrot.slane %v7653_v9, 5  ;;  %v10368_v48 = vadd.f32 %v10367_v22, %v10279_v17  ;;  %v13345_v21 = vld [vmem:[#allocation4 + $0x300] sm:$0xf0] }
 0x43f   : > { %10863 = vmatmul.bf16.gmra.mxu0 %v12340_v6  ;;  %v7465_v53 = vrot.slane %v7464_v34, 4  ;;  %v8183_v19 = vsel %vm13693_vm11, %v8178_v1, %v8182_v10  ;;  %v7781_v31 = vrot.slane %v7654_v43, 5  ;;  %v12543_v52 = vld [vmem:[#allocation4 + $0x2e0] sm:$0xf]  ;;  %v13292_v35 = vld [vmem:[#allocation4 + $0x158] sm:$0xf0]  ;;  %v16221_v1 = vpop.f32.mrf.mxu0 }
 0x440   : > { %v7460_v38 = vsel %vm13693_vm11, %v7455_v44, %v7459_v11  ;;  %8445 = vst [vmem:[#allocation4 + $0x1f0] sm:$0xf] %v8183_v19  ;;  %v7779_v39 = vsel %vm14155_vm14, %v12140_v57, %v7778_v47  ;;  %v7780_v56 = vrot.slane %v7778_v47, 4  ;;  %v8185_v4 = vshrl.u32 %v7989_v41, 16  ;;  %v7918_v29 = vld [vmem:[#allocation3 + $0x6c] sm:$0xf] }
 0x441   : > { %v7470_v17 = vsel %vm13693_vm11, %v7465_v53, %v7469_v45  ;;  %7621 = vst [vmem:[#allocation4 + $0x328] sm:$0xf] %v7460_v38  ;;  %v8188_v60 = vshll.u32 %v7989_v41, 16  ;;  %v8194_v61 = vshll.u32 %v7990_v3, 16  ;;  %v8198_v9 = vshrl.u32 %v7990_v3, 16  ;;  %v10587_v54 = vpop.f32.mrf.mxu1  ;;  %v10456_v13 = vpop.f32.mrf.mxu3 }
 0x442   : > { %v7919_v6 = vld [vmem:[#allocation3 + $0x70] sm:$0xf]  ;;  %7622 = vst [vmem:[#allocation4 + $0x34c] sm:$0xf] %v7470_v17  ;;  %v7782_v11 = vsel %vm14155_vm14, %v7780_v56, %v7781_v31  ;;  %v8187_v43 = vrot.slane %v8185_v4, 4  ;;  %v16223_v10 = vadd.f32 %v10587_v54, %v10499_v28  ;;  %v16225_v22 = vadd.f32 %v10456_v13, %v10368_v48 }
 0x443   : > { %v16219_v34 = vld [vmem:[#allocation3 + $0x70] sm:$0xf]  ;;  %16863 = vst [vmem:[#allocation15_spill] sm:$0xff] %v16221_v1  ;;  %10685 = vmatmul.bf16.gmra.mxu2 %v12332_v36  ;;  %v12544_v41 = vor.u32 %v13345_v21, %v12543_v52  ;;  %v8190_v44 = vrot.slane %v8188_v60, 5  ;;  %v7655_v45 = vld [vmem:[#allocation3 + $0x6c] sm:$0xe]  ;;  %v10282_v57 = vadd.f32 %v16145_v8, %v15988_v32 }
 0x444   : > { %16864 = vst [vmem:[#allocation16_spill] sm:$0xff] %v16225_v22  ;;  %v12335_v47 = vld [vmem:[#allocation4 + $0x138] sm:$0xf]  ;;  %v8196_v53 = vrot.slane %v8194_v61, 5  ;;  %v8200_v19 = vrot.slane %v8198_v9, 4  ;;  %v7785_v36 = vrot.slane %v16219_v34, 5 }
 0x445   : > { %7885 = vst [vmem:[#allocation4 + $0x20c] sm:$0xf] %v7779_v39  ;;  %v12336_v3 = vor.u32 %v13292_v35, %v12335_v47  ;;  %v10370_v28 = vpop.f32.mrf.mxu2  ;;  %v7991_v31 = vld [vmem:[#allocation3 + $0x74] sm:$0x1]  ;;  %v8191_v48 = vor.u32 %v8190_v44, %v8187_v43  ;;  %v12141_v21 = vrot.slane %v7655_v45, 9  ;;  %v16865_v32 = vld [vmem:[#allocation18_spill] sm:$0xff] }
 0x446   : > { %7886 = vst [vmem:[#allocation4 + $0x230] sm:$0xf] %v7782_v11  ;;  %10626 = vmatmul.bf16.gmra.mxu1 %v12544_v41  ;;  %v10371_v52 = vadd.f32 %v10370_v28, %v10282_v57  ;;  %v7171_v38 = vld [vmem:[#allocation3 + $0x9c] sm:$0xf]  ;;  %v7172_v39 = vld [vmem:[#allocation3 + $0xa0] sm:$0xf]  ;;  %v10501_v56 = vadd.f32 %v16865_v32, %v15821_v42  ;;  %v8201_v11 = vor.u32 %v8200_v19, %v8196_v53 }
 0x447   : > { %7950 = vst [vmem:[#allocation4 + $0x210] sm:$0xf] %v7918_v29  ;;  %v12373_v4 = vld [vmem:[#allocation4 + $0x1a4] sm:$0xf0]  ;;  %v7173_v17 = vld [vmem:[#allocation3 + $0xa4] sm:$0x1]  ;;  %v7786_v29 = vsel %vm14155_vm14, %v12141_v21, %v7785_v36  ;;  %v10284_v19 = vadd.f32 %v16145_v8, %v16017_v30 }
 0x448   : > { %7951 = vst [vmem:[#allocation4 + $0x234] sm:$0xf] %v7919_v6  ;;  %10774 = vmatmul.bf16.gmra.mxu3 %v12336_v3  ;;  %v7472_v35 = vshrl.u32 %v7171_v38, 16  ;;  %v7475_v60 = vshll.u32 %v7171_v38, 16  ;;  %v16234_v61 = vld [vmem:[#allocation4 + $0x19c] sm:$0xf0] }
 0x449   : > { %v13297_v9 = vld [vmem:[#allocation4 + $0x184] sm:$0xf]  ;;  %v7481_v54 = vshll.u32 %v7172_v39, 16  ;;  %v7485_v6 = vshrl.u32 %v7172_v39, 16  ;;  %v13458_v13 = vld [vmem:[%s16756_s3 + $0x208] sm:$0xff]  ;;  %v8204_v43 = vshll.u32 %v7991_v31, 16  ;;  %v10589_v42 = vpop.f32.mrf.mxu1  ;;  %v10459_v41 = vpop.f32.mrf.mxu3 }
 0x44a   : > { %v7920_v34 = vld [vmem:[#allocation3 + $0x78] sm:$0xf]  ;;  %v7474_v44 = vrot.slane %v7472_v35, 4  ;;  %v7477_v45 = vrot.slane %v7475_v60, 5  ;;  %v7491_v57 = vshll.u32 %v7173_v17, 16  ;;  %v8192_v47 = vrot.slane %v8191_v48, 4  ;;  %10930 = vmatpush.bf16.msra.mxu1 %v13458_v13  ;;  %v16247_v48 = vpop.f32.mrf.mxu0 }
 0x44b   : > { %v7657_v3 = vld [vmem:[#allocation3 + $0x74] sm:$0x1]  ;;  %v16239_v28 = vadd.f32 %v10589_v42, %v10501_v56  ;;  %v16241_v21 = vadd.f32 %v10459_v41, %v10371_v52  ;;  %v7483_v38 = vrot.slane %v7481_v54, 5  ;;  %v7487_v39 = vrot.slane %v7485_v6, 4  ;;  %7887 = vst [vmem:[#allocation4 + $0x254] sm:$0xf] %v7786_v29 }
 0x44c   : > { %v7992_v32 = vld [vmem:[#allocation3 + $0x78] sm:$0xf]  ;;  %v13296_v31 = vld [vmem:[#allocation4 + $0x17c] sm:$0xf]  ;;  %v12376_v22 = vor.u32 %v13297_v9, %v12373_v4  ;;  %v7478_v1 = vor.u32 %v7477_v45, %v7474_v44  ;;  %v8197_v17 = vsel %vm13693_vm11, %v8192_v47, %v8196_v53  ;;  %7952 = vst [vmem:[#allocation4 + $0x258] sm:$0xf] %v7920_v34 }
 0x44d   : > { %16866 = vst [vmem:[#allocation18_spill] sm:$0xff] %v16241_v21  ;;  %v7488_v56 = vor.u32 %v7487_v39, %v7483_v38  ;;  %v8202_v52 = vrot.slane %v8201_v11, 4  ;;  %v8206_v35 = vrot.slane %v8204_v43, 5  ;;  %v7787_v60 = vrot.slane %v7785_v36, 4  ;;  %v10372_v54 = vpop.f32.mrf.mxu2  ;;  %v7993_v13 = vld [vmem:[#allocation3 + $0x7c] sm:$0xf] }
 0x44e   : > { %8446 = vst [vmem:[#allocation4 + $0x214] sm:$0xf] %v8197_v17  ;;  %v12368_v29 = vor.u32 %v13296_v31, %v16234_v61  ;;  %v7479_v6 = vrot.slane %v7478_v1, 4  ;;  %v7788_v30 = vrot.slane %v7657_v3, 5  ;;  %v8209_v4 = vshrl.u32 %v7992_v32, 16  ;;  %v16867_v47 = vld [vmem:[#allocation21_spill] sm:$0xff] }
 0x44f   : > { %10868 = vmatmul.bf16.gmra.mxu0 %v12376_v22  ;;  %v10373_v9 = vadd.f32 %v10372_v54, %v10284_v19  ;;  %v12579_v42 = vld [vmem:[#allocation4 + $0x328] sm:$0xf]  ;;  %v13354_v41 = vld [vmem:[#allocation4 + $0x348] sm:$0xf0]  ;;  %v7489_v53 = vrot.slane %v7488_v56, 4  ;;  %v7493_v34 = vrot.slane %v7491_v57, 5  ;;  %v8207_v44 = vsel %vm13693_vm11, %v8202_v52, %v8206_v35 }
 0x450   : > { %v13301_v11 = vld [vmem:[#allocation4 + $0x1a0] sm:$0xf0]  ;;  %v7484_v36 = vsel %vm13693_vm11, %v7479_v6, %v7483_v38  ;;  %8447 = vst [vmem:[#allocation4 + $0x238] sm:$0xf] %v8207_v44  ;;  %v7789_v22 = vsel %vm14155_vm14, %v7787_v60, %v7788_v30  ;;  %v7994_v1 = vld [vmem:[#allocation3 + $0x80] sm:$0x1]  ;;  %v12580_v52 = vor.u32 %v13354_v41, %v12579_v42 }
 0x451   : > { %v8211_v61 = vrot.slane %v8209_v4, 4  ;;  %v8212_v43 = vshll.u32 %v7992_v32, 16  ;;  %v7921_v45 = vld [vmem:[#allocation3 + $0x7c] sm:$0xf]  ;;  %v7494_v57 = vsel %vm13693_vm11, %v7489_v53, %v7493_v34  ;;  %7623 = vst [vmem:[#allocation4 + $0x370] sm:$0xf] %v7484_v36  ;;  %v10592_v56 = vpop.f32.mrf.mxu1  ;;  %v10461_v38 = vpop.f32.mrf.mxu3 }
 0x452   : > { %v16868_v3 = vld [vmem:[#allocation17_spill] sm:$0xff]  ;;  %v8218_v19 = vshll.u32 %v7993_v13, 16  ;;  %v8222_v31 = vshrl.u32 %v7993_v13, 16  ;;  %7624 = vst [vmem:[#allocation4 + $0x394] sm:$0xf] %v7494_v57  ;;  %v16264_v6 = vadd.f32 %v10461_v38, %v10373_v9  ;;  %v10287_v13 = vadd.f32 %v16145_v8, %v16035_v37  ;;  %v16271_v37 = vpop.f32.mrf.mxu0 }
 0x453   : > { %v10504_v39 = vadd.f32 %v16868_v3, %v16867_v47  ;;  %v7659_v17 = vld [vmem:[#allocation3 + $0x7c] sm:$0xf]  ;;  %v8214_v35 = vrot.slane %v8212_v43, 5  ;;  %v7658_v60 = vld [vmem:[#allocation3 + $0x78] sm:$0xe]  ;;  %10690 = vmatmul.bf16.gmra.mxu2 %v12368_v29  ;;  %v8228_v36 = vshll.u32 %v7994_v1, 16 }
 0x454   : > { %v16260_v54 = vld [vmem:[#allocation3 + $0x18] sm:$0xe]  ;;  %16869 = vst [vmem:[#allocation21_spill] sm:$0xff] %v16264_v6  ;;  %v8220_v30 = vrot.slane %v8218_v19, 5  ;;  %v8224_v4 = vrot.slane %v8222_v31, 4  ;;  %v7792_v42 = vrot.slane %v7659_v17, 5 }
 0x455   : > { %v16262_v32 = vadd.f32 %v10592_v56, %v10504_v39  ;;  %7888 = vst [vmem:[#allocation4 + $0x278] sm:$0xf] %v7789_v22  ;;  %v12371_v53 = vld [vmem:[#allocation4 + $0x180] sm:$0xf]  ;;  %v8215_v34 = vor.u32 %v8214_v35, %v8211_v61  ;;  %v7660_v43 = vld [vmem:[#allocation3 + $0x80] sm:$0x1]  ;;  %v10375_v3 = vpop.f32.mrf.mxu2 }
 0x456   : > { %7953 = vst [vmem:[#allocation4 + $0x27c] sm:$0xf] %v7921_v45  ;;  %10631 = vmatmul.bf16.gmra.mxu1 %v12580_v52  ;;  %v12372_v41 = vor.u32 %v13301_v11, %v12371_v53  ;;  %v8225_v44 = vor.u32 %v8224_v4, %v8220_v30  ;;  %v12142_v29 = vrot.slane %v7658_v60, 9  ;;  %v7922_v47 = vld [vmem:[#allocation3 + $0x84] sm:$0xf]  ;;  %v7794_v39 = vrot.slane %v7792_v42, 4 }
 0x457   : > { %v8216_v22 = vrot.slane %v8215_v34, 4  ;;  %7954 = vst [vmem:[#allocation4 + $0x2a0] sm:$0xf] %v7922_v47  ;;  %v16269_v57 = vld [vmem:[#allocation3 + $0x1c] sm:$0xf]  ;;  %v10376_v61 = vadd.f32 %v10375_v3, %v10287_v13  ;;  %v16871_v45 = vld [vmem:[#allocation22_spill] sm:$0xff] }
 0x458   : > { %16870 = vst [vmem:[#allocation17_spill] sm:$0xff] %v16271_v37  ;;  %10779 = vmatmul.bf16.gmra.mxu3 %v12372_v41  ;;  %v16872_v19 = vld [vmem:[#allocation19_spill] sm:$0xff]  ;;  %v7793_v17 = vsel %vm14155_vm14, %v12142_v29, %v7792_v42  ;;  %v16277_v56 = vld [vmem:[#allocation4 + $0x1e4] sm:$0xf0]  ;;  %v7176_v38 = vld [vmem:[#allocation3 + $0xb0] sm:$0x1] }
 0x459   : > { %v10506_v11 = vadd.f32 %v16872_v19, %v16871_v45  ;;  %v7174_v31 = vld [vmem:[#allocation3 + $0xa8] sm:$0xf]  ;;  %v7175_v1 = vld [vmem:[#allocation3 + $0xac] sm:$0xf]  ;;  %v8221_v60 = vsel %vm13693_vm11, %v8216_v22, %v8220_v30  ;;  %v7795_v4 = vrot.slane %v7660_v43, 5  ;;  %v8226_v47 = vrot.slane %v8225_v44, 4  ;;  %v10594_v45 = vpop.f32.mrf.mxu1 }
 0x45a   : > { %v7496_v52 = vshrl.u32 %v7174_v31, 16  ;;  %v7499_v35 = vshll.u32 %v7174_v31, 16  ;;  %v13306_v53 = vld [vmem:[#allocation4 + $0x1cc] sm:$0xf]  ;;  %v12409_v13 = vld [vmem:[#allocation4 + $0x1ec] sm:$0xf0] }
 0x45b   : > { %v7505_v34 = vshll.u32 %v7175_v1, 16  ;;  %v7509_v41 = vshrl.u32 %v7175_v1, 16  ;;  %v8230_v3 = vrot.slane %v8228_v36, 5  ;;  %v10464_v19 = vpop.f32.mrf.mxu3  ;;  %v7515_v42 = vshll.u32 %v7176_v38, 16  ;;  %8448 = vst [vmem:[#allocation4 + $0x25c] sm:$0xf] %v8221_v60 }
 0x45c   : > { %v7498_v9 = vrot.slane %v7496_v52, 4  ;;  %v7501_v6 = vrot.slane %v7499_v35, 5  ;;  %v7796_v29 = vsel %vm14155_vm14, %v7794_v39, %v7795_v4  ;;  %v16283_v31 = vadd.f32 %v10594_v45, %v10506_v11  ;;  %7889 = vst [vmem:[#allocation4 + $0x29c] sm:$0xf] %v7793_v17  ;;  %v7995_v22 = vld [vmem:[#allocation3 + $0x84] sm:$0xf] }
 0x45d   : > { %v16285_v37 = vadd.f32 %v10464_v19, %v10376_v61  ;;  %v7507_v30 = vrot.slane %v7505_v34, 5  ;;  %v7511_v43 = vrot.slane %v7509_v41, 4  ;;  %v8562_v44 = vrot.slane %v16269_v57, 5  ;;  %v13305_v36 = vld [vmem:[#allocation4 + $0x1c4] sm:$0xf]  ;;  %v10377_v17 = vpop.f32.mrf.mxu2  ;;  %v16295_v19 = vpop.f32.mrf.mxu0 }
 0x45e   : > { %v12412_v1 = vor.u32 %v13306_v53, %v12409_v13  ;;  %v7502_v21 = vor.u32 %v7501_v6, %v7498_v9  ;;  %v8231_v38 = vsel %vm13693_vm11, %v8226_v47, %v8230_v3  ;;  %7890 = vst [vmem:[#allocation4 + $0x2c0] sm:$0xf] %v7796_v29  ;;  %v10289_v39 = vadd.f32 %v16145_v8, %v16051_v20  ;;  %v7996_v52 = vld [vmem:[#allocation3 + $0x88] sm:$0xf]  ;;  %v7997_v35 = vld [vmem:[#allocation3 + $0x8c] sm:$0x1] }
 0x45f   : > { %v12404_v11 = vor.u32 %v13305_v36, %v16277_v56  ;;  %v7512_v61 = vor.u32 %v7511_v43, %v7507_v30  ;;  %8449 = vst [vmem:[#allocation4 + $0x280] sm:$0xf] %v8231_v38  ;;  %v8233_v57 = vshrl.u32 %v7995_v22, 16  ;;  %v8236_v4 = vshll.u32 %v7995_v22, 16  ;;  %v7923_v6 = vld [vmem:[#allocation3 + $0x88] sm:$0xf] }
 0x460   : > { %10873 = vmatmul.bf16.gmra.mxu0 %v12412_v1  ;;  %v7503_v60 = vrot.slane %v7502_v21, 4  ;;  %v8242_v53 = vshll.u32 %v7996_v52, 16  ;;  %v10378_v9 = vadd.f32 %v10377_v17, %v10289_v39  ;;  %v7517_v34 = vrot.slane %v7515_v42, 5  ;;  %7955 = vst [vmem:[#allocation4 + $0x2c4] sm:$0xf] %v7923_v6  ;;  %v16873_v29 = vld [vmem:[#allocation24_spill] sm:$0xff] }
 0x461   : > { %v7513_v13 = vrot.slane %v7512_v61, 4  ;;  %v8246_v41 = vshrl.u32 %v7996_v52, 16  ;;  %v13363_v47 = vld [vmem:[#allocation4 + $0x390] sm:$0xf0]  ;;  %v8235_v56 = vrot.slane %v8233_v57, 4  ;;  %v8238_v3 = vrot.slane %v8236_v4, 5 }
 0x462   : > { %v7508_v20 = vsel %vm13693_vm11, %v7503_v60, %v7507_v30  ;;  %v8244_v45 = vrot.slane %v8242_v53, 5  ;;  %v16874_v21 = vld [vmem:[#allocation20_spill] sm:$0xff]  ;;  %v13310_v22 = vld [vmem:[#allocation4 + $0x1e8] sm:$0xf0]  ;;  %v8252_v1 = vshll.u32 %v7997_v35, 16  ;;  %v16875_v17 = vrot.slane %v16260_v54, 9 }
 0x463   : > { %v10509_v43 = vadd.f32 %v16874_v21, %v16873_v29  ;;  %v7518_v36 = vsel %vm13693_vm11, %v7513_v13, %v7517_v34  ;;  %7625 = vst [vmem:[#allocation4 + $0x3b8] sm:$0xf] %v7508_v20  ;;  %v8248_v42 = vrot.slane %v8246_v41, 4  ;;  %v10597_v38 = vpop.f32.mrf.mxu1  ;;  %v10466_v39 = vpop.f32.mrf.mxu3  ;;  %v12615_v61 = vld [vmem:[#allocation4 + $0x370] sm:$0xf]  ;;  %v8239_v30 = vor.u32 %v8238_v3, %v8235_v56  ;;  %10695 = vmatmul.bf16.gmra.mxu2 %v12404_v11 }
 0x464   : > { %7626 = vst [vmem:[#allocation4 + $0x3dc] sm:$0xf] %v7518_v36  ;;  %v7662_v52 = vld [vmem:[#allocation3 + $0x88] sm:$0xf]  ;;  %v8563_v60 = vsel %vm14155_vm14, %v16875_v17, %v8562_v44  ;;  %v8466_v57 = vld [vmem:[#allocation3 + $0x20] sm:$0x1]  ;;  %v16307_v53 = vadd.f32 %v10466_v39, %v10378_v9  ;;  %v12616_v6 = vor.u32 %v13363_v47, %v12615_v61  ;;  %v10292_v41 = vadd.f32 %v16145_v8, %v16065_v15 }
 0x465   : > { %v16305_v4 = vadd.f32 %v10597_v38, %v10509_v43  ;;  %v8249_v13 = vor.u32 %v8248_v42, %v8244_v45  ;;  %v7661_v35 = vld [vmem:[#allocation3 + $0x84] sm:$0xe]  ;;  %v8564_v34 = vrot.slane %v8562_v44, 4  ;;  %v12407_v20 = vld [vmem:[#allocation4 + $0x1c8] sm:$0xf]  ;;  %v8240_v3 = vrot.slane %v8239_v30, 4 }
 0x466   : > { %v12445_v56 = vld [vmem:[#allocation4 + $0x234] sm:$0xf0]  ;;  %10636 = vmatmul.bf16.gmra.mxu1 %v12616_v6  ;;  %v12408_v54 = vor.u32 %v13310_v22, %v12407_v20  ;;  %v8254_v21 = vrot.slane %v8252_v1, 5  ;;  %v7799_v36 = vrot.slane %v7662_v52, 5  ;;  %v8565_v43 = vrot.slane %v8466_v57, 5  ;;  %v10380_v38 = vpop.f32.mrf.mxu2  ;;  %v16877_v20 = vld [vmem:[#allocation7_spill] sm:$0xff] }
 0x467   : > { %16876 = vst [vmem:[#allocation22_spill] sm:$0xff] %v16305_v4  ;;  %v8250_v29 = vrot.slane %v8249_v13, 4  ;;  %v7998_v11 = vld [vmem:[#allocation3 + $0x90] sm:$0xf]  ;;  %v13315_v9 = vld [vmem:[#allocation4 + $0x214] sm:$0xf]  ;;  %v8245_v47 = vsel %vm13693_vm11, %v8240_v3, %v8244_v45  ;;  %v10381_v39 = vadd.f32 %v10380_v38, %v10292_v41 }
 0x468   : > { %v7663_v42 = vld [vmem:[#allocation3 + $0x8c] sm:$0x1]  ;;  %v12143_v44 = vrot.slane %v7661_v35, 9  ;;  %8704 = vst [vmem:[#allocation4 + $0x20] sm:$0xf] %v8563_v60  ;;  %10784 = vmatmul.bf16.gmra.mxu3 %v12408_v54  ;;  %v8257_v30 = vshrl.u32 %v7998_v11, 16  ;;  %v12448_v3 = vor.u32 %v13315_v9, %v12445_v56  ;;  %v8566_v41 = vsel %vm14155_vm14, %v8564_v34, %v8565_v43 }
 0x469   : > { %v7177_v15 = vld [vmem:[#allocation3 + $0xb4] sm:$0xf]  ;;  %v7178_v61 = vld [vmem:[#allocation3 + $0xb8] sm:$0xf]  ;;  %v8255_v22 = vsel %vm13693_vm11, %v8250_v29, %v8254_v21  ;;  %v8260_v1 = vshll.u32 %v7998_v11, 16  ;;  %v16878_v4 = vld [vmem:[#allocation23_spill] sm:$0xff] }
 0x46a   : > { %v7179_v52 = vld [vmem:[#allocation3 + $0xbc] sm:$0x1]  ;;  %v7520_v17 = vshrl.u32 %v7177_v15, 16  ;;  %v7523_v57 = vshll.u32 %v7177_v15, 16  ;;  %v7529_v6 = vshll.u32 %v7178_v61, 16  ;;  %v7533_v13 = vshrl.u32 %v7178_v61, 16 }
 0x46b   : > { %v10511_v45 = vadd.f32 %v16878_v4, %v16877_v20  ;;  %v13457_v60 = vld [vmem:[%s16756_s3 + $0x200] sm:$0xff]  ;;  %8450 = vst [vmem:[#allocation4 + $0x2a4] sm:$0xf] %v8245_v47  ;;  %v7800_v35 = vsel %vm14155_vm14, %v12143_v44, %v7799_v36  ;;  %v10599_v54 = vpop.f32.mrf.mxu1  ;;  %v10469_v29 = vpop.f32.mrf.mxu3  ;;  %v7802_v15 = vrot.slane %v7663_v42, 5  ;;  %v7539_v61 = vshll.u32 %v7179_v52, 16 }
 0x46c   : > { %v7522_v21 = vrot.slane %v7520_v17, 4  ;;  %v7525_v11 = vrot.slane %v7523_v57, 5  ;;  %v7531_v38 = vrot.slane %v7529_v6, 5  ;;  %8451 = vst [vmem:[#allocation4 + $0x2c8] sm:$0xf] %v8255_v22  ;;  %v16324_v4 = vpop.f32.mrf.mxu0  ;;  %v16328_v9 = vadd.f32 %v10469_v29, %v10381_v39  ;;  %10931 = vmatpush.bf16.msra.mxu1 %v13457_v60 }
 0x46d   : > { %v16326_v56 = vadd.f32 %v10599_v54, %v10511_v45  ;;  %v7535_v47 = vrot.slane %v7533_v13, 4  ;;  %7891 = vst [vmem:[#allocation4 + $0x2e4] sm:$0xf] %v7800_v35  ;;  %v7801_v20 = vrot.slane %v7799_v36, 4  ;;  %v8259_v34 = vrot.slane %v8257_v30, 4 }
 0x46e   : > { %v7526_v44 = vor.u32 %v7525_v11, %v7522_v21  ;;  %v8262_v43 = vrot.slane %v8260_v1, 5  ;;  %8705 = vst [vmem:[#allocation4 + $0x44] sm:$0xf] %v8566_v41  ;;  %v10294_v17 = vadd.f32 %v16145_v8, %v16086_v49  ;;  %v13314_v22 = vld [vmem:[#allocation4 + $0x20c] sm:$0xf]  ;;  %v10382_v54 = vpop.f32.mrf.mxu2  ;;  %v7541_v29 = vrot.slane %v7539_v61, 5 }
 0x46f   : > { %16879 = vst [vmem:[#allocation19_spill] sm:$0xff] %v16326_v56  ;;  %v12437_v42 = vld [vmem:[#allocation4 + $0x22c] sm:$0xf0]  ;;  %v7536_v57 = vor.u32 %v7535_v47, %v7531_v38  ;;  %v7999_v6 = vld [vmem:[#allocation3 + $0x94] sm:$0xf]  ;;  %v7803_v52 = vsel %vm14155_vm14, %v7801_v20, %v7802_v15  ;;  %v16880_v15 = vld [vmem:[#allocation25_spill] sm:$0xff] }
 0x470   : > { %v8467_v45 = vld [vmem:[#allocation3 + $0x24] sm:$0xe]  ;;  %10878 = vmatmul.bf16.gmra.mxu0 %v12448_v3  ;;  %v7527_v39 = vrot.slane %v7526_v44, 4  ;;  %v8000_v13 = vld [vmem:[#allocation3 + $0x98] sm:$0x1]  ;;  %v8263_v60 = vor.u32 %v8262_v43, %v8259_v34  ;;  %v8266_v36 = vshll.u32 %v7999_v6, 16  ;;  %v10383_v1 = vadd.f32 %v10382_v54, %v10294_v17 }
 0x471   : > { %v8468_v30 = vld [vmem:[#allocation3 + $0x28] sm:$0xf]  ;;  %v13319_v35 = vld [vmem:[#allocation4 + $0x230] sm:$0xf0]  ;;  %v7537_v41 = vrot.slane %v7536_v57, 4  ;;  %v8270_v49 = vshrl.u32 %v7999_v6, 16  ;;  %v12440_v21 = vor.u32 %v13314_v22, %v12437_v42  ;;  %v10514_v20 = vadd.f32 %v16880_v15, %v15949_v14 }
 0x472   : > { %7892 = vst [vmem:[#allocation4 + $0x308] sm:$0xf] %v7803_v52  ;;  %v12651_v11 = vld [vmem:[#allocation4 + $0x3b8] sm:$0xf]  ;;  %v13372_v47 = vld [vmem:[#allocation4 + $0x3d8] sm:$0xf0]  ;;  %v7532_v3 = vsel %vm13693_vm11, %v7527_v39, %v7531_v38 }
 0x473   : > { %v8264_v44 = vrot.slane %v8263_v60, 4  ;;  %v8268_v56 = vrot.slane %v8266_v36, 5  ;;  %v7542_v34 = vsel %vm13693_vm11, %v7537_v41, %v7541_v29  ;;  %7627 = vst [vmem:[#allocation4 + $0x400] sm:$0xf] %v7532_v3  ;;  %v8272_v43 = vrot.slane %v8270_v49, 4  ;;  %v10602_v57 = vpop.f32.mrf.mxu1  ;;  %v10471_v6 = vpop.f32.mrf.mxu3  ;;  %10700 = vmatmul.bf16.gmra.mxu2 %v12440_v21 }
 0x474   : > { %v8276_v17 = vshll.u32 %v8000_v13, 16  ;;  %v8469_v61 = vld [vmem:[#allocation3 + $0x2c] sm:$0x1]  ;;  %7628 = vst [vmem:[#allocation4 + $0x424] sm:$0xf] %v7542_v34  ;;  %v12150_v42 = vrot.slane %v8467_v45, 9  ;;  %v16342_v39 = vadd.f32 %v10602_v57, %v10514_v20  ;;  %v16344_v14 = vadd.f32 %v10471_v6, %v10383_v1 }
 0x475   : > { %v8269_v22 = vsel %vm13693_vm11, %v8264_v44, %v8268_v56  ;;  %v8569_v38 = vrot.slane %v8468_v30, 5  ;;  %v8471_v54 = vld [vmem:[#allocation3 + $0x34] sm:$0xf]  ;;  %v12652_v52 = vor.u32 %v13372_v47, %v12651_v11  ;;  %v12443_v60 = vld [vmem:[#allocation4 + $0x210] sm:$0xf]  ;;  %v8273_v36 = vor.u32 %v8272_v43, %v8268_v56  ;;  %v16350_v30 = vpop.f32.mrf.mxu0 }
 0x476   : > { %v8470_v41 = vld [vmem:[#allocation3 + $0x30] sm:$0xe]  ;;  %v10297_v13 = vadd.f32 %v16145_v8, %v16098_v40  ;;  %v12444_v29 = vor.u32 %v13319_v35, %v12443_v60  ;;  %8452 = vst [vmem:[#allocation4 + $0x2ec] sm:$0xf] %v8269_v22  ;;  %v8278_v3 = vrot.slane %v8276_v17, 5  ;;  %v8572_v1 = vrot.slane %v8469_v61, 5  ;;  %v10385_v47 = vpop.f32.mrf.mxu2 }
 0x477   : > { %v8570_v49 = vsel %vm14155_vm14, %v12150_v42, %v8569_v38  ;;  %v8571_v45 = vrot.slane %v8569_v38, 4  ;;  %10641 = vmatmul.bf16.gmra.mxu1 %v12652_v52  ;;  %v8274_v21 = vrot.slane %v8273_v36, 4  ;;  %v8576_v11 = vrot.slane %v8471_v54, 5  ;;  %v8472_v56 = vld [vmem:[#allocation3 + $0x38] sm:$0x1] }
 0x478   : > { %8706 = vst [vmem:[#allocation4 + $0x68] sm:$0xf] %v8570_v49  ;;  %v12151_v44 = vrot.slane %v8470_v41, 9  ;;  %v10386_v15 = vadd.f32 %v10385_v47, %v10297_v13  ;;  %10789 = vmatmul.bf16.gmra.mxu3 %v12444_v29  ;;  %v7180_v40 = vld [vmem:[#allocation3 + $0xc0] sm:$0xf]  ;;  %v16881_v22 = vld [vmem:[#allocation5_spill] sm:$0xff] }
 0x479   : > { %v7181_v8 = vld [vmem:[#allocation3 + $0xc4] sm:$0xf]  ;;  %v7182_v35 = vld [vmem:[#allocation3 + $0xc8] sm:$0x1]  ;;  %v8279_v20 = vsel %vm13693_vm11, %v8274_v21, %v8278_v3  ;;  %v8573_v34 = vsel %vm14155_vm14, %v8571_v45, %v8572_v1  ;;  %v12481_v43 = vld [vmem:[#allocation4 + $0x27c] sm:$0xf0]  ;;  %v10516_v42 = vadd.f32 %v16881_v22, %v16000_v12 }
 0x47a   : > { %v7544_v57 = vshrl.u32 %v7180_v40, 16  ;;  %v7547_v17 = vshll.u32 %v7180_v40, 16  ;;  %v7553_v61 = vshll.u32 %v7181_v8, 16  ;;  %v7557_v6 = vshrl.u32 %v7181_v8, 16  ;;  %8453 = vst [vmem:[#allocation4 + $0x310] sm:$0xf] %v8279_v20 }
 0x47b   : > { %v8577_v38 = vsel %vm14155_vm14, %v12151_v44, %v8576_v11  ;;  %v8578_v54 = vrot.slane %v8576_v11, 4  ;;  %v8579_v52 = vrot.slane %v8472_v56, 5  ;;  %v8473_v60 = vld [vmem:[#allocation3 + $0x3c] sm:$0xe]  ;;  %v10604_v36 = vpop.f32.mrf.mxu1  ;;  %v10474_v41 = vpop.f32.mrf.mxu3  ;;  %v7563_v45 = vshll.u32 %v7182_v35, 16 }
 0x47c   : > { %v7546_v13 = vrot.slane %v7544_v57, 4  ;;  %v7549_v29 = vrot.slane %v7547_v17, 5  ;;  %v7555_v49 = vrot.slane %v7553_v61, 5  ;;  %8707 = vst [vmem:[#allocation4 + $0x8c] sm:$0xf] %v8573_v34  ;;  %v16360_v21 = vadd.f32 %v10604_v36, %v10516_v42 }
 0x47d   : > { %v16362_v3 = vadd.f32 %v10474_v41, %v10386_v15  ;;  %v13324_v1 = vld [vmem:[#allocation4 + $0x25c] sm:$0xf]  ;;  %v7559_v12 = vrot.slane %v7557_v6, 4  ;;  %8708 = vst [vmem:[#allocation4 + $0xb0] sm:$0xf] %v8577_v38  ;;  %v8580_v11 = vsel %vm14155_vm14, %v8578_v54, %v8579_v52  ;;  %v12152_v15 = vrot.slane %v8473_v60, 9  ;;  %v16370_v22 = vpop.f32.mrf.mxu0 }
 0x47e   : > { %v12484_v47 = vor.u32 %v13324_v1, %v12481_v43  ;;  %v7550_v40 = vor.u32 %v7549_v29, %v7546_v13  ;;  %v8474_v56 = vld [vmem:[#allocation3 + $0x40] sm:$0xf]  ;;  %v8475_v44 = vld [vmem:[#allocation3 + $0x44] sm:$0x1]  ;;  %v13497_v8 = vld [vmem:[%s16757_s4] ss:$0 sm:$0xff]  ;;  %v10387_v57 = vpop.f32.mrf.mxu2  ;;  %v10519_v13 = vadd.f32 %v15984_v2, %v16026_v7 }
 0x47f   : > { %v10299_v35 = vadd.f32 %v13497_v8, %v16115_v27  ;;  %v7560_v20 = vor.u32 %v7559_v12, %v7555_v49  ;;  %8709 = vst [vmem:[#allocation4 + $0xd4] sm:$0xf] %v8580_v11  ;;  %v8583_v34 = vrot.slane %v8474_v56, 5  ;;  %v12473_v17 = vld [vmem:[#allocation4 + $0x274] sm:$0xf0]  ;;  %v7565_v61 = vrot.slane %v7563_v45, 5 }
 0x480   : > { %10883 = vmatmul.bf16.gmra.mxu0 %v12484_v47  ;;  %v7551_v43 = vrot.slane %v7550_v40, 4  ;;  %v8586_v6 = vrot.slane %v8475_v44, 5  ;;  %v13323_v36 = vld [vmem:[#allocation4 + $0x254] sm:$0xf]  ;;  %v13381_v27 = vld [vmem:[#allocation4 + $0x420] sm:$0xf0] }
 0x481   : > { %v10388_v42 = vadd.f32 %v10387_v57, %v10299_v35  ;;  %v7561_v38 = vrot.slane %v7560_v20, 4  ;;  %v8584_v54 = vsel %vm14155_vm14, %v12152_v15, %v8583_v34  ;;  %v8585_v52 = vrot.slane %v8583_v34, 4  ;;  %v12687_v47 = vld [vmem:[#allocation4 + $0x400] sm:$0xf]  ;;  %v13328_v40 = vld [vmem:[#allocation4 + $0x278] sm:$0xf0] }
 0x482   : > { %v7556_v60 = vsel %vm13693_vm11, %v7551_v43, %v7555_v49  ;;  %8710 = vst [vmem:[#allocation4 + $0xf8] sm:$0xf] %v8584_v54  ;;  %v12476_v41 = vor.u32 %v13323_v36, %v12473_v17  ;;  %v12688_v56 = vor.u32 %v13381_v27, %v12687_v47  ;;  %v12479_v2 = vld [vmem:[#allocation4 + $0x258] sm:$0xf]  ;;  %v7925_v20 = vld [vmem:[#allocation3 + $0x94] sm:$0xf] }
 0x483   : > { %v7566_v29 = vsel %vm13693_vm11, %v7561_v38, %v7565_v61  ;;  %7629 = vst [vmem:[#allocation4 + $0x448] sm:$0xf] %v7556_v60  ;;  %v8587_v45 = vsel %vm14155_vm14, %v8585_v52, %v8586_v6  ;;  %v10607_v1 = vpop.f32.mrf.mxu1  ;;  %v10476_v12 = vpop.f32.mrf.mxu3  ;;  %v12480_v7 = vor.u32 %v13328_v40, %v12479_v2  ;;  %v7924_v35 = vld [vmem:[#allocation3 + $0x90] sm:$0xf]  ;;  %v8476_v15 = vld [vmem:[#allocation3 + $0x48] sm:$0xe] }
 0x484   : > { %7630 = vst [vmem:[#allocation4 + $0x46c] sm:$0xf] %v7566_v29  ;;  %10705 = vmatmul.bf16.gmra.mxu2 %v12476_v41  ;;  %v16382_v11 = vadd.f32 %v10607_v1, %v10519_v13  ;;  %v16384_v49 = vadd.f32 %v10476_v12, %v10388_v42  ;;  %v8477_v34 = vld [vmem:[#allocation3 + $0x4c] sm:$0xf]  ;;  %v16882_v17 = vld [vmem:[#allocation6_spill] sm:$0xff]  ;;  %v16883_v43 = vld [vmem:[#allocation9_spill] sm:$0xff] }
 0x485   : > { %8711 = vst [vmem:[#allocation4 + $0x11c] sm:$0xf] %v8587_v45  ;;  %v16387_v57 = vpop.f32.mrf.mxu0  ;;  %v10521_v61 = vadd.f32 %v16883_v43, %v16882_v17  ;;  %v12517_v6 = vld [vmem:[#allocation4 + $0x2c4] sm:$0xf0]  ;;  %v8478_v42 = vld [vmem:[#allocation3 + $0x50] sm:$0x1] }
 0x486   : > { %v10666_v44 = vpop.f32.mrf.mxu2  ;;  %7956 = vst [vmem:[#allocation4 + $0x2e8] sm:$0xf] %v7924_v35  ;;  %v12153_v52 = vrot.slane %v8476_v15, 9  ;;  %v8590_v36 = vrot.slane %v8477_v34, 5  ;;  %v13333_v60 = vld [vmem:[#allocation4 + $0x2a4] sm:$0xf] }
 0x487   : > { %10646 = vmatmul.bf16.gmra.mxu1 %v12688_v56  ;;  %v10667_v8 = vadd.f32 %v10666_v44, %v16136_v58  ;;  %7957 = vst [vmem:[#allocation4 + $0x30c] sm:$0xf] %v7925_v20  ;;  %v12520_v41 = vor.u32 %v13333_v60, %v12517_v6  ;;  %v8593_v45 = vrot.slane %v8478_v42, 5  ;;  %v12509_v12 = vld [vmem:[#allocation4 + $0x2bc] sm:$0xf0]  ;;  %v16884_v34 = vld [vmem:[#allocation10_spill] sm:$0xff] }
 0x488   : > { %10794 = vmatmul.bf16.gmra.mxu3 %v12480_v7  ;;  %v8591_v13 = vsel %vm14155_vm14, %v12153_v52, %v8590_v36  ;;  %v8592_v29 = vrot.slane %v8590_v36, 4  ;;  %v13332_v56 = vld [vmem:[#allocation4 + $0x29c] sm:$0xf]  ;;  %v7664_v2 = vld [vmem:[#allocation3 + $0x90] sm:$0xe]  ;;  %v10524_v17 = vadd.f32 %v16884_v34, %v16057_v50 }
 0x489   : > { %8712 = vst [vmem:[#allocation4 + $0x140] sm:$0xf] %v8591_v13  ;;  %v7665_v7 = vld [vmem:[#allocation3 + $0x94] sm:$0xf]  ;;  %v12144_v35 = vrot.slane %v7664_v2, 9  ;;  %v12512_v15 = vor.u32 %v13332_v56, %v12509_v12 }
 0x48a   : > { %v8594_v47 = vsel %vm14155_vm14, %v8592_v29, %v8593_v45  ;;  %v7806_v20 = vrot.slane %v7665_v7, 5  ;;  %v12723_v6 = vld [vmem:[#allocation4 + $0x448] sm:$0xf]  ;;  %v12515_v42 = vld [vmem:[#allocation4 + $0x2a0] sm:$0xf] }
 0x48b   : > { %v10609_v38 = vpop.f32.mrf.mxu1  ;;  %v10755_v54 = vpop.f32.mrf.mxu3  ;;  %v13390_v44 = vld [vmem:[#allocation4 + $0x468] sm:$0xf0]  ;;  %8713 = vst [vmem:[#allocation4 + $0x164] sm:$0xf] %v8594_v47  ;;  %v8001_v50 = vld [vmem:[#allocation3 + $0x9c] sm:$0xf] }
 0x48c   : > { %v16391_v27 = vadd.f32 %v10609_v38, %v10521_v61  ;;  %v16393_v58 = vadd.f32 %v10755_v54, %v10667_v8  ;;  %v7666_v8 = vld [vmem:[#allocation3 + $0x98] sm:$0x1]  ;;  %v13337_v38 = vld [vmem:[#allocation4 + $0x2c0] sm:$0xf0]  ;;  %v7808_v54 = vrot.slane %v7806_v20, 4  ;;  %v12724_v13 = vor.u32 %v13390_v44, %v12723_v6 }
 0x48d   : > { %v7809_v52 = vrot.slane %v7666_v8, 5  ;;  %v16404_v36 = vpop.f32.mrf.mxu0  ;;  %v8002_v29 = vld [vmem:[#allocation3 + $0xa0] sm:$0xf]  ;;  %v8281_v12 = vshrl.u32 %v8001_v50, 16  ;;  %v8284_v47 = vshll.u32 %v8001_v50, 16  ;;  %v12516_v2 = vor.u32 %v13337_v38, %v12515_v42  ;;  %v16886_v42 = vld [vmem:[#allocation8_spill] sm:$0xff] }
 0x48e   : > { %v10668_v1 = vpop.f32.mrf.mxu2  ;;  %v8290_v56 = vshll.u32 %v8002_v29, 16  ;;  %v8294_v7 = vshrl.u32 %v8002_v29, 16  ;;  %v8479_v44 = vld [vmem:[#allocation3 + $0x54] sm:$0xe]  ;;  %v12553_v6 = vld [vmem:[#allocation4 + $0x30c] sm:$0xf0] }
 0x48f   : > { %v10669_v40 = vadd.f32 %v10668_v1, %v16164_v46  ;;  %v7807_v46 = vsel %vm14155_vm14, %v12144_v35, %v7806_v20  ;;  %v7810_v45 = vsel %vm14155_vm14, %v7808_v54, %v7809_v52  ;;  %v8003_v1 = vld [vmem:[#allocation3 + $0xa4] sm:$0x1]  ;;  %v8283_v35 = vrot.slane %v8281_v12, 4  ;;  %v8480_v54 = vld [vmem:[#allocation3 + $0x58] sm:$0xf] }
 0x490   : > { %10888 = vmatmul.bf16.gmra.mxu0 %v12520_v41  ;;  %7893 = vst [vmem:[#allocation4 + $0x32c] sm:$0xf] %v7807_v46  ;;  %v8286_v20 = vrot.slane %v8284_v47, 5  ;;  %v16885_v52 = vld [vmem:[#allocation13_spill] sm:$0xff]  ;;  %v12154_v29 = vrot.slane %v8479_v44, 9 }
 0x491   : > { %7894 = vst [vmem:[#allocation4 + $0x350] sm:$0xf] %v7810_v45  ;;  %v10526_v38 = vadd.f32 %v16886_v42, %v16885_v52  ;;  %v8481_v50 = vld [vmem:[#allocation3 + $0x5c] sm:$0x1]  ;;  %v8597_v45 = vrot.slane %v8480_v54, 5 }
 0x492   : > { %v8287_v46 = vor.u32 %v8286_v20, %v8283_v35  ;;  %v8600_v44 = vrot.slane %v8481_v50, 5  ;;  %v13341_v52 = vld [vmem:[#allocation4 + $0x2e4] sm:$0xf]  ;;  %v7668_v42 = vld [vmem:[#allocation3 + $0xa0] sm:$0xf] }
 0x493   : > { %v10612_v43 = vpop.f32.mrf.mxu1  ;;  %v10757_v61 = vpop.f32.mrf.mxu3  ;;  %v8598_v35 = vsel %vm14155_vm14, %v12154_v29, %v8597_v45  ;;  %v7813_v29 = vrot.slane %v7668_v42, 5 }
 0x494   : > { %10710 = vmatmul.bf16.gmra.mxu2 %v12512_v15  ;;  %v16406_v60 = vadd.f32 %v10612_v43, %v10524_v17  ;;  %v16408_v41 = vadd.f32 %v10757_v61, %v10669_v40  ;;  %v8292_v40 = vrot.slane %v8290_v56, 5  ;;  %v8300_v15 = vshll.u32 %v8003_v1, 16  ;;  %v7926_v43 = vld [vmem:[#allocation3 + $0x9c] sm:$0xf]  ;;  %v7927_v61 = vld [vmem:[#allocation3 + $0xa0] sm:$0xf] }
 0x495   : > { %v8296_v17 = vrot.slane %v8294_v7, 4  ;;  %7958 = vst [vmem:[#allocation4 + $0x330] sm:$0xf] %v7926_v43  ;;  %v8288_v47 = vrot.slane %v8287_v46, 4  ;;  %v13342_v7 = vld [vmem:[#allocation4 + $0x2ec] sm:$0xf] }
 0x496   : > { %v10671_v8 = vpop.f32.mrf.mxu2  ;;  %7959 = vst [vmem:[#allocation4 + $0x354] sm:$0xf] %v7927_v61  ;;  %v12556_v20 = vor.u32 %v13342_v7, %v12553_v6  ;;  %v8599_v43 = vrot.slane %v8597_v45, 4  ;;  %v16423_v61 = vpop.f32.mrf.mxu0  ;;  %v12545_v46 = vld [vmem:[#allocation4 + $0x304] sm:$0xf0] }
 0x497   : > { %10651 = vmatmul.bf16.gmra.mxu1 %v12724_v13  ;;  %v10672_v34 = vadd.f32 %v10671_v8, %v16186_v5  ;;  %v8297_v13 = vor.u32 %v8296_v17, %v8292_v40  ;;  %v8302_v5 = vrot.slane %v8300_v15, 5  ;;  %v8293_v17 = vsel %vm13693_vm11, %v8288_v47, %v8292_v40  ;;  %8714 = vst [vmem:[#allocation4 + $0x188] sm:$0xf] %v8598_v35  ;;  %v7667_v40 = vld [vmem:[#allocation3 + $0x9c] sm:$0xe] }
 0x498   : > { %10799 = vmatmul.bf16.gmra.mxu3 %v12516_v2  ;;  %8454 = vst [vmem:[#allocation4 + $0x334] sm:$0xf] %v8293_v17  ;;  %v8601_v54 = vsel %vm14155_vm14, %v8599_v43, %v8600_v44  ;;  %v12145_v50 = vrot.slane %v7667_v40, 9  ;;  %v12548_v45 = vor.u32 %v13341_v52, %v12545_v46  ;;  %v13346_v35 = vld [vmem:[#allocation4 + $0x308] sm:$0xf0] }
 0x499   : > { %v8298_v8 = vrot.slane %v8297_v13, 4  ;;  %v7669_v13 = vld [vmem:[#allocation3 + $0xa4] sm:$0x1]  ;;  %8715 = vst [vmem:[#allocation4 + $0x1ac] sm:$0xf] %v8601_v54 }
 0x49a   : > { %v7816_v17 = vrot.slane %v7669_v13, 5  ;;  %v8005_v46 = vld [vmem:[#allocation3 + $0xac] sm:$0xf]  ;;  %v12551_v52 = vld [vmem:[#allocation4 + $0x2e8] sm:$0xf] }
 0x49b   : > { %v10614_v1 = vpop.f32.mrf.mxu1  ;;  %v10760_v12 = vpop.f32.mrf.mxu3  ;;  %v8303_v15 = vsel %vm13693_vm11, %v8298_v8, %v8302_v5  ;;  %v12199_v8 = vld [vmem:[#allocation4 + $0x20] sm:$0xf]  ;;  %v8006_v40 = vld [vmem:[#allocation3 + $0xb0] sm:$0x1]  ;;  %v8314_v13 = vshll.u32 %v8005_v46, 16 }
 0x49c   : > { %v16415_v56 = vadd.f32 %v10614_v1, %v10526_v38  ;;  %v16417_v2 = vadd.f32 %v10760_v12, %v10672_v34  ;;  %8455 = vst [vmem:[#allocation4 + $0x358] sm:$0xf] %v8303_v15  ;;  %v13257_v38 = vld [vmem:[#allocation4 + $0x40] sm:$0xf0]  ;;  %v16887_v1 = vld [vmem:[#allocation12_spill] sm:$0xff]  ;;  %v16888_v12 = vld [vmem:[#allocation11_spill] sm:$0xff] }
 0x49d   : > { %v10529_v47 = vadd.f32 %v16888_v12, %v16887_v1  ;;  %v12200_v15 = vor.u32 %v13257_v38, %v12199_v8 }
 0x49e   : > { %v10673_v34 = vpop.f32.mrf.mxu2  ;;  %v16440_v38 = vpop.f32.mrf.mxu0 }
 0x49f   : > { %v10674_v6 = vadd.f32 %v10673_v34, %v16200_v63  ;;  %v7815_v63 = vrot.slane %v7813_v29, 4  ;;  %v8004_v34 = vld [vmem:[#allocation3 + $0xa8] sm:$0xf] }
 0x4a0   : > { %10893 = vmatmul.bf16.gmra.mxu0 %v12556_v20  ;;  %v7814_v20 = vsel %vm14155_vm14, %v12145_v50, %v7813_v29  ;;  %v8305_v42 = vshrl.u32 %v8004_v34, 16  ;;  %v8308_v1 = vshll.u32 %v8004_v34, 16  ;;  %v12552_v50 = vor.u32 %v13346_v35, %v12551_v52  ;;  %v16890_v35 = vld [vmem:[#allocation14_spill] sm:$0xff] }
 0x4a1   : > { %7895 = vst [vmem:[#allocation4 + $0x374] sm:$0xf] %v7814_v20  ;;  %v7817_v54 = vsel %vm14155_vm14, %v7815_v63, %v7816_v17  ;;  %v8318_v29 = vshrl.u32 %v8005_v46, 16  ;;  %v7928_v20 = vld [vmem:[#allocation3 + $0xa8] sm:$0xf]  ;;  %v10531_v34 = vadd.f32 %v16890_v35, %v16100_v62 }
 0x4a2   : > { %7896 = vst [vmem:[#allocation4 + $0x398] sm:$0xf] %v7817_v54  ;;  %v8307_v12 = vrot.slane %v8305_v42, 4  ;;  %v7929_v63 = vld [vmem:[#allocation3 + $0xac] sm:$0xf] }
 0x4a3   : > { %v10617_v5 = vpop.f32.mrf.mxu1  ;;  %v10762_v7 = vpop.f32.mrf.mxu3  ;;  %v8320_v8 = vrot.slane %v8318_v29, 4  ;;  %7960 = vst [vmem:[#allocation4 + $0x378] sm:$0xf] %v7928_v20  ;;  %v12589_v46 = vld [vmem:[#allocation4 + $0x354] sm:$0xf0] }
 0x4a4   : > { %10715 = vmatmul.bf16.gmra.mxu2 %v12548_v45  ;;  %v16434_v43 = vadd.f32 %v10617_v5, %v10529_v47  ;;  %v16436_v44 = vadd.f32 %v10762_v7, %v10674_v6  ;;  %v8310_v6 = vrot.slane %v8308_v1, 5  ;;  %v8324_v47 = vshll.u32 %v8006_v40, 16  ;;  %7961 = vst [vmem:[#allocation4 + $0x39c] sm:$0xf] %v7929_v63  ;;  %v8483_v54 = vld [vmem:[#allocation3 + $0x64] sm:$0xf] }
 0x4a5   : > { %v8316_v7 = vrot.slane %v8314_v13, 5  ;;  %v13351_v29 = vld [vmem:[#allocation4 + $0x334] sm:$0xf] }
 0x4a6   : > { %16889 = vst [vmem:[#allocation24_spill] sm:$0xff] %v16434_v43  ;;  %v10676_v45 = vpop.f32.mrf.mxu2  ;;  %v8311_v17 = vor.u32 %v8310_v6, %v8307_v12  ;;  %v8484_v43 = vld [vmem:[#allocation3 + $0x68] sm:$0x1]  ;;  %v8326_v12 = vrot.slane %v8324_v47, 5  ;;  %v12592_v6 = vor.u32 %v13351_v29, %v12589_v46  ;;  %v7670_v46 = vld [vmem:[#allocation3 + $0xa8] sm:$0xe] }
 0x4a7   : > { %10932 = vmatmul.bf16.vlgmr.msra.gmra.mxu1 %v12200_v15  ;;  %v10677_v5 = vadd.f32 %v10676_v45, %v16223_v10  ;;  %v8482_v15 = vld [vmem:[#allocation3 + $0x60] sm:$0xe]  ;;  %v8321_v52 = vor.u32 %v8320_v8, %v8316_v7  ;;  %v8604_v10 = vrot.slane %v8483_v54, 5  ;;  %v12581_v54 = vld [vmem:[#allocation4 + $0x34c] sm:$0xf0] }
 0x4a8   : > { %10804 = vmatmul.bf16.gmra.mxu3 %v12552_v50  ;;  %v8312_v1 = vrot.slane %v8311_v17, 4  ;;  %v12155_v20 = vrot.slane %v8482_v15, 9  ;;  %v8607_v17 = vrot.slane %v8484_v43, 5  ;;  %v13350_v15 = vld [vmem:[#allocation4 + $0x32c] sm:$0xf]  ;;  %v16458_v43 = vpop.f32.mrf.mxu0 }
 0x4a9   : > { %v8322_v45 = vrot.slane %v8321_v52, 4  ;;  %v8606_v8 = vrot.slane %v8604_v10, 4  ;;  %v7671_v52 = vld [vmem:[#allocation3 + $0xac] sm:$0xf]  ;;  %v12584_v29 = vor.u32 %v13350_v15, %v12581_v54  ;;  %v8007_v54 = vld [vmem:[#allocation3 + $0xb4] sm:$0xf] }
 0x4aa   : > { %v8317_v62 = vsel %vm13693_vm11, %v8312_v1, %v8316_v7  ;;  %v7820_v1 = vrot.slane %v7671_v52, 5  ;;  %v8329_v52 = vshrl.u32 %v8007_v54, 16  ;;  %v8332_v15 = vshll.u32 %v8007_v54, 16 }
 0x4ab   : > { %v10619_v40 = vpop.f32.mrf.mxu1  ;;  %v10765_v42 = vpop.f32.mrf.mxu3  ;;  %v8327_v63 = vsel %vm13693_vm11, %v8322_v45, %v8326_v12  ;;  %8456 = vst [vmem:[#allocation4 + $0x37c] sm:$0xf] %v8317_v62  ;;  %v8608_v7 = vsel %vm14155_vm14, %v8606_v8, %v8607_v17  ;;  %v10534_v45 = vadd.f32 %v16117_v0, %v16119_v23  ;;  %v12235_v12 = vld [vmem:[#allocation4 + $0x68] sm:$0xf]  ;;  %v8008_v0 = vld [vmem:[#allocation3 + $0xb8] sm:$0xf] }
 0x4ac   : > { %v16445_v50 = vadd.f32 %v10619_v40, %v10531_v34  ;;  %v16447_v13 = vadd.f32 %v10765_v42, %v10677_v5  ;;  %8457 = vst [vmem:[#allocation4 + $0x3a0] sm:$0xf] %v8327_v63  ;;  %v8605_v5 = vsel %vm14155_vm14, %v12155_v20, %v8604_v10  ;;  %v13266_v34 = vld [vmem:[#allocation4 + $0x88] sm:$0xf0]  ;;  %v7672_v40 = vld [vmem:[#allocation3 + $0xb0] sm:$0x1] }
 0x4ad   : > { %v12146_v42 = vrot.slane %v7670_v46, 9  ;;  %8716 = vst [vmem:[#allocation4 + $0x1d0] sm:$0xf] %v8605_v5  ;;  %v7822_v20 = vrot.slane %v7820_v1, 4  ;;  %v7823_v8 = vrot.slane %v7672_v40, 5  ;;  %v8342_v40 = vshrl.u32 %v8008_v0, 16 }
 0x4ae   : > { %v10678_v35 = vpop.f32.mrf.mxu2  ;;  %8717 = vst [vmem:[#allocation4 + $0x1f4] sm:$0xf] %v8608_v7  ;;  %v12587_v23 = vld [vmem:[#allocation4 + $0x330] sm:$0xf]  ;;  %v8009_v46 = vld [vmem:[#allocation3 + $0xbc] sm:$0x1] }
 0x4af   : > { %v10679_v47 = vadd.f32 %v10678_v35, %v16239_v28  ;;  %v7821_v62 = vsel %vm14155_vm14, %v12146_v42, %v7820_v1  ;;  %v12236_v35 = vor.u32 %v13266_v34, %v12235_v12  ;;  %v7824_v5 = vsel %vm14155_vm14, %v7822_v20, %v7823_v8  ;;  %v8485_v8 = vld [vmem:[#allocation3 + $0x6c] sm:$0xe] }
 0x4b0   : > { %10898 = vmatmul.bf16.gmra.mxu0 %v12592_v6  ;;  %v13355_v6 = vld [vmem:[#allocation4 + $0x350] sm:$0xf0]  ;;  %7897 = vst [vmem:[#allocation4 + $0x3bc] sm:$0xf] %v7821_v62  ;;  %v8338_v7 = vshll.u32 %v8008_v0, 16 }
 0x4b1   : > { %v12588_v42 = vor.u32 %v13355_v6, %v12587_v23  ;;  %7898 = vst [vmem:[#allocation4 + $0x3e0] sm:$0xf] %v7824_v5  ;;  %v7931_v62 = vld [vmem:[#allocation3 + $0xb8] sm:$0xf]  ;;  %v10536_v6 = vadd.f32 %v16149_v55, %v16138_v26  ;;  %v8486_v0 = vld [vmem:[#allocation3 + $0x70] sm:$0xf] }
 0x4b2   : > { %v8340_v12 = vrot.slane %v8338_v7, 5  ;;  %7963 = vst [vmem:[#allocation4 + $0x3e4] sm:$0xf] %v7931_v62  ;;  %v13360_v7 = vld [vmem:[#allocation4 + $0x37c] sm:$0xf]  ;;  %v12156_v55 = vrot.slane %v8485_v8, 9 }
 0x4b3   : > { %v10622_v10 = vpop.f32.mrf.mxu1  ;;  %v10767_v28 = vpop.f32.mrf.mxu3  ;;  %v13359_v8 = vld [vmem:[#allocation4 + $0x374] sm:$0xf] }
 0x4b4   : > { %10720 = vmatmul.bf16.gmra.mxu2 %v12584_v29  ;;  %v16464_v63 = vadd.f32 %v10622_v10, %v10534_v45  ;;  %v16466_v17 = vadd.f32 %v10767_v28, %v10679_v47  ;;  %v8331_v29 = vrot.slane %v8329_v52, 4  ;;  %v8334_v47 = vrot.slane %v8332_v15, 5  ;;  %v7930_v28 = vld [vmem:[#allocation3 + $0xb4] sm:$0xf] }
 0x4b5   : > { %v8348_v45 = vshll.u32 %v8009_v46, 16  ;;  %v8344_v10 = vrot.slane %v8342_v40, 4  ;;  %7962 = vst [vmem:[#allocation4 + $0x3c0] sm:$0xf] %v7930_v28  ;;  %v8487_v52 = vld [vmem:[#allocation3 + $0x74] sm:$0x1] }
 0x4b6   : > { %v10681_v1 = vpop.f32.mrf.mxu2  ;;  %v8335_v20 = vor.u32 %v8334_v47, %v8331_v29  ;;  %v16477_v29 = vpop.f32.mrf.mxu0  ;;  %v8614_v62 = vrot.slane %v8487_v52, 5 }
 0x4b7   : > { %10937 = vmatmul.bf16.gmra.mxu1 %v12236_v35  ;;  %v10682_v34 = vadd.f32 %v10681_v1, %v16262_v32  ;;  %v12625_v35 = vld [vmem:[#allocation4 + $0x39c] sm:$0xf0]  ;;  %v8345_v54 = vor.u32 %v8344_v10, %v8340_v12  ;;  %v8611_v32 = vrot.slane %v8486_v0, 5  ;;  %v8350_v1 = vrot.slane %v8348_v45, 5 }
 0x4b8   : > { %10809 = vmatmul.bf16.gmra.mxu3 %v12588_v42  ;;  %v8336_v46 = vrot.slane %v8335_v20, 4  ;;  %v12628_v47 = vor.u32 %v13360_v7, %v12625_v35  ;;  %v13275_v35 = vld [vmem:[#allocation4 + $0xd0] sm:$0xf0]  ;;  %v7674_v0 = vld [vmem:[#allocation3 + $0xb8] sm:$0xf]  ;;  %v10539_v7 = vadd.f32 %v16174_v59, %v16166_v18 }
 0x4b9   : > { %v8346_v40 = vrot.slane %v8345_v54, 4  ;;  %v8613_v10 = vrot.slane %v8611_v32, 4  ;;  %v8612_v45 = vsel %vm14155_vm14, %v12156_v55, %v8611_v32  ;;  %v7673_v54 = vld [vmem:[#allocation3 + $0xb4] sm:$0xe]  ;;  %v8011_v18 = vld [vmem:[#allocation3 + $0xc4] sm:$0xf] }
 0x4ba   : > { %v8341_v26 = vsel %vm13693_vm11, %v8336_v46, %v8340_v12  ;;  %v7827_v46 = vrot.slane %v7674_v0, 5  ;;  %8718 = vst [vmem:[#allocation4 + $0x218] sm:$0xf] %v8612_v45  ;;  %v12623_v59 = vld [vmem:[#allocation4 + $0x378] sm:$0xf] }
 0x4bb   : > { %v10624_v23 = vpop.f32.mrf.mxu1  ;;  %v10770_v5 = vpop.f32.mrf.mxu3  ;;  %v8351_v28 = vsel %vm13693_vm11, %v8346_v40, %v8350_v1  ;;  %8458 = vst [vmem:[#allocation4 + $0x3c4] sm:$0xf] %v8341_v26  ;;  %v8615_v12 = vsel %vm14155_vm14, %v8613_v10, %v8614_v62  ;;  %v12271_v40 = vld [vmem:[#allocation4 + $0xb0] sm:$0xf] }
 0x4bc   : > { %v16473_v15 = vadd.f32 %v10624_v23, %v10536_v6  ;;  %v16475_v42 = vadd.f32 %v10770_v5, %v10682_v34  ;;  %v12617_v6 = vld [vmem:[#allocation4 + $0x394] sm:$0xf0]  ;;  %8459 = vst [vmem:[#allocation4 + $0x3e8] sm:$0xf] %v8351_v28  ;;  %v7675_v23 = vld [vmem:[#allocation3 + $0xbc] sm:$0x1]  ;;  %v12272_v62 = vor.u32 %v13275_v35, %v12271_v40 }
 0x4bd   : > { %v12147_v5 = vrot.slane %v7673_v54, 9  ;;  %v12620_v52 = vor.u32 %v13359_v8, %v12617_v6  ;;  %v7829_v26 = vrot.slane %v7827_v46, 4  ;;  %v7830_v55 = vrot.slane %v7675_v23, 5  ;;  %8719 = vst [vmem:[#allocation4 + $0x23c] sm:$0xf] %v8615_v12 }
 0x4be   : > { %v10683_v20 = vpop.f32.mrf.mxu2  ;;  %v8012_v45 = vld [vmem:[#allocation3 + $0xc8] sm:$0x1]  ;;  %v8362_v12 = vshll.u32 %v8011_v18, 16  ;;  %v8366_v23 = vshrl.u32 %v8011_v18, 16  ;;  %v7932_v40 = vld [vmem:[#allocation3 + $0xc0] sm:$0xf] }
 0x4bf   : > { %v10684_v34 = vadd.f32 %v10683_v20, %v16283_v31  ;;  %v7828_v31 = vsel %vm14155_vm14, %v12147_v5, %v7827_v46  ;;  %v8010_v20 = vld [vmem:[#allocation3 + $0xc0] sm:$0xf]  ;;  %v7831_v6 = vsel %vm14155_vm14, %v7829_v26, %v7830_v55  ;;  %v16498_v5 = vpop.f32.mrf.mxu0  ;;  %v8372_v35 = vshll.u32 %v8012_v45, 16  ;;  %7964 = vst [vmem:[#allocation4 + $0x408] sm:$0xf] %v7932_v40 }
 0x4c0   : > { %10903 = vmatmul.bf16.gmra.mxu0 %v12628_v47  ;;  %v13364_v47 = vld [vmem:[#allocation4 + $0x398] sm:$0xf0]  ;;  %7899 = vst [vmem:[#allocation4 + $0x404] sm:$0xf] %v7828_v31  ;;  %v8353_v54 = vshrl.u32 %v8010_v20, 16  ;;  %v8356_v0 = vshll.u32 %v8010_v20, 16  ;;  %v10541_v26 = vadd.f32 %v16192_v25, %v16188_v33 }
 0x4c1   : > { %v12624_v8 = vor.u32 %v13364_v47, %v12623_v59  ;;  %7900 = vst [vmem:[#allocation4 + $0x428] sm:$0xf] %v7831_v6  ;;  %v8488_v31 = vld [vmem:[#allocation3 + $0x78] sm:$0xe]  ;;  %v8490_v59 = vld [vmem:[#allocation3 + $0x80] sm:$0x1] }
 0x4c2   : > { %v8358_v46 = vrot.slane %v8356_v0, 5  ;;  %v8621_v25 = vrot.slane %v8490_v59, 5  ;;  %v12307_v59 = vld [vmem:[#allocation4 + $0xf8] sm:$0xf] }
 0x4c3   : > { %v10627_v1 = vpop.f32.mrf.mxu1  ;;  %v10772_v32 = vpop.f32.mrf.mxu3  ;;  %v12661_v47 = vld [vmem:[#allocation4 + $0x3e4] sm:$0xf0] }
 0x4c4   : > { %10725 = vmatmul.bf16.gmra.mxu2 %v12620_v52  ;;  %v16492_v10 = vadd.f32 %v10627_v1, %v10539_v7  ;;  %v16494_v28 = vadd.f32 %v10772_v32, %v10684_v34  ;;  %v8355_v34 = vrot.slane %v8353_v54, 4  ;;  %v8364_v52 = vrot.slane %v8362_v12, 5  ;;  %v7933_v1 = vld [vmem:[#allocation3 + $0xc4] sm:$0xf]  ;;  %v13369_v54 = vld [vmem:[#allocation4 + $0x3c4] sm:$0xf] }
 0x4c5   : > { %v8368_v7 = vrot.slane %v8366_v23, 4  ;;  %7965 = vst [vmem:[#allocation4 + $0x42c] sm:$0xf] %v7933_v1  ;;  %v12664_v12 = vor.u32 %v13369_v54, %v12661_v47  ;;  %v13284_v1 = vld [vmem:[#allocation4 + $0x118] sm:$0xf0] }
 0x4c6   : > { %v8359_v32 = vor.u32 %v8358_v46, %v8355_v34  ;;  %v12157_v34 = vrot.slane %v8488_v31, 9  ;;  %v13368_v31 = vld [vmem:[#allocation4 + $0x3bc] sm:$0xf]  ;;  %v7678_v47 = vld [vmem:[#allocation3 + $0xc8] sm:$0x1] }
 0x4c7   : > { %10942 = vmatmul.bf16.gmra.mxu1 %v12272_v62  ;;  %v8369_v55 = vor.u32 %v8368_v7, %v8364_v52  ;;  %v8489_v62 = vld [vmem:[#allocation3 + $0x7c] sm:$0xf]  ;;  %v12653_v7 = vld [vmem:[#allocation4 + $0x3dc] sm:$0xf0] }
 0x4c8   : > { %10814 = vmatmul.bf16.gmra.mxu3 %v12624_v8  ;;  %v8360_v18 = vrot.slane %v8359_v32, 4  ;;  %v8618_v6 = vrot.slane %v8489_v62, 5  ;;  %v8374_v8 = vrot.slane %v8372_v35, 5  ;;  %v7676_v32 = vld [vmem:[#allocation3 + $0xc0] sm:$0xe]  ;;  %v12656_v62 = vor.u32 %v13368_v31, %v12653_v7  ;;  %v16892_v31 = vld [vmem:[#allocation16_spill] sm:$0xff] }
 0x4c9   : > { %v8370_v0 = vrot.slane %v8369_v55, 4  ;;  %v7677_v35 = vld [vmem:[#allocation3 + $0xc4] sm:$0xf]  ;;  %v12148_v24 = vrot.slane %v7676_v32, 9  ;;  %v8492_v7 = vld [vmem:[#allocation3 + $0x88] sm:$0xf] }
 0x4ca   : > { %v8365_v23 = vsel %vm13693_vm11, %v8360_v18, %v8364_v52  ;;  %v8620_v46 = vrot.slane %v8618_v6, 4  ;;  %v8619_v40 = vsel %vm14155_vm14, %v12157_v34, %v8618_v6  ;;  %v16512_v52 = vpop.f32.mrf.mxu0  ;;  %v7834_v55 = vrot.slane %v7677_v35, 5  ;;  %v13373_v6 = vld [vmem:[#allocation4 + $0x3e0] sm:$0xf0] }
 0x4cb   : > { %v10629_v20 = vpop.f32.mrf.mxu1  ;;  %v8375_v33 = vsel %vm13693_vm11, %v8370_v0, %v8374_v8  ;;  %8460 = vst [vmem:[#allocation4 + $0x40c] sm:$0xf] %v8365_v23  ;;  %v12308_v34 = vor.u32 %v13284_v1, %v12307_v59  ;;  %v8625_v35 = vrot.slane %v8492_v7, 5 }
 0x4cc   : > { %v16502_v45 = vadd.f32 %v10629_v20, %v10541_v26  ;;  %8461 = vst [vmem:[#allocation4 + $0x430] sm:$0xf] %v8375_v33  ;;  %v8622_v26 = vsel %vm14155_vm14, %v8620_v46, %v8621_v25  ;;  %v16891_v20 = vld [vmem:[#allocation15_spill] sm:$0xff]  ;;  %v7835_v0 = vsel %vm14155_vm14, %v12148_v24, %v7834_v55  ;;  %v7836_v8 = vrot.slane %v7834_v55, 4  ;;  %v12659_v46 = vld [vmem:[#allocation4 + $0x3c0] sm:$0xf] }
 0x4cd   : > { %v10544_v18 = vadd.f32 %v16891_v20, %v16202_v51  ;;  %8720 = vst [vmem:[#allocation4 + $0x260] sm:$0xf] %v8619_v40  ;;  %v12660_v51 = vor.u32 %v13373_v6, %v12659_v46  ;;  %v8491_v25 = vld [vmem:[#allocation3 + $0x84] sm:$0xe]  ;;  %v8493_v40 = vld [vmem:[#allocation3 + $0x8c] sm:$0x1] }
 0x4ce   : > { %8721 = vst [vmem:[#allocation4 + $0x284] sm:$0xf] %v8622_v26  ;;  %v12158_v32 = vrot.slane %v8491_v25, 9  ;;  %v10546_v26 = vadd.f32 %v16247_v48, %v16892_v31  ;;  %v8628_v20 = vrot.slane %v8493_v40, 5  ;;  %v13377_v48 = vld [vmem:[#allocation4 + $0x404] sm:$0xf] }
 0x4cf   : > { %7901 = vst [vmem:[#allocation4 + $0x44c] sm:$0xf] %v7835_v0  ;;  %v12689_v0 = vld [vmem:[#allocation4 + $0x424] sm:$0xf0]  ;;  %v16894_v46 = vld [vmem:[#allocation17_spill] sm:$0xff] }
 0x4d0   : > { %10908 = vmatmul.bf16.gmra.mxu0 %v12664_v12  ;;  %v7837_v12 = vrot.slane %v7678_v47, 5  ;;  %v8626_v55 = vsel %vm14155_vm14, %v12158_v32, %v8625_v35  ;;  %v12343_v25 = vld [vmem:[#allocation4 + $0x140] sm:$0xf]  ;;  %v13382_v7 = vld [vmem:[#allocation4 + $0x428] sm:$0xf0] }
 0x4d1   : > { %8722 = vst [vmem:[#allocation4 + $0x2a8] sm:$0xf] %v8626_v55  ;;  %v12695_v31 = vld [vmem:[#allocation4 + $0x408] sm:$0xf]  ;;  %v12733_v55 = vld [vmem:[#allocation4 + $0x474] sm:$0xf0] }
 0x4d2   : > { %v7838_v33 = vsel %vm14155_vm14, %v7836_v8, %v7837_v12  ;;  %v16524_v24 = vpop.f32.mrf.mxu0  ;;  %v13378_v59 = vld [vmem:[#allocation4 + $0x40c] sm:$0xf]  ;;  %v13293_v8 = vld [vmem:[#allocation4 + $0x160] sm:$0xf0]  ;;  %v12692_v12 = vor.u32 %v13377_v48, %v12689_v0 }
 0x4d3   : > { %v10632_v54 = vpop.f32.mrf.mxu1  ;;  %7902 = vst [vmem:[#allocation4 + $0x470] sm:$0xf] %v7838_v33  ;;  %v12697_v47 = vld [vmem:[#allocation4 + $0x42c] sm:$0xf0]  ;;  %v12344_v32 = vor.u32 %v13293_v8, %v12343_v25 }
 0x4d4   : > { %10730 = vmatmul.bf16.gmra.mxu2 %v12656_v62  ;;  %v16518_v23 = vadd.f32 %v10632_v54, %v10544_v18  ;;  %v8627_v62 = vrot.slane %v8625_v35, 4  ;;  %v12700_v54 = vor.u32 %v13378_v59, %v12697_v47  ;;  %v8494_v47 = vld [vmem:[#allocation3 + $0x90] sm:$0xe] }
 0x4d5   : > { %v12159_v59 = vrot.slane %v8494_v47, 9 }
 0x4d6   : > { %v8629_v6 = vsel %vm14155_vm14, %v8627_v62, %v8628_v20  ;;  %v8495_v62 = vld [vmem:[#allocation3 + $0x94] sm:$0xf]  ;;  %v8496_v20 = vld [vmem:[#allocation3 + $0x98] sm:$0x1] }
 0x4d7   : > { %10947 = vmatmul.bf16.gmra.mxu1 %v12308_v34  ;;  %8723 = vst [vmem:[#allocation4 + $0x2cc] sm:$0xf] %v8629_v6  ;;  %v16893_v34 = vld [vmem:[#allocation18_spill] sm:$0xff]  ;;  %v16895_v6 = vld [vmem:[#allocation21_spill] sm:$0xff] }
 0x4d8   : > { %10819 = vmatmul.bf16.gmra.mxu3 %v12660_v51  ;;  %v10549_v33 = vadd.f32 %v16894_v46, %v16893_v34  ;;  %v10551_v0 = vadd.f32 %v16295_v19, %v16895_v6  ;;  %v8635_v46 = vrot.slane %v8496_v20, 5  ;;  %v13386_v19 = vld [vmem:[#allocation4 + $0x44c] sm:$0xf]  ;;  %v8497_v6 = vld [vmem:[#allocation3 + $0x9c] sm:$0xe] }
 0x4da   : > { %v16536_v35 = vpop.f32.mrf.mxu0 }
 0x4db   : > { %v10634_v1 = vpop.f32.mrf.mxu1 }
 0x4dc   : > { %v16528_v18 = vadd.f32 %v10634_v1, %v10546_v26  ;;  %v12696_v26 = vor.u32 %v13382_v7, %v12695_v31  ;;  %v13387_v1 = vld [vmem:[#allocation4 + $0x454] sm:$0xf]  ;;  %v12725_v7 = vld [vmem:[#allocation4 + $0x46c] sm:$0xf0] }
 0x4dd   : > { %v12731_v31 = vld [vmem:[#allocation4 + $0x450] sm:$0xf]  ;;  %v12728_v47 = vor.u32 %v13386_v19, %v12725_v7  ;;  %v13311_v19 = vld [vmem:[#allocation4 + $0x1f0] sm:$0xf0] }
 0x4e0   : > { %10913 = vmatmul.bf16.gmra.mxu0 %v12700_v54  ;;  %v8632_v54 = vrot.slane %v8495_v62, 5  ;;  %v12379_v62 = vld [vmem:[#allocation4 + $0x188] sm:$0xf] }
 0x4e2   : > { %v8633_v8 = vsel %vm14155_vm14, %v12159_v59, %v8632_v54  ;;  %v8634_v34 = vrot.slane %v8632_v54, 4  ;;  %v16546_v25 = vpop.f32.mrf.mxu0 }
 0x4e3   : > { %v10637_v51 = vpop.f32.mrf.mxu1  ;;  %8724 = vst [vmem:[#allocation4 + $0x2f0] sm:$0xf] %v8633_v8 }
 0x4e4   : > { %10735 = vmatmul.bf16.gmra.mxu2 %v12692_v12  ;;  %v16534_v40 = vadd.f32 %v10637_v51, %v10549_v33  ;;  %v12736_v12 = vor.u32 %v13387_v1, %v12733_v55  ;;  %v8636_v51 = vsel %vm14155_vm14, %v8634_v34, %v8635_v46  ;;  %v10554_v1 = vadd.f32 %v16324_v4, %v16285_v37 }
 0x4e5   : > { %8725 = vst [vmem:[#allocation4 + $0x314] sm:$0xf] %v8636_v51  ;;  %v10556_v34 = vadd.f32 %v16350_v30, %v16307_v53 }
 0x4e7   : > { %10952 = vmatmul.bf16.gmra.mxu1 %v12344_v32  ;;  %v13302_v32 = vld [vmem:[#allocation4 + $0x1a8] sm:$0xf0] }
 0x4e8   : > { %10824 = vmatmul.bf16.gmra.mxu3 %v12696_v26  ;;  %v13391_v26 = vld [vmem:[#allocation4 + $0x470] sm:$0xf0]  ;;  %v12380_v59 = vor.u32 %v13302_v32, %v12379_v62  ;;  %v8502_v62 = vld [vmem:[#allocation3 + $0xb0] sm:$0x1] }
 0x4e9   : > { %v12732_v54 = vor.u32 %v13391_v26, %v12731_v31  ;;  %v10559_v31 = vadd.f32 %v16370_v22, %v16328_v9  ;;  %v8649_v9 = vrot.slane %v8502_v62, 5 }
 0x4eb   : > { %v10639_v48 = vpop.f32.mrf.mxu1 }
 0x4ec   : > { %v16542_v33 = vadd.f32 %v10639_v48, %v10551_v0  ;;  %v8498_v0 = vld [vmem:[#allocation3 + $0xa0] sm:$0xf]  ;;  %v8499_v48 = vld [vmem:[#allocation3 + $0xa4] sm:$0x1] }
 0x4ed   : > { %v8639_v8 = vrot.slane %v8498_v0, 5  ;;  %v8642_v51 = vrot.slane %v8499_v48, 5 }
 0x4ef   : > { %v8641_v4 = vrot.slane %v8639_v8, 4 }
 0x4f0   : > { %10918 = vmatmul.bf16.gmra.mxu0 %v12736_v12  ;;  %v12160_v12 = vrot.slane %v8497_v6, 9  ;;  %v10561_v6 = vadd.f32 %v16387_v57, %v16344_v14 }
 0x4f1   : > { %v8643_v32 = vsel %vm14155_vm14, %v8641_v4, %v8642_v51  ;;  %v12451_v4 = vld [vmem:[#allocation4 + $0x218] sm:$0xf]  ;;  %v8503_v51 = vld [vmem:[#allocation3 + $0xb4] sm:$0xe] }
 0x4f2   : > { %v8640_v37 = vsel %vm14155_vm14, %v12160_v12, %v8639_v8  ;;  %8727 = vst [vmem:[#allocation4 + $0x35c] sm:$0xf] %v8643_v32  ;;  %v8504_v32 = vld [vmem:[#allocation3 + $0xb8] sm:$0xf] }
 0x4f3   : > { %8726 = vst [vmem:[#allocation4 + $0x338] sm:$0xf] %v8640_v37 }
 0x4f4   : > { %v10642_v55 = vpop.f32.mrf.mxu1  ;;  %10740 = vmatmul.bf16.gmra.mxu2 %v12728_v47  ;;  %v12415_v47 = vld [vmem:[#allocation4 + $0x1d0] sm:$0xf] }
 0x4f5   : > { %v16550_v20 = vadd.f32 %v10642_v55, %v10554_v1  ;;  %v12416_v30 = vor.u32 %v13311_v19, %v12415_v47  ;;  %v8500_v1 = vld [vmem:[#allocation3 + $0xa8] sm:$0xe]  ;;  %v8501_v55 = vld [vmem:[#allocation3 + $0xac] sm:$0xf]  ;;  %v8505_v19 = vld [vmem:[#allocation3 + $0xbc] sm:$0x1]  ;;  %v10566_v47 = vadd.f32 %v16423_v61, %v16384_v49 }
 0x4f6   : > { %v12487_v49 = vld [vmem:[#allocation4 + $0x260] sm:$0xf] }
 0x4f7   : > { %10957 = vmatmul.bf16.gmra.mxu1 %v12380_v59  ;;  %v12161_v59 = vrot.slane %v8500_v1, 9 }
 0x4f8   : > { %10829 = vmatmul.bf16.gmra.mxu3 %v12732_v54  ;;  %v8646_v54 = vrot.slane %v8501_v55, 5 }
 0x4fa   : > { %v8647_v48 = vsel %vm14155_vm14, %v12161_v59, %v8646_v54  ;;  %v8648_v12 = vrot.slane %v8646_v54, 4  ;;  %v13329_v59 = vld [vmem:[#allocation4 + $0x280] sm:$0xf0]  ;;  %v10845_v54 = vadd.f32 %v16440_v38, %v16393_v58 }
 0x4fb   : > { %8728 = vst [vmem:[#allocation4 + $0x380] sm:$0xf] %v8647_v48  ;;  %v11045_v48 = vld [vmem:[%s13572_s8] sm:$0xff] }
 0x4fc   : > { %v10644_v46 = vpop.f32.mrf.mxu1  ;;  %v8650_v8 = vsel %vm14155_vm14, %v8648_v12, %v8649_v9  ;;  %v8506_v9 = vld [vmem:[#allocation3 + $0xc0] sm:$0xe] }
 0x4fd   : > { %v16556_v7 = vadd.f32 %v10644_v46, %v10556_v34  ;;  %8729 = vst [vmem:[#allocation4 + $0x3a4] sm:$0xf] %v8650_v8  ;;  %v13320_v34 = vld [vmem:[#allocation4 + $0x238] sm:$0xf0]  ;;  %v10564_v46 = vadd.f32 %v16404_v36, %v16362_v3  ;;  %v8656_v36 = vrot.slane %v8505_v19, 5  ;;  %v12163_v58 = vrot.slane %v8506_v9, 9 }
 0x4fe   : > { %v12452_v57 = vor.u32 %v13320_v34, %v12451_v4  ;;  %v8507_v34 = vld [vmem:[#allocation3 + $0xc4] sm:$0xf]  ;;  %v16597_v4 = vpop.f32.mrf.mxu2 }
 0x4ff   : > { %v8660_v38 = vrot.slane %v8507_v34, 5 }
 0x504   : > { %v10647_v26 = vpop.f32.mrf.mxu1 }
 0x505   : > { %v16562_v53 = vadd.f32 %v10647_v26, %v10559_v31  ;;  %v12162_v31 = vrot.slane %v8503_v51, 9  ;;  %v8653_v26 = vrot.slane %v8504_v32, 5  ;;  %v8661_v51 = vsel %vm14155_vm14, %v12163_v58, %v8660_v38 }
 0x506   : > { %v8662_v32 = vrot.slane %v8660_v38, 4  ;;  %8732 = vst [vmem:[#allocation4 + $0x410] sm:$0xf] %v8661_v51 }
 0x507   : > { %10962 = vmatmul.bf16.gmra.mxu1 %v12416_v30  ;;  %v8654_v1 = vsel %vm14155_vm14, %v12162_v31, %v8653_v26  ;;  %v8655_v3 = vrot.slane %v8653_v26, 4  ;;  %v16601_v26 = vpop.f32.mrf.mxu3 }
 0x508   : > { %8730 = vst [vmem:[#allocation4 + $0x3c8] sm:$0xf] %v8654_v1 }
 0x509   : > { %v8657_v62 = vsel %vm14155_vm14, %v8655_v3, %v8656_v36  ;;  %v10850_v3 = vadd.f32 %v16477_v29, %v16417_v2  ;;  %v16609_v36 = vpop.f32.mrf.mxu0  ;;  %v10852_v2 = vadd.f32 %v16498_v5, %v16436_v44  ;;  %v12559_v5 = vld [vmem:[#allocation4 + $0x2f0] sm:$0xf] }
 0x50a   : > { %8731 = vst [vmem:[#allocation4 + $0x3ec] sm:$0xf] %v8657_v62 }
 0x50c   : > { %v10649_v0 = vpop.f32.mrf.mxu1 }
 0x50d   : > { %v16568_v22 = vadd.f32 %v10649_v0, %v10561_v6  ;;  %v12488_v0 = vor.u32 %v13329_v59, %v12487_v49  ;;  %v12523_v59 = vld [vmem:[#allocation4 + $0x2a8] sm:$0xf]  ;;  %v16611_v49 = vpop.f32.mrf.mxu2 }
 0x511   : > { %v16619_v9 = vpop.f32.mrf.mxu0 }
 0x514   : > { %v10652_v37 = vpop.f32.mrf.mxu1 }
 0x515   : > { %v16574_v14 = vadd.f32 %v10652_v37, %v10564_v46  ;;  %v8508_v46 = vld [vmem:[#allocation3 + $0xc8] sm:$0x1]  ;;  %v10847_v37 = vadd.f32 %v16458_v43, %v16408_v41  ;;  %v13338_v43 = vld [vmem:[#allocation4 + $0x2c8] sm:$0xf0] }
 0x516   : > { %v8663_v19 = vrot.slane %v8508_v46, 5  ;;  %v16622_v46 = vpop.f32.mrf.mxu2 }
 0x517   : > { %10967 = vmatmul.bf16.gmra.mxu1 %v12452_v57 }
 0x51c   : > { %v10654_v30 = vpop.f32.mrf.mxu1 }
 0x51d   : > { %v16580_v55 = vadd.f32 %v10654_v30, %v10566_v47  ;;  %v11046_v47 = vld [vmem:[%s13572_s8 + $0x8] sm:$0xff]  ;;  %v8664_v30 = vsel %vm14155_vm14, %v8662_v32, %v8663_v19  ;;  %v11049_v19 = vld [vmem:[%s13572_s8 + $0x20] sm:$0xff] }
 0x51e   : > { %8733 = vst [vmem:[#allocation4 + $0x434] sm:$0xf] %v8664_v30 }
 0x524   : > { %v10933_v6 = vpop.f32.mrf.mxu1 }
 0x525   : > { %v10934_v61 = vadd.f32 %v10933_v6, %v10845_v54  ;;  %v12524_v6 = vor.u32 %v13338_v43, %v12523_v59 }
 0x527   : > { %v11013_v12 = vmax.f32 %v10934_v61, 0.0  ;;  %10972 = vmatmul.bf16.gmra.mxu1 %v12488_v0  ;;  %v16614_v0 = vpop.f32.mrf.mxu3 }
 0x529   : > { %v11077_v8 = vadd.f32 %v11045_v48, %v11013_v12 }
 0x52b   : > { %11109 = vst [vmem:[%s16592_s11] sm:$0xff] %v11077_v8  ;;  %v11048_v8 = vld [vmem:[%s13572_s8 + $0x18] sm:$0xff] }
 0x52c   : > { %v10935_v57 = vpop.f32.mrf.mxu1 }
 0x52d   : > { %v10936_v31 = vadd.f32 %v10935_v57, %v10847_v37  ;;  %v13347_v37 = vld [vmem:[#allocation4 + $0x310] sm:$0xf0]  ;;  %v10855_v57 = vadd.f32 %v16512_v52, %v16447_v13 }
 0x52e   : > { %v12560_v32 = vor.u32 %v13347_v37, %v12559_v5 }
 0x52f   : > { %v11014_v1 = vmax.f32 %v10936_v31, 0.0  ;;  %v16624_v38 = vpop.f32.mrf.mxu3 }
 0x531   : > { %v11078_v41 = vadd.f32 %v11046_v47, %v11014_v1  ;;  %v16630_v47 = vpop.f32.mrf.mxu0  ;;  %v16632_v1 = vpop.f32.mrf.mxu2 }
 0x533   : > { %11110 = vst [vmem:[%s16592_s11 + $0x8] sm:$0xff] %v11078_v41  ;;  %v10857_v41 = vadd.f32 %v16524_v24, %v16466_v17  ;;  %v12595_v17 = vld [vmem:[#allocation4 + $0x338] sm:$0xf] }
 0x534   : > { %v10938_v62 = vpop.f32.mrf.mxu1 }
 0x535   : > { %v10939_v54 = vadd.f32 %v10938_v62, %v10850_v3  ;;  %v11050_v3 = vld [vmem:[%s13572_s8 + $0x28] sm:$0xff] }
 0x537   : > { %v11015_v61 = vmax.f32 %v10939_v54, 0.0  ;;  %10977 = vmatmul.bf16.gmra.mxu1 %v12524_v6  ;;  %v16637_v43 = vpop.f32.mrf.mxu3  ;;  %v13356_v6 = vld [vmem:[#allocation4 + $0x358] sm:$0xf0] }
 0x539   : > { %v11079_v48 = vadd.f32 %v11047_v16, %v11015_v61  ;;  %v16640_v54 = vpop.f32.mrf.mxu0  ;;  %v10860_v16 = vadd.f32 %v16536_v35, %v16475_v42  ;;  %v16645_v61 = vpop.f32.mrf.mxu2  ;;  %v16896_v35 = vld [vmem:[#allocation22_spill] sm:$0xff] }
 0x53b   : > { %11111 = vst [vmem:[%s16592_s11 + $0x10] sm:$0xff] %v11079_v48 }
 0x53c   : > { %v10940_v29 = vpop.f32.mrf.mxu1 }
 0x53d   : > { %v10941_v12 = vadd.f32 %v10940_v29, %v10852_v2  ;;  %v12596_v2 = vor.u32 %v13356_v6, %v12595_v17  ;;  %v11053_v6 = vld [vmem:[%s13572_s8 + $0x40] sm:$0xff] }
 0x53f   : > { %v11016_v34 = vmax.f32 %v10941_v12, 0.0  ;;  %v16647_v29 = vpop.f32.mrf.mxu3  ;;  %v11051_v12 = vld [vmem:[%s13572_s8 + $0x30] sm:$0xff] }
 0x541   : > { %v11080_v58 = vadd.f32 %v11048_v8, %v11016_v34  ;;  %v16653_v37 = vpop.f32.mrf.mxu0  ;;  %v16657_v5 = vpop.f32.mrf.mxu2 }
 0x543   : > { %11112 = vst [vmem:[%s16592_s11 + $0x18] sm:$0xff] %v11080_v58  ;;  %v10862_v58 = vadd.f32 %v16546_v25, %v16494_v28 }
 0x544   : > { %v10943_v44 = vpop.f32.mrf.mxu1 }
 0x545   : > { %v10944_v51 = vadd.f32 %v10943_v44, %v10855_v57  ;;  %v10687_v57 = vadd.f32 %v16597_v4, %v16896_v35 }
 0x547   : > { %v11017_v31 = vmax.f32 %v10944_v51, 0.0  ;;  %10982 = vmatmul.bf16.gmra.mxu1 %v12560_v32  ;;  %v11052_v51 = vld [vmem:[%s13572_s8 + $0x38] sm:$0xff]  ;;  %v10776_v32 = vadd.f32 %v16601_v26, %v10687_v57 }
 0x548   : > { %v13374_v57 = vld [vmem:[#allocation4 + $0x3e8] sm:$0xf0] }
 0x549   : > { %v11081_v30 = vadd.f32 %v11049_v19, %v11017_v31  ;;  %v16661_v31 = vpop.f32.mrf.mxu3  ;;  %v10865_v28 = vadd.f32 %v16609_v36, %v10776_v32  ;;  %v12667_v32 = vld [vmem:[#allocation4 + $0x3c8] sm:$0xf] }
 0x54b   : > { %11113 = vst [vmem:[%s16592_s11 + $0x20] sm:$0xff] %v11081_v30 }
 0x54c   : > { %v10945_v13 = vpop.f32.mrf.mxu1 }
 0x54d   : > { %v10946_v52 = vadd.f32 %v10945_v13, %v10857_v41  ;;  %v13365_v41 = vld [vmem:[#allocation4 + $0x3a0] sm:$0xf0]  ;;  %v12631_v13 = vld [vmem:[#allocation4 + $0x380] sm:$0xf] }
 0x54f   : > { %v11018_v62 = vmax.f32 %v10946_v52, 0.0  ;;  %v16897_v52 = vld [vmem:[#allocation19_spill] sm:$0xff] }
 0x550   : > { %v10689_v4 = vadd.f32 %v16611_v49, %v16897_v52  ;;  %v10692_v49 = vadd.f32 %v16622_v46, %v16342_v39  ;;  %v10694_v39 = vadd.f32 %v16632_v1, %v16360_v21 }
 0x551   : > { %v11082_v59 = vadd.f32 %v11050_v3, %v11018_v62  ;;  %v12632_v62 = vor.u32 %v13365_v41, %v12631_v13 }
 0x552   : > { %v10778_v26 = vadd.f32 %v16614_v0, %v10689_v4  ;;  %v10697_v4 = vadd.f32 %v16645_v61, %v16382_v11 }
 0x553   : > { %11114 = vst [vmem:[%s16592_s11 + $0x28] sm:$0xff] %v11082_v59  ;;  %v10876_v59 = vpop.f32.mrf.mxu0 }
 0x554   : > { %v10948_v48 = vpop.f32.mrf.mxu1  ;;  %v10867_v36 = vadd.f32 %v16619_v9, %v10778_v26  ;;  %v13383_v26 = vld [vmem:[#allocation4 + $0x430] sm:$0xf0] }
 0x555   : > { %v10949_v24 = vadd.f32 %v10948_v48, %v10860_v16  ;;  %v10701_v48 = vpop.f32.mrf.mxu2 }
 0x557   : > { %v11019_v8 = vmax.f32 %v10949_v24, 0.0  ;;  %10987 = vmatmul.bf16.gmra.mxu1 %v12596_v2  ;;  %v10790_v24 = vpop.f32.mrf.mxu3 }
 0x559   : > { %v11083_v34 = vadd.f32 %v11051_v12, %v11019_v8  ;;  %v11054_v8 = vld [vmem:[%s13572_s8 + $0x48] sm:$0xff] }
 0x55b   : > { %11115 = vst [vmem:[%s16592_s11 + $0x30] sm:$0xff] %v11083_v34  ;;  %v10781_v34 = vadd.f32 %v16624_v38, %v10692_v49  ;;  %v10879_v0 = vpop.f32.mrf.mxu0  ;;  %v10783_v38 = vadd.f32 %v16637_v43, %v10694_v39 }
 0x55c   : > { %v10950_v42 = vpop.f32.mrf.mxu1 }
 0x55d   : > { %v10951_v44 = vadd.f32 %v10950_v42, %v10862_v58  ;;  %v10703_v35 = vpop.f32.mrf.mxu2 }
 0x55f   : > { %v11020_v19 = vmax.f32 %v10951_v44, 0.0  ;;  %v10870_v44 = vadd.f32 %v16630_v47, %v10781_v34  ;;  %v10872_v47 = vadd.f32 %v16640_v54, %v10783_v38 }
 0x561   : > { %v11084_v30 = vadd.f32 %v11052_v51, %v11020_v19  ;;  %v10792_v51 = vpop.f32.mrf.mxu3  ;;  %v12668_v19 = vor.u32 %v13374_v57, %v12667_v32  ;;  %v10702_v57 = vadd.f32 %v10701_v48, %v16406_v60  ;;  %v11059_v48 = vld [vmem:[%s13572_s8 + $0x70] sm:$0xff] }
 0x563   : > { %11116 = vst [vmem:[%s16592_s11 + $0x38] sm:$0xff] %v11084_v30  ;;  %v11055_v30 = vld [vmem:[%s13572_s8 + $0x50] sm:$0xff] }
 0x564   : > { %v10953_v25 = vpop.f32.mrf.mxu1 }
 0x565   : > { %v10954_v3 = vadd.f32 %v10953_v25, %v10865_v28  ;;  %v10881_v25 = vpop.f32.mrf.mxu0  ;;  %v10706_v13 = vpop.f32.mrf.mxu2 }
 0x567   : > { %v11021_v16 = vmax.f32 %v10954_v3, 0.0  ;;  %10992 = vmatmul.bf16.gmra.mxu1 %v12632_v62  ;;  %v11056_v3 = vld [vmem:[%s13572_s8 + $0x58] sm:$0xff]  ;;  %v10786_v62 = vadd.f32 %v16647_v29, %v10697_v4 }
 0x569   : > { %v11085_v17 = vadd.f32 %v11053_v6, %v11021_v16  ;;  %v10795_v1 = vpop.f32.mrf.mxu3  ;;  %v10875_v16 = vadd.f32 %v16653_v37, %v10786_v62 }
 0x56b   : > { %11117 = vst [vmem:[%s16592_s11 + $0x40] sm:$0xff] %v11085_v17 }
 0x56c   : > { %v10955_v2 = vpop.f32.mrf.mxu1 }
 0x56d   : > { %v10956_v12 = vadd.f32 %v10955_v2, %v10867_v36  ;;  %v10884_v17 = vpop.f32.mrf.mxu0  ;;  %v12703_v36 = vld [vmem:[#allocation4 + $0x410] sm:$0xf]  ;;  %v10699_v2 = vadd.f32 %v16657_v5, %v16391_v27  ;;  %v10708_v49 = vpop.f32.mrf.mxu2  ;;  %v11058_v5 = vld [vmem:[%s13572_s8 + $0x68] sm:$0xff] }
 0x56e   : > { %v12704_v61 = vor.u32 %v13383_v26, %v12703_v36 }
 0x56f   : > { %v11022_v58 = vmax.f32 %v10956_v12, 0.0  ;;  %v11057_v12 = vld [vmem:[%s13572_s8 + $0x60] sm:$0xff]  ;;  %v10788_v29 = vadd.f32 %v16661_v31, %v10699_v2 }
 0x571   : > { %v11086_v42 = vadd.f32 %v11054_v8, %v11022_v58  ;;  %v10797_v34 = vpop.f32.mrf.mxu3  ;;  %v10877_v37 = vadd.f32 %v10876_v59, %v10788_v29  ;;  %v10704_v59 = vadd.f32 %v10703_v35, %v16415_v56  ;;  %v11061_v29 = vld [vmem:[%s13572_s8 + $0x80] sm:$0xff] }
 0x573   : > { %11118 = vst [vmem:[%s16592_s11 + $0x48] sm:$0xff] %v11086_v42 }
 0x574   : > { %v10958_v9 = vpop.f32.mrf.mxu1 }
 0x575   : > { %v10959_v46 = vadd.f32 %v10958_v9, %v10870_v44  ;;  %v10886_v27 = vpop.f32.mrf.mxu0  ;;  %v10791_v9 = vadd.f32 %v10790_v24, %v10702_v57  ;;  %v10711_v39 = vpop.f32.mrf.mxu2 }
 0x576   : > { %v10712_v57 = vadd.f32 %v10711_v39, %v16464_v63 }
 0x577   : > { %v11023_v41 = vmax.f32 %v10959_v46, 0.0  ;;  %10997 = vmatmul.bf16.gmra.mxu1 %v12668_v19  ;;  %v12739_v46 = vld [vmem:[#allocation4 + $0x458] sm:$0xf]  ;;  %v13392_v19 = vld [vmem:[#allocation4 + $0x478] sm:$0xf0]  ;;  %v10880_v38 = vadd.f32 %v10879_v0, %v10791_v9 }
 0x578   : > { %v16898_v0 = vld [vmem:[#allocation24_spill] sm:$0xff] }
 0x579   : > { %v11087_v28 = vadd.f32 %v11055_v30, %v11023_v41  ;;  %v10800_v30 = vpop.f32.mrf.mxu3  ;;  %v12740_v41 = vor.u32 %v13392_v19, %v12739_v46 }
 0x57a   : > { %v10801_v9 = vadd.f32 %v10800_v30, %v10712_v57 }
 0x57b   : > { %11119 = vst [vmem:[%s16592_s11 + $0x50] sm:$0xff] %v11087_v28 }
 0x57c   : > { %v10960_v52 = vpop.f32.mrf.mxu1 }
 0x57d   : > { %v10961_v21 = vadd.f32 %v10960_v52, %v10872_v47  ;;  %v10793_v47 = vadd.f32 %v10792_v51, %v10704_v59  ;;  %v10889_v24 = vpop.f32.mrf.mxu0 }
 0x57e   : > { %v10890_v46 = vadd.f32 %v10889_v24, %v10801_v9 }
 0x57f   : > { %v11024_v43 = vmax.f32 %v10961_v21, 0.0  ;;  %v10713_v21 = vpop.f32.mrf.mxu2 }
 0x580   : > { %v10714_v19 = vadd.f32 %v10713_v21, %v16473_v15 }
 0x581   : > { %v11088_v6 = vadd.f32 %v11056_v3, %v11024_v43  ;;  %v10882_v3 = vadd.f32 %v10881_v25, %v10793_v47  ;;  %v10802_v62 = vpop.f32.mrf.mxu3 }
 0x583   : > { %11120 = vst [vmem:[%s16592_s11 + $0x58] sm:$0xff] %v11088_v6  ;;  %v10707_v6 = vadd.f32 %v10706_v13, %v16898_v0 }
 0x584   : > { %v10963_v54 = vpop.f32.mrf.mxu1 }
 0x585   : > { %v10964_v11 = vadd.f32 %v10963_v54, %v10875_v16  ;;  %v11060_v16 = vld [vmem:[%s13572_s8 + $0x78] sm:$0xff]  ;;  %v10796_v56 = vadd.f32 %v10795_v1, %v10707_v6  ;;  %v10891_v51 = vpop.f32.mrf.mxu0 }
 0x587   : > { %v11025_v8 = vmax.f32 %v10964_v11, 0.0  ;;  %11002 = vmatmul.bf16.gmra.mxu1 %v12704_v61  ;;  %v10885_v36 = vadd.f32 %v10884_v17, %v10796_v56  ;;  %v10716_v2 = vpop.f32.mrf.mxu2  ;;  %v10709_v61 = vadd.f32 %v10708_v49, %v16445_v50 }
 0x589   : > { %v11089_v58 = vadd.f32 %v11057_v12, %v11025_v8  ;;  %v10805_v12 = vpop.f32.mrf.mxu3  ;;  %v10798_v8 = vadd.f32 %v10797_v34, %v10709_v61 }
 0x58b   : > { %11121 = vst [vmem:[%s16592_s11 + $0x60] sm:$0xff] %v11089_v58 }
 0x58c   : > { %v10965_v42 = vpop.f32.mrf.mxu1 }
 0x58d   : > { %v10966_v44 = vadd.f32 %v10965_v42, %v10877_v37  ;;  %v10887_v37 = vadd.f32 %v10886_v27, %v10798_v8  ;;  %v10894_v1 = vpop.f32.mrf.mxu0 }
 0x58f   : > { %v11026_v32 = vmax.f32 %v10966_v44, 0.0  ;;  %v10718_v44 = vpop.f32.mrf.mxu2 }
 0x590   : > { %v10719_v6 = vadd.f32 %v10718_v44, %v16502_v45 }
 0x591   : > { %v11090_v31 = vadd.f32 %v11058_v5, %v11026_v32  ;;  %v11062_v5 = vld [vmem:[%s13572_s8 + $0x88] sm:$0xff]  ;;  %v10807_v49 = vpop.f32.mrf.mxu3 }
 0x592   : > { %v10808_v56 = vadd.f32 %v10807_v49, %v10719_v6 }
 0x593   : > { %11122 = vst [vmem:[%s16592_s11 + $0x68] sm:$0xff] %v11090_v31 }
 0x594   : > { %v10968_v28 = vpop.f32.mrf.mxu1 }
 0x595   : > { %v10969_v60 = vadd.f32 %v10968_v28, %v10880_v38  ;;  %v10896_v31 = vpop.f32.mrf.mxu0  ;;  %v11063_v38 = vld [vmem:[%s13572_s8 + $0x90] sm:$0xff] }
 0x597   : > { %v11027_v52 = vmax.f32 %v10969_v60, 0.0  ;;  %11007 = vmatmul.bf16.gmra.mxu1 %v12740_v41  ;;  %v10803_v41 = vadd.f32 %v10802_v62, %v10714_v19  ;;  %v10721_v39 = vpop.f32.mrf.mxu2  ;;  %v11068_v19 = vld [vmem:[%s13572_s8 + $0xb8] sm:$0xff] }
 0x599   : > { %v11091_v4 = vadd.f32 %v11059_v48, %v11027_v52  ;;  %v10810_v59 = vpop.f32.mrf.mxu3  ;;  %v10892_v30 = vadd.f32 %v10891_v51, %v10803_v41  ;;  %v10717_v48 = vadd.f32 %v10716_v2, %v16492_v10  ;;  %v11064_v52 = vld [vmem:[%s13572_s8 + $0x98] sm:$0xff]  ;;  %v10897_v51 = vadd.f32 %v10896_v31, %v10808_v56 }
 0x59b   : > { %11123 = vst [vmem:[%s16592_s11 + $0x70] sm:$0xff] %v11091_v4  ;;  %v10806_v24 = vadd.f32 %v10805_v12, %v10717_v48  ;;  %v11066_v12 = vld [vmem:[%s13572_s8 + $0xa8] sm:$0xff] }
 0x59c   : > { %v10970_v43 = vpop.f32.mrf.mxu1 }
 0x59d   : > { %v10971_v26 = vadd.f32 %v10970_v43, %v10882_v3  ;;  %v10899_v4 = vpop.f32.mrf.mxu0  ;;  %v10895_v62 = vadd.f32 %v10894_v1, %v10806_v24 }
 0x59f   : > { %v11028_v35 = vmax.f32 %v10971_v26, 0.0  ;;  %v10723_v3 = vpop.f32.mrf.mxu2 }
 0x5a0   : > { %v10724_v1 = vadd.f32 %v10723_v3, %v16528_v18 }
 0x5a1   : > { %v11092_v54 = vadd.f32 %v11060_v16, %v11028_v35  ;;  %v10812_v43 = vpop.f32.mrf.mxu3  ;;  %v11065_v16 = vld [vmem:[%s13572_s8 + $0xa0] sm:$0xff] }
 0x5a2   : > { %v10813_v44 = vadd.f32 %v10812_v43, %v10724_v1 }
 0x5a3   : > { %11124 = vst [vmem:[%s16592_s11 + $0x78] sm:$0xff] %v11092_v54 }
 0x5a4   : > { %v10973_v11 = vpop.f32.mrf.mxu1 }
 0x5a5   : > { %v10974_v25 = vadd.f32 %v10973_v11, %v10885_v36  ;;  %v10901_v54 = vpop.f32.mrf.mxu0  ;;  %v10722_v11 = vadd.f32 %v10721_v39, %v16518_v23 }
 0x5a7   : > { %v11029_v13 = vmax.f32 %v10974_v25, 0.0  ;;  %v10726_v36 = vpop.f32.mrf.mxu2 }
 0x5a9   : > { %v11093_v58 = vadd.f32 %v11061_v29, %v11029_v13  ;;  %v10815_v25 = vpop.f32.mrf.mxu3  ;;  %v10811_v29 = vadd.f32 %v10810_v59, %v10722_v11 }
 0x5ab   : > { %11125 = vst [vmem:[%s16592_s11 + $0x80] sm:$0xff] %v11093_v58  ;;  %v10900_v13 = vadd.f32 %v10899_v4, %v10811_v29 }
 0x5ac   : > { %v10975_v42 = vpop.f32.mrf.mxu1 }
 0x5ad   : > { %v10976_v17 = vadd.f32 %v10975_v42, %v10887_v37  ;;  %v10904_v58 = vpop.f32.mrf.mxu0 }
 0x5af   : > { %v11030_v50 = vmax.f32 %v10976_v17, 0.0  ;;  %v10728_v57 = vpop.f32.mrf.mxu2  ;;  %v11067_v17 = vld [vmem:[%s13572_s8 + $0xb0] sm:$0xff] }
 0x5b1   : > { %v11094_v32 = vadd.f32 %v11062_v5, %v11030_v50  ;;  %v10817_v5 = vpop.f32.mrf.mxu3  ;;  %v10902_v50 = vadd.f32 %v10901_v54, %v10813_v44 }
 0x5b3   : > { %11126 = vst [vmem:[%s16592_s11 + $0x88] sm:$0xff] %v11094_v32  ;;  %v10727_v32 = vadd.f32 %v10726_v36, %v16534_v40 }
 0x5b4   : > { %v10978_v34 = vpop.f32.mrf.mxu1 }
 0x5b5   : > { %v10979_v27 = vadd.f32 %v10978_v34, %v10890_v46  ;;  %v10906_v34 = vpop.f32.mrf.mxu0 }
 0x5b7   : > { %v11031_v63 = vmax.f32 %v10979_v27, 0.0  ;;  %v10816_v27 = vadd.f32 %v10815_v25, %v10727_v32  ;;  %v10731_v31 = vpop.f32.mrf.mxu2 }
 0x5b9   : > { %v11095_v28 = vadd.f32 %v11063_v38, %v11031_v63  ;;  %v10820_v41 = vpop.f32.mrf.mxu3  ;;  %v10905_v63 = vadd.f32 %v10904_v58, %v10816_v27 }
 0x5bb   : > { %11127 = vst [vmem:[%s16592_s11 + $0x90] sm:$0xff] %v11095_v28  ;;  %v10729_v28 = vadd.f32 %v10728_v57, %v16542_v33 }
 0x5bc   : > { %v10980_v60 = vpop.f32.mrf.mxu1 }
 0x5bd   : > { %v10981_v47 = vadd.f32 %v10980_v60, %v10892_v30  ;;  %v11069_v30 = vld [vmem:[%s13572_s8 + $0xc0] sm:$0xff]  ;;  %v10818_v60 = vadd.f32 %v10817_v5, %v10729_v28  ;;  %v10909_v48 = vpop.f32.mrf.mxu0 }
 0x5bf   : > { %v11032_v15 = vmax.f32 %v10981_v47, 0.0  ;;  %v10907_v24 = vadd.f32 %v10906_v34, %v10818_v60  ;;  %v11075_v60 = vld [vmem:[%s13572_s8 + $0xf0] sm:$0xff] }
 0x5c1   : > { %v11096_v21 = vadd.f32 %v11064_v52, %v11032_v15  ;;  %v10733_v52 = vpop.f32.mrf.mxu2  ;;  %v10822_v15 = vpop.f32.mrf.mxu3 }
 0x5c3   : > { %11128 = vst [vmem:[%s16592_s11 + $0x98] sm:$0xff] %v11096_v21  ;;  %v10732_v21 = vadd.f32 %v10731_v31, %v16550_v20 }
 0x5c4   : > { %v10983_v0 = vpop.f32.mrf.mxu1 }
 0x5c5   : > { %v10984_v26 = vadd.f32 %v10983_v0, %v10895_v62  ;;  %v11070_v62 = vld [vmem:[%s13572_s8 + $0xc8] sm:$0xff]  ;;  %v10821_v43 = vadd.f32 %v10820_v41, %v10732_v21  ;;  %v10911_v6 = vpop.f32.mrf.mxu0 }
 0x5c7   : > { %v11033_v10 = vmax.f32 %v10984_v26, 0.0  ;;  %v10910_v26 = vadd.f32 %v10909_v48, %v10821_v43 }
 0x5c9   : > { %v11097_v35 = vadd.f32 %v11065_v16, %v11033_v10  ;;  %v10736_v16 = vpop.f32.mrf.mxu2  ;;  %v10734_v10 = vadd.f32 %v10733_v52, %v16556_v7  ;;  %v10825_v54 = vpop.f32.mrf.mxu3 }
 0x5cb   : > { %11129 = vst [vmem:[%s16592_s11 + $0xa0] sm:$0xff] %v11097_v35  ;;  %v10823_v36 = vadd.f32 %v10822_v15, %v10734_v10 }
 0x5cc   : > { %v10985_v2 = vpop.f32.mrf.mxu1 }
 0x5cd   : > { %v10986_v61 = vadd.f32 %v10985_v2, %v10897_v51  ;;  %v11071_v51 = vld [vmem:[%s13572_s8 + $0xd0] sm:$0xff]  ;;  %v10912_v11 = vadd.f32 %v10911_v6, %v10823_v36 }
 0x5cf   : > { %v11034_v45 = vmax.f32 %v10986_v61, 0.0  ;;  %v10914_v61 = vpop.f32.mrf.mxu0 }
 0x5d1   : > { %v11098_v8 = vadd.f32 %v11066_v12, %v11034_v45  ;;  %v10737_v12 = vadd.f32 %v10736_v16, %v16562_v53  ;;  %v10738_v45 = vpop.f32.mrf.mxu2  ;;  %v10827_v58 = vpop.f32.mrf.mxu3 }
 0x5d2   : > { %v10739_v57 = vadd.f32 %v10738_v45, %v16568_v22 }
 0x5d3   : > { %11130 = vst [vmem:[%s16592_s11 + $0xa8] sm:$0xff] %v11098_v8  ;;  %v11072_v8 = vld [vmem:[%s13572_s8 + $0xd8] sm:$0xff] }
 0x5d4   : > { %v10988_v37 = vpop.f32.mrf.mxu1  ;;  %v10828_v5 = vadd.f32 %v10827_v58, %v10739_v57 }
 0x5d5   : > { %v10989_v42 = vadd.f32 %v10988_v37, %v10900_v13  ;;  %v10826_v13 = vadd.f32 %v10825_v54, %v10737_v12 }
 0x5d7   : > { %v11035_v23 = vmax.f32 %v10989_v42, 0.0  ;;  %v10915_v1 = vadd.f32 %v10914_v61, %v10826_v13  ;;  %v10916_v44 = vpop.f32.mrf.mxu0 }
 0x5d8   : > { %v10917_v32 = vadd.f32 %v10916_v44, %v10828_v5 }
 0x5d9   : > { %v11099_v9 = vadd.f32 %v11067_v17, %v11035_v23  ;;  %v11073_v23 = vld [vmem:[%s13572_s8 + $0xe0] sm:$0xff]  ;;  %v10741_v53 = vpop.f32.mrf.mxu2 }
 0x5da   : > { %v10742_v34 = vadd.f32 %v10741_v53, %v16574_v14 }
 0x5db   : > { %11131 = vst [vmem:[%s16592_s11 + $0xb0] sm:$0xff] %v11099_v9 }
 0x5dc   : > { %v10990_v49 = vpop.f32.mrf.mxu1 }
 0x5dd   : > { %v10991_v46 = vadd.f32 %v10990_v49, %v10902_v50  ;;  %v10830_v49 = vpop.f32.mrf.mxu3 }
 0x5de   : > { %v10831_v31 = vadd.f32 %v10830_v49, %v10742_v34 }
 0x5df   : > { %v11036_v18 = vmax.f32 %v10991_v46, 0.0  ;;  %v10919_v27 = vpop.f32.mrf.mxu0 }
 0x5e1   : > { %v11100_v38 = vadd.f32 %v11068_v19, %v11036_v18  ;;  %v11074_v18 = vld [vmem:[%s13572_s8 + $0xe8] sm:$0xff]  ;;  %v10743_v41 = vpop.f32.mrf.mxu2 }
 0x5e3   : > { %11132 = vst [vmem:[%s16592_s11 + $0xb8] sm:$0xff] %v11100_v38 }
 0x5e4   : > { %v10993_v39 = vpop.f32.mrf.mxu1 }
 0x5e5   : > { %v10994_v59 = vadd.f32 %v10993_v39, %v10905_v63  ;;  %v10920_v63 = vadd.f32 %v10919_v27, %v10831_v31  ;;  %v10832_v39 = vpop.f32.mrf.mxu3 }
 0x5e7   : > { %v11037_v40 = vmax.f32 %v10994_v59, 0.0  ;;  %v10744_v59 = vadd.f32 %v10743_v41, %v16580_v55  ;;  %v10921_v48 = vpop.f32.mrf.mxu0 }
 0x5e9   : > { %v11101_v47 = vadd.f32 %v11069_v30, %v11037_v40  ;;  %v10833_v40 = vadd.f32 %v10832_v39, %v10744_v59 }
 0x5eb   : > { %11133 = vst [vmem:[%s16592_s11 + $0xc0] sm:$0xff] %v11101_v47  ;;  %v10922_v52 = vadd.f32 %v10921_v48, %v10833_v40 }
 0x5ec   : > { %v10995_v4 = vpop.f32.mrf.mxu1 }
 0x5ed   : > { %v10996_v3 = vadd.f32 %v10995_v4, %v10907_v24  ;;  %v11076_v4 = vld [vmem:[%s13572_s8 + $0xf8] sm:$0xff] }
 0x5ef   : > { %v11038_v33 = vmax.f32 %v10996_v3, 0.0 }
 0x5f1   : > { %v11102_v0 = vadd.f32 %v11070_v62, %v11038_v33 }
 0x5f3   : > { %11134 = vst [vmem:[%s16592_s11 + $0xc8] sm:$0xff] %v11102_v0 }
 0x5f4   : > { %v10998_v56 = vpop.f32.mrf.mxu1 }
 0x5f5   : > { %v10999_v35 = vadd.f32 %v10998_v56, %v10910_v26 }
 0x5f7   : > { %v11039_v20 = vmax.f32 %v10999_v35, 0.0 }
 0x5f9   : > { %v11103_v2 = vadd.f32 %v11071_v51, %v11039_v20 }
 0x5fb   : > { %11135 = vst [vmem:[%s16592_s11 + $0xd0] sm:$0xff] %v11103_v2 }
 0x5fc   : > { %v11000_v25 = vpop.f32.mrf.mxu1 }
 0x5fd   : > { %v11001_v29 = vadd.f32 %v11000_v25, %v10912_v11 }
 0x5ff   : > { %v11040_v7 = vmax.f32 %v11001_v29, 0.0 }
 0x601   : > { %v11104_v37 = vadd.f32 %v11072_v8, %v11040_v7 }
 0x603   : > { %11136 = vst [vmem:[%s16592_s11 + $0xd8] sm:$0xff] %v11104_v37 }
 0x604   : > { %v11003_v42 = vpop.f32.mrf.mxu1 }
 0x605   : > { %v11004_v17 = vadd.f32 %v11003_v42, %v10915_v1 }
 0x607   : > { %v11041_v9 = vmax.f32 %v11004_v17, 0.0 }
 0x609   : > { %v11105_v50 = vadd.f32 %v11073_v23, %v11041_v9 }
 0x60b   : > { %11137 = vst [vmem:[%s16592_s11 + $0xe0] sm:$0xff] %v11105_v50 }
 0x60c   : > { %v11005_v46 = vpop.f32.mrf.mxu1 }
 0x60d   : > { %v11006_v19 = vadd.f32 %v11005_v46, %v10917_v32 }
 0x60f   : > { %v11042_v22 = vmax.f32 %v11006_v19, 0.0 }
 0x611   : > { %v11106_v38 = vadd.f32 %v11074_v18, %v11042_v22 }
 0x613   : > { %11138 = vst [vmem:[%s16592_s11 + $0xe8] sm:$0xff] %v11106_v38 }
 0x614   : > { %v11008_v28 = vpop.f32.mrf.mxu1 }
 0x615   : > { %v11009_v30 = vadd.f32 %v11008_v28, %v10920_v63 }
 0x617   : > { %v11043_v14 = vmax.f32 %v11009_v30, 0.0 }
 0x619   : > { %v11107_v47 = vadd.f32 %v11075_v60, %v11043_v14 }
 0x61b   : > { %11139 = vst [vmem:[%s16592_s11 + $0xf0] sm:$0xff] %v11107_v47 }
 0x61c   : > { %v11010_v24 = vpop.f32.mrf.mxu1 }
 0x61d   : > { %v11011_v15 = vadd.f32 %v11010_v24, %v10922_v52 }
 0x61f   : > { %v11044_v21 = vmax.f32 %v11011_v15, 0.0 }
 0x621   : > { %v11108_v3 = vadd.f32 %v11076_v4, %v11044_v21 }
 0x623   : > { %11140 = vst [vmem:[%s16592_s11 + $0xf8] sm:$0xff] %v11108_v3 }
 0x624 PF: > { %s15_s18 = sadd.s32 1, %s13504_s18  }
 0x625   : > { %p12_p4 = scmp.ge.s32.totalorder %s15_s18, 4  }
 0x627   :  { %14 = sbr.rel (!%p12_p4) target bundleno = 1 (0x1), region = 76 }

</bundles_post_ra>
